<compile_context>
chip_gen: v5e
topology: v5e:2x2
jax: 0.10.0
libtpu: 0.0.40
codegen_flags: <defaults>
</compile_context>

<pallas_src>
import math

import numpy as np

import jax
import jax.numpy as jnp
from jax.experimental import pallas as pl
from jax.experimental.pallas import tpu as pltpu


# ---------------------------------------------------------------------------
# Helpers (wrapper-side layout / weight preprocessing)
# ---------------------------------------------------------------------------
def _pixel_shuffle_nhwc(y, r):
    """NHWC pixel shuffle; channel index c*r^2 + i*r + j (PyTorch convention)."""
    B, H, W, Cr2 = y.shape
    C = Cr2 // (r * r)
    y = y.reshape(B, H, W, C, r, r)
    y = jnp.transpose(y, (0, 1, 4, 2, 5, 3))          # (B, H, r, W, r, C)
    return y.reshape(B, H * r, W * r, C)


def _pick_batch_block(B, cap=8):
    """Largest divisor of B (<= cap) that still leaves >= 2 grid steps."""
    divisors = [d for d in range(1, min(B, cap) + 1) if B % d == 0]
    multi_step = [d for d in divisors if B // d >= 2]
    return max(multi_step) if multi_step else max(divisors)


def _subpixel_conv2_weight(w2_hwio, r, K):
    """Re-express conv_2 (fine grid, 'same' zero pad) as a coarse-grid conv acting on the
    pre-pixel-shuffle tensor (channel index c*r^2 + pi*r + pj).  Returns (Kc, weight matrix
    of shape (Kc*Kc*Cout*r^2, Cout*r^2))."""
    p = K // 2
    dlo = -((p + r - 1) // r)
    dhi = (r - 1 + p) // r
    Kc = dhi - dlo + 1
    Cout = w2_hwio.shape[3]
    Cr2 = Cout * r * r

    sel = np.zeros((Kc, Kc, r, r, r, r, K, K), np.float32)
    for a, dh in enumerate(range(dlo, dhi + 1)):
        for b, dw in enumerate(range(dlo, dhi + 1)):
            for pi in range(r):
                for pj in range(r):
                    for i in range(r):
                        for j in range(r):
                            kh = dh * r + pi - i + p
                            kw = dw * r + pj - j + p
                            if 0 <= kh < K and 0 <= kw < K:
                                sel[a, b, pi, pj, i, j, kh, kw] = 1.0
    # rows: input channel ci*r^2 + pi*r + pj ; cols: output channel co*r^2 + i*r + j
    w_eff = jnp.einsum("abpqijhw,hwco->abcpqoij", sel, w2_hwio.astype(jnp.float32))
    return Kc, w_eff.reshape(Kc * Kc * Cr2, Cr2)


# ---------------------------------------------------------------------------
# Fused forward
# ---------------------------------------------------------------------------
def upscale_conv_block_forward(x_nchw, params, *, upscale_factor=2, Ch=0, Cw=0):
    """Pallas forward of Upscale_Conv_block (activation=relu, padding='same',
    padding_mode='zeros').  Weights are HWIO (K, K, Cin, Cout); a PyTorch Conv2d
    weight of shape (O, I, K, K) maps via w.transpose(2, 3, 1, 0)."""
    ws, bs = params["w_short"], params["b_short"]
    wm, bm = params["w_main"], params["b_main"]
    w2, b2 = params["w_conv"], params["b_conv"]

    r = int(upscale_factor)
    K = ws.shape[0]
    assert K % 2 == 1, "padding='same' path assumes an odd kernel_size"
    p = K // 2

    B, Cin, H, W = x_nchw.shape
    Cr2 = ws.shape[3]
    Cout = Cr2 // (r * r)
    HW = H * W
    KKC = K * K * Cin

    # ---- wrapper-side prep: im2col LHS (bf16), matrix weights, sub-pixel conv_2 ----
    x = jnp.transpose(x_nchw, (0, 2, 3, 1)).astype(jnp.bfloat16)      # NHWC, bf16
    xp = jnp.pad(x, ((0, 0), (p, p), (p, p), (0, 0)))                 # zero 'same' pad
    taps = [xp[:, kh:kh + H, kw:kw + W, :] for kh in range(K) for kw in range(K)]
    lhs1 = jnp.concatenate(taps, axis=-1).reshape(B, HW, KKC)         # (B, HW, K^2*Cin)

    ws_m = ws.reshape(KKC, Cr2).astype(jnp.bfloat16)
    wm_m = wm.reshape(KKC, Cr2).astype(jnp.bfloat16)
    bs_m = bs.reshape(1, Cr2).astype(jnp.float32)
    bm_m = bm.reshape(1, Cr2).astype(jnp.float32)

    Kc, w2_eff = _subpixel_conv2_weight(w2, r, K)
    w2_eff = w2_eff.astype(jnp.bfloat16)                               # (Kc^2*Cr2, Cr2)
    b2_eff = jnp.repeat(b2.astype(jnp.float32), r * r).reshape(1, Cr2)
    cp = (p + r - 1) // r                                              # coarse low-side pad
    Hp, Wp = H + Kc - 1, W + Kc - 1

    bb = _pick_batch_block(B)
    G = B // bb

    # ---- kernel: both stage-1 convs + sub-pixel conv_2 + shortcut add, fused --------
    def kernel(lhs_ref, ws_ref, bs_ref, wm_ref, bm_ref, w2_ref, b2_ref,
               out_ref, pad_ref, l2_ref):
        # Re-zero the padded coarse buffer each step: cheap, and keeps the kernel correct
        # when the batch grid is sharded across TensorCores ("parallel").
        pad_ref[...] = jnp.zeros_like(pad_ref)
        for e in range(bb):                                   # static, small
            patches = lhs_ref[e]                              # (HW, K^2*Cin) bf16
            # stage 1: shortcut conv(X) and main conv(relu(X)) share one im2col LHS
            y_s = jnp.dot(patches, ws_ref[...],
                          preferred_element_type=jnp.float32) + bs_ref[...]
            y_m = jnp.dot(jnp.maximum(patches, 0.0), wm_ref[...],
                          preferred_element_type=jnp.float32) + bm_ref[...]
            out_ref[e] = y_s                                  # stash shortcut (added below)
            a_m = jnp.maximum(y_m, 0.0).astype(jnp.bfloat16)  # relu before conv_2
            pad_ref[e, cp:cp + H, cp:cp + W, :] = a_m.reshape(H, W, Cr2)
            # stage 2: sub-pixel-decomposed conv_2 -> assemble coarse im2col LHS in VMEM
            t = 0
            for kh in range(Kc):
                for kw in range(Kc):
                    l2_ref[:, t * Cr2:(t + 1) * Cr2] = (
                        pad_ref[e, kh:kh + H, kw:kw + W, :].reshape(HW, Cr2))
                    t += 1
            o2 = jnp.dot(l2_ref[...], w2_ref[...],
                         preferred_element_type=jnp.float32) + b2_ref[...]
            out_ref[e] = out_ref[e] + o2                      # + shortcut, pre-shuffle layout

    def resident(shape):          # weights / biases: same block every grid step
        return pl.BlockSpec(shape, lambda g: (0,) * len(shape))

    out_pre = pl.pallas_call(
        kernel,
        out_shape=jax.ShapeDtypeStruct((B, HW, Cr2), jnp.float32),
        grid=(G,),
        in_specs=[pl.BlockSpec((bb, HW, KKC), lambda g: (g, 0, 0)),
                  resident(ws_m.shape), resident(bs_m.shape),
                  resident(wm_m.shape), resident(bm_m.shape),
                  resident(w2_eff.shape), resident(b2_eff.shape)],
        out_specs=pl.BlockSpec((bb, HW, Cr2), lambda g: (g, 0, 0)),
        scratch_shapes=[pltpu.VMEM((bb, Hp, Wp, Cr2), jnp.bfloat16),        # padded coarse grid
                        pltpu.VMEM((HW, Kc * Kc * Cr2), jnp.bfloat16)],     # stage-2 im2col LHS
        compiler_params=pltpu.CompilerParams(
            dimension_semantics=("parallel",),
            vmem_limit_bytes=32 * 1024 * 1024),
    )(lhs1, ws_m, bs_m, wm_m, bm_m, w2_eff, b2_eff)

    # final pixel shuffle + NCHW transpose + crop: pure layout glue on the output only
    out = _pixel_shuffle_nhwc(out_pre.reshape(B, H, W, Cr2), r)
    out = jnp.transpose(out, (0, 3, 1, 2))
    # 'same' padding -> both branches share spatial dims; the module's crop-then-add branch
    # reduces to the in-kernel add, leaving only the final [Ch:, Cw:] crop.
    return out[:, :, Ch:, Cw:]


# ---------------------------------------------------------------------------
# Pure-JAX reference (lax.conv) with matching bf16 operand quantization
# ---------------------------------------------------------------------------
def _conv2d_same_ref(x_nhwc, w_hwio, b):
    out = jax.lax.conv_general_dilated(
        x_nhwc, w_hwio, window_strides=(1, 1), padding="SAME",
        dimension_numbers=("NHWC", "HWIO", "NHWC"),
        preferred_element_type=jnp.float32)
    return out + b.reshape(1, 1, 1, -1).astype(jnp.float32)


def _reference_forward(x_nchw, params, r):
    bf = jnp.bfloat16
    x = jnp.transpose(x_nchw, (0, 2, 3, 1)).astype(bf)
    xs = _conv2d_same_ref(x, params["w_short"].astype(bf), params["b_short"])
    xs = _pixel_shuffle_nhwc(xs, r)
    xm = _conv2d_same_ref(jnp.maximum(x, 0), params["w_main"].astype(bf), params["b_main"])
    xm = _pixel_shuffle_nhwc(xm, r)
    xm = jnp.maximum(xm, 0.0).astype(bf)
    xm = _conv2d_same_ref(xm, params["w_conv"].astype(bf), params["b_conv"])
    out = xm + xs
    return jnp.transpose(out, (0, 3, 1, 2))


# ---------------------------------------------------------------------------
if __name__ == "__main__":
    key = jax.random.PRNGKey(0)
    ks = jax.random.split(key, 7)

    # Small shapes; Cout*r^2 = 128 so every in-kernel matmul / store is 128-lane dense.
    B, Cin, H, W = 2, 8, 16, 16
    Cout, K, r = 32, 3, 2
    Cr2 = Cout * r * r

    def uinit(k, shape, fan_in):
        bound = 1.0 / math.sqrt(fan_in)
        return jax.random.uniform(k, shape, jnp.float32, -bound, bound)

    x = jax.random.normal(ks[0], (B, Cin, H, W), dtype=jnp.float32)
    fan1 = Cin * K * K
    fan2 = Cout * K * K
    params = dict(
        w_short=uinit(ks[1], (K, K, Cin, Cr2), fan1),
        b_short=uinit(ks[2], (Cr2,), fan1),
        w_main=uinit(ks[3], (K, K, Cin, Cr2), fan1),
        b_main=uinit(ks[4], (Cr2,), fan1),
        w_conv=uinit(ks[5], (K, K, Cout, Cout), fan2),
        b_conv=uinit(ks[6], (Cout,), fan2),
    )

    fwd = jax.jit(lambda xx, pp: upscale_conv_block_forward(xx, pp, upscale_factor=r))
    out = jax.block_until_ready(fwd(x, params))

    ref = _reference_forward(x, params, r)
    assert out.shape == (B, Cout, H * r, W * r), out.shape
    assert jnp.allclose(out, ref, atol=5e-3, rtol=5e-3), \
        float(jnp.max(jnp.abs(out - ref)))

    print("KERNEL_OK")
</pallas_src>

<mosaic_0001>
module attributes {stable_mosaic.version = 11 : i64} {
  func.func @kernel(%arg0: i32, %arg1: memref<1x256x72xbf16, #tpu.memory_space<vmem>>, %arg2: memref<72x128xbf16, #tpu.memory_space<vmem>>, %arg3: memref<1x128xf32, #tpu.memory_space<vmem>>, %arg4: memref<72x128xbf16, #tpu.memory_space<vmem>>, %arg5: memref<1x128xf32, #tpu.memory_space<vmem>>, %arg6: memref<1152x128xbf16, #tpu.memory_space<vmem>>, %arg7: memref<1x128xf32, #tpu.memory_space<vmem>>, %arg8: memref<1x256x128xf32, #tpu.memory_space<vmem>>, %arg9: memref<1x18x18x128xbf16, #tpu.memory_space<vmem>>, %arg10: memref<256x1152xbf16, #tpu.memory_space<vmem>>) attributes {dimension_semantics = [#tpu.dimension_semantics<parallel>], iteration_bounds = array<i64: 2>, scalar_prefetch = 0 : i64, scratch_operands = 2 : i64, tpu.core_type = #tpu.core_type<tc>, window_params = [{transform_indices = @transform_0, window_bounds = array<i64: 1, 256, 72>}, {pipeline_mode = #tpu.pipeline_mode<synchronous>, transform_indices = @transform_1, window_bounds = array<i64: 72, 128>}, {pipeline_mode = #tpu.pipeline_mode<synchronous>, transform_indices = @transform_2, window_bounds = array<i64: 1, 128>}, {pipeline_mode = #tpu.pipeline_mode<synchronous>, transform_indices = @transform_3, window_bounds = array<i64: 72, 128>}, {pipeline_mode = #tpu.pipeline_mode<synchronous>, transform_indices = @transform_4, window_bounds = array<i64: 1, 128>}, {pipeline_mode = #tpu.pipeline_mode<synchronous>, transform_indices = @transform_5, window_bounds = array<i64: 1152, 128>}, {pipeline_mode = #tpu.pipeline_mode<synchronous>, transform_indices = @transform_6, window_bounds = array<i64: 1, 128>}, {transform_indices = @transform_7, window_bounds = array<i64: 1, 256, 128>}]} {
    %cst = arith.constant 0.000000e+00 : bf16
    %0 = vector.broadcast %cst : bf16 to vector<1x18x18x128xbf16>
    %c0 = arith.constant 0 : index
    %c0_0 = arith.constant 0 : index
    %c0_1 = arith.constant 0 : index
    %c0_2 = arith.constant 0 : index
    %1 = vector.load %arg9[%c0, %c0_0, %c0_1, %c0_2] : memref<1x18x18x128xbf16, #tpu.memory_space<vmem>>, vector<1x18x18x128xbf16>
    tpu.vector_store %arg9[%c0, %c0_0, %c0_1, %c0_2], %0 {strides = array<i32>} : memref<1x18x18x128xbf16, #tpu.memory_space<vmem>>, vector<1x18x18x128xbf16>,
    %c0_3 = arith.constant 0 : index
    %c0_4 = arith.constant 0 : index
    %c0_5 = arith.constant 0 : index
    %2 = vector.load %arg1[%c0_3, %c0_4, %c0_5] : memref<1x256x72xbf16, #tpu.memory_space<vmem>>, vector<1x256x72xbf16>
    %3 = vector.shape_cast %2 : vector<1x256x72xbf16> to vector<256x72xbf16>
    %c0_6 = arith.constant 0 : index
    %c0_7 = arith.constant 0 : index
    %4 = vector.load %arg2[%c0_6, %c0_7] : memref<72x128xbf16, #tpu.memory_space<vmem>>, vector<72x128xbf16>
    %cst_8 = arith.constant dense<0.000000e+00> : vector<256x128xf32>
    %5 = tpu.matmul %3, %4, %cst_8 {dimension_numbers = #tpu.dot_dimension_numbers<[1], [0], [0], [1], [0, 0, 1, 1], [], []>} : vector<256x72xbf16>, vector<72x128xbf16>, vector<256x128xf32> -> vector<256x128xf32>
    %c0_9 = arith.constant 0 : index
    %c0_10 = arith.constant 0 : index
    %6 = vector.load %arg3[%c0_9, %c0_10] : memref<1x128xf32, #tpu.memory_space<vmem>>, vector<1x128xf32>
    %7 = vector.broadcast %6 : vector<1x128xf32> to vector<256x128xf32>
    %8 = arith.addf %5, %7 : vector<256x128xf32>
    %cst_11 = arith.constant 0.000000e+00 : bf16
    %9 = vector.broadcast %cst_11 : bf16 to vector<256x72xbf16>
    %10 = arith.maximumf %3, %9 : vector<256x72xbf16>
    %c0_12 = arith.constant 0 : index
    %c0_13 = arith.constant 0 : index
    %11 = vector.load %arg4[%c0_12, %c0_13] : memref<72x128xbf16, #tpu.memory_space<vmem>>, vector<72x128xbf16>
    %cst_14 = arith.constant dense<0.000000e+00> : vector<256x128xf32>
    %12 = tpu.matmul %10, %11, %cst_14 {dimension_numbers = #tpu.dot_dimension_numbers<[1], [0], [0], [1], [0, 0, 1, 1], [], []>} : vector<256x72xbf16>, vector<72x128xbf16>, vector<256x128xf32> -> vector<256x128xf32>
    %c0_15 = arith.constant 0 : index
    %c0_16 = arith.constant 0 : index
    %13 = vector.load %arg5[%c0_15, %c0_16] : memref<1x128xf32, #tpu.memory_space<vmem>>, vector<1x128xf32>
    %14 = vector.broadcast %13 : vector<1x128xf32> to vector<256x128xf32>
    %15 = arith.addf %12, %14 : vector<256x128xf32>
    %c0_17 = arith.constant 0 : index
    %c0_18 = arith.constant 0 : index
    %c0_19 = arith.constant 0 : index
    %16 = vector.load %arg8[%c0_17, %c0_18, %c0_19] : memref<1x256x128xf32, #tpu.memory_space<vmem>>, vector<1x256x128xf32>
    %17 = vector.shape_cast %16 : vector<1x256x128xf32> to vector<256x128xf32>
    %18 = vector.shape_cast %8 : vector<256x128xf32> to vector<1x256x128xf32>
    tpu.vector_store %arg8[%c0_17, %c0_18, %c0_19], %18 {strides = array<i32>} : memref<1x256x128xf32, #tpu.memory_space<vmem>>, vector<1x256x128xf32>,
    %cst_20 = arith.constant 0.000000e+00 : f32
    %19 = vector.broadcast %cst_20 : f32 to vector<256x128xf32>
    %20 = arith.maximumf %15, %19 : vector<256x128xf32>
    %21 = arith.truncf %20 : vector<256x128xf32> to vector<256x128xbf16>
    %22 = vector.shape_cast %21 : vector<256x128xbf16> to vector<16x16x128xbf16>
    %c0_21 = arith.constant 0 : index
    %c1 = arith.constant 1 : index
    %c1_22 = arith.constant 1 : index
    %c0_23 = arith.constant 0 : index
    %23 = vector.load %arg9[%c0_21, %c1, %c1_22, %c0_23] : memref<1x18x18x128xbf16, #tpu.memory_space<vmem>>, vector<1x16x16x128xbf16>
    %24 = vector.shape_cast %23 : vector<1x16x16x128xbf16> to vector<16x16x128xbf16>
    %25 = vector.shape_cast %22 : vector<16x16x128xbf16> to vector<1x16x16x128xbf16>
    tpu.vector_store %arg9[%c0_21, %c1, %c1_22, %c0_23], %25 {strides = array<i32>} : memref<1x18x18x128xbf16, #tpu.memory_space<vmem>>, vector<1x16x16x128xbf16>,
    %c0_24 = arith.constant 0 : index
    %c0_25 = arith.constant 0 : index
    %c0_26 = arith.constant 0 : index
    %c0_27 = arith.constant 0 : index
    %26 = vector.load %arg9[%c0_24, %c0_25, %c0_26, %c0_27] : memref<1x18x18x128xbf16, #tpu.memory_space<vmem>>, vector<1x16x16x128xbf16>
    %27 = vector.shape_cast %26 : vector<1x16x16x128xbf16> to vector<16x16x128xbf16>
    %28 = vector.shape_cast %27 : vector<16x16x128xbf16> to vector<256x128xbf16>
    %c0_28 = arith.constant 0 : index
    %c0_29 = arith.constant 0 : index
    %29 = vector.load %arg10[%c0_28, %c0_29] : memref<256x1152xbf16, #tpu.memory_space<vmem>>, vector<256x128xbf16>
    tpu.vector_store %arg10[%c0_28, %c0_29], %28 {strides = array<i32>} : memref<256x1152xbf16, #tpu.memory_space<vmem>>, vector<256x128xbf16>,
    %c0_30 = arith.constant 0 : index
    %c0_31 = arith.constant 0 : index
    %c1_32 = arith.constant 1 : index
    %c0_33 = arith.constant 0 : index
    %30 = vector.load %arg9[%c0_30, %c0_31, %c1_32, %c0_33] : memref<1x18x18x128xbf16, #tpu.memory_space<vmem>>, vector<1x16x16x128xbf16>
    %31 = vector.shape_cast %30 : vector<1x16x16x128xbf16> to vector<16x16x128xbf16>
    %32 = vector.shape_cast %31 : vector<16x16x128xbf16> to vector<256x128xbf16>
    %c0_34 = arith.constant 0 : index
    %c128 = arith.constant 128 : index
    %33 = vector.load %arg10[%c0_34, %c128] : memref<256x1152xbf16, #tpu.memory_space<vmem>>, vector<256x128xbf16>
    tpu.vector_store %arg10[%c0_34, %c128], %32 {strides = array<i32>} : memref<256x1152xbf16, #tpu.memory_space<vmem>>, vector<256x128xbf16>,
    %c0_35 = arith.constant 0 : index
    %c0_36 = arith.constant 0 : index
    %c2 = arith.constant 2 : index
    %c0_37 = arith.constant 0 : index
    %34 = vector.load %arg9[%c0_35, %c0_36, %c2, %c0_37] : memref<1x18x18x128xbf16, #tpu.memory_space<vmem>>, vector<1x16x16x128xbf16>
    %35 = vector.shape_cast %34 : vector<1x16x16x128xbf16> to vector<16x16x128xbf16>
    %36 = vector.shape_cast %35 : vector<16x16x128xbf16> to vector<256x128xbf16>
    %c0_38 = arith.constant 0 : index
    %c256 = arith.constant 256 : index
    %37 = vector.load %arg10[%c0_38, %c256] : memref<256x1152xbf16, #tpu.memory_space<vmem>>, vector<256x128xbf16>
    tpu.vector_store %arg10[%c0_38, %c256], %36 {strides = array<i32>} : memref<256x1152xbf16, #tpu.memory_space<vmem>>, vector<256x128xbf16>,
    %c0_39 = arith.constant 0 : index
    %c1_40 = arith.constant 1 : index
    %c0_41 = arith.constant 0 : index
    %c0_42 = arith.constant 0 : index
    %38 = vector.load %arg9[%c0_39, %c1_40, %c0_41, %c0_42] : memref<1x18x18x128xbf16, #tpu.memory_space<vmem>>, vector<1x16x16x128xbf16>
    %39 = vector.shape_cast %38 : vector<1x16x16x128xbf16> to vector<16x16x128xbf16>
    %40 = vector.shape_cast %39 : vector<16x16x128xbf16> to vector<256x128xbf16>
    %c0_43 = arith.constant 0 : index
    %c384 = arith.constant 384 : index
    %41 = vector.load %arg10[%c0_43, %c384] : memref<256x1152xbf16, #tpu.memory_space<vmem>>, vector<256x128xbf16>
    tpu.vector_store %arg10[%c0_43, %c384], %40 {strides = array<i32>} : memref<256x1152xbf16, #tpu.memory_space<vmem>>, vector<256x128xbf16>,
    %c0_44 = arith.constant 0 : index
    %c1_45 = arith.constant 1 : index
    %c1_46 = arith.constant 1 : index
    %c0_47 = arith.constant 0 : index
    %42 = vector.load %arg9[%c0_44, %c1_45, %c1_46, %c0_47] : memref<1x18x18x128xbf16, #tpu.memory_space<vmem>>, vector<1x16x16x128xbf16>
    %43 = vector.shape_cast %42 : vector<1x16x16x128xbf16> to vector<16x16x128xbf16>
    %44 = vector.shape_cast %43 : vector<16x16x128xbf16> to vector<256x128xbf16>
    %c0_48 = arith.constant 0 : index
    %c512 = arith.constant 512 : index
    %45 = vector.load %arg10[%c0_48, %c512] : memref<256x1152xbf16, #tpu.memory_space<vmem>>, vector<256x128xbf16>
    tpu.vector_store %arg10[%c0_48, %c512], %44 {strides = array<i32>} : memref<256x1152xbf16, #tpu.memory_space<vmem>>, vector<256x128xbf16>,
    %c0_49 = arith.constant 0 : index
    %c1_50 = arith.constant 1 : index
    %c2_51 = arith.constant 2 : index
    %c0_52 = arith.constant 0 : index
    %46 = vector.load %arg9[%c0_49, %c1_50, %c2_51, %c0_52] : memref<1x18x18x128xbf16, #tpu.memory_space<vmem>>, vector<1x16x16x128xbf16>
    %47 = vector.shape_cast %46 : vector<1x16x16x128xbf16> to vector<16x16x128xbf16>
    %48 = vector.shape_cast %47 : vector<16x16x128xbf16> to vector<256x128xbf16>
    %c0_53 = arith.constant 0 : index
    %c640 = arith.constant 640 : index
    %49 = vector.load %arg10[%c0_53, %c640] : memref<256x1152xbf16, #tpu.memory_space<vmem>>, vector<256x128xbf16>
    tpu.vector_store %arg10[%c0_53, %c640], %48 {strides = array<i32>} : memref<256x1152xbf16, #tpu.memory_space<vmem>>, vector<256x128xbf16>,
    %c0_54 = arith.constant 0 : index
    %c2_55 = arith.constant 2 : index
    %c0_56 = arith.constant 0 : index
    %c0_57 = arith.constant 0 : index
    %50 = vector.load %arg9[%c0_54, %c2_55, %c0_56, %c0_57] : memref<1x18x18x128xbf16, #tpu.memory_space<vmem>>, vector<1x16x16x128xbf16>
    %51 = vector.shape_cast %50 : vector<1x16x16x128xbf16> to vector<16x16x128xbf16>
    %52 = vector.shape_cast %51 : vector<16x16x128xbf16> to vector<256x128xbf16>
    %c0_58 = arith.constant 0 : index
    %c768 = arith.constant 768 : index
    %53 = vector.load %arg10[%c0_58, %c768] : memref<256x1152xbf16, #tpu.memory_space<vmem>>, vector<256x128xbf16>
    tpu.vector_store %arg10[%c0_58, %c768], %52 {strides = array<i32>} : memref<256x1152xbf16, #tpu.memory_space<vmem>>, vector<256x128xbf16>,
    %c0_59 = arith.constant 0 : index
    %c2_60 = arith.constant 2 : index
    %c1_61 = arith.constant 1 : index
    %c0_62 = arith.constant 0 : index
    %54 = vector.load %arg9[%c0_59, %c2_60, %c1_61, %c0_62] : memref<1x18x18x128xbf16, #tpu.memory_space<vmem>>, vector<1x16x16x128xbf16>
    %55 = vector.shape_cast %54 : vector<1x16x16x128xbf16> to vector<16x16x128xbf16>
    %56 = vector.shape_cast %55 : vector<16x16x128xbf16> to vector<256x128xbf16>
    %c0_63 = arith.constant 0 : index
    %c896 = arith.constant 896 : index
    %57 = vector.load %arg10[%c0_63, %c896] : memref<256x1152xbf16, #tpu.memory_space<vmem>>, vector<256x128xbf16>
    tpu.vector_store %arg10[%c0_63, %c896], %56 {strides = array<i32>} : memref<256x1152xbf16, #tpu.memory_space<vmem>>, vector<256x128xbf16>,
    %c0_64 = arith.constant 0 : index
    %c2_65 = arith.constant 2 : index
    %c2_66 = arith.constant 2 : index
    %c0_67 = arith.constant 0 : index
    %58 = vector.load %arg9[%c0_64, %c2_65, %c2_66, %c0_67] : memref<1x18x18x128xbf16, #tpu.memory_space<vmem>>, vector<1x16x16x128xbf16>
    %59 = vector.shape_cast %58 : vector<1x16x16x128xbf16> to vector<16x16x128xbf16>
    %60 = vector.shape_cast %59 : vector<16x16x128xbf16> to vector<256x128xbf16>
    %c0_68 = arith.constant 0 : index
    %c1024 = arith.constant 1024 : index
    %61 = vector.load %arg10[%c0_68, %c1024] : memref<256x1152xbf16, #tpu.memory_space<vmem>>, vector<256x128xbf16>
    tpu.vector_store %arg10[%c0_68, %c1024], %60 {strides = array<i32>} : memref<256x1152xbf16, #tpu.memory_space<vmem>>, vector<256x128xbf16>,
    %c0_69 = arith.constant 0 : index
    %c0_70 = arith.constant 0 : index
    %62 = vector.load %arg10[%c0_69, %c0_70] : memref<256x1152xbf16, #tpu.memory_space<vmem>>, vector<256x1152xbf16>
    %c0_71 = arith.constant 0 : index
    %c0_72 = arith.constant 0 : index
    %63 = vector.load %arg6[%c0_71, %c0_72] : memref<1152x128xbf16, #tpu.memory_space<vmem>>, vector<1152x128xbf16>
    %cst_73 = arith.constant dense<0.000000e+00> : vector<256x128xf32>
    %64 = tpu.matmul %62, %63, %cst_73 {dimension_numbers = #tpu.dot_dimension_numbers<[1], [0], [0], [1], [0, 0, 1, 1], [], []>} : vector<256x1152xbf16>, vector<1152x128xbf16>, vector<256x128xf32> -> vector<256x128xf32>
    %c0_74 = arith.constant 0 : index
    %c0_75 = arith.constant 0 : index
    %65 = vector.load %arg7[%c0_74, %c0_75] : memref<1x128xf32, #tpu.memory_space<vmem>>, vector<1x128xf32>
    %66 = vector.broadcast %65 : vector<1x128xf32> to vector<256x128xf32>
    %67 = arith.addf %64, %66 : vector<256x128xf32>
    %c0_76 = arith.constant 0 : index
    %c0_77 = arith.constant 0 : index
    %c0_78 = arith.constant 0 : index
    %68 = vector.load %arg8[%c0_76, %c0_77, %c0_78] : memref<1x256x128xf32, #tpu.memory_space<vmem>>, vector<1x256x128xf32>
    %69 = vector.shape_cast %68 : vector<1x256x128xf32> to vector<256x128xf32>
    %70 = arith.addf %69, %67 : vector<256x128xf32>
    %c0_79 = arith.constant 0 : index
    %c0_80 = arith.constant 0 : index
    %c0_81 = arith.constant 0 : index
    %71 = vector.load %arg8[%c0_79, %c0_80, %c0_81] : memref<1x256x128xf32, #tpu.memory_space<vmem>>, vector<1x256x128xf32>
    %72 = vector.shape_cast %71 : vector<1x256x128xf32> to vector<256x128xf32>
    %73 = vector.shape_cast %70 : vector<256x128xf32> to vector<1x256x128xf32>
    tpu.vector_store %arg8[%c0_79, %c0_80, %c0_81], %73 {strides = array<i32>} : memref<1x256x128xf32, #tpu.memory_space<vmem>>, vector<1x256x128xf32>,
    return
  }
  func.func @transform_0(%arg0: i32) -> (i32, i32, i32) {
    %c0_i32 = arith.constant 0 : i32
    %c0_i32_0 = arith.constant 0 : i32
    %c0_i32_1 = arith.constant 0 : i32
    return %arg0, %c0_i32, %c0_i32_0 : i32, i32, i32
  }
  func.func @transform_1(%arg0: i32) -> (i32, i32) {
    %c0_i32 = arith.constant 0 : i32
    %c0_i32_0 = arith.constant 0 : i32
    %c0_i32_1 = arith.constant 0 : i32
    return %c0_i32, %c0_i32_0 : i32, i32
  }
  func.func @transform_2(%arg0: i32) -> (i32, i32) {
    %c0_i32 = arith.constant 0 : i32
    %c0_i32_0 = arith.constant 0 : i32
    %c0_i32_1 = arith.constant 0 : i32
    return %c0_i32, %c0_i32_0 : i32, i32
  }
  func.func @transform_3(%arg0: i32) -> (i32, i32) {
    %c0_i32 = arith.constant 0 : i32
    %c0_i32_0 = arith.constant 0 : i32
    %c0_i32_1 = arith.constant 0 : i32
    return %c0_i32, %c0_i32_0 : i32, i32
  }
  func.func @transform_4(%arg0: i32) -> (i32, i32) {
    %c0_i32 = arith.constant 0 : i32
    %c0_i32_0 = arith.constant 0 : i32
    %c0_i32_1 = arith.constant 0 : i32
    return %c0_i32, %c0_i32_0 : i32, i32
  }
  func.func @transform_5(%arg0: i32) -> (i32, i32) {
    %c0_i32 = arith.constant 0 : i32
    %c0_i32_0 = arith.constant 0 : i32
    %c0_i32_1 = arith.constant 0 : i32
    return %c0_i32, %c0_i32_0 : i32, i32
  }
  func.func @transform_6(%arg0: i32) -> (i32, i32) {
    %c0_i32 = arith.constant 0 : i32
    %c0_i32_0 = arith.constant 0 : i32
    %c0_i32_1 = arith.constant 0 : i32
    return %c0_i32, %c0_i32_0 : i32, i32
  }
  func.func @transform_7(%arg0: i32) -> (i32, i32, i32) {
    %c0_i32 = arith.constant 0 : i32
    %c0_i32_0 = arith.constant 0 : i32
    %c0_i32_1 = arith.constant 0 : i32
    return %arg0, %c0_i32, %c0_i32_0 : i32, i32, i32
  }
}

</mosaic_0001>

<bundles_post_ra>
// kernel: _lambda_.1
= control target key start
LH: loop header
LB: loop body
LE: loop exit
PB: predicated region body
PF: predicated region fallthrough
CT: control target
= control target key end

     0   :  { %s7732_s24 = smov 0   ;;  %s9750_s0 = inlined_call_operand.vmem [shape: bf16[2,256,72], index: 0, kind: input, shape index: {}]   ;;  %s9751_s1 = inlined_call_operand.vmem [shape: bf16[72,128], index: 1, kind: input, shape index: {}]   ;;  %s9752_s2 = inlined_call_operand.vmem [shape: f32[1,128], index: 2, kind: input, shape index: {}]   ;;  %s9753_s3 = inlined_call_operand.vmem [shape: bf16[72,128], index: 3, kind: input, shape index: {}]   ;;  %s9754_s4 = inlined_call_operand.vmem [shape: f32[1,128], index: 4, kind: input, shape index: {}]   ;;  %s9755_s5 = inlined_call_operand.vmem [shape: bf16[1152,128], index: 5, kind: input, shape index: {}]   ;;  %s9756_s6 = inlined_call_operand.vmem [shape: f32[1,128], index: 6, kind: input, shape index: {}]   ;;  %s9757_s7 = inlined_call_operand.vmem [shape: f32[2,256,128], index: 7, kind: output, shape index: {}]  }
   0x1 LB: > { %s6356_s25 = sadd.s32 4294967295, %s7689_s24   ;;  %p6360_p0 = scmp.ge.s32.totalorder %s7689_s24, 1  ;;  %s7689_s24 = sphi %s7732_s24, %s17_s24  }
   0x2   : > { %p237_p1 = scmp.lt.s32.totalorder %s7689_s24, 3 }
   0x4   : > { %p238_p2 = pnand %p6360_p0, %p237_p1 }
   0x6   : > { %241 = sbr.rel (%p238_p2) target bundleno = 1101 (0x44d), region = 48 }
   0xb   : > { %v374_v0 = vld [vmem:[%s9751_s1 + $0x20] sm:$0xf]  ;;  %p269_p3 = scmp.lt.s32.totalorder %s6356_s25, 1  ;;  %vm535_vm0 = vcmask 1043456   ;;  %v7428_v8 = vld [vmem:[%s9751_s1 + $0x18] sm:$0xff]  ;;  %v7427_v10 = vld [vmem:[%s9751_s1 + $0x10] sm:$0xff] }
   0xc   : > { %v476_v1 = vunpack.c.l.b16 %v374_v0  ;;  %v716_v2 = vld [vmem:[%s9753_s3 + $0x20] sm:$0xf]  ;;  %v7432_v9 = vld [vmem:[%s9753_s3 + $0x18] sm:$0xff]  ;;  %v7431_v11 = vld [vmem:[%s9753_s3 + $0x10] sm:$0xff]  ;;  %vm486_vm1 = vcmask 588800   ;;  %vm1315_vm6 = vcmask 1040384  }
   0xd   : > { %v738_v3 = vunpack.c.l.b16 %v716_v2  ;;  %s9983_s25 = smov (!%p269_p3, %s6356_s25), 1  ;;  %v7426_v13 = vld [vmem:[%s9751_s1 + $0x8] sm:$0xff]  ;;  %v7425_v17 = vld [vmem:[%s9751_s1] sm:$0xff]  ;;  %v7584_v58 = vld [vmem:[%s9755_s5 + $0x38] sm:$0xff]  ;;  %vm1309_vm2 = vsmask.f32 7938 }
   0xe   : > { %v481_v4 = vpack.c.b16 %v476_v1, %v476_v1  ;;  %s7407_s30 = sshll.u32 %s9983_s25, 7  ;;  %v7430_v16 = vld [vmem:[%s9753_s3 + $0x8] sm:$0xff]  ;;  %v7429_v20 = vld [vmem:[%s9753_s3] sm:$0xff]  ;;  %5404 = vmatpush.bf16.msra.mxu2 %v7584_v58  ;;  %v7811_v60 = vld [vmem:[%s9755_s5 + $0x30] sm:$0xff]  ;;  %s7408_s27 = sshll.u32 %s9983_s25, 8  ;;  %vm2084_vm9 = vcmask 1042432  }
   0xf   : > { %v743_v5 = vpack.c.b16 %v738_v3, %v738_v3  ;;  %s7760_s14 = scalar_lea.vmem %s9750_s0, %s7407_s30  ;;  %v7818_v3 = vld [vmem:[%s9755_s5 + $0x28] sm:$0xff]  ;;  %s7908_s8 = scalar_lea.vmem %s9757_s7, %s7408_s27  ;;  %vm7929_vm3 = vmand %vm535_vm0, %vm1309_vm2  ;;  %vm984_vm4 = vsmask.f32 256  ;;  %vm985_vm5 = vsmask.f32 4368  ;;  %vm2085_vm10 = vcmask 1046532  }
  0x10   : > { %v537_v6 = vsel %vm535_vm0, %v481_v4, 0  ;;  %v334_v12 = vld [vmem:[%s7760_s14] sm:$0xff]   ;;  %v336_v23 = vld [vmem:[%s7760_s14 + $0x8] sm:$0xff]   ;;  %v338_v30 = vld [vmem:[%s7760_s14 + $0x10] sm:$0xff]   ;;  %v7691_v4 = vmov 0  }
  0x11   : > { %542 = vmatpush.bf16.msra.mxu0 %v537_v6  ;;  %v797_v7 = vsel %vm535_vm0, %v743_v5, 0  ;;  %7649 = vmatpush.bf16.msra.mxu3 %v537_v6  ;;  %v628_v14 = vunpack.c.l.bf16 %v334_v12  ;;  %v629_v15 = vunpack.c.h.bf16 %v334_v12  ;;  %v7409_v21 = vld [vmem:[%s7760_s14] sm:$0xff]  ;;  %v630_v24 = vunpack.c.l.bf16 %v336_v23  ;;  %v7410_v28 = vld [vmem:[%s7760_s14 + $0x8] sm:$0xff]  ;;  %v7411_v35 = vld [vmem:[%s7760_s14 + $0x10] sm:$0xff]  ;;  %283 = vst [vmem:[#allocation2 + $0xc] sm:$0xf] %v7691_v4 }
  0x12   : > { %802 = vmatpush.bf16.msra.mxu1 %v797_v7  ;;  %v631_v25 = vunpack.c.h.bf16 %v336_v23  ;;  %v632_v31 = vunpack.c.l.bf16 %v338_v30  ;;  %v633_v32 = vunpack.c.h.bf16 %v338_v30  ;;  %v340_v37 = vld [vmem:[%s7760_s14 + $0x18] sm:$0xff]   ;;  %v342_v44 = vld [vmem:[%s7760_s14 + $0x20] sm:$0xff]   ;;  %v344_v51 = vld [vmem:[%s7760_s14 + $0x28] sm:$0xff]   ;;  %5405 = vmatpush.bf16.msra.mxu2 %v7811_v60  ;;  %280 = vst [vmem:[#allocation2] sm:$0xf] %v7691_v4 }
  0x13   : > { %v660_v18 = vmax.f32 %v628_v14, 0.0  ;;  %v661_v19 = vmax.f32 %v629_v15, 0.0  ;;  %v662_v26 = vmax.f32 %v630_v24, 0.0  ;;  %v634_v38 = vunpack.c.l.bf16 %v340_v37  ;;  %v7412_v42 = vld [vmem:[%s7760_s14 + $0x18] sm:$0xff]  ;;  %v7413_v49 = vld [vmem:[%s7760_s14 + $0x20] sm:$0xff]  ;;  %v7414_v56 = vld [vmem:[%s7760_s14 + $0x28] sm:$0xff] }
  0x14   : > { %v663_v27 = vmax.f32 %v631_v25, 0.0  ;;  %v664_v33 = vmax.f32 %v632_v31, 0.0  ;;  %v665_v34 = vmax.f32 %v633_v32, 0.0  ;;  %v635_v39 = vunpack.c.h.bf16 %v340_v37  ;;  %v346_v59 = vld [vmem:[%s7760_s14 + $0x30] sm:$0xff]   ;;  %v7827_v5 = vld [vmem:[%s9755_s5 + $0x20] sm:$0xff]  ;;  %v348_v6 = vld [vmem:[%s7760_s14 + $0x38] sm:$0xff]  }
  0x15   : > { %543 = vmatpush.bf16.msra.mxu0 %v7428_v8  ;;  %7650 = vmatpush.bf16.msra.mxu3 %v7428_v8  ;;  %v692_v22 = vpack.c.bf16 %v661_v19, %v660_v18  ;;  %v666_v40 = vmax.f32 %v634_v38, 0.0  ;;  %v636_v45 = vunpack.c.l.bf16 %v342_v44  ;;  %v637_v46 = vunpack.c.h.bf16 %v342_v44  ;;  %v7415_v1 = vld [vmem:[%s7760_s14 + $0x30] sm:$0xff]  ;;  %281 = vst [vmem:[#allocation2 + $0x4] sm:$0xf] %v7691_v4  ;;  %v7846_v12 = vld [vmem:[%s9755_s5 + $0x18] sm:$0xff]  ;;  %v350_v15 = vld [vmem:[%s7760_s14 + $0x40] sm:$0xff]  }
  0x16   : > { %803 = vmatpush.bf16.msra.mxu1 %v7432_v9  ;;  %v693_v29 = vpack.c.bf16 %v663_v27, %v662_v26  ;;  %v694_v36 = vpack.c.bf16 %v665_v34, %v664_v33  ;;  %v667_v41 = vmax.f32 %v635_v39, 0.0  ;;  %v638_v52 = vunpack.c.l.bf16 %v344_v51  ;;  %5406 = vmatpush.bf16.msra.mxu2 %v7818_v3  ;;  %282 = vst [vmem:[#allocation2 + $0x8] sm:$0x1] %v7691_v4  ;;  %v7857_v14 = vld [vmem:[%s9755_s5 + $0x10] sm:$0xff]  ;;  %v7890_v23 = vld [vmem:[%s9754_s4] ss:$0 sm:$0xff]  ;;  %vm7960_vm7 = vmor %vm984_vm4, %vm985_vm5 }
  0x17   : > { %v668_v47 = vmax.f32 %v636_v45, 0.0  ;;  %v669_v48 = vmax.f32 %v637_v46, 0.0  ;;  %v639_v53 = vunpack.c.h.bf16 %v344_v51  ;;  %v640_v61 = vunpack.c.l.bf16 %v346_v59  ;;  %284 = vst [vmem:[#allocation2 + $0x10] sm:$0xf] %v7691_v4  ;;  %v7897_v24 = vld [vmem:[%s9752_s2] ss:$0 sm:$0xff]  ;;  %vm7967_vm8 = vmand %vm1315_vm6, %vm984_vm4 }
  0x18   : > { %v695_v43 = vpack.c.bf16 %v667_v41, %v666_v40  ;;  %v670_v54 = vmax.f32 %v638_v52, 0.0  ;;  %v641_v62 = vunpack.c.h.bf16 %v346_v59  ;;  %v643_v8 = vunpack.c.h.bf16 %v348_v6  ;;  %285 = vst [vmem:[#allocation2 + $0x14] sm:$0x1] %v7691_v4  ;;  %v7417_v25 = vld [vmem:[%s7760_s14 + $0x40] sm:$0xff]  ;;  %v352_v32 = vld [vmem:[%s7760_s14 + $0x48] sm:$0xff]   ;;  %vm8076_vm11 = vmor %vm2084_vm9, %vm2085_vm10 }
  0x19   : > { %544 = vmatpush.bf16.msra.mxu0 %v7427_v10  ;;  %7651 = vmatpush.bf16.msra.mxu3 %v7427_v10  ;;  %v696_v50 = vpack.c.bf16 %v669_v48, %v668_v47  ;;  %v671_v55 = vmax.f32 %v639_v53, 0.0  ;;  %v672_v63 = vmax.f32 %v640_v61, 0.0  ;;  %286 = vst [vmem:[#allocation2 + $0x18] sm:$0xf] %v7691_v4  ;;  %v644_v18 = vunpack.c.l.bf16 %v350_v15 }
  0x1a   : > { %804 = vmatpush.bf16.msra.mxu1 %v7431_v11  ;;  %v673_v0 = vmax.f32 %v641_v62, 0.0  ;;  %5407 = vmatpush.bf16.msra.mxu2 %v7827_v5  ;;  %287 = vst [vmem:[#allocation2 + $0x1c] sm:$0xf] %v7691_v4  ;;  %v675_v10 = vmax.f32 %v643_v8, 0.0  ;;  %v645_v19 = vunpack.c.h.bf16 %v350_v15  ;;  %v647_v37 = vunpack.c.h.bf16 %v352_v32 }
  0x1b   : > { %v697_v57 = vpack.c.bf16 %v671_v55, %v670_v54  ;;  %288 = vst [vmem:[#allocation2 + $0x20] sm:$0x1] %v7691_v4  ;;  %vm1537_vm12 = vsmask.f32 3328  ;;  %vm1538_vm13 = vsmask.f32 7440 }
  0x1c   : > { %v698_v2 = vpack.c.bf16 %v673_v0, %v672_v63  ;;  %289 = vst [vmem:[#allocation2 + $0x24] sm:$0xf] %v7691_v4  ;;  %v679_v47 = vmax.f32 %v647_v37, 0.0  ;;  %vm8157_vm14 = vmor %vm1537_vm12, %vm1538_vm13 }
  0x1d   : > { %545 = vmatpush.bf16.msra.mxu0 %v7426_v13  ;;  %7652 = vmatpush.bf16.msra.mxu3 %v7426_v13  ;;  %290 = vst [vmem:[#allocation2 + $0x28] sm:$0xf] %v7691_v4 }
  0x1e   : > { %805 = vmatpush.bf16.msra.mxu1 %v7430_v16  ;;  %291 = vst [vmem:[#allocation2 + $0x2c] sm:$0x1] %v7691_v4  ;;  %5408 = vmatpush.bf16.msra.mxu2 %v7846_v12 }
  0x1f   : > { %292 = vst [vmem:[#allocation2 + $0x30] sm:$0xf] %v7691_v4 }
  0x20   : > { %293 = vst [vmem:[#allocation2 + $0x34] sm:$0xf] %v7691_v4 }
  0x21   : > { %546 = vmatpush.bf16.msra.mxu0 %v7425_v17  ;;  %7653 = vmatpush.bf16.msra.mxu3 %v7425_v17  ;;  %294 = vst [vmem:[#allocation2 + $0x38] sm:$0x1] %v7691_v4  ;;  %v7871_v17 = vld [vmem:[%s9755_s5 + $0x8] sm:$0xff] }
  0x22   : > { %806 = vmatpush.bf16.msra.mxu1 %v7429_v20  ;;  %295 = vst [vmem:[#allocation2 + $0x3c] sm:$0xf] %v7691_v4  ;;  %5409 = vmatpush.bf16.msra.mxu2 %v7857_v14 }
  0x23   : > { %296 = vst [vmem:[#allocation2 + $0x40] sm:$0xf] %v7691_v4 }
  0x24   : > { %6445 = vmatmul.msk.bf16.vlgmr.msra.gmra.mxu0 %vm486_vm1, %v7409_v21  ;;  %297 = vst [vmem:[#allocation2 + $0x44] sm:$0x1] %v7691_v4  ;;  %v676_v21 = vmax.f32 %v644_v18, 0.0 }
  0x25   : > { %7654 = vmatpush.bf16.msrb.mxu3 %v797_v7  ;;  %6477 = vmatmul.msk.bf16.vlgmr.msra.gmra.mxu1 %vm486_vm1, %v692_v22  ;;  %v642_v7 = vunpack.c.l.bf16 %v348_v6  ;;  %298 = vst [vmem:[#allocation2 + $0x48] sm:$0xf] %v7691_v4  ;;  %v677_v22 = vmax.f32 %v645_v19, 0.0 }
  0x26   : > { %299 = vst [vmem:[#allocation2 + $0x4c] sm:$0xf] %v7691_v4  ;;  %5410 = vmatpush.bf16.msra.mxu2 %v7871_v17 }
  0x27   : > { %300 = vst [vmem:[#allocation2 + $0x50] sm:$0x1] %v7691_v4  ;;  %v700_v27 = vpack.c.bf16 %v677_v22, %v676_v21 }
  0x28   : > { %301 = vst [vmem:[#allocation2 + $0x54] sm:$0xf] %v7691_v4 }
  0x29   : > { %7655 = vmatpush.bf16.msrb.mxu3 %v7432_v9  ;;  %v674_v9 = vmax.f32 %v642_v7, 0.0  ;;  %302 = vst [vmem:[#allocation2 + $0x58] sm:$0xf] %v7691_v4 }
  0x2a   : > { %303 = vst [vmem:[#allocation2 + $0x5c] sm:$0x1] %v7691_v4 }
  0x2b   : > { %v699_v13 = vpack.c.bf16 %v675_v10, %v674_v9  ;;  %304 = vst [vmem:[#allocation2 + $0x60] sm:$0xf] %v7691_v4 }
  0x2c   : > { %305 = vst [vmem:[#allocation2 + $0x64] sm:$0xf] %v7691_v4 }
  0x2d   : > { %7656 = vmatpush.bf16.msrb.mxu3 %v7431_v11  ;;  %v7416_v11 = vld [vmem:[%s7760_s14 + $0x38] sm:$0xff]  ;;  %306 = vst [vmem:[#allocation2 + $0x68] sm:$0x1] %v7691_v4 }
  0x2e   : > { %307 = vst [vmem:[#allocation2 + $0x6c] sm:$0xf] %v7691_v4 }
  0x2f   : > { %308 = vst [vmem:[#allocation2 + $0x70] sm:$0xf] %v7691_v4 }
  0x30   : > { %309 = vst [vmem:[#allocation2 + $0x74] sm:$0x1] %v7691_v4 }
  0x31   : > { %7657 = vmatpush.bf16.msrb.mxu3 %v7430_v16  ;;  %v7422_v16 = vld [vmem:[%s7760_s14 + $0x68] sm:$0xff]  ;;  %310 = vst [vmem:[#allocation2 + $0x78] sm:$0xf] %v7691_v4 }
  0x32   : > { %6458 = vmatmul.msk.bf16.vlgmr.msra.gmra.mxu3 %vm486_vm1, %v7422_v16  ;;  %311 = vst [vmem:[#allocation2 + $0x7c] sm:$0xf] %v7691_v4 }
  0x33   : > { %312 = vst [vmem:[#allocation2 + $0x80] sm:$0x1] %v7691_v4 }
  0x34   : > { %6446 = vmatmul.msk.bf16.gmra.mxu0 %vm486_vm1, %v7410_v28  ;;  %313 = vst [vmem:[#allocation2 + $0x84] sm:$0xf] %v7691_v4 }
  0x35   : > { %7658 = vmatpush.bf16.msrb.mxu3 %v7429_v20  ;;  %6478 = vmatmul.msk.bf16.gmra.mxu1 %vm486_vm1, %v693_v29  ;;  %v7881_v20 = vld [vmem:[%s9755_s5] sm:$0xff]  ;;  %314 = vst [vmem:[#allocation2 + $0x88] sm:$0xf] %v7691_v4 }
  0x36   : > { %5411 = vmatpush.bf16.msra.mxu2 %v7881_v20  ;;  %315 = vst [vmem:[#allocation2 + $0x8c] sm:$0x1] %v7691_v4 }
  0x37   : > { %316 = vst [vmem:[#allocation2 + $0x90] sm:$0xf] %v7691_v4 }
  0x38   : > { %317 = vst [vmem:[#allocation2 + $0x94] sm:$0xf] %v7691_v4 }
  0x39   : > { %7659 = vmatpush.bf16.msra.mxu3 %v7584_v58  ;;  %318 = vst [vmem:[#allocation2 + $0x98] sm:$0x1] %v7691_v4 }
  0x3a   : > { %319 = vst [vmem:[#allocation2 + $0x9c] sm:$0xf] %v7691_v4 }
  0x3b   : > { %320 = vst [vmem:[#allocation2 + $0xa0] sm:$0xf] %v7691_v4 }
  0x3c   : > { %321 = vst [vmem:[#allocation2 + $0xa4] sm:$0x1] %v7691_v4 }
  0x3d   : > { %7660 = vmatpush.bf16.msra.mxu3 %v7811_v60  ;;  %322 = vst [vmem:[#allocation2 + $0xa8] sm:$0xf] %v7691_v4  ;;  %v354_v60 = vld [vmem:[%s7760_s14 + $0x50] sm:$0xff]  }
  0x3e   : > { %323 = vst [vmem:[#allocation2 + $0xac] sm:$0xf] %v7691_v4  ;;  %v648_v8 = vunpack.c.l.bf16 %v354_v60  ;;  %v649_v9 = vunpack.c.h.bf16 %v354_v60 }
  0x3f   : > { %324 = vst [vmem:[#allocation2 + $0xb0] sm:$0x1] %v7691_v4 }
  0x40   : > { %325 = vst [vmem:[#allocation2 + $0xb4] sm:$0xf] %v7691_v4  ;;  %v681_v21 = vmax.f32 %v649_v9, 0.0 }
  0x41   : > { %7661 = vmatpush.bf16.msra.mxu3 %v7818_v3  ;;  %326 = vst [vmem:[#allocation2 + $0xb8] sm:$0xf] %v7691_v4 }
  0x42   : > { %327 = vst [vmem:[#allocation2 + $0xbc] sm:$0x1] %v7691_v4 }
  0x43   : > { %328 = vst [vmem:[#allocation2 + $0xc0] sm:$0xf] %v7691_v4 }
  0x44   : > { %6447 = vmatmul.msk.bf16.gmra.mxu0 %vm486_vm1, %v7411_v35  ;;  %329 = vst [vmem:[#allocation2 + $0xc4] sm:$0xf] %v7691_v4 }
  0x45   : > { %6479 = vmatmul.msk.bf16.gmra.mxu1 %vm486_vm1, %v694_v36  ;;  %7662 = vmatpush.bf16.msra.mxu3 %v7827_v5  ;;  %v646_v36 = vunpack.c.l.bf16 %v352_v32  ;;  %330 = vst [vmem:[#allocation2 + $0xc8] sm:$0x1] %v7691_v4  ;;  %v1317_v5 = vld [vmem:[#allocation2 + $0x14] sm:$0x1]  ;;  %v7424_v32 = vld [vmem:[%s7760_s14 + $0x78] sm:$0xff] }
  0x46   : > { %331 = vst [vmem:[#allocation2 + $0xcc] sm:$0xf] %v7691_v4 }
  0x47   : > { %v678_v46 = vmax.f32 %v646_v36, 0.0  ;;  %332 = vst [vmem:[#allocation2 + $0xd0] sm:$0xf] %v7691_v4 }
  0x48   : > { %333 = vst [vmem:[#allocation2 + $0xd4] sm:$0x1] %v7691_v4 }
  0x49   : > { %7663 = vmatpush.bf16.msra.mxu3 %v7846_v12  ;;  %v701_v53 = vpack.c.bf16 %v679_v47, %v678_v46 }
  0x4d   : > { %7664 = vmatpush.bf16.msra.mxu3 %v7857_v14 }
  0x51   : > { %7665 = vmatpush.bf16.msra.mxu3 %v7871_v17  ;;  %v1320_v17 = vld [vmem:[#allocation2 + $0x18] sm:$0xf] }
  0x54   : > { %6448 = vmatmul.msk.bf16.gmra.mxu0 %vm486_vm1, %v7412_v42 }
  0x55   : > { %6480 = vmatmul.msk.bf16.gmra.mxu1 %vm486_vm1, %v695_v43  ;;  %v1311_v43 = vld [vmem:[#allocation2 + $0xc] sm:$0xf]  ;;  %7666 = vmatpush.bf16.msra.mxu3 %v7881_v20  ;;  %v680_v20 = vmax.f32 %v648_v8, 0.0  ;;  %v7599_v8 = vld [vmem:[%s9755_s5 + $0xb0] sm:$0xff] }
  0x64   : > { %6449 = vmatmul.msk.bf16.gmra.mxu0 %vm486_vm1, %v7413_v49 }
  0x65   : > { %6481 = vmatmul.msk.bf16.gmra.mxu1 %vm486_vm1, %v696_v50  ;;  %v7418_v50 = vld [vmem:[%s7760_s14 + $0x48] sm:$0xff] }
  0x74   : > { %6450 = vmatmul.msk.bf16.gmra.mxu0 %vm486_vm1, %v7414_v56 }
  0x75   : > { %6482 = vmatmul.msk.bf16.gmra.mxu1 %vm486_vm1, %v697_v57  ;;  %v7423_v57 = vld [vmem:[%s7760_s14 + $0x70] sm:$0xff] }
  0x76   : > { %6459 = vmatmul.msk.bf16.gmra.mxu3 %vm486_vm1, %v7423_v57 }
  0x84   : > { %6451 = vmatmul.msk.bf16.gmra.mxu0 %vm486_vm1, %v7415_v1 }
  0x85   : > { %6483 = vmatmul.msk.bf16.gmra.mxu1 %vm486_vm1, %v698_v2 }
  0x86   : > { %6460 = vmatmul.msk.bf16.gmra.mxu3 %vm486_vm1, %v7424_v32 }
  0x94   : > { %6452 = vmatmul.msk.bf16.gmra.mxu0 %vm486_vm1, %v7416_v11 }
  0x95   : > { %6484 = vmatmul.msk.bf16.gmra.mxu1 %vm486_vm1, %v699_v13 }
  0xa1   : > { %v548_v26 = vpop.f32.mrf.mxu0 }
  0xa2   : > { %v549_v28 = vadd.f32 %v7897_v24, %v548_v26  ;;  %v808_v29 = vpop.f32.mrf.mxu1  ;;  %v1425_v26 = vld [vmem:[#allocation2] sm:$0xf] }
  0xa3   : > { %v809_v30 = vadd.f32 %v7890_v23, %v808_v29  ;;  %v1426_v29 = vld [vmem:[#allocation2 + $0x4] sm:$0xf]  ;;  %1457 = vst [vmem:[#allocation3] sm:$0xf] %v1425_v26 }
  0xa4   : > { %888 = vst [vmem:[%s7908_s8] sm:$0xff] %v549_v28  ;;  %6453 = vmatmul.msk.bf16.gmra.mxu0 %vm486_vm1, %v7417_v25 }
  0xa5   : > { %v920_v31 = vmax.f32 %v809_v30, 0.0  ;;  %6485 = vmatmul.msk.bf16.gmra.mxu1 %vm486_vm1, %v700_v27  ;;  %v7419_v27 = vld [vmem:[%s7760_s14 + $0x50] sm:$0xff]  ;;  %1458 = vst [vmem:[#allocation3 + $0x24] sm:$0xf] %v1426_v29 }
  0xa7   : > { %v952_v33 = vpack.c.bf16 %v920_v31, %v920_v31  ;;  %v702_v31 = vpack.c.bf16 %v681_v21, %v680_v20 }
  0xa9   : > { %v988_v34 = vshrl.u32 %v952_v33, 16  ;;  %v550_v35 = vpop.f32.mrf.mxu0  ;;  %v991_v40 = vshll.u32 %v952_v33, 16 }
  0xaa   : > { %v810_v38 = vpop.f32.mrf.mxu1  ;;  %v551_v63 = vadd.f32 %v7897_v24, %v550_v35 }
  0xab   : > { %v7924_v39 = vrot.slane %v988_v34, 7  ;;  %v811_v41 = vadd.f32 %v7890_v23, %v810_v38 }
  0xac   : > { %889 = vst [vmem:[%s7908_s8 + $0x8] sm:$0xff] %v551_v63  ;;  %v7437_v57 = vld [vmem:[#allocation3 + $0x20] sm:$0xf0] }
  0xad   : > { %v993_v44 = vor.u32 %v991_v40, %v7924_v39  ;;  %v921_v45 = vmax.f32 %v811_v41, 0.0  ;;  %v994_v2 = vrot.slane %v7924_v39, 4 }
  0xaf   : > { %v1312_v48 = vsel %vm7929_vm3, %v993_v44, %v1311_v43  ;;  %v953_v49 = vpack.c.bf16 %v921_v45, %v921_v45  ;;  %v1324_v43 = vld [vmem:[#allocation2 + $0x20] sm:$0x1]  ;;  %v356_v45 = vld [vmem:[%s7760_s14 + $0x58] sm:$0xff]  }
  0xb0   : > { %1313 = vst [vmem:[#allocation2 + $0xc] sm:$0xf] %v1312_v48 }
  0xb1   : > { %v996_v51 = vshrl.u32 %v953_v49, 16  ;;  %v553_v52 = vpop.f32.mrf.mxu0  ;;  %v999_v58 = vshll.u32 %v953_v49, 16 }
  0xb2   : > { %v813_v54 = vpop.f32.mrf.mxu1  ;;  %v554_v16 = vadd.f32 %v7897_v24, %v553_v52  ;;  %v651_v52 = vunpack.c.h.bf16 %v356_v45 }
  0xb3   : > { %v998_v55 = vrot.slane %v996_v51, 7  ;;  %v814_v56 = vadd.f32 %v7890_v23, %v813_v54  ;;  %v650_v51 = vunpack.c.l.bf16 %v356_v45 }
  0xb4   : > { %6454 = vmatmul.msk.bf16.gmra.mxu0 %vm486_vm1, %v7418_v50  ;;  %890 = vst [vmem:[%s7908_s8 + $0x10] sm:$0xff] %v554_v16 }
  0xb5   : > { %v922_v59 = vmax.f32 %v814_v56, 0.0  ;;  %6486 = vmatmul.msk.bf16.gmra.mxu1 %vm486_vm1, %v701_v53  ;;  %v1001_v61 = vor.u32 %v999_v58, %v998_v55  ;;  %v1003_v1 = vrot.slane %v998_v55, 4  ;;  %v6543_v56 = vld [vmem:[#allocation3] sm:$0xf] }
  0xb6   : > { %v6544_v60 = vor.u32 %v7437_v57, %v6543_v56 }
  0xb7   : > { %v954_v62 = vpack.c.bf16 %v922_v59, %v922_v59  ;;  %v1002_v11 = vsel %vm7960_vm7, %v994_v2, %v1001_v61  ;;  %v1318_v15 = vsel %vm7967_vm8, %v1003_v1, %v1317_v5  ;;  %v1427_v38 = vld [vmem:[#allocation2 + $0xc] sm:$0xf]  ;;  %v682_v2 = vmax.f32 %v650_v51, 0.0 }
  0xb8   : > { %1314 = vst [vmem:[#allocation2 + $0x10] sm:$0xf] %v1002_v11  ;;  %v683_v5 = vmax.f32 %v651_v52, 0.0  ;;  %5412 = vmatmul.bf16.vlgmr.msra.gmra.mxu2 %v6544_v60  ;;  %v2263_v32 = vld [vmem:[#allocation2 + $0xc] sm:$0xf] }
  0xb9   : > { %v1005_v6 = vshrl.u32 %v954_v62, 16  ;;  %v555_v7 = vpop.f32.mrf.mxu0  ;;  %v1008_v13 = vshll.u32 %v954_v62, 16  ;;  %1319 = vst [vmem:[#allocation2 + $0x14] sm:$0x1] %v1318_v15  ;;  %v7600_v62 = vld [vmem:[%s9755_s5 + $0xb8] sm:$0xff] }
  0xba   : > { %v815_v10 = vpop.f32.mrf.mxu1  ;;  %v556_v22 = vadd.f32 %v7897_v24, %v555_v7  ;;  %1459 = vst [vmem:[#allocation3 + $0x48] sm:$0xf] %v1427_v38  ;;  %v1327_v7 = vld [vmem:[#allocation2 + $0x24] sm:$0xf]  ;;  %5582 = vmatpush.bf16.msrb.mxu0 %v7600_v62 }
  0xbb   : > { %v1007_v12 = vrot.slane %v1005_v6, 7  ;;  %v816_v14 = vadd.f32 %v7890_v23, %v815_v10  ;;  %v7608_v6 = vld [vmem:[%s9755_s5 + $0xf8] sm:$0xff]  ;;  %2295 = vst [vmem:[#allocation3 + $0xc] sm:$0xf] %v2263_v32 }
  0xbc   : > { %891 = vst [vmem:[%s7908_s8 + $0x18] sm:$0xff] %v556_v22  ;;  %5671 = vmatpush.bf16.msrb.mxu1 %v7608_v6  ;;  %v7598_v22 = vld [vmem:[%s9755_s5 + $0xa8] sm:$0xff] }
  0xbd   : > { %v1010_v18 = vor.u32 %v1008_v13, %v1007_v12  ;;  %v923_v19 = vmax.f32 %v816_v14, 0.0  ;;  %v1011_v41 = vrot.slane %v1007_v12, 4  ;;  %v7607_v12 = vld [vmem:[%s9755_s5 + $0xf0] sm:$0xff]  ;;  %v7420_v13 = vld [vmem:[%s7760_s14 + $0x58] sm:$0xff]  ;;  %v360_v14 = vld [vmem:[%s7760_s14 + $0x68] sm:$0xff]  }
  0xbe   : > { %5583 = vmatpush.bf16.msrb.mxu0 %v7599_v8  ;;  %v654_v26 = vunpack.c.l.bf16 %v360_v14 }
  0xbf   : > { %v1321_v4 = vsel %vm7929_vm3, %v1010_v18, %v1320_v17  ;;  %v955_v25 = vpack.c.bf16 %v923_v19, %v923_v19  ;;  %v1428_v55 = vld [vmem:[#allocation2 + $0x10] sm:$0xf]  ;;  %v703_v18 = vpack.c.bf16 %v683_v5, %v682_v2 }
  0xc0   : > { %1322 = vst [vmem:[#allocation2 + $0x18] sm:$0xf] %v1321_v4  ;;  %5672 = vmatpush.bf16.msrb.mxu1 %v7607_v12 }
  0xc1   : > { %v1013_v28 = vshrl.u32 %v955_v25, 16  ;;  %v558_v30 = vpop.f32.mrf.mxu0  ;;  %v1016_v36 = vshll.u32 %v955_v25, 16  ;;  %1460 = vst [vmem:[#allocation3 + $0x6c] sm:$0xf] %v1428_v55  ;;  %v7606_v25 = vld [vmem:[%s9755_s5 + $0xe8] sm:$0xff]  ;;  %v7596_v55 = vld [vmem:[%s9755_s5 + $0x98] sm:$0xff] }
  0xc2   : > { %v559_v33 = vadd.f32 %v7897_v24, %v558_v30  ;;  %v818_v34 = vpop.f32.mrf.mxu1  ;;  %5584 = vmatpush.bf16.msrb.mxu0 %v7598_v22 }
  0xc3   : > { %v1015_v35 = vrot.slane %v1013_v28, 7  ;;  %v819_v37 = vadd.f32 %v7890_v23, %v818_v34  ;;  %v655_v28 = vunpack.c.h.bf16 %v360_v14 }
  0xc4   : > { %6455 = vmatmul.msk.bf16.gmra.mxu0 %vm486_vm1, %v7419_v27  ;;  %892 = vst [vmem:[%s7908_s8 + $0x20] sm:$0xff] %v559_v33  ;;  %v1331_v27 = vld [vmem:[#allocation2 + $0x2c] sm:$0x1]  ;;  %5673 = vmatpush.bf16.msrb.mxu1 %v7606_v25 }
  0xc5   : > { %v1018_v39 = vor.u32 %v1016_v36, %v1015_v35  ;;  %v1020_v40 = vrot.slane %v1015_v35, 4  ;;  %6487 = vmatmul.msk.bf16.gmra.mxu1 %vm486_vm1, %v702_v31  ;;  %v924_v44 = vmax.f32 %v819_v37, 0.0  ;;  %v2264_v35 = vld [vmem:[#allocation2 + $0x10] sm:$0xf]  ;;  %v7594_v25 = vld [vmem:[%s9755_s5 + $0x88] sm:$0xff] }
  0xc6   : > { %2296 = vst [vmem:[#allocation3 + $0x30] sm:$0xf] %v2264_v35 }
  0xc7   : > { %v1019_v46 = vsel %vm7960_vm7, %v1011_v41, %v1018_v39  ;;  %v956_v47 = vpack.c.bf16 %v924_v44, %v924_v44  ;;  %v3096_v48 = vld [vmem:[#allocation2 + $0x18] sm:$0xf]  ;;  %v1325_v49 = vsel %vm7967_vm8, %v1020_v40, %v1324_v43  ;;  %v686_v39 = vmax.f32 %v654_v26, 0.0  ;;  %v7597_v43 = vld [vmem:[%s9755_s5 + $0xa0] sm:$0xff] }
  0xc8   : > { %3128 = vst [vmem:[#allocation3 + $0x18] sm:$0xf] %v3096_v48  ;;  %v1429_v11 = vld [vmem:[#allocation2 + $0x18] sm:$0xf]  ;;  %v7446_v38 = vld [vmem:[#allocation3 + $0x68] sm:$0xf0]  ;;  %5585 = vmatpush.bf16.msrb.mxu0 %v7597_v43 }
  0xc9   : > { %v560_v50 = vpop.f32.mrf.mxu0  ;;  %v1022_v53 = vshrl.u32 %v956_v47, 16  ;;  %1323 = vst [vmem:[#allocation2 + $0x1c] sm:$0xf] %v1019_v46  ;;  %v1025_v63 = vshll.u32 %v956_v47, 16  ;;  %v687_v41 = vmax.f32 %v655_v28, 0.0  ;;  %v7605_v44 = vld [vmem:[%s9755_s5 + $0xe0] sm:$0xff] }
  0xca   : > { %v820_v54 = vpop.f32.mrf.mxu1  ;;  %v561_v58 = vadd.f32 %v7897_v24, %v560_v50  ;;  %1326 = vst [vmem:[#allocation2 + $0x20] sm:$0x1] %v1325_v49  ;;  %v6579_v47 = vld [vmem:[#allocation3 + $0x48] sm:$0xf]  ;;  %5674 = vmatpush.bf16.msrb.mxu1 %v7605_v44  ;;  %v1991_v43 = vld [vmem:[#allocation2 + $0xc] sm:$0xe] }
  0xcb   : > { %v821_v59 = vadd.f32 %v7890_v23, %v820_v54  ;;  %v1024_v61 = vrot.slane %v1022_v53, 7  ;;  %1461 = vst [vmem:[#allocation3 + $0x90] sm:$0xf] %v1429_v11  ;;  %v358_v49 = vld [vmem:[%s7760_s14 + $0x60] sm:$0xff]   ;;  %v6580_v50 = vor.u32 %v7446_v38, %v6579_v47  ;;  %v705_v54 = vpack.c.bf16 %v687_v41, %v686_v39  ;;  %v362_v11 = vld [vmem:[%s7760_s14 + $0x70] sm:$0xff]  }
  0xcc   : > { %893 = vst [vmem:[%s7908_s8 + $0x28] sm:$0xff] %v561_v58  ;;  %v652_v57 = vunpack.c.l.bf16 %v358_v49  ;;  %v653_v58 = vunpack.c.h.bf16 %v358_v49  ;;  %5586 = vmatpush.bf16.msrb.mxu0 %v7596_v55  ;;  %v657_v14 = vunpack.c.h.bf16 %v362_v11  ;;  %v1992_v44 = vld [vmem:[#allocation2 + $0x10] sm:$0xf] }
  0xcd   : > { %v925_v1 = vmax.f32 %v821_v59, 0.0  ;;  %v1027_v9 = vor.u32 %v1025_v63, %v1024_v61  ;;  %v1028_v29 = vrot.slane %v1024_v61, 4  ;;  %v7604_v59 = vld [vmem:[%s9755_s5 + $0xd8] sm:$0xff]  ;;  %6490 = vmatmul.msk.bf16.vlgmr.msrb.gmra.mxu3 %vm486_vm1, %v705_v54  ;;  %v1334_v63 = vld [vmem:[#allocation2 + $0x30] sm:$0xf]  ;;  %5417 = vmatmul.bf16.gmra.mxu2 %v6580_v50  ;;  %v2096_v47 = vrot.slane %v1992_v44, 5 }
  0xce   : > { %v684_v2 = vmax.f32 %v652_v57, 0.0  ;;  %v685_v5 = vmax.f32 %v653_v58, 0.0  ;;  %5675 = vmatpush.bf16.msrb.mxu1 %v7604_v59  ;;  %v689_v35 = vmax.f32 %v657_v14, 0.0 }
  0xcf   : > { %v957_v10 = vpack.c.bf16 %v925_v1, %v925_v1  ;;  %v1328_v15 = vsel %vm7929_vm3, %v1027_v9, %v1327_v7  ;;  %v7595_v7 = vld [vmem:[%s9755_s5 + $0x90] sm:$0xff]  ;;  %v7421_v9 = vld [vmem:[%s7760_s14 + $0x60] sm:$0xff] }
  0xd0   : > { %v3097_v19 = vld [vmem:[#allocation2 + $0x1c] sm:$0xf]  ;;  %1329 = vst [vmem:[#allocation2 + $0x24] sm:$0xf] %v1328_v15  ;;  %v1988_v15 = vld [vmem:[#allocation2] sm:$0xe]  ;;  %5587 = vmatpush.bf16.msrb.mxu0 %v7595_v7 }
  0xd1   : > { %v1030_v16 = vshrl.u32 %v957_v10, 16  ;;  %v563_v17 = vpop.f32.mrf.mxu0  ;;  %3129 = vst [vmem:[#allocation3 + $0x3c] sm:$0xf] %v3097_v19  ;;  %v1033_v31 = vshll.u32 %v957_v10, 16  ;;  %v1430_v34 = vld [vmem:[#allocation2 + $0x1c] sm:$0xf] }
  0xd2   : > { %v564_v20 = vadd.f32 %v7897_v24, %v563_v17  ;;  %v823_v21 = vpop.f32.mrf.mxu1  ;;  %1462 = vst [vmem:[#allocation3 + $0xb4] sm:$0xf] %v1430_v34  ;;  %v7603_v10 = vld [vmem:[%s9755_s5 + $0xd0] sm:$0xff]  ;;  %v1990_v17 = vld [vmem:[#allocation2 + $0x8] sm:$0x1]  ;;  %v6493_v26 = vrot.slane %v1988_v15, 9 }
  0xd3   : > { %v824_v4 = vadd.f32 %v7890_v23, %v823_v21  ;;  %v1032_v30 = vrot.slane %v1030_v16, 7  ;;  %v1989_v16 = vld [vmem:[#allocation2 + $0x4] sm:$0xf]  ;;  %5676 = vmatpush.bf16.msrb.mxu1 %v7603_v10  ;;  %v6615_v57 = vld [vmem:[#allocation3 + $0x90] sm:$0xf] }
  0xd4   : > { %6456 = vmatmul.msk.bf16.gmra.mxu0 %vm486_vm1, %v7420_v13  ;;  %894 = vst [vmem:[%s7908_s8 + $0x30] sm:$0xff] %v564_v20  ;;  %v656_v13 = vunpack.c.l.bf16 %v362_v11  ;;  %v704_v20 = vpack.c.bf16 %v685_v5, %v684_v2  ;;  %v2089_v32 = vrot.slane %v1989_v16, 5  ;;  %v1995_v10 = vld [vmem:[#allocation2 + $0x1c] sm:$0xf]  ;;  %v2265_v15 = vld [vmem:[#allocation2 + $0x18] sm:$0xf] }
  0xd5   : > { %6488 = vmatmul.msk.bf16.gmra.mxu1 %vm486_vm1, %v703_v18  ;;  %v926_v33 = vmax.f32 %v824_v4, 0.0  ;;  %v1035_v36 = vor.u32 %v1033_v31, %v1032_v30  ;;  %v1037_v37 = vrot.slane %v1032_v30, 4  ;;  %v7602_v31 = vld [vmem:[%s9755_s5 + $0xc8] sm:$0xff]  ;;  %5588 = vmatpush.bf16.msrb.mxu0 %v7594_v25  ;;  %v1994_v16 = vld [vmem:[#allocation2 + $0x18] sm:$0xe] }
  0xd6   : > { %v688_v34 = vmax.f32 %v656_v13, 0.0  ;;  %v2090_v41 = vsel %vm8076_vm11, %v6493_v26, %v2089_v32  ;;  %v6553_v13 = vld [vmem:[#allocation3 + $0x2c] sm:$0xf0]  ;;  %v6495_v26 = vrot.slane %v1994_v16, 9  ;;  %2297 = vst [vmem:[#allocation3 + $0x54] sm:$0xf] %v2265_v15 }
  0xd7   : > { %v958_v40 = vpack.c.bf16 %v926_v33, %v926_v33  ;;  %v1036_v45 = vsel %vm7960_vm7, %v1028_v29, %v1035_v36  ;;  %v1332_v46 = vsel %vm7967_vm8, %v1037_v37, %v1331_v27  ;;  %v1431_v62 = vld [vmem:[#allocation2 + $0x24] sm:$0xf]  ;;  %v1338_v29 = vld [vmem:[#allocation2 + $0x38] sm:$0x1]  ;;  %v2092_v37 = vrot.slane %v1990_v17, 5  ;;  %5677 = vmatpush.bf16.msrb.mxu1 %v7602_v31 }
  0xd8   : > { %1330 = vst [vmem:[#allocation2 + $0x28] sm:$0xf] %v1036_v45  ;;  %v7593_v45 = vld [vmem:[%s9755_s5 + $0x80] sm:$0xff]  ;;  %v706_v54 = vpack.c.bf16 %v689_v35, %v688_v34  ;;  %v7616_v17 = vld [vmem:[%s9755_s5 + $0x138] sm:$0xff] }
  0xd9   : > { %v565_v48 = vpop.f32.mrf.mxu0  ;;  %v1039_v51 = vshrl.u32 %v958_v40, 16  ;;  %1333 = vst [vmem:[#allocation2 + $0x2c] sm:$0x1] %v1332_v46  ;;  %v1042_v61 = vshll.u32 %v958_v40, 16  ;;  %v2091_v46 = vrot.slane %v2089_v32, 4  ;;  %5589 = vmatpush.bf16.msrb.mxu0 %v7593_v45  ;;  %5760 = vmatpush.bf16.msrb.mxu2 %v7616_v17 }
  0xda   : > { %v566_v52 = vadd.f32 %v7897_v24, %v565_v48  ;;  %v825_v53 = vpop.f32.mrf.mxu1  ;;  %1463 = vst [vmem:[#allocation3 + $0xd8] sm:$0xf] %v1431_v62  ;;  %v7455_v50 = vld [vmem:[#allocation3 + $0xb0] sm:$0xf0]  ;;  %v1345_v45 = vld [vmem:[#allocation2 + $0x44] sm:$0x1] }
  0xdb   : > { %v826_v56 = vadd.f32 %v7890_v23, %v825_v53  ;;  %v8048_v60 = vrot.slane %v1039_v51, 7  ;;  %2231 = vst [vmem:[#allocation3 + $0x8] sm:$0xf] %v2090_v41  ;;  %v1993_v53 = vld [vmem:[#allocation2 + $0x14] sm:$0x1]  ;;  %v2093_v55 = vsel %vm8076_vm11, %v2091_v46, %v2092_v37 }
  0xdc   : > { %895 = vst [vmem:[%s7908_s8 + $0x38] sm:$0xff] %v566_v52  ;;  %v7601_v52 = vld [vmem:[%s9755_s5 + $0xc0] sm:$0xff]  ;;  %v2099_v2 = vrot.slane %v1993_v53, 5 }
  0xdd   : > { %v927_v1 = vmax.f32 %v826_v56, 0.0  ;;  %v1044_v6 = vor.u32 %v1042_v61, %v8048_v60  ;;  %v1045_v33 = vrot.slane %v8048_v60, 4  ;;  %v6494_v56 = vrot.slane %v1991_v43, 9  ;;  %5678 = vmatpush.bf16.msrb.mxu1 %v7601_v52  ;;  %2232 = vst [vmem:[#allocation3 + $0x2c] sm:$0xf] %v2093_v55  ;;  %6491 = vmatmul.msk.bf16.gmra.mxu3 %vm486_vm1, %v706_v54 }
  0xde   : > { %v6616_v60 = vor.u32 %v7455_v50, %v6615_v57 }
  0xdf   : > { %v959_v8 = vpack.c.bf16 %v927_v1, %v927_v1  ;;  %v1335_v12 = vsel %vm7929_vm3, %v1044_v6, %v1334_v63  ;;  %v1432_v21 = vld [vmem:[#allocation2 + $0x28] sm:$0xf]  ;;  %v2097_v1 = vsel %vm8076_vm11, %v6494_v56, %v2096_v47  ;;  %v2267_v56 = vld [vmem:[#allocation2 + $0x24] sm:$0xf] }
  0xe0   : > { %1336 = vst [vmem:[#allocation2 + $0x30] sm:$0xf] %v1335_v12  ;;  %5422 = vmatmul.bf16.gmra.mxu2 %v6616_v60  ;;  %v1998_v44 = vld [vmem:[#allocation2 + $0x28] sm:$0xf]  ;;  %v1999_v57 = vld [vmem:[#allocation2 + $0x2c] sm:$0x1] }
  0xe1   : > { %v1047_v18 = vshrl.u32 %v959_v8, 16  ;;  %v568_v19 = vpop.f32.mrf.mxu0  ;;  %1464 = vst [vmem:[#allocation3 + $0xfc] sm:$0xf] %v1432_v21  ;;  %v1050_v28 = vshll.u32 %v959_v8, 16  ;;  %v2098_v8 = vrot.slane %v2096_v47, 4  ;;  %v2110_v46 = vrot.slane %v1998_v44, 5 }
  0xe2   : > { %v569_v22 = vadd.f32 %v7897_v24, %v568_v19  ;;  %v828_v4 = vpop.f32.mrf.mxu1  ;;  %2233 = vst [vmem:[#allocation3 + $0x50] sm:$0xf] %v2097_v1  ;;  %v2103_v19 = vrot.slane %v1995_v10, 5 }
  0xe3   : > { %v1049_v27 = vrot.slane %v1047_v18, 7  ;;  %v829_v30 = vadd.f32 %v7890_v23, %v828_v4  ;;  %v2100_v14 = vsel %vm8076_vm11, %v2098_v8, %v2099_v2  ;;  %v1996_v18 = vld [vmem:[#allocation2 + $0x20] sm:$0x1]  ;;  %v2266_v4 = vld [vmem:[#allocation2 + $0x1c] sm:$0xf] }
  0xe4   : > { %896 = vst [vmem:[%s7908_s8 + $0x40] sm:$0xff] %v569_v22  ;;  %6457 = vmatmul.msk.bf16.gmra.mxu0 %vm486_vm1, %v7421_v9  ;;  %v1341_v9 = vld [vmem:[#allocation2 + $0x3c] sm:$0xf]  ;;  %v6551_v22 = vld [vmem:[#allocation3 + $0x8] sm:$0xf]  ;;  %v2106_v31 = vrot.slane %v1996_v18, 5 }
  0xe5   : > { %v1052_v38 = vor.u32 %v1050_v28, %v1049_v27  ;;  %v1054_v39 = vrot.slane %v1049_v27, 4  ;;  %v928_v40 = vmax.f32 %v829_v30, 0.0  ;;  %6489 = vmatmul.msk.bf16.gmra.mxu1 %vm486_vm1, %v704_v20  ;;  %2234 = vst [vmem:[#allocation3 + $0x74] sm:$0xf] %v2100_v14  ;;  %v2105_v27 = vrot.slane %v2103_v19, 4 }
  0xe6   : > { %v7434_v30 = vld [vmem:[#allocation3 + $0xc] sm:$0xf]  ;;  %2298 = vst [vmem:[#allocation3 + $0x78] sm:$0xf] %v2266_v4 }
  0xe7   : > { %v1053_v48 = vsel %vm7960_vm7, %v1045_v33, %v1052_v38  ;;  %v1339_v49 = vsel %vm7967_vm8, %v1054_v39, %v1338_v29  ;;  %v960_v51 = vpack.c.bf16 %v928_v40, %v928_v40  ;;  %v1433_v63 = vld [vmem:[#allocation2 + $0x30] sm:$0xf]  ;;  %v7438_v35 = vld [vmem:[#allocation3 + $0x28] sm:$0xf0]  ;;  %v6556_v37 = vor.u32 %v7434_v30, %v6553_v13  ;;  %2299 = vst [vmem:[#allocation3 + $0x9c] sm:$0xf] %v2267_v56 }
  0xe8   : > { %1337 = vst [vmem:[#allocation2 + $0x34] sm:$0xf] %v1053_v48  ;;  %v2104_v38 = vsel %vm8076_vm11, %v6495_v26, %v2103_v19  ;;  %v6552_v41 = vor.u32 %v7438_v35, %v6551_v22  ;;  %v2107_v43 = vsel %vm8076_vm11, %v2105_v27, %v2106_v31  ;;  %v7464_v54 = vld [vmem:[#allocation3 + $0xf8] sm:$0xf0]  ;;  %v1348_v13 = vld [vmem:[#allocation2 + $0x48] sm:$0xf] }
  0xe9   : > { %v1056_v58 = vshrl.u32 %v960_v51, 16  ;;  %v570_v59 = vpop.f32.mrf.mxu0  ;;  %1340 = vst [vmem:[#allocation2 + $0x38] sm:$0x1] %v1339_v49  ;;  %v1059_v6 = vshll.u32 %v960_v51, 16  ;;  %v1997_v51 = vld [vmem:[#allocation2 + $0x24] sm:$0xe] }
  0xea   : > { %v571_v61 = vadd.f32 %v7897_v24, %v570_v59  ;;  %v830_v62 = vpop.f32.mrf.mxu1  ;;  %1465 = vst [vmem:[#allocation3 + $0x120] sm:$0xf] %v1433_v63  ;;  %v2112_v59 = vrot.slane %v2110_v46, 4  ;;  %v6496_v63 = vrot.slane %v1997_v51, 9  ;;  %v2269_v18 = vld [vmem:[#allocation2 + $0x30] sm:$0xf] }
  0xeb   : > { %v8098_v5 = vrot.slane %v1056_v58, 7  ;;  %v831_v7 = vadd.f32 %v7890_v23, %v830_v62  ;;  %2235 = vst [vmem:[#allocation3 + $0x98] sm:$0xf] %v2104_v38  ;;  %v6651_v58 = vld [vmem:[#allocation3 + $0xd8] sm:$0xf] }
  0xec   : > { %897 = vst [vmem:[%s7908_s8 + $0x48] sm:$0xff] %v571_v61  ;;  %v2268_v62 = vld [vmem:[#allocation2 + $0x28] sm:$0xf]  ;;  %v6652_v1 = vor.u32 %v7464_v54, %v6651_v58  ;;  %v7447_v14 = vld [vmem:[#allocation3 + $0x70] sm:$0xf0] }
  0xed   : > { %v1061_v11 = vor.u32 %v1059_v6, %v8098_v5  ;;  %v929_v12 = vmax.f32 %v831_v7, 0.0  ;;  %v1062_v47 = vrot.slane %v8098_v5, 4  ;;  %2236 = vst [vmem:[#allocation3 + $0xbc] sm:$0xf] %v2107_v43  ;;  %v2113_v7 = vrot.slane %v1999_v57, 5 }
  0xee   : > { %2300 = vst [vmem:[#allocation3 + $0xc0] sm:$0xf] %v2268_v62  ;;  %v6587_v19 = vld [vmem:[#allocation3 + $0x50] sm:$0xf]  ;;  %v2000_v22 = vld [vmem:[#allocation2 + $0x30] sm:$0xe] }
  0xef   : > { %v1342_v20 = vsel %vm7929_vm3, %v1061_v11, %v1341_v9  ;;  %v961_v21 = vpack.c.bf16 %v929_v12, %v929_v12  ;;  %v1434_v25 = vld [vmem:[#allocation2 + $0x34] sm:$0xf]  ;;  %v2111_v11 = vsel %vm8076_vm11, %v6496_v63, %v2110_v46  ;;  %v2327_v12 = vld [vmem:[#allocation2 + $0xc] sm:$0xf]  ;;  %v2114_v15 = vsel %vm8076_vm11, %v2112_v59, %v2113_v7  ;;  %2301 = vst [vmem:[#allocation3 + $0xe4] sm:$0xf] %v2269_v18 }
  0xf0   : > { %1343 = vst [vmem:[#allocation2 + $0x3c] sm:$0xf] %v1342_v20  ;;  %5427 = vmatmul.bf16.gmra.mxu2 %v6652_v1  ;;  %v6589_v20 = vld [vmem:[#allocation3 + $0x74] sm:$0xf0]  ;;  %v2001_v27 = vld [vmem:[#allocation2 + $0x34] sm:$0xf] }
  0xf1   : > { %v1064_v28 = vshrl.u32 %v961_v21, 16  ;;  %v573_v29 = vpop.f32.mrf.mxu0  ;;  %1466 = vst [vmem:[#allocation3 + $0x144] sm:$0xf] %v1434_v25  ;;  %v1067_v32 = vshll.u32 %v961_v21, 16  ;;  %v2270_v21 = vld [vmem:[#allocation2 + $0x34] sm:$0xf] }
  0xf2   : > { %v574_v33 = vadd.f32 %v7897_v24, %v573_v29  ;;  %v833_v34 = vpop.f32.mrf.mxu1  ;;  %2237 = vst [vmem:[#allocation3 + $0xe0] sm:$0xf] %v2111_v11  ;;  %v6497_v29 = vrot.slane %v2000_v22, 9  ;;  %v2117_v30 = vrot.slane %v2001_v27, 5  ;;  %v2376_v31 = vshrl.u32 %v2327_v12, 16  ;;  %v7615_v62 = vld [vmem:[%s9755_s5 + $0x130] sm:$0xff] }
  0xf3   : > { %v1066_v39 = vrot.slane %v1064_v28, 7  ;;  %v834_v40 = vadd.f32 %v7890_v23, %v833_v34  ;;  %2238 = vst [vmem:[#allocation3 + $0x104] sm:$0xf] %v2114_v15  ;;  %v2002_v28 = vld [vmem:[#allocation2 + $0x38] sm:$0x1]  ;;  %v6588_v34 = vor.u32 %v7447_v14, %v6587_v19  ;;  %5761 = vmatpush.bf16.msrb.mxu2 %v7615_v62 }
  0xf4   : > { %898 = vst [vmem:[%s7908_s8 + $0x50] sm:$0xff] %v574_v33  ;;  %5590 = vmatmul.bf16.vlgmr.msrb.gmra.mxu0 %v6552_v41  ;;  %v7443_v38 = vld [vmem:[#allocation3 + $0x54] sm:$0xf]  ;;  %v2120_v41 = vrot.slane %v2002_v28, 5  ;;  %v2378_v59 = vrot.slane %v2376_v31, 4 }
  0xf5   : > { %v1069_v48 = vor.u32 %v1067_v32, %v1066_v39  ;;  %v1071_v49 = vrot.slane %v1066_v39, 4  ;;  %v930_v50 = vmax.f32 %v834_v40, 0.0  ;;  %5679 = vmatmul.bf16.vlgmr.msrb.gmra.mxu1 %v6556_v37  ;;  %v2118_v39 = vsel %vm8076_vm11, %v6497_v29, %v2117_v30  ;;  %2302 = vst [vmem:[#allocation3 + $0x108] sm:$0xf] %v2270_v21  ;;  %v6687_v1 = vld [vmem:[#allocation3 + $0x120] sm:$0xf] }
  0xf6   : > { %v2119_v40 = vrot.slane %v2117_v30, 4  ;;  %v6592_v46 = vor.u32 %v7443_v38, %v6589_v20  ;;  %2239 = vst [vmem:[#allocation3 + $0x128] sm:$0xf] %v2118_v39  ;;  %v1355_v7 = vld [vmem:[#allocation2 + $0x54] sm:$0xf] }
  0xf7   : > { %v1070_v52 = vsel %vm7960_vm7, %v1062_v47, %v1069_v48  ;;  %v1346_v53 = vsel %vm7967_vm8, %v1071_v49, %v1345_v45  ;;  %v962_v55 = vpack.c.bf16 %v930_v50, %v930_v50  ;;  %v1435_v6 = vld [vmem:[#allocation2 + $0x3c] sm:$0xf]  ;;  %v2379_v47 = vshll.u32 %v2327_v12, 16  ;;  %v2328_v48 = vld [vmem:[#allocation2 + $0x10] sm:$0xf] }
  0xf8   : > { %1344 = vst [vmem:[#allocation2 + $0x40] sm:$0xf] %v1070_v52  ;;  %v1352_v49 = vld [vmem:[#allocation2 + $0x50] sm:$0x1]  ;;  %v2121_v50 = vsel %vm8076_vm11, %v2119_v40, %v2120_v41  ;;  %v7473_v57 = vld [vmem:[#allocation3 + $0x140] sm:$0xf0] }
  0xf9   : > { %1347 = vst [vmem:[#allocation2 + $0x44] sm:$0x1] %v1346_v53  ;;  %v1073_v60 = vshrl.u32 %v962_v55, 16  ;;  %v575_v61 = vpop.f32.mrf.mxu0  ;;  %v1076_v9 = vshll.u32 %v962_v55, 16  ;;  %v2385_v63 = vshll.u32 %v2328_v48, 16 }
  0xfa   : > { %v576_v2 = vadd.f32 %v7897_v24, %v575_v61  ;;  %v835_v5 = vpop.f32.mrf.mxu1  ;;  %1467 = vst [vmem:[#allocation3 + $0x168] sm:$0xf] %v1435_v6  ;;  %v2389_v61 = vshrl.u32 %v2328_v48, 16  ;;  %v6688_v6 = vor.u32 %v7473_v57, %v6687_v1  ;;  %v2271_v11 = vld [vmem:[#allocation2 + $0x3c] sm:$0xf] }
  0xfb   : > { %v1075_v8 = vrot.slane %v1073_v60, 7  ;;  %v836_v10 = vadd.f32 %v7890_v23, %v835_v5  ;;  %2240 = vst [vmem:[#allocation3 + $0x14c] sm:$0xf] %v2121_v50  ;;  %v2381_v60 = vrot.slane %v2379_v47, 5  ;;  %v7456_v22 = vld [vmem:[#allocation3 + $0xb8] sm:$0xf0] }
  0xfc   : > { %899 = vst [vmem:[%s7908_s8 + $0x58] sm:$0xff] %v576_v2  ;;  %v6623_v27 = vld [vmem:[#allocation3 + $0x98] sm:$0xf]  ;;  %v7452_v28 = vld [vmem:[#allocation3 + $0x9c] sm:$0xf] }
  0xfd   : > { %v1078_v16 = vor.u32 %v1076_v9, %v1075_v8  ;;  %v931_v17 = vmax.f32 %v836_v10, 0.0  ;;  %v1079_v51 = vrot.slane %v1075_v8, 4  ;;  %v2382_v19 = vor.u32 %v2381_v60, %v2378_v59  ;;  %2303 = vst [vmem:[#allocation3 + $0x12c] sm:$0xf] %v2271_v11  ;;  %v6625_v29 = vld [vmem:[#allocation3 + $0xbc] sm:$0xf0] }
  0xfe   : > { %v2329_v41 = vld [vmem:[#allocation2 + $0x14] sm:$0x1]  ;;  %v6624_v48 = vor.u32 %v7456_v22, %v6623_v27 }
  0xff   : > { %v1349_v4 = vsel %vm7929_vm3, %v1078_v16, %v1348_v13  ;;  %v963_v25 = vpack.c.bf16 %v931_v17, %v931_v17  ;;  %v1436_v26 = vld [vmem:[#allocation2 + $0x40] sm:$0xf]  ;;  %v2391_v16 = vrot.slane %v2389_v61, 4  ;;  %v2003_v17 = vld [vmem:[#allocation2 + $0x3c] sm:$0xe]  ;;  %v2395_v57 = vshll.u32 %v2329_v41, 16 }
 0x100   : > { %1350 = vst [vmem:[#allocation2 + $0x48] sm:$0xf] %v1349_v4  ;;  %v2272_v15 = vld [vmem:[#allocation2 + $0x40] sm:$0xf]  ;;  %5432 = vmatmul.bf16.gmra.mxu2 %v6688_v6  ;;  %v2005_v4 = vld [vmem:[#allocation2 + $0x44] sm:$0x1] }
 0x101   : > { %v1081_v32 = vshrl.u32 %v963_v25, 16  ;;  %v578_v33 = vpop.f32.mrf.mxu0  ;;  %1468 = vst [vmem:[#allocation3 + $0x18c] sm:$0xf] %v1436_v26  ;;  %v1084_v44 = vshll.u32 %v963_v25, 16  ;;  %v2004_v18 = vld [vmem:[#allocation2 + $0x40] sm:$0xf] }
 0x102   : > { %v579_v35 = vadd.f32 %v7897_v24, %v578_v33  ;;  %v838_v37 = vpop.f32.mrf.mxu1  ;;  %2304 = vst [vmem:[#allocation3 + $0x150] sm:$0xf] %v2272_v15  ;;  %v2330_v25 = vld [vmem:[#allocation2 + $0x18] sm:$0xf]  ;;  %v6498_v31 = vrot.slane %v2003_v17, 9  ;;  %v2127_v33 = vrot.slane %v2005_v4, 5 }
 0x103   : > { %v1083_v43 = vrot.slane %v1081_v32, 7  ;;  %v839_v45 = vadd.f32 %v7890_v23, %v838_v37  ;;  %v2124_v32 = vrot.slane %v2004_v18, 5  ;;  %v2403_v59 = vshll.u32 %v2330_v25, 16  ;;  %v6723_v6 = vld [vmem:[#allocation3 + $0x168] sm:$0xf] }
 0x104   : > { %900 = vst [vmem:[%s7908_s8 + $0x60] sm:$0xff] %v579_v35  ;;  %5595 = vmatmul.bf16.gmra.mxu0 %v6588_v34  ;;  %v2383_v34 = vrot.slane %v2382_v19, 4  ;;  %v6661_v41 = vld [vmem:[#allocation3 + $0x104] sm:$0xf0] }
 0x105   : > { %v1086_v52 = vor.u32 %v1084_v44, %v1083_v43  ;;  %v1088_v53 = vrot.slane %v1083_v43, 4  ;;  %v932_v54 = vmax.f32 %v839_v45, 0.0  ;;  %5684 = vmatmul.bf16.gmra.mxu1 %v6592_v46  ;;  %v2125_v38 = vsel %vm8076_vm11, %v6498_v31, %v2124_v32  ;;  %v8164_v45 = vld [vmem:[%s9752_s2] ss:$0 sm:$0xff] }
 0x106   : > { %v2126_v39 = vrot.slane %v2124_v32, 4  ;;  %2241 = vst [vmem:[#allocation3 + $0x170] sm:$0xf] %v2125_v38  ;;  %v2405_v15 = vrot.slane %v2403_v59, 5  ;;  %v7465_v32 = vld [vmem:[#allocation3 + $0x100] sm:$0xf0] }
 0x107   : > { %v1087_v55 = vsel %vm7960_vm7, %v1079_v51, %v1086_v52  ;;  %v1353_v56 = vsel %vm7967_vm8, %v1088_v53, %v1352_v49  ;;  %v964_v58 = vpack.c.bf16 %v932_v54, %v932_v54  ;;  %v1437_v10 = vld [vmem:[#allocation2 + $0x48] sm:$0xf]  ;;  %v6628_v49 = vor.u32 %v7452_v28, %v6625_v29  ;;  %v8170_v52 = vld [vmem:[%s9754_s4] ss:$0 sm:$0xff] }
 0x108   : > { %1351 = vst [vmem:[#allocation2 + $0x4c] sm:$0xf] %v1087_v55  ;;  %v2273_v50 = vld [vmem:[#allocation2 + $0x48] sm:$0xf]  ;;  %v2128_v54 = vsel %vm8076_vm11, %v2126_v39, %v2127_v33  ;;  %v6659_v39 = vld [vmem:[#allocation3 + $0xe0] sm:$0xf] }
 0x109   : > { %1354 = vst [vmem:[#allocation2 + $0x50] sm:$0x1] %v1353_v56  ;;  %v1090_v2 = vshrl.u32 %v964_v58, 16  ;;  %v580_v5 = vpop.f32.mrf.mxu0  ;;  %v1093_v13 = vshll.u32 %v964_v58, 16  ;;  %v1359_v56 = vld [vmem:[#allocation2 + $0x5c] sm:$0x1] }
 0x10a   : > { %v581_v8 = vadd.f32 %v7897_v24, %v580_v5  ;;  %v840_v9 = vpop.f32.mrf.mxu1  ;;  %1469 = vst [vmem:[#allocation3 + $0x1b0] sm:$0xf] %v1437_v10  ;;  %v2387_v24 = vrot.slane %v2385_v63, 5  ;;  %v2400_v58 = vshrl.u32 %v2330_v25, 16  ;;  %v2331_v10 = vld [vmem:[#allocation2 + $0x1c] sm:$0xf] }
 0x10b   : > { %v8147_v12 = vrot.slane %v1090_v2, 7  ;;  %v841_v14 = vadd.f32 %v7890_v23, %v840_v9  ;;  %2305 = vst [vmem:[#allocation3 + $0x174] sm:$0xf] %v2273_v50  ;;  %v2397_v9 = vrot.slane %v2395_v57, 5  ;;  %v2409_v25 = vshll.u32 %v2331_v10, 16  ;;  %v7614_v33 = vld [vmem:[%s9755_s5 + $0x128] sm:$0xff] }
 0x10c   : > { %901 = vst [vmem:[%s7908_s8 + $0x68] sm:$0xff] %v581_v8  ;;  %v2392_v43 = vor.u32 %v2391_v16, %v2387_v24  ;;  %v2388_v55 = vsel %vm8157_vm14, %v2383_v34, %v2387_v24  ;;  %v2402_v11 = vrot.slane %v2400_v58, 4  ;;  %v2413_v27 = vshrl.u32 %v2331_v10, 16  ;;  %5762 = vmatpush.bf16.msrb.mxu2 %v7614_v33 }
 0x10d   : > { %v1095_v20 = vor.u32 %v1093_v13, %v8147_v12  ;;  %v933_v21 = vmax.f32 %v841_v14, 0.0  ;;  %v1096_v60 = vrot.slane %v8147_v12, 4  ;;  %2242 = vst [vmem:[#allocation3 + $0x194] sm:$0xf] %v2128_v54  ;;  %v6660_v57 = vor.u32 %v7465_v32, %v6659_v39 }
 0x10e   : > { %v2393_v1 = vrot.slane %v2392_v43, 4  ;;  %2791 = vst [vmem:[#allocation3 + $0x10] sm:$0xf] %v2388_v55  ;;  %v2406_v31 = vor.u32 %v2405_v15, %v2402_v11 }
 0x10f   : > { %v1356_v23 = vsel %vm7929_vm3, %v1095_v20, %v1355_v7  ;;  %v965_v26 = vpack.c.bf16 %v933_v21, %v933_v21  ;;  %v1438_v30 = vld [vmem:[#allocation2 + $0x4c] sm:$0xf]  ;;  %v7482_v7 = vld [vmem:[#allocation3 + $0x188] sm:$0xf0]  ;;  %v2006_v20 = vld [vmem:[#allocation2 + $0x48] sm:$0xe] }
 0x110   : > { %1357 = vst [vmem:[#allocation2 + $0x54] sm:$0xf] %v1356_v23  ;;  %v6724_v16 = vor.u32 %v7482_v7, %v6723_v6  ;;  %v2274_v19 = vld [vmem:[#allocation2 + $0x4c] sm:$0xf]  ;;  %v2398_v21 = vsel %vm8157_vm14, %v2393_v1, %v2397_v9  ;;  %v1362_v23 = vld [vmem:[#allocation2 + $0x60] sm:$0xf] }
 0x111   : > { %v1098_v35 = vshrl.u32 %v965_v26, 16  ;;  %v583_v37 = vpop.f32.mrf.mxu0  ;;  %1470 = vst [vmem:[#allocation3 + $0x1d4] sm:$0xf] %v1438_v30  ;;  %v1101_v44 = vshll.u32 %v965_v26, 16  ;;  %v2007_v26 = vld [vmem:[#allocation2 + $0x4c] sm:$0xf] }
 0x112   : > { %v584_v46 = vadd.f32 %v8164_v45, %v583_v37  ;;  %v843_v47 = vpop.f32.mrf.mxu1  ;;  %2306 = vst [vmem:[#allocation3 + $0x198] sm:$0xf] %v2274_v19  ;;  %v2008_v30 = vld [vmem:[#allocation2 + $0x50] sm:$0x1]  ;;  %5437 = vmatmul.bf16.gmra.mxu2 %v6724_v16  ;;  %v6499_v34 = vrot.slane %v2006_v20, 9  ;;  %v2407_v54 = vrot.slane %v2406_v31, 4  ;;  %v613_v16 = vpop.f32.mrf.mxu3 }
 0x113   : > { %v1100_v51 = vrot.slane %v1098_v35, 7  ;;  %v844_v53 = vadd.f32 %v8170_v52, %v843_v47  ;;  %2792 = vst [vmem:[#allocation3 + $0x34] sm:$0xf] %v2398_v21  ;;  %v2131_v35 = vrot.slane %v2007_v26, 5  ;;  %v2332_v1 = vld [vmem:[#allocation2 + $0x20] sm:$0x1] }
 0x114   : > { %902 = vst [vmem:[%s7908_s8 + $0x70] sm:$0xff] %v584_v46  ;;  %5600 = vmatmul.bf16.gmra.mxu0 %v6624_v48  ;;  %v2134_v48 = vrot.slane %v2008_v30, 5  ;;  %v2333_v20 = vld [vmem:[#allocation2 + $0x24] sm:$0xf] }
 0x115   : > { %v1103_v61 = vor.u32 %v1101_v44, %v1100_v51  ;;  %v1105_v62 = vrot.slane %v1100_v51, 4  ;;  %v934_v63 = vmax.f32 %v844_v53, 0.0  ;;  %5689 = vmatmul.bf16.gmra.mxu1 %v6628_v49  ;;  %v2411_v44 = vrot.slane %v2409_v25, 5  ;;  %v7461_v53 = vld [vmem:[#allocation3 + $0xe4] sm:$0xf] }
 0x116   : > { %v2132_v46 = vsel %vm8076_vm11, %v6499_v34, %v2131_v35  ;;  %v2133_v47 = vrot.slane %v2131_v35, 4  ;;  %v2415_v49 = vrot.slane %v2413_v27, 4  ;;  %v6664_v58 = vor.u32 %v7461_v53, %v6661_v41  ;;  %v1369_v25 = vld [vmem:[#allocation2 + $0x6c] sm:$0xf]  ;;  %v7474_v34 = vld [vmem:[#allocation3 + $0x148] sm:$0xf0] }
 0x117   : > { %v1104_v2 = vsel %vm7960_vm7, %v1096_v60, %v1103_v61  ;;  %v1360_v5 = vsel %vm7967_vm8, %v1105_v62, %v1359_v56  ;;  %v966_v8 = vpack.c.bf16 %v934_v63, %v934_v63  ;;  %v1439_v14 = vld [vmem:[#allocation2 + $0x54] sm:$0xf]  ;;  %2243 = vst [vmem:[#allocation3 + $0x1b8] sm:$0xf] %v2132_v46  ;;  %v6695_v46 = vld [vmem:[#allocation3 + $0x128] sm:$0xf] }
 0x118   : > { %1358 = vst [vmem:[#allocation2 + $0x58] sm:$0xf] %v1104_v2  ;;  %v2135_v59 = vsel %vm8076_vm11, %v2133_v47, %v2134_v48  ;;  %v2275_v60 = vld [vmem:[#allocation2 + $0x54] sm:$0xf]  ;;  %v2412_v2 = vsel %vm8157_vm14, %v2407_v54, %v2411_v44  ;;  %v2416_v6 = vor.u32 %v2415_v49, %v2411_v44  ;;  %v7491_v11 = vld [vmem:[#allocation3 + $0x1d0] sm:$0xf0] }
 0x119   : > { %1361 = vst [vmem:[#allocation2 + $0x5c] sm:$0x1] %v1360_v5  ;;  %v1107_v12 = vshrl.u32 %v966_v8, 16  ;;  %v585_v13 = vpop.f32.mrf.mxu0  ;;  %v1110_v22 = vshll.u32 %v966_v8, 16  ;;  %v1366_v5 = vld [vmem:[#allocation2 + $0x68] sm:$0x1] }
 0x11a   : > { %v586_v17 = vadd.f32 %v8164_v45, %v585_v13  ;;  %v845_v18 = vpop.f32.mrf.mxu1  ;;  %1471 = vst [vmem:[#allocation3 + $0x1f8] sm:$0xf] %v1439_v14  ;;  %v2417_v19 = vrot.slane %v2416_v6, 4  ;;  %v2009_v35 = vld [vmem:[#allocation2 + $0x54] sm:$0xe]  ;;  %v2427_v53 = vshll.u32 %v2333_v20, 16 }
 0x11b   : > { %v8186_v24 = vrot.slane %v1107_v12, 7  ;;  %v846_v4 = vadd.f32 %v8170_v52, %v845_v18  ;;  %2244 = vst [vmem:[#allocation3 + $0x1dc] sm:$0xf] %v2135_v59  ;;  %v2419_v12 = vshll.u32 %v2332_v1, 16  ;;  %v614_v18 = vadd.f32 %v8164_v45, %v613_v16  ;;  %v6697_v47 = vld [vmem:[#allocation3 + $0x14c] sm:$0xf0] }
 0x11c   : > { %903 = vst [vmem:[%s7908_s8 + $0x78] sm:$0xff] %v586_v17  ;;  %v6759_v17 = vld [vmem:[#allocation3 + $0x1b0] sm:$0xf] }
 0x11d   : > { %v1112_v28 = vor.u32 %v1110_v22, %v8186_v24  ;;  %v935_v29 = vmax.f32 %v846_v4, 0.0  ;;  %v1113_v7 = vrot.slane %v8186_v24, 4  ;;  %2307 = vst [vmem:[#allocation3 + $0x1bc] sm:$0xf] %v2275_v60  ;;  %v6760_v21 = vor.u32 %v7491_v11, %v6759_v17  ;;  %v364_v4 = vld [vmem:[%s7760_s14 + $0x78] sm:$0xff]  }
 0x11e   : > { %2793 = vst [vmem:[#allocation3 + $0x58] sm:$0xf] %v2412_v2  ;;  %v658_v27 = vunpack.c.l.bf16 %v364_v4  ;;  %v2421_v30 = vrot.slane %v2419_v12, 5  ;;  %v6696_v60 = vor.u32 %v7474_v34, %v6695_v46  ;;  %v2429_v12 = vrot.slane %v2427_v53, 5 }
 0x11f   : > { %v1363_v37 = vsel %vm7929_vm3, %v1112_v28, %v1362_v23  ;;  %v967_v38 = vpack.c.bf16 %v935_v29, %v935_v29  ;;  %v1440_v43 = vld [vmem:[#allocation2 + $0x58] sm:$0xf]  ;;  %914 = vst [vmem:[%s7908_s8 + $0xd0] sm:$0xff] %v614_v18  ;;  %v659_v28 = vunpack.c.h.bf16 %v364_v4  ;;  %v1373_v18 = vld [vmem:[#allocation2 + $0x74] sm:$0x1] }
 0x120   : > { %1364 = vst [vmem:[#allocation2 + $0x60] sm:$0xf] %v1363_v37  ;;  %v690_v37 = vmax.f32 %v658_v27, 0.0  ;;  %v2276_v39 = vld [vmem:[#allocation2 + $0x58] sm:$0xf]  ;;  %v2422_v41 = vsel %vm8157_vm14, %v2417_v19, %v2421_v30 }
 0x121   : > { %v1115_v50 = vshrl.u32 %v967_v38, 16  ;;  %v588_v51 = vpop.f32.mrf.mxu0  ;;  %1472 = vst [vmem:[#allocation3 + $0x21c] sm:$0xf] %v1440_v43  ;;  %v1118_v62 = vshll.u32 %v967_v38, 16  ;;  %v691_v38 = vmax.f32 %v659_v28, 0.0 }
 0x122   : > { %v589_v55 = vadd.f32 %v8164_v45, %v588_v51  ;;  %v848_v56 = vpop.f32.mrf.mxu1  ;;  %2308 = vst [vmem:[#allocation3 + $0x1e0] sm:$0xf] %v2276_v39  ;;  %5442 = vmatmul.bf16.gmra.mxu2 %v6760_v21  ;;  %v2010_v49 = vld [vmem:[#allocation2 + $0x58] sm:$0xf]  ;;  %v2424_v51 = vshrl.u32 %v2333_v20, 16 }
 0x123   : > { %v1117_v61 = vrot.slane %v1115_v50, 7  ;;  %v849_v63 = vadd.f32 %v8170_v52, %v848_v56  ;;  %v707_v48 = vpack.c.bf16 %v691_v38, %v690_v37  ;;  %v2011_v50 = vld [vmem:[#allocation2 + $0x5c] sm:$0x1]  ;;  %v2138_v59 = vrot.slane %v2010_v49, 5  ;;  %2794 = vst [vmem:[#allocation3 + $0x7c] sm:$0xf] %v2422_v41 }
 0x124   : > { %904 = vst [vmem:[%s7908_s8 + $0x80] sm:$0xff] %v589_v55  ;;  %5605 = vmatmul.bf16.gmra.mxu0 %v6660_v57  ;;  %v615_v57 = vpop.f32.mrf.mxu3  ;;  %v2426_v11 = vrot.slane %v2424_v51, 4  ;;  %v1376_v39 = vld [vmem:[#allocation2 + $0x78] sm:$0xf] }
 0x125   : > { %v1120_v8 = vor.u32 %v1118_v62, %v1117_v61  ;;  %v1122_v9 = vrot.slane %v1117_v61, 4  ;;  %v936_v10 = vmax.f32 %v849_v63, 0.0  ;;  %5694 = vmatmul.bf16.gmra.mxu1 %v6664_v58  ;;  %v6500_v58 = vrot.slane %v2009_v35, 9  ;;  %v7470_v61 = vld [vmem:[#allocation3 + $0x12c] sm:$0xf]  ;;  %6492 = vmatmul.msk.bf16.gmra.mxu3 %vm486_vm1, %v707_v48 }
 0x126   : > { %v616_v62 = vadd.f32 %v8164_v45, %v615_v57  ;;  %v2334_v63 = vld [vmem:[#allocation2 + $0x28] sm:$0xf]  ;;  %v2140_v6 = vrot.slane %v2138_v59, 4  ;;  %v2335_v57 = vld [vmem:[#allocation2 + $0x2c] sm:$0x1] }
 0x127   : > { %v1121_v13 = vsel %vm7960_vm7, %v1113_v7, %v1120_v8  ;;  %v1367_v14 = vsel %vm7967_vm8, %v1122_v9, %v1366_v5  ;;  %v968_v15 = vpack.c.bf16 %v936_v10, %v936_v10  ;;  %v1441_v29 = vld [vmem:[#allocation2 + $0x60] sm:$0xf]  ;;  %v2139_v5 = vsel %vm8076_vm11, %v6500_v58, %v2138_v59 }
 0x128   : > { %1365 = vst [vmem:[#allocation2 + $0x64] sm:$0xf] %v1121_v13  ;;  %v2141_v7 = vrot.slane %v2011_v50, 5  ;;  %v6700_v10 = vor.u32 %v7470_v61, %v6697_v47  ;;  %v2277_v17 = vld [vmem:[#allocation2 + $0x60] sm:$0xf]  ;;  %v2433_v19 = vshll.u32 %v2334_v63, 16 }
 0x129   : > { %1368 = vst [vmem:[#allocation2 + $0x68] sm:$0x1] %v1367_v14  ;;  %v1124_v24 = vshrl.u32 %v968_v15, 16  ;;  %v590_v22 = vpop.f32.mrf.mxu0  ;;  %v1127_v32 = vshll.u32 %v968_v15, 16  ;;  %v2437_v20 = vshrl.u32 %v2334_v63, 16 }
 0x12a   : > { %v591_v23 = vadd.f32 %v8164_v45, %v590_v22  ;;  %v850_v26 = vpop.f32.mrf.mxu1  ;;  %1473 = vst [vmem:[#allocation3 + $0x240] sm:$0xf] %v1441_v29  ;;  %v2142_v16 = vsel %vm8076_vm11, %v2140_v6, %v2141_v7  ;;  %v7500_v27 = vld [vmem:[#allocation3 + $0x218] sm:$0xf0]  ;;  %v2336_v29 = vld [vmem:[#allocation2 + $0x30] sm:$0xf] }
 0x12b   : > { %v8214_v31 = vrot.slane %v1124_v24, 7  ;;  %v851_v33 = vadd.f32 %v8170_v52, %v850_v26  ;;  %915 = vst [vmem:[%s7908_s8 + $0xd8] sm:$0xff] %v616_v62  ;;  %v8241_v37 = vrot.slane %v2437_v20, 4  ;;  %v2012_v47 = vld [vmem:[#allocation2 + $0x60] sm:$0xe]  ;;  %v2451_v59 = vshll.u32 %v2336_v29, 16 }
 0x12c   : > { %905 = vst [vmem:[%s7908_s8 + $0x88] sm:$0xff] %v591_v23  ;;  %v618_v30 = vpop.f32.mrf.mxu3  ;;  %v2337_v62 = vld [vmem:[#allocation2 + $0x34] sm:$0xf]  ;;  %v6731_v63 = vld [vmem:[#allocation3 + $0x170] sm:$0xf] }
 0x12d   : > { %v1129_v43 = vor.u32 %v1127_v32, %v8214_v31  ;;  %v937_v44 = vmax.f32 %v851_v33, 0.0  ;;  %2245 = vst [vmem:[#allocation3 + $0x200] sm:$0xf] %v2139_v5  ;;  %v1130_v21 = vrot.slane %v8214_v31, 4  ;;  %v8238_v31 = vrot.slane %v2433_v19, 5 }
 0x12e   : > { %2246 = vst [vmem:[#allocation3 + $0x224] sm:$0xf] %v2142_v16  ;;  %v6795_v32 = vld [vmem:[#allocation3 + $0x1f8] sm:$0xf]  ;;  %v619_v35 = vadd.f32 %v8164_v45, %v618_v30  ;;  %v6501_v5 = vrot.slane %v2012_v47, 9  ;;  %v2453_v16 = vrot.slane %v2451_v59, 5 }
 0x12f   : > { %v1370_v54 = vsel %vm7929_vm3, %v1129_v43, %v1369_v25  ;;  %v969_v55 = vpack.c.bf16 %v937_v44, %v937_v44  ;;  %v1442_v56 = vld [vmem:[#allocation2 + $0x64] sm:$0xf]  ;;  %2309 = vst [vmem:[#allocation3 + $0x204] sm:$0xf] %v2277_v17  ;;  %v2430_v25 = vor.u32 %v2429_v12, %v2426_v11  ;;  %v6796_v38 = vor.u32 %v7500_v27, %v6795_v32  ;;  %v8264_v17 = vld [vmem:[#allocation2 + $0x3c] sm:$0xf] }
 0x130   : > { %1371 = vst [vmem:[#allocation2 + $0x6c] sm:$0xf] %v1370_v54  ;;  %v7613_v44 = vld [vmem:[%s9755_s5 + $0x120] sm:$0xff]  ;;  %v2448_v54 = vshrl.u32 %v2336_v29, 16  ;;  %v2457_v27 = vshll.u32 %v2337_v62, 16 }
 0x131   : > { %v1132_v1 = vshrl.u32 %v969_v55, 16  ;;  %v593_v2 = vpop.f32.mrf.mxu0  ;;  %1474 = vst [vmem:[#allocation3 + $0x264] sm:$0xf] %v1442_v56  ;;  %v1135_v14 = vshll.u32 %v969_v55, 16  ;;  %v2431_v48 = vrot.slane %v2430_v25, 4  ;;  %5763 = vmatpush.bf16.msrb.mxu2 %v7613_v44 }
 0x132   : > { %v594_v8 = vadd.f32 %v8164_v45, %v593_v2  ;;  %v853_v9 = vpop.f32.mrf.mxu1  ;;  %916 = vst [vmem:[%s7908_s8 + $0xe0] sm:$0xff] %v619_v35  ;;  %v2278_v53 = vld [vmem:[#allocation2 + $0x64] sm:$0xf]  ;;  %v7483_v55 = vld [vmem:[#allocation3 + $0x190] sm:$0xf0]  ;;  %5447 = vmatmul.bf16.gmra.mxu2 %v6796_v38  ;;  %v8260_v11 = vrot.slane %v2448_v54, 4 }
 0x133   : > { %v1134_v13 = vrot.slane %v1132_v1, 7  ;;  %v854_v15 = vadd.f32 %v8170_v52, %v853_v9  ;;  %v2013_v56 = vld [vmem:[#allocation2 + $0x64] sm:$0xf]  ;;  %v2436_v58 = vsel %vm8157_vm14, %v2431_v48, %v8238_v31  ;;  %v6733_v1 = vld [vmem:[#allocation3 + $0x194] sm:$0xf0]  ;;  %v6732_v20 = vor.u32 %v7483_v55, %v6731_v63 }
 0x134   : > { %906 = vst [vmem:[%s7908_s8 + $0x90] sm:$0xff] %v594_v8  ;;  %5610 = vmatmul.bf16.gmra.mxu0 %v6696_v60  ;;  %v2014_v2 = vld [vmem:[#allocation2 + $0x68] sm:$0x1]  ;;  %v2145_v6 = vrot.slane %v2013_v56, 5  ;;  %v620_v12 = vpop.f32.mrf.mxu3  ;;  %v2338_v38 = vld [vmem:[#allocation2 + $0x38] sm:$0x1] }
 0x135   : > { %v1137_v24 = vor.u32 %v1135_v14, %v1134_v13  ;;  %v1139_v22 = vrot.slane %v1134_v13, 4  ;;  %v938_v4 = vmax.f32 %v854_v15, 0.0  ;;  %5699 = vmatmul.bf16.gmra.mxu1 %v6700_v10  ;;  %2310 = vst [vmem:[#allocation3 + $0x228] sm:$0xf] %v2278_v53  ;;  %v2440_v10 = vor.u32 %v8241_v37, %v8238_v31  ;;  %v8286_v56 = vld [vmem:[#allocation3 + $0x1b8] sm:$0xf] }
 0x136   : > { %2795 = vst [vmem:[#allocation3 + $0xa0] sm:$0xf] %v2436_v58  ;;  %v2146_v13 = vsel %vm8076_vm11, %v6501_v5, %v2145_v6  ;;  %v2147_v14 = vrot.slane %v2145_v6, 4  ;;  %v2148_v15 = vrot.slane %v2014_v2, 5  ;;  %v8279_v48 = vrot.slane %v2457_v27, 5 }
 0x137   : > { %v1138_v23 = vsel %vm7960_vm7, %v1130_v21, %v1137_v24  ;;  %v1374_v26 = vsel %vm7967_vm8, %v1139_v22, %v1373_v18  ;;  %v970_v28 = vpack.c.bf16 %v938_v4, %v938_v4  ;;  %v1443_v46 = vld [vmem:[#allocation2 + $0x6c] sm:$0xf]  ;;  %v621_v24 = vadd.f32 %v8164_v45, %v620_v12  ;;  %v1380_v4 = vld [vmem:[#allocation2 + $0x80] sm:$0x1]  ;;  %2247 = vst [vmem:[#allocation3 + $0x248] sm:$0xf] %v2146_v13 }
 0x138   : > { %1372 = vst [vmem:[#allocation2 + $0x70] sm:$0xf] %v1138_v23  ;;  %v7479_v21 = vld [vmem:[#allocation3 + $0x174] sm:$0xf]  ;;  %v2443_v22 = vshll.u32 %v2335_v57, 16  ;;  %v8275_v37 = vrot.slane %v2440_v10, 4 }
 0x139   : > { %1375 = vst [vmem:[#allocation2 + $0x74] sm:$0x1] %v1374_v26  ;;  %v1141_v33 = vshrl.u32 %v970_v28, 16  ;;  %v595_v34 = vpop.f32.mrf.mxu0  ;;  %v1144_v50 = vshll.u32 %v970_v28, 16  ;;  %v2149_v26 = vsel %vm8076_vm11, %v2147_v14, %v2148_v15  ;;  %v2461_v28 = vshrl.u32 %v2337_v62, 16 }
 0x13a   : > { %v596_v41 = vadd.f32 %v8164_v45, %v595_v34  ;;  %v855_v43 = vpop.f32.mrf.mxu1  ;;  %1475 = vst [vmem:[#allocation3 + $0x288] sm:$0xf] %v1443_v46  ;;  %v6736_v32 = vor.u32 %v7479_v21, %v6733_v1  ;;  %v2279_v34 = vld [vmem:[#allocation2 + $0x6c] sm:$0xf]  ;;  %v7509_v35 = vld [vmem:[#allocation3 + $0x260] sm:$0xf0] }
 0x13b   : > { %v8247_v49 = vrot.slane %v1141_v33, 7  ;;  %v856_v51 = vadd.f32 %v8170_v52, %v855_v43  ;;  %917 = vst [vmem:[%s7908_s8 + $0xe8] sm:$0xff] %v621_v24  ;;  %v8272_v33 = vld [vmem:[#allocation3 + $0x1d8] sm:$0xf0]  ;;  %v2445_v47 = vrot.slane %v2443_v22, 5  ;;  %v2475_v57 = vshll.u32 %v8264_v17, 16 }
 0x13c   : > { %907 = vst [vmem:[%s7908_s8 + $0x98] sm:$0xff] %v596_v41  ;;  %v8289_v58 = vld [vmem:[#allocation2 + $0xc] sm:$0xf]  ;;  %v8293_v62 = vld [vmem:[#allocation3 + $0x1dc] sm:$0xf0] }
 0x13d   : > { %v1146_v60 = vor.u32 %v1144_v50, %v8247_v49  ;;  %v939_v61 = vmax.f32 %v856_v51, 0.0  ;;  %v1147_v41 = vrot.slane %v8247_v49, 4  ;;  %2248 = vst [vmem:[#allocation3 + $0x26c] sm:$0xf] %v2149_v26  ;;  %v2463_v50 = vrot.slane %v2461_v28, 4 }
 0x13e   : > { %2311 = vst [vmem:[#allocation3 + $0x24c] sm:$0xf] %v2279_v34  ;;  %v2472_v51 = vshrl.u32 %v8264_v17, 16  ;;  %v6831_v49 = vld [vmem:[#allocation3 + $0x240] sm:$0xf]  ;;  %v2446_v24 = vsel %vm8157_vm14, %v8275_v37, %v2445_v47 }
 0x13f   : > { %v1377_v7 = vsel %vm7929_vm3, %v1146_v60, %v1376_v39  ;;  %v971_v8 = vpack.c.bf16 %v939_v61, %v939_v61  ;;  %v1444_v9 = vld [vmem:[#allocation2 + $0x70] sm:$0xf]  ;;  %v2454_v39 = vor.u32 %v2453_v16, %v8260_v11  ;;  %v6832_v59 = vor.u32 %v7509_v35, %v6831_v49  ;;  %v623_v60 = vpop.f32.mrf.mxu3  ;;  %v2340_v63 = vld [vmem:[#allocation2 + $0x40] sm:$0xf]  ;;  %v8296_v6 = vld [vmem:[#allocation3 + $0x1bc] sm:$0xf] }
 0x140   : > { %1378 = vst [vmem:[#allocation2 + $0x78] sm:$0xf] %v1377_v7  ;;  %v6768_v61 = vor.u32 %v8272_v33, %v8286_v56  ;;  %v624_v5 = vadd.f32 %v8164_v45, %v623_v60  ;;  %v1383_v10 = vld [vmem:[#allocation2 + $0x84] sm:$0xf]  ;;  %v2464_v14 = vor.u32 %v2463_v50, %v8279_v48  ;;  %v2474_v15 = vrot.slane %v2472_v51, 4  ;;  %v8320_v51 = vpop.f32.mrf.mxu2 }
 0x141   : > { %v1149_v18 = vshrl.u32 %v971_v8, 16  ;;  %v598_v19 = vpop.f32.mrf.mxu0  ;;  %1476 = vst [vmem:[#allocation3 + $0x2ac] sm:$0xf] %v1444_v9  ;;  %v1152_v30 = vshll.u32 %v971_v8, 16  ;;  %v2455_v7 = vrot.slane %v2454_v39, 4  ;;  %v2467_v8 = vshll.u32 %v2338_v38, 16 }
 0x142   : > { %v599_v25 = vadd.f32 %v8164_v45, %v598_v19  ;;  %v858_v23 = vpop.f32.mrf.mxu1  ;;  %918 = vst [vmem:[%s7908_s8 + $0xf0] sm:$0xff] %v624_v5  ;;  %v2477_v19 = vrot.slane %v2475_v57, 5  ;;  %v6772_v21 = vor.u32 %v8296_v6, %v8293_v62  ;;  %v2485_v22 = vshrl.u32 %v2340_v63, 16  ;;  %5452 = vmatmul.bf16.gmra.mxu2 %v6832_v59  ;;  %v8315_v35 = vld [vmem:[#allocation2 + $0x18] sm:$0xf] }
 0x143   : > { %v1151_v29 = vrot.slane %v1149_v18, 7  ;;  %v859_v31 = vadd.f32 %v8170_v52, %v858_v23  ;;  %v2280_v18 = vld [vmem:[#allocation2 + $0x70] sm:$0xf]  ;;  %v2460_v27 = vsel %vm8157_vm14, %v2455_v7, %v8279_v48  ;;  %v2469_v28 = vrot.slane %v2467_v8, 5  ;;  %2796 = vst [vmem:[#allocation3 + $0xc4] sm:$0xf] %v2446_v24 }
 0x144   : > { %908 = vst [vmem:[%s7908_s8 + $0xa0] sm:$0xff] %v599_v25  ;;  %5615 = vmatmul.bf16.gmra.mxu0 %v6732_v20  ;;  %v2481_v20 = vshll.u32 %v2340_v63, 16  ;;  %v1565_v25 = vshrl.u32 %v8289_v58, 16  ;;  %v2487_v34 = vrot.slane %v2485_v22, 4  ;;  %v7612_v62 = vld [vmem:[%s9755_s5 + $0x118] sm:$0xff] }
 0x145   : > { %v1154_v43 = vor.u32 %v1152_v30, %v1151_v29  ;;  %v1156_v44 = vrot.slane %v1151_v29, 4  ;;  %v940_v46 = vmax.f32 %v859_v31, 0.0  ;;  %5704 = vmatmul.bf16.gmra.mxu1 %v6736_v32  ;;  %v2341_v29 = vld [vmem:[#allocation2 + $0x44] sm:$0x1]  ;;  %2312 = vst [vmem:[#allocation3 + $0x270] sm:$0xf] %v2280_v18  ;;  %v2478_v31 = vor.u32 %v2477_v19, %v2474_v15  ;;  %5764 = vmatpush.bf16.msrb.mxu2 %v7612_v62 }
 0x146   : > { %v2465_v30 = vrot.slane %v2464_v14, 4  ;;  %v2483_v32 = vrot.slane %v2481_v20, 5  ;;  %v2491_v47 = vshll.u32 %v2341_v29, 16  ;;  %v1567_v48 = vrot.slane %v1565_v25, 4  ;;  %2797 = vst [vmem:[#allocation3 + $0xe8] sm:$0xf] %v2460_v27 }
 0x147   : > { %v1155_v53 = vsel %vm7960_vm7, %v1147_v41, %v1154_v43  ;;  %v1381_v54 = vsel %vm7967_vm8, %v1156_v44, %v1380_v4  ;;  %v972_v55 = vpack.c.bf16 %v940_v46, %v940_v46  ;;  %v1445_v13 = vld [vmem:[#allocation2 + $0x78] sm:$0xf]  ;;  %v1493_v4 = vld [vmem:[#allocation2 + $0x10] sm:$0xf]  ;;  %v1568_v41 = vshll.u32 %v8289_v58, 16  ;;  %v625_v44 = vpop.f32.mrf.mxu3 }
 0x148   : > { %1379 = vst [vmem:[#allocation2 + $0x7c] sm:$0xf] %v1155_v53  ;;  %v1574_v43 = vshll.u32 %v1493_v4, 16  ;;  %v2488_v46 = vor.u32 %v2487_v34, %v2483_v32  ;;  %v1578_v50 = vshrl.u32 %v1493_v4, 16  ;;  %v626_v49 = vadd.f32 %v8164_v45, %v625_v44  ;;  %v1494_v8 = vld [vmem:[#allocation2 + $0x14] sm:$0x1]  ;;  %v8351_v27 = vpop.f32.mrf.mxu2 }
 0x149   : > { %1382 = vst [vmem:[#allocation2 + $0x80] sm:$0x1] %v1381_v54  ;;  %v1158_v1 = vshrl.u32 %v972_v55, 16  ;;  %v600_v2 = vpop.f32.mrf.mxu0  ;;  %v1161_v9 = vshll.u32 %v972_v55, 16  ;;  %v2479_v55 = vrot.slane %v2478_v31, 4  ;;  %v1570_v57 = vrot.slane %v1568_v41, 5 }
 0x14a   : > { %v601_v11 = vadd.f32 %v8164_v45, %v600_v2  ;;  %v860_v12 = vpop.f32.mrf.mxu1  ;;  %1477 = vst [vmem:[#allocation3 + $0x2d0] sm:$0xf] %v1445_v13  ;;  %v2470_v63 = vsel %vm8157_vm14, %v2465_v30, %v2469_v28  ;;  %v8329_v2 = vld [vmem:[#allocation2 + $0x18] sm:$0xf]  ;;  %v1580_v14 = vrot.slane %v1578_v50, 4  ;;  %v3212_v20 = vshll.u32 %v8315_v35, 16 }
 0x14b   : > { %v8300_v16 = vrot.slane %v1158_v1, 7  ;;  %v861_v17 = vadd.f32 %v8170_v52, %v860_v12  ;;  %v2489_v1 = vrot.slane %v2488_v46, 4  ;;  %919 = vst [vmem:[%s7908_s8 + $0xf8] sm:$0xff] %v626_v49  ;;  %v2484_v7 = vsel %vm8157_vm14, %v2479_v55, %v2483_v32  ;;  %v7518_v25 = vld [vmem:[#allocation3 + $0x2a8] sm:$0xf0] }
 0x14c   : > { %909 = vst [vmem:[%s7908_s8 + $0xa8] sm:$0xff] %v601_v11  ;;  %v1387_v11 = vld [vmem:[#allocation2 + $0x8c] sm:$0x1]  ;;  %v2493_v12 = vrot.slane %v2491_v47, 5  ;;  %v1571_v13 = vor.u32 %v1570_v57, %v1567_v48  ;;  %v1584_v22 = vshll.u32 %v1494_v8, 16  ;;  %v1592_v48 = vshll.u32 %v8329_v2, 16 }
 0x14d   : > { %v1163_v23 = vor.u32 %v1161_v9, %v8300_v16  ;;  %v941_v26 = vmax.f32 %v861_v17, 0.0  ;;  %v1576_v9 = vrot.slane %v1574_v43, 5  ;;  %v1164_v15 = vrot.slane %v8300_v16, 4  ;;  %2798 = vst [vmem:[#allocation3 + $0x10c] sm:$0xf] %v2470_v63 }
 0x14e   : > { %v2494_v24 = vsel %vm8157_vm14, %v2489_v1, %v2493_v12  ;;  %2799 = vst [vmem:[#allocation3 + $0x130] sm:$0xf] %v2484_v7  ;;  %v6867_v33 = vld [vmem:[#allocation3 + $0x288] sm:$0xf]  ;;  %v1572_v56 = vrot.slane %v1571_v13, 4 }
 0x14f   : > { %v1384_v37 = vsel %vm7929_vm3, %v1163_v23, %v1383_v10  ;;  %v973_v38 = vpack.c.bf16 %v941_v26, %v941_v26  ;;  %v1446_v39 = vld [vmem:[#allocation2 + $0x7c] sm:$0xf]  ;;  %v3209_v10 = vshrl.u32 %v8315_v35, 16  ;;  %v1581_v26 = vor.u32 %v1580_v14, %v1576_v9  ;;  %v1390_v32 = vld [vmem:[#allocation2 + $0x90] sm:$0xf] }
 0x150   : > { %1385 = vst [vmem:[#allocation2 + $0x84] sm:$0xf] %v1384_v37  ;;  %v1496_v30 = vld [vmem:[#allocation2 + $0x1c] sm:$0xf]  ;;  %v6868_v31 = vor.u32 %v7518_v25, %v6867_v33  ;;  %v8371_v14 = vpop.f32.mrf.mxu2  ;;  %v2351_v0 = vld [vmem:[#allocation2 + $0x6c] sm:$0xf] }
 0x151   : > { %v1166_v53 = vshrl.u32 %v973_v38, 16  ;;  %v603_v54 = vpop.f32.mrf.mxu0  ;;  %1478 = vst [vmem:[#allocation3 + $0x2f4] sm:$0xf] %v1446_v39  ;;  %v1169_v59 = vshll.u32 %v973_v38, 16  ;;  %v1577_v38 = vsel %vm8157_vm14, %v1572_v56, %v1576_v9  ;;  %v1586_v39 = vrot.slane %v1584_v22, 5 }
 0x152   : > { %v604_v58 = vadd.f32 %v8164_v45, %v603_v54  ;;  %v863_v60 = vpop.f32.mrf.mxu1  ;;  %2800 = vst [vmem:[#allocation3 + $0x154] sm:$0xf] %v2494_v24  ;;  %v1582_v46 = vrot.slane %v1581_v26, 4  ;;  %v1598_v50 = vshll.u32 %v1496_v30, 16  ;;  %v3214_v54 = vrot.slane %v3212_v20, 5  ;;  %5457 = vmatmul.bf16.gmra.mxu2 %v6868_v31 }
 0x153   : > { %v1168_v5 = vrot.slane %v1166_v53, 7  ;;  %v864_v6 = vadd.f32 %v8170_v52, %v863_v60  ;;  %v1602_v53 = vshrl.u32 %v1496_v30, 16  ;;  %v8361_v49 = vld [vmem:[#allocation2 + $0x1c] sm:$0xf]  ;;  %1958 = vst [vmem:[#allocation3 + $0x4c] sm:$0xf] %v1577_v38 }
 0x154   : > { %910 = vst [vmem:[%s7908_s8 + $0xb0] sm:$0xff] %v604_v58  ;;  %5620 = vmatmul.bf16.gmra.mxu0 %v6768_v61  ;;  %v1589_v61 = vshrl.u32 %v8329_v2, 16  ;;  %v1587_v58 = vsel %vm8157_vm14, %v1582_v46, %v1586_v39  ;;  %v1594_v60 = vrot.slane %v1592_v48, 5  ;;  %v1600_v62 = vrot.slane %v1598_v50, 5  ;;  %v6803_v9 = vld [vmem:[#allocation3 + $0x200] sm:$0xf] }
 0x155   : > { %v1171_v17 = vor.u32 %v1169_v59, %v1168_v5  ;;  %v1173_v18 = vrot.slane %v1168_v5, 4  ;;  %v942_v19 = vmax.f32 %v864_v6, 0.0  ;;  %5709 = vmatmul.bf16.gmra.mxu1 %v6772_v21  ;;  %v8349_v21 = vrot.slane %v3209_v10, 4  ;;  %v7501_v59 = vld [vmem:[#allocation3 + $0x220] sm:$0xf0]  ;;  %v873_v5 = vpop.f32.mrf.mxu3 }
 0x156   : > { %v1591_v47 = vrot.slane %v1589_v61, 4  ;;  %v1604_v63 = vrot.slane %v1602_v53, 4  ;;  %v6805_v6 = vld [vmem:[#allocation3 + $0x224] sm:$0xf0]  ;;  %1959 = vst [vmem:[#allocation3 + $0x70] sm:$0xf] %v1587_v58  ;;  %v874_v8 = vadd.f32 %v8170_v52, %v873_v5 }
 0x157   : > { %v1172_v4 = vsel %vm7960_vm7, %v1164_v15, %v1171_v17  ;;  %v1388_v16 = vsel %vm7967_vm8, %v1173_v18, %v1387_v11  ;;  %v974_v23 = vpack.c.bf16 %v942_v19, %v942_v19  ;;  %v1447_v37 = vld [vmem:[#allocation2 + $0x84] sm:$0xf]  ;;  %v7497_v10 = vld [vmem:[#allocation3 + $0x204] sm:$0xf]  ;;  %v3215_v12 = vor.u32 %v3214_v54, %v8349_v21  ;;  %v1497_v19 = vld [vmem:[#allocation2 + $0x20] sm:$0x1] }
 0x158   : > { %1386 = vst [vmem:[#allocation2 + $0x88] sm:$0xf] %v1172_v4  ;;  %v1595_v11 = vor.u32 %v1594_v60, %v1591_v47  ;;  %v3218_v13 = vshll.u32 %v8361_v49, 16  ;;  %v6804_v18 = vor.u32 %v7501_v59, %v6803_v9  ;;  %v946_v22 = vmax.f32 %v874_v8, 0.0  ;;  %v1394_v21 = vld [vmem:[#allocation2 + $0x98] sm:$0x1]  ;;  %v8395_v60 = vpop.f32.mrf.mxu2 }
 0x159   : > { %1389 = vst [vmem:[#allocation2 + $0x8c] sm:$0x1] %v1388_v16  ;;  %v1175_v28 = vshrl.u32 %v974_v23, 16  ;;  %v605_v29 = vpop.f32.mrf.mxu0  ;;  %v1178_v43 = vshll.u32 %v974_v23, 16  ;;  %v6808_v4 = vor.u32 %v7497_v10, %v6805_v6  ;;  %v7611_v16 = vld [vmem:[%s9755_s5 + $0x110] sm:$0xff]  ;;  %v1605_v25 = vor.u32 %v1604_v63, %v1600_v62  ;;  %v7609_v8 = vld [vmem:[%s9755_s5 + $0x100] sm:$0xff] }
 0x15a   : > { %v606_v34 = vadd.f32 %v8164_v45, %v605_v29  ;;  %v865_v35 = vpop.f32.mrf.mxu1  ;;  %1479 = vst [vmem:[#allocation3 + $0x318] sm:$0xf] %v1447_v37  ;;  %v1596_v56 = vrot.slane %v1595_v11, 4  ;;  %5765 = vmatpush.bf16.msrb.mxu2 %v7611_v16  ;;  %v7610_v29 = vld [vmem:[%s9755_s5 + $0x108] sm:$0xff]  ;;  %v1608_v30 = vshll.u32 %v1497_v19, 16  ;;  %v3216_v37 = vrot.slane %v3215_v12, 4 }
 0x15b   : > { %v8356_v41 = vrot.slane %v1175_v28, 7  ;;  %v866_v44 = vadd.f32 %v8170_v52, %v865_v35  ;;  %v978_v28 = vpack.c.bf16 %v946_v22, %v946_v22  ;;  %v7527_v47 = vld [vmem:[#allocation3 + $0x2f0] sm:$0xf0]  ;;  %v6903_v53 = vld [vmem:[#allocation3 + $0x2d0] sm:$0xf]  ;;  %v3222_v59 = vshrl.u32 %v8361_v49, 16 }
 0x15c   : > { %911 = vst [vmem:[%s7908_s8 + $0xb8] sm:$0xff] %v606_v34  ;;  %v1601_v35 = vsel %vm8157_vm14, %v1596_v56, %v1600_v62  ;;  %v1498_v58 = vld [vmem:[#allocation2 + $0x24] sm:$0xf]  ;;  %v1404_v63 = vld [vmem:[#allocation2 + $0xa8] sm:$0xf]  ;;  %v7592_v49 = vld [vmem:[%s9755_s5 + $0x78] sm:$0xff] }
 0x15d   : > { %v1180_v55 = vor.u32 %v1178_v43, %v8356_v41  ;;  %v943_v57 = vmax.f32 %v866_v44, 0.0  ;;  %v1181_v61 = vrot.slane %v8356_v41, 4  ;;  %v1209_v38 = vshrl.u32 %v978_v28, 16  ;;  %1960 = vst [vmem:[#allocation3 + $0x94] sm:$0xf] %v1601_v35  ;;  %v875_v50 = vpop.f32.mrf.mxu3  ;;  %5493 = vmatpush.bf16.msrb.mxu3 %v7592_v49 }
 0x15e   : > { %v1212_v39 = vshll.u32 %v978_v28, 16  ;;  %v1606_v41 = vrot.slane %v1605_v25, 4  ;;  %v8385_v43 = vrot.slane %v3218_v13, 5  ;;  %5766 = vmatpush.bf16.msrb.mxu2 %v7610_v29  ;;  %v8416_v19 = vrot.slane %v3222_v59, 4  ;;  %v7510_v22 = vld [vmem:[#allocation3 + $0x268] sm:$0xf0] }
 0x15f   : > { %v1391_v1 = vsel %vm7929_vm3, %v1180_v55, %v1390_v32  ;;  %v975_v2 = vpack.c.bf16 %v943_v57, %v943_v57  ;;  %v1448_v7 = vld [vmem:[#allocation2 + $0x88] sm:$0xf]  ;;  %v8391_v54 = vrot.slane %v1209_v38, 7  ;;  %v876_v55 = vadd.f32 %v8170_v52, %v875_v50  ;;  %v8424_v29 = vld [vmem:[%s9754_s4] ss:$0 sm:$0xff] }
 0x160   : > { %1392 = vst [vmem:[#allocation2 + $0x90] sm:$0xf] %v1391_v1  ;;  %v1610_v57 = vrot.slane %v1608_v30, 5  ;;  %v6841_v16 = vld [vmem:[#allocation3 + $0x26c] sm:$0xf0]  ;;  %v1613_v25 = vshrl.u32 %v1498_v58, 16 }
 0x161   : > { %v1183_v15 = vshrl.u32 %v975_v2, 16  ;;  %v608_v17 = vpop.f32.mrf.mxu0  ;;  %1480 = vst [vmem:[#allocation3 + $0x33c] sm:$0xf] %v1448_v7  ;;  %v1186_v26 = vshll.u32 %v975_v2, 16  ;;  %v6904_v2 = vor.u32 %v7527_v47, %v6903_v53  ;;  %v1214_v5 = vor.u32 %v1212_v39, %v8391_v54  ;;  %v2015_v50 = vld [vmem:[#allocation2 + $0x6c] sm:$0xe] }
 0x162   : > { %v609_v20 = vadd.f32 %v8164_v45, %v608_v17  ;;  %v868_v24 = vpop.f32.mrf.mxu1  ;;  %v1611_v10 = vsel %vm8157_vm14, %v1606_v41, %v1610_v57  ;;  %5767 = vmatpush.bf16.msrb.mxu2 %v7609_v8  ;;  %v1215_v35 = vrot.slane %v8391_v54, 4  ;;  %v8437_v53 = vrot.slane %v1613_v25, 4 }
 0x163   : > { %v1185_v23 = vrot.slane %v1183_v15, 7  ;;  %v869_v33 = vadd.f32 %v8170_v52, %v868_v24  ;;  %v947_v15 = vmax.f32 %v876_v55, 0.0  ;;  %v1405_v17 = vsel %vm7929_vm3, %v1214_v5, %v1404_v63  ;;  %5462 = vmatmul.bf16.gmra.mxu2 %v6904_v2  ;;  %1961 = vst [vmem:[#allocation3 + $0xb8] sm:$0xf] %v1611_v10  ;;  %v1401_v63 = vld [vmem:[#allocation2 + $0xa4] sm:$0x1] }
 0x164   : > { %912 = vst [vmem:[%s7908_s8 + $0xc0] sm:$0xff] %v609_v20  ;;  %5625 = vmatmul.bf16.gmra.mxu0 %v6804_v18  ;;  %v3221_v18 = vsel %vm8157_vm14, %v3216_v37, %v8385_v43 }
 0x165   : > { %v1188_v31 = vor.u32 %v1186_v26, %v1185_v23  ;;  %v1190_v32 = vrot.slane %v1185_v23, 4  ;;  %v944_v34 = vmax.f32 %v869_v33, 0.0  ;;  %5714 = vmatmul.bf16.gmra.mxu1 %v6808_v4  ;;  %1406 = vst [vmem:[#allocation2 + $0xa8] sm:$0xf] %v1405_v17  ;;  %v6839_v4 = vld [vmem:[#allocation3 + $0x248] sm:$0xf] }
 0x166   : > { %v1616_v23 = vshll.u32 %v1498_v58, 16  ;;  %3624 = vst [vmem:[#allocation3 + $0x1c] sm:$0xf] %v3221_v18  ;;  %v6840_v39 = vor.u32 %v7510_v22, %v6839_v4  ;;  %v1411_v22 = vld [vmem:[#allocation2 + $0xb4] sm:$0xf] }
 0x167   : > { %v1189_v44 = vsel %vm7960_vm7, %v1181_v61, %v1188_v31  ;;  %v1395_v46 = vsel %vm7967_vm8, %v1190_v32, %v1394_v21  ;;  %v976_v48 = vpack.c.bf16 %v944_v34, %v944_v34  ;;  %v1449_v9 = vld [vmem:[#allocation2 + $0x90] sm:$0xf]  ;;  %v878_v21 = vpop.f32.mrf.mxu3  ;;  %v7506_v31 = vld [vmem:[#allocation3 + $0x24c] sm:$0xf]  ;;  %v1499_v32 = vld [vmem:[#allocation2 + $0x28] sm:$0xf]  ;;  %v8427_v34 = vpop.f32.mrf.mxu2 }
 0x168   : > { %1393 = vst [vmem:[#allocation2 + $0x94] sm:$0xf] %v1189_v44  ;;  %v879_v30 = vadd.f32 %v8424_v29, %v878_v21  ;;  %v6844_v47 = vor.u32 %v7506_v31, %v6841_v16  ;;  %v8439_v55 = vrot.slane %v1616_v23, 5  ;;  %v1622_v5 = vshll.u32 %v1499_v32, 16 }
 0x169   : > { %1396 = vst [vmem:[#allocation2 + $0x98] sm:$0x1] %v1395_v46  ;;  %v1192_v62 = vshrl.u32 %v976_v48, 16  ;;  %v610_v1 = vpop.f32.mrf.mxu0  ;;  %v1195_v12 = vshll.u32 %v976_v48, 16  ;;  %v7591_v48 = vld [vmem:[%s9755_s5 + $0x70] sm:$0xff] }
 0x16a   : > { %v611_v6 = vadd.f32 %v8164_v45, %v610_v1  ;;  %v870_v7 = vpop.f32.mrf.mxu1  ;;  %1481 = vst [vmem:[#allocation3 + $0x360] sm:$0xf] %v1449_v9  ;;  %v1397_v45 = vld [vmem:[#allocation2 + $0x9c] sm:$0xf]  ;;  %v948_v46 = vmax.f32 %v879_v30, 0.0  ;;  %5494 = vmatpush.bf16.msrb.mxu3 %v7591_v48  ;;  %v1619_v25 = vor.u32 %v8439_v55, %v8437_v53  ;;  %v1624_v31 = vrot.slane %v1622_v5, 5 }
 0x16b   : > { %v8407_v11 = vrot.slane %v1192_v62, 7  ;;  %v871_v13 = vadd.f32 %v8170_v52, %v870_v7  ;;  %v979_v52 = vpack.c.bf16 %v947_v15, %v947_v15  ;;  %v2016_v62 = vld [vmem:[#allocation2 + $0x70] sm:$0xf]  ;;  %v3162_v7 = vld [vmem:[#allocation2 + $0x20] sm:$0x1] }
 0x16c   : > { %913 = vst [vmem:[%s7908_s8 + $0xc8] sm:$0xff] %v611_v6  ;;  %v1408_v1 = vld [vmem:[#allocation2 + $0xb0] sm:$0x1]  ;;  %v980_v2 = vpack.c.bf16 %v948_v46, %v948_v46  ;;  %v1626_v6 = vshrl.u32 %v1499_v32, 16  ;;  %v2152_v17 = vrot.slane %v2016_v62, 5  ;;  %v3225_v62 = vor.u32 %v8416_v19, %v8385_v43 }
 0x16d   : > { %v1197_v20 = vor.u32 %v1195_v12, %v8407_v11  ;;  %v945_v24 = vmax.f32 %v871_v13, 0.0  ;;  %v1217_v56 = vshrl.u32 %v979_v52, 16  ;;  %v1220_v61 = vshll.u32 %v979_v52, 16  ;;  %v2017_v12 = vld [vmem:[#allocation2 + $0x74] sm:$0x1] }
 0x16e   : > { %v1198_v8 = vrot.slane %v8407_v11, 4  ;;  %v1226_v13 = vshrl.u32 %v980_v2, 16  ;;  %v1229_v15 = vshll.u32 %v980_v2, 16  ;;  %v6939_v11 = vld [vmem:[#allocation3 + $0x318] sm:$0xf]  ;;  %v2155_v30 = vrot.slane %v2017_v12, 5 }
 0x16f   : > { %v1398_v26 = vsel %vm7929_vm3, %v1197_v20, %v1397_v45  ;;  %v977_v33 = vpack.c.bf16 %v945_v24, %v945_v24  ;;  %v1450_v28 = vld [vmem:[#allocation2 + $0x94] sm:$0xf]  ;;  %v1219_v38 = vrot.slane %v1217_v56, 7  ;;  %v6502_v45 = vrot.slane %v2015_v50, 9  ;;  %v880_v16 = vpop.f32.mrf.mxu3  ;;  %v8457_v21 = vpop.f32.mrf.mxu2  ;;  %v2342_v48 = vld [vmem:[#allocation2 + $0x48] sm:$0xf] }
 0x170   : > { %1399 = vst [vmem:[#allocation2 + $0x9c] sm:$0xf] %v1398_v26  ;;  %v7536_v24 = vld [vmem:[#allocation3 + $0x338] sm:$0xf0]  ;;  %v8452_v23 = vrot.slane %v1226_v13, 7  ;;  %v1628_v32 = vrot.slane %v1626_v6, 4 }
 0x171   : > { %v1200_v37 = vshrl.u32 %v977_v33, 16  ;;  %1482 = vst [vmem:[#allocation3 + $0x384] sm:$0xf] %v1450_v28  ;;  %v8430_v41 = vpop.f32.mrf.mxu0  ;;  %v1203_v57 = vshll.u32 %v977_v33, 16  ;;  %v1222_v59 = vor.u32 %v1220_v61, %v1219_v38  ;;  %v1224_v58 = vrot.slane %v1219_v38, 4 }
 0x172   : > { %9770 = vst [vmem:[#allocation4_spill] sm:$0xff] %v8430_v41  ;;  %v8432_v44 = vpop.f32.mrf.mxu1  ;;  %v6975_v4 = vld [vmem:[#allocation3 + $0x360] sm:$0xf]  ;;  %v881_v33 = vadd.f32 %v8424_v29, %v880_v16  ;;  %v2153_v56 = vsel %vm8076_vm11, %v6502_v45, %v2152_v17  ;;  %v2154_v61 = vrot.slane %v2152_v17, 4  ;;  %v1231_v38 = vor.u32 %v1229_v15, %v8452_v23  ;;  %v1500_v55 = vld [vmem:[#allocation2 + $0x2c] sm:$0x1] }
 0x173   : > { %9771 = vst [vmem:[#allocation5_spill] sm:$0xff] %v8432_v44  ;;  %v1202_v54 = vrot.slane %v1200_v37, 7  ;;  %v1223_v10 = vsel %vm7960_vm7, %v1215_v35, %v1222_v59  ;;  %v1409_v52 = vsel %vm7967_vm8, %v1224_v58, %v1408_v1  ;;  %v3228_v35 = vshll.u32 %v3162_v7, 16  ;;  %v2281_v53 = vld [vmem:[#allocation2 + $0x78] sm:$0xf]  ;;  %v7590_v58 = vld [vmem:[%s9755_s5 + $0x68] sm:$0xff] }
 0x174   : > { %5630 = vmatmul.bf16.gmra.mxu0 %v6840_v39  ;;  %1407 = vst [vmem:[#allocation2 + $0xac] sm:$0xf] %v1223_v10  ;;  %v6940_v37 = vor.u32 %v7536_v24, %v6939_v11  ;;  %v2156_v50 = vsel %vm8076_vm11, %v2154_v61, %v2155_v30  ;;  %v2282_v59 = vld [vmem:[#allocation2 + $0x7c] sm:$0xf]  ;;  %v1620_v1 = vrot.slane %v1619_v25, 4  ;;  %v1629_v2 = vor.u32 %v1628_v32, %v1624_v31  ;;  %v7589_v16 = vld [vmem:[%s9755_s5 + $0x60] sm:$0xff] }
 0x175   : > { %v1205_v9 = vor.u32 %v1203_v57, %v1202_v54  ;;  %v1207_v49 = vrot.slane %v1202_v54, 4  ;;  %5719 = vmatmul.bf16.gmra.mxu1 %v6844_v47  ;;  %1410 = vst [vmem:[#allocation2 + $0xb0] sm:$0x1] %v1409_v52  ;;  %v949_v47 = vmax.f32 %v881_v33, 0.0  ;;  %v1412_v54 = vsel %vm7929_vm3, %v1231_v38, %v1411_v22  ;;  %5495 = vmatpush.bf16.msrb.mxu3 %v7590_v58  ;;  %v2018_v10 = vld [vmem:[#allocation2 + $0x78] sm:$0xe] }
 0x176   : > { %2249 = vst [vmem:[#allocation3 + $0x290] sm:$0xf] %v2153_v56  ;;  %v8473_v5 = vrot.slane %v3228_v35, 5  ;;  %5467 = vmatmul.bf16.gmra.mxu2 %v6940_v37  ;;  %v1625_v43 = vsel %vm8157_vm14, %v1620_v1, %v1624_v31  ;;  %v1232_v19 = vrot.slane %v8452_v23, 4  ;;  %v2496_v13 = vshrl.u32 %v2342_v48, 16 }
 0x177   : > { %v1206_v18 = vsel %vm7960_vm7, %v1198_v8, %v1205_v9  ;;  %v1402_v20 = vsel %vm7967_vm8, %v1207_v49, %v1401_v63  ;;  %v981_v57 = vpack.c.bf16 %v949_v47, %v949_v47  ;;  %2250 = vst [vmem:[#allocation3 + $0x2b4] sm:$0xf] %v2156_v50  ;;  %v1451_v63 = vld [vmem:[#allocation2 + $0x9c] sm:$0xf]  ;;  %v1632_v8 = vshll.u32 %v1500_v55, 16  ;;  %v8482_v17 = vpop.f32.mrf.mxu2 }
 0x178   : > { %1400 = vst [vmem:[#allocation2 + $0xa0] sm:$0xf] %v1206_v18  ;;  %v7545_v26 = vld [vmem:[#allocation3 + $0x380] sm:$0xf0]  ;;  %v8475_v9 = vld [vmem:[#allocation2 + $0x30] sm:$0xf] }
 0x179   : > { %1403 = vst [vmem:[#allocation2 + $0xa4] sm:$0x1] %v1402_v20  ;;  %v6976_v28 = vor.u32 %v7545_v26, %v6975_v4  ;;  %v8460_v39 = vpop.f32.mrf.mxu0  ;;  %v1234_v6 = vshrl.u32 %v981_v57, 16  ;;  %v1237_v7 = vshll.u32 %v981_v57, 16  ;;  %v2499_v15 = vshll.u32 %v2342_v48, 16  ;;  %5496 = vmatpush.bf16.msrb.mxu3 %v7589_v16 }
 0x17a   : > { %9772 = vst [vmem:[#allocation6_spill] sm:$0xff] %v8460_v39  ;;  %v8462_v46 = vpop.f32.mrf.mxu1  ;;  %v8480_v45 = vrot.slane %v3225_v62, 4  ;;  %v1415_v18 = vld [vmem:[#allocation2 + $0xbc] sm:$0x1]  ;;  %v1630_v20 = vrot.slane %v1629_v2, 4  ;;  %v2498_v25 = vrot.slane %v2496_v13, 4 }
 0x17b   : > { %9773 = vst [vmem:[#allocation7_spill] sm:$0xff] %v8462_v46  ;;  %5472 = vmatmul.bf16.vlgmr.msra.gmra.mxu3 %v6976_v28  ;;  %v1236_v12 = vrot.slane %v1234_v6, 7  ;;  %v1634_v23 = vrot.slane %v1632_v8, 5  ;;  %v6503_v33 = vrot.slane %v2018_v10, 9  ;;  %v2501_v56 = vrot.slane %v2499_v15, 5 }
 0x17c   : > { %1413 = vst [vmem:[#allocation2 + $0xb4] sm:$0xf] %v1412_v54  ;;  %v1637_v31 = vshrl.u32 %v8475_v9, 16  ;;  %v2019_v35 = vld [vmem:[#allocation2 + $0x7c] sm:$0xf] }
 0x17d   : > { %2313 = vst [vmem:[#allocation3 + $0x294] sm:$0xf] %v2281_v53  ;;  %v1239_v11 = vor.u32 %v1237_v7, %v1236_v12  ;;  %v1241_v24 = vrot.slane %v1236_v12, 4  ;;  %v6875_v4 = vld [vmem:[#allocation3 + $0x290] sm:$0xf]  ;;  %v2502_v37 = vor.u32 %v2501_v56, %v2498_v25  ;;  %v1635_v48 = vsel %vm8157_vm14, %v1630_v20, %v1634_v23  ;;  %v7588_v25 = vld [vmem:[%s9755_s5 + $0x58] sm:$0xff] }
 0x17e   : > { %2314 = vst [vmem:[#allocation3 + $0x2b8] sm:$0xf] %v2282_v59  ;;  %v7519_v26 = vld [vmem:[#allocation3 + $0x2b0] sm:$0xf0]  ;;  %v2020_v47 = vld [vmem:[#allocation2 + $0x80] sm:$0x1]  ;;  %5497 = vmatpush.bf16.msrb.mxu3 %v7588_v25 }
 0x17f   : > { %v1452_v49 = vld [vmem:[#allocation2 + $0xa0] sm:$0xf]  ;;  %1483 = vst [vmem:[#allocation3 + $0x3a8] sm:$0xf] %v1451_v63  ;;  %v1240_v61 = vsel %vm7960_vm7, %v1232_v19, %v1239_v11  ;;  %v1416_v28 = vsel %vm7967_vm8, %v1241_v24, %v1415_v18  ;;  %v6876_v30 = vor.u32 %v7519_v26, %v6875_v4  ;;  %v7439_v50 = vld [vmem:[#allocation3 + $0x30] sm:$0xf0]  ;;  %v8499_v6 = vpop.f32.mrf.mxu2 }
 0x180   : > { %1484 = vst [vmem:[#allocation3 + $0x3cc] sm:$0xf] %v1452_v49  ;;  %v2159_v54 = vrot.slane %v2019_v35, 5  ;;  %v2343_v57 = vld [vmem:[#allocation2 + $0x4c] sm:$0xf]  ;;  %v1640_v59 = vshll.u32 %v8475_v9, 16 }
 0x181   : > { %v8484_v52 = vpop.f32.mrf.mxu0  ;;  %1962 = vst [vmem:[#allocation3 + $0xdc] sm:$0xf] %v1625_v43  ;;  %v2162_v62 = vrot.slane %v2020_v47, 5  ;;  %v2503_v63 = vrot.slane %v2502_v37, 4  ;;  %v2505_v1 = vshll.u32 %v2343_v57, 16  ;;  %v1639_v2 = vrot.slane %v1637_v31, 4 }
 0x182   : > { %9774 = vst [vmem:[#allocation8_spill] sm:$0xff] %v8484_v52  ;;  %v8486_v22 = vpop.f32.mrf.mxu1  ;;  %v6559_v7 = vld [vmem:[#allocation3 + $0x10] sm:$0xf]  ;;  %v2160_v49 = vsel %vm8076_vm11, %v6503_v33, %v2159_v54  ;;  %v2161_v10 = vrot.slane %v2159_v54, 4  ;;  %v2344_v43 = vld [vmem:[#allocation2 + $0x50] sm:$0x1] }
 0x183   : > { %9775 = vst [vmem:[#allocation9_spill] sm:$0xff] %v8486_v22  ;;  %v2509_v19 = vshrl.u32 %v2343_v57, 16  ;;  %v8503_v12 = vld [vmem:[#allocation2 + $0x24] sm:$0xf]  ;;  %v2284_v15 = vld [vmem:[#allocation2 + $0x88] sm:$0xf]  ;;  %v6560_v16 = vor.u32 %v7439_v50, %v6559_v7 }
 0x184   : > { %1414 = vst [vmem:[#allocation2 + $0xb8] sm:$0xf] %v1240_v61  ;;  %v7515_v32 = vld [vmem:[#allocation3 + $0x294] sm:$0xf]  ;;  %5635 = vmatmul.bf16.gmra.mxu0 %v6876_v30  ;;  %v2283_v13 = vld [vmem:[#allocation2 + $0x84] sm:$0xf]  ;;  %v2163_v11 = vsel %vm8076_vm11, %v2161_v10, %v2162_v62  ;;  %v3231_v61 = vsel %vm8157_vm14, %v8480_v45, %v8473_v5 }
 0x185   : > { %1417 = vst [vmem:[#allocation2 + $0xbc] sm:$0x1] %v1416_v28  ;;  %v6877_v38 = vld [vmem:[#allocation3 + $0x2b4] sm:$0xf0]  ;;  %v1502_v18 = vld [vmem:[#allocation2 + $0x34] sm:$0xf] }
 0x186   : > { %v6880_v53 = vor.u32 %v7515_v32, %v6877_v38  ;;  %v7011_v55 = vld [vmem:[#allocation3 + $0x3a8] sm:$0xf]  ;;  %1963 = vst [vmem:[#allocation3 + $0x100] sm:$0xf] %v1635_v48  ;;  %v1453_v24 = vld [vmem:[#allocation2 + $0xa8] sm:$0xf]  ;;  %5768 = vmatmul.bf16.vlgmr.msrb.gmra.mxu2 %v6560_v16 }
 0x187   : > { %v7554_v58 = vld [vmem:[#allocation3 + $0x3c8] sm:$0xf0]  ;;  %2251 = vst [vmem:[#allocation3 + $0x2d8] sm:$0xf] %v2160_v49  ;;  %v1454_v4 = vld [vmem:[#allocation2 + $0xac] sm:$0xf] }
 0x188   : > { %5724 = vmatmul.bf16.gmra.mxu1 %v6880_v53  ;;  %v7012_v8 = vor.u32 %v7554_v58, %v7011_v55  ;;  %2315 = vst [vmem:[#allocation3 + $0x2dc] sm:$0xf] %v2283_v13  ;;  %v2507_v23 = vrot.slane %v2505_v1, 5  ;;  %v2511_v26 = vrot.slane %v2509_v19, 4  ;;  %v2515_v33 = vshll.u32 %v2344_v43, 16  ;;  %v8521_v55 = vpop.f32.mrf.mxu2  ;;  %v7587_v62 = vld [vmem:[%s9755_s5 + $0x50] sm:$0xff] }
 0x189   : > { %v8505_v9 = vpop.f32.mrf.mxu0  ;;  %2252 = vst [vmem:[#allocation3 + $0x2fc] sm:$0xf] %v2163_v11  ;;  %v2345_v56 = vld [vmem:[#allocation2 + $0x54] sm:$0xf]  ;;  %v1642_v31 = vrot.slane %v1640_v59, 5  ;;  %v1646_v35 = vshll.u32 %v1502_v18, 16  ;;  %5498 = vmatpush.bf16.msrb.mxu3 %v7587_v62 }
 0x18a   : > { %9776 = vst [vmem:[#allocation10_spill] sm:$0xff] %v8505_v9  ;;  %v8507_v20 = vpop.f32.mrf.mxu1  ;;  %v2508_v28 = vsel %vm8157_vm14, %v2503_v63, %v2507_v23  ;;  %v2512_v30 = vor.u32 %v2511_v26, %v2507_v23  ;;  %v2517_v32 = vrot.slane %v2515_v33, 5  ;;  %v1650_v37 = vshrl.u32 %v1502_v18, 16  ;;  %v3098_v38 = vld [vmem:[#allocation2 + $0x24] sm:$0xf] }
 0x18b   : > { %5477 = vmatmul.bf16.gmra.mxu3 %v7012_v8  ;;  %9777 = vst [vmem:[#allocation11_spill] sm:$0xff] %v8507_v20  ;;  %v3233_v47 = vshrl.u32 %v8503_v12, 16  ;;  %v2520_v50 = vshrl.u32 %v2345_v56, 16  ;;  %v2523_v53 = vshll.u32 %v2345_v56, 16  ;;  %v1643_v5 = vor.u32 %v1642_v31, %v1639_v2  ;;  %v3099_v45 = vld [vmem:[#allocation2 + $0x28] sm:$0xf] }
 0x18c   : > { %2316 = vst [vmem:[#allocation3 + $0x300] sm:$0xf] %v2284_v15  ;;  %v2513_v48 = vrot.slane %v2512_v30, 4  ;;  %v1503_v54 = vld [vmem:[#allocation2 + $0x38] sm:$0x1]  ;;  %v3236_v2 = vshll.u32 %v8503_v12, 16 }
 0x18d   : > { %1485 = vst [vmem:[#allocation3 + $0x3f0] sm:$0xf] %v1453_v24  ;;  %v3164_v57 = vld [vmem:[#allocation2 + $0x28] sm:$0xf]  ;;  %v2522_v1 = vrot.slane %v2520_v50, 4  ;;  %v2525_v7 = vrot.slane %v2523_v53, 5 }
 0x18e   : > { %1486 = vst [vmem:[#allocation3 + $0x414] sm:$0xf] %v1454_v4  ;;  %v6911_v59 = vld [vmem:[#allocation3 + $0x2d8] sm:$0xf]  ;;  %v2518_v63 = vsel %vm8157_vm14, %v2513_v48, %v2517_v32  ;;  %v1644_v49 = vrot.slane %v1643_v5, 4  ;;  %v1648_v10 = vrot.slane %v1646_v35, 5 }
 0x18f   : > { %2801 = vst [vmem:[#allocation3 + $0x178] sm:$0xf] %v2508_v28  ;;  %v8531_v43 = vld [vmem:[#allocation2 + $0x2c] sm:$0x1]  ;;  %v2526_v15 = vor.u32 %v2525_v7, %v2522_v1  ;;  %v1652_v18 = vrot.slane %v1650_v37, 4  ;;  %v1656_v11 = vshll.u32 %v1503_v54, 16 }
 0x190   : > { %3625 = vst [vmem:[#allocation3 + $0x40] sm:$0xf] %v3231_v61  ;;  %v7528_v8 = vld [vmem:[#allocation3 + $0x2f8] sm:$0xf0]  ;;  %v1649_v16 = vsel %vm8157_vm14, %v1644_v49, %v1648_v10  ;;  %v3242_v12 = vshll.u32 %v3164_v57, 16  ;;  %v3246_v25 = vshrl.u32 %v3164_v57, 16  ;;  %v8538_v48 = vpop.f32.mrf.mxu2 }
 0x191   : > { %v8523_v58 = vpop.f32.mrf.mxu0  ;;  %2802 = vst [vmem:[#allocation3 + $0x19c] sm:$0xf] %v2518_v63  ;;  %v6912_v19 = vor.u32 %v7528_v8, %v6911_v59  ;;  %v7524_v23 = vld [vmem:[#allocation3 + $0x2dc] sm:$0xf]  ;;  %v2346_v56 = vld [vmem:[#allocation2 + $0x58] sm:$0xf]  ;;  %v1653_v61 = vor.u32 %v1652_v18, %v1648_v10 }
 0x192   : > { %9778 = vst [vmem:[#allocation12_spill] sm:$0xff] %v8523_v58  ;;  %v8533_v24 = vpop.f32.mrf.mxu1  ;;  %v3235_v28 = vrot.slane %v3233_v47, 4  ;;  %v3238_v30 = vrot.slane %v3236_v2, 5  ;;  %v7448_v31 = vld [vmem:[#allocation3 + $0x78] sm:$0xf0]  ;;  %v2527_v35 = vrot.slane %v2526_v15, 4 }
 0x193   : > { %v6913_v13 = vld [vmem:[#allocation3 + $0x2fc] sm:$0xf0]  ;;  %3130 = vst [vmem:[#allocation3 + $0x60] sm:$0xf] %v3098_v38  ;;  %v1658_v37 = vrot.slane %v1656_v11, 5  ;;  %v3252_v38 = vshll.u32 %v8531_v43, 16 }
 0x194   : > { %9779 = vst [vmem:[#allocation13_spill] sm:$0xff] %v8533_v24  ;;  %v7047_v4 = vld [vmem:[#allocation3 + $0x3f0] sm:$0xf]  ;;  %5640 = vmatmul.bf16.gmra.mxu0 %v6912_v19  ;;  %v6916_v33 = vor.u32 %v7524_v23, %v6913_v13  ;;  %v6595_v50 = vld [vmem:[#allocation3 + $0x58] sm:$0xf]  ;;  %v2529_v5 = vshll.u32 %v2346_v56, 16  ;;  %v3239_v10 = vor.u32 %v3238_v30, %v3235_v28 }
 0x195   : > { %3131 = vst [vmem:[#allocation3 + $0x84] sm:$0xf] %v3099_v45  ;;  %v7563_v26 = vld [vmem:[#allocation3 + $0x410] sm:$0xf0]  ;;  %v2347_v53 = vld [vmem:[#allocation2 + $0x5c] sm:$0x1]  ;;  %v6596_v43 = vor.u32 %v7448_v31, %v6595_v50 }
 0x196   : > { %1964 = vst [vmem:[#allocation3 + $0x124] sm:$0xf] %v1649_v16  ;;  %v7048_v32 = vor.u32 %v7563_v26, %v7047_v4  ;;  %v2533_v45 = vshrl.u32 %v2346_v56, 16  ;;  %v3244_v54 = vrot.slane %v3242_v12, 5  ;;  %v3248_v57 = vrot.slane %v3246_v25, 4  ;;  %v7586_v8 = vld [vmem:[%s9755_s5 + $0x48] sm:$0xff] }
 0x197   : > { %v2021_v62 = vld [vmem:[#allocation2 + $0x84] sm:$0xe]  ;;  %v2022_v47 = vld [vmem:[#allocation2 + $0x88] sm:$0xf]  ;;  %v2023_v63 = vld [vmem:[#allocation2 + $0x8c] sm:$0x1]  ;;  %5499 = vmatpush.bf16.msrb.mxu3 %v7586_v8  ;;  %5773 = vmatmul.bf16.gmra.mxu2 %v6596_v43 }
 0x198   : > { %5729 = vmatmul.bf16.gmra.mxu1 %v6916_v33  ;;  %v6504_v1 = vrot.slane %v2021_v62, 9  ;;  %v2166_v7 = vrot.slane %v2022_v47, 5  ;;  %v2285_v2 = vld [vmem:[#allocation2 + $0x90] sm:$0xf]  ;;  %v1654_v49 = vrot.slane %v1653_v61, 4  ;;  %v3249_v15 = vor.u32 %v3248_v57, %v3244_v54  ;;  %v8555_v50 = vpop.f32.mrf.mxu2 }
 0x199   : > { %v8540_v59 = vpop.f32.mrf.mxu0  ;;  %v2286_v19 = vld [vmem:[#allocation2 + $0x94] sm:$0xf]  ;;  %2317 = vst [vmem:[#allocation3 + $0x324] sm:$0xf] %v2285_v2  ;;  %v2169_v4 = vrot.slane %v2023_v63, 5  ;;  %v2531_v16 = vrot.slane %v2529_v5, 5 }
 0x19a   : > { %9780 = vst [vmem:[#allocation14_spill] sm:$0xff] %v8540_v59  ;;  %v1455_v13 = vld [vmem:[#allocation2 + $0xb4] sm:$0xf]  ;;  %v2167_v18 = vsel %vm8076_vm11, %v6504_v1, %v2166_v7  ;;  %v2168_v11 = vrot.slane %v2166_v7, 4  ;;  %v1456_v12 = vld [vmem:[#allocation2 + $0xb8] sm:$0xf]  ;;  %v8547_v26 = vpop.f32.mrf.mxu1  ;;  %v1659_v30 = vsel %vm8157_vm14, %v1654_v49, %v1658_v37 }
 0x19b   : > { %5482 = vmatmul.bf16.gmra.mxu3 %v7048_v32  ;;  %2318 = vst [vmem:[#allocation3 + $0x348] sm:$0xf] %v2286_v19  ;;  %v2535_v25 = vrot.slane %v2533_v45, 4  ;;  %v2539_v23 = vshll.u32 %v2347_v53, 16  ;;  %v2532_v56 = vsel %vm8157_vm14, %v2527_v35, %v2531_v16  ;;  %v3240_v61 = vrot.slane %v3239_v10, 4  ;;  %v7585_v45 = vld [vmem:[%s9755_s5 + $0x40] sm:$0xff] }
 0x19c   : > { %2253 = vst [vmem:[#allocation3 + $0x320] sm:$0xf] %v2167_v18  ;;  %v2170_v33 = vsel %vm8076_vm11, %v2168_v11, %v2169_v4  ;;  %v3250_v31 = vrot.slane %v3249_v15, 4  ;;  %v1504_v32 = vld [vmem:[#allocation2 + $0x3c] sm:$0xf]  ;;  %v3254_v5 = vrot.slane %v3252_v38, 5  ;;  %5500 = vmatpush.bf16.msrb.mxu3 %v7585_v45 }
 0x19d   : > { %9781 = vst [vmem:[#allocation15_spill] sm:$0xff] %v8547_v26  ;;  %v2536_v28 = vor.u32 %v2535_v25, %v2531_v16  ;;  %v3245_v53 = vsel %vm8157_vm14, %v3240_v61, %v3244_v54  ;;  %v2541_v57 = vrot.slane %v2539_v23, 5  ;;  %v8564_v62 = vld [vmem:[#allocation2 + $0x30] sm:$0xf]  ;;  %v1661_v1 = vshrl.u32 %v1504_v32, 16 }
 0x19e   : > { %1487 = vst [vmem:[#allocation3 + $0x438] sm:$0xf] %v1455_v13  ;;  %v3255_v37 = vsel %vm8157_vm14, %v3250_v31, %v3254_v5  ;;  %v3100_v54 = vld [vmem:[#allocation2 + $0x30] sm:$0xf]  ;;  %v1664_v7 = vshll.u32 %v1504_v32, 16 }
 0x19f   : > { %2254 = vst [vmem:[#allocation3 + $0x344] sm:$0xf] %v2170_v33  ;;  %v2537_v35 = vrot.slane %v2536_v28, 4  ;;  %v3101_v2 = vld [vmem:[#allocation2 + $0x34] sm:$0xf]  ;;  %v8576_v23 = vrot.slane %v1661_v1, 4 }
 0x1a0   : > { %1488 = vst [vmem:[#allocation3 + $0x45c] sm:$0xf] %v1456_v12  ;;  %v7533_v8 = vld [vmem:[#allocation3 + $0x324] sm:$0xf]  ;;  %v8570_v13 = vld [vmem:[#allocation2 + $0x60] sm:$0xf]  ;;  %v8572_v11 = vpop.f32.mrf.mxu2 }
 0x1a1   : > { %2803 = vst [vmem:[#allocation3 + $0x1c0] sm:$0xf] %v2532_v56  ;;  %v8566_v47 = vpop.f32.mrf.mxu0  ;;  %v2542_v38 = vsel %vm8157_vm14, %v2537_v35, %v2541_v57  ;;  %v6631_v4 = vld [vmem:[#allocation3 + $0xa0] sm:$0xf]  ;;  %v7457_v16 = vld [vmem:[#allocation3 + $0xc0] sm:$0xf0] }
 0x1a2   : > { %1965 = vst [vmem:[#allocation3 + $0x148] sm:$0xf] %v1659_v30  ;;  %v6949_v63 = vld [vmem:[#allocation3 + $0x344] sm:$0xf0]  ;;  %v8574_v12 = vpop.f32.mrf.mxu1  ;;  %v8578_v33 = vrot.slane %v1664_v7, 5  ;;  %v3257_v56 = vshrl.u32 %v8564_v62, 16  ;;  %v6632_v35 = vor.u32 %v7457_v16, %v6631_v4 }
 0x1a3   : > { %9782 = vst [vmem:[#allocation16_spill] sm:$0xff] %v8566_v47  ;;  %v6947_v10 = vld [vmem:[#allocation3 + $0x320] sm:$0xf]  ;;  %v6952_v19 = vor.u32 %v7533_v8, %v6949_v63  ;;  %v2024_v61 = vld [vmem:[#allocation2 + $0x90] sm:$0xe]  ;;  %v2544_v45 = vshrl.u32 %v8570_v13, 16 }
 0x1a4   : > { %3626 = vst [vmem:[#allocation3 + $0x64] sm:$0xf] %v3245_v53  ;;  %v2025_v28 = vld [vmem:[#allocation2 + $0x94] sm:$0xf]  ;;  %v2026_v30 = vld [vmem:[#allocation2 + $0x98] sm:$0x1] }
 0x1a5   : > { %2804 = vst [vmem:[#allocation3 + $0x1e4] sm:$0xf] %v2542_v38  ;;  %v7083_v49 = vld [vmem:[#allocation3 + $0x438] sm:$0xf]  ;;  %v6505_v31 = vrot.slane %v2024_v61, 9  ;;  %v2173_v32 = vrot.slane %v2025_v28, 5 }
 0x1a6   : > { %3627 = vst [vmem:[#allocation3 + $0x88] sm:$0xf] %v3255_v37  ;;  %v7537_v43 = vld [vmem:[#allocation3 + $0x340] sm:$0xf0]  ;;  %v2176_v53 = vrot.slane %v2026_v30, 5  ;;  %v8593_v61 = vrot.slane %v3257_v56, 4 }
 0x1a7   : > { %3132 = vst [vmem:[#allocation3 + $0xa8] sm:$0xf] %v3100_v54  ;;  %v6948_v15 = vor.u32 %v7537_v43, %v6947_v10  ;;  %v7572_v18 = vld [vmem:[#allocation3 + $0x458] sm:$0xf0]  ;;  %v2287_v5 = vld [vmem:[#allocation2 + $0x9c] sm:$0xf]  ;;  %v2174_v38 = vsel %vm8076_vm11, %v6505_v31, %v2173_v32  ;;  %5778 = vmatmul.bf16.gmra.mxu2 %v6632_v35 }
 0x1a8   : > { %3133 = vst [vmem:[#allocation3 + $0xcc] sm:$0xf] %v3101_v2  ;;  %5734 = vmatmul.bf16.gmra.mxu1 %v6952_v19  ;;  %v7084_v25 = vor.u32 %v7572_v18, %v7083_v49  ;;  %v2288_v57 = vld [vmem:[#allocation2 + $0xa0] sm:$0xf]  ;;  %v8582_v63 = vld [vmem:[#allocation2 + $0x34] sm:$0xf]  ;;  %v8596_v30 = vpop.f32.mrf.mxu2 }
 0x1a9   : > { %9783 = vst [vmem:[#allocation17_spill] sm:$0xff] %v8574_v12  ;;  %5645 = vmatmul.bf16.gmra.mxu0 %v6948_v15  ;;  %v1489_v37 = vld [vmem:[#allocation2] sm:$0xf]  ;;  %v2175_v54 = vrot.slane %v2173_v32, 4  ;;  %v1490_v1 = vld [vmem:[#allocation2 + $0x4] sm:$0xf]  ;;  %v8586_v2 = vpop.f32.mrf.mxu0 }
 0x1aa   : > { %2319 = vst [vmem:[#allocation3 + $0x36c] sm:$0xf] %v2287_v5  ;;  %v1541_v7 = vshrl.u32 %v1489_v37, 16  ;;  %v1491_v8 = vld [vmem:[#allocation2 + $0x8] sm:$0x1]  ;;  %v1544_v49 = vshll.u32 %v1489_v37, 16 }
 0x1ab   : > { %5487 = vmatmul.bf16.gmra.mxu3 %v7084_v25  ;;  %2320 = vst [vmem:[#allocation3 + $0x390] sm:$0xf] %v2288_v57  ;;  %v1550_v10 = vshll.u32 %v1490_v1, 16  ;;  %v2177_v43 = vsel %vm8076_vm11, %v2175_v54, %v2176_v53  ;;  %v1554_v15 = vshrl.u32 %v1490_v1, 16  ;;  %v1560_v18 = vshll.u32 %v1491_v8, 16  ;;  %v7624_v4 = vld [vmem:[%s9755_s5 + $0x178] sm:$0xff]  ;;  %v8611_v1 = vpop.f32.mrf.mxu1 }
 0x1ac   : > { %9784 = vst [vmem:[#allocation18_spill] sm:$0xff] %v8586_v2  ;;  %v1543_v19 = vrot.slane %v1541_v7, 4  ;;  %v1546_v16 = vrot.slane %v1544_v49, 5  ;;  %v3260_v28 = vshll.u32 %v8564_v62, 16  ;;  %5849 = vmatpush.bf16.msra.mxu3 %v7624_v4  ;;  %v2349_v32 = vld [vmem:[#allocation2 + $0x64] sm:$0xf]  ;;  %v1667_v54 = vor.u32 %v8578_v33, %v8576_v23  ;;  %v883_v49 = vpop.f32.mrf.mxu3 }
 0x1ad   : > { %2255 = vst [vmem:[#allocation3 + $0x368] sm:$0xf] %v2174_v38  ;;  %v1552_v25 = vrot.slane %v1550_v10, 5  ;;  %v1556_v31 = vrot.slane %v1554_v15, 4  ;;  %v2350_v53 = vld [vmem:[#allocation2 + $0x68] sm:$0x1]  ;;  %v884_v4 = vadd.f32 %v8424_v29, %v883_v49 }
 0x1ae   : > { %2256 = vst [vmem:[#allocation3 + $0x38c] sm:$0xf] %v2177_v43  ;;  %v1547_v35 = vor.u32 %v1546_v16, %v1543_v19  ;;  %v7648_v57 = vld [vmem:[%s9755_s5 + $0x238] sm:$0xff]  ;;  %v2546_v37 = vrot.slane %v2544_v45, 4  ;;  %v2547_v38 = vshll.u32 %v8570_v13, 16  ;;  %v1562_v8 = vrot.slane %v1560_v18, 5 }
 0x1af   : > { %v7632_v56 = vld [vmem:[%s9755_s5 + $0x1b8] sm:$0xff]  ;;  %9785 = vst [vmem:[#allocation19_spill] sm:$0xff] %v8611_v1  ;;  %v1557_v7 = vor.u32 %v1556_v31, %v1552_v25  ;;  %v2553_v10 = vshll.u32 %v2349_v32, 16  ;;  %v2557_v43 = vshrl.u32 %v2349_v32, 16  ;;  %6116 = vmatpush.bf16.msra.mxu2 %v7648_v57  ;;  %v2563_v45 = vshll.u32 %v2350_v53, 16 }
 0x1b0   : > { %v7640_v62 = vld [vmem:[%s9755_s5 + $0x1f8] sm:$0xff]  ;;  %v1548_v15 = vrot.slane %v1547_v35, 4  ;;  %5938 = vmatpush.bf16.msra.mxu0 %v7632_v56  ;;  %v2549_v16 = vrot.slane %v2547_v38, 5  ;;  %v8616_v33 = vrot.slane %v3260_v28, 5  ;;  %v950_v32 = vmax.f32 %v884_v4, 0.0 }
 0x1b1   : > { %v1558_v5 = vrot.slane %v1557_v7, 4  ;;  %6027 = vmatpush.bf16.msra.mxu1 %v7640_v62  ;;  %v8614_v13 = vrot.slane %v2553_v10, 5  ;;  %v2559_v23 = vrot.slane %v2557_v43, 4  ;;  %v7542_v31 = vld [vmem:[#allocation3 + $0x36c] sm:$0xf]  ;;  %v8624_v7 = vpop.f32.mrf.mxu0 }
 0x1b2   : > { %v6985_v19 = vld [vmem:[#allocation3 + $0x38c] sm:$0xf0]  ;;  %v1553_v18 = vsel %vm8157_vm14, %v1548_v15, %v1552_v25  ;;  %v2550_v1 = vor.u32 %v2549_v16, %v2546_v37  ;;  %v1505_v35 = vld [vmem:[#allocation2 + $0x40] sm:$0xf]  ;;  %v7466_v28 = vld [vmem:[#allocation3 + $0x108] sm:$0xf0]  ;;  %v982_v25 = vpack.c.bf16 %v950_v32, %v950_v32  ;;  %v8628_v15 = vpop.f32.mrf.mxu2 }
 0x1b3   : > { %v6988_v38 = vor.u32 %v7542_v31, %v6985_v19  ;;  %v1563_v53 = vsel %vm8157_vm14, %v1558_v5, %v1562_v8  ;;  %1956 = vst [vmem:[#allocation3 + $0x4] sm:$0xf] %v1553_v18  ;;  %v2560_v62 = vor.u32 %v2559_v23, %v8614_v13  ;;  %v8626_v37 = vrot.slane %v2563_v45, 5  ;;  %v6667_v4 = vld [vmem:[#allocation3 + $0xe8] sm:$0xf] }
 0x1b4   : > { %v6983_v57 = vld [vmem:[#allocation3 + $0x368] sm:$0xf]  ;;  %9786 = vst [vmem:[#allocation20_spill] sm:$0xff] %v8624_v7  ;;  %v2551_v43 = vrot.slane %v2550_v1, 4  ;;  %v8630_v16 = vrot.slane %v1667_v54, 4  ;;  %v1670_v5 = vshll.u32 %v1505_v35, 16  ;;  %v885_v1 = vpop.f32.mrf.mxu3 }
 0x1b5   : > { %v7546_v56 = vld [vmem:[#allocation3 + $0x388] sm:$0xf0]  ;;  %1957 = vst [vmem:[#allocation3 + $0x28] sm:$0xf] %v1563_v53  ;;  %v2561_v19 = vrot.slane %v2560_v62, 4  ;;  %v1674_v8 = vshrl.u32 %v1505_v35, 16  ;;  %v886_v35 = vadd.f32 %v8424_v29, %v885_v1 }
 0x1b6   : > { %v6984_v10 = vor.u32 %v7546_v56, %v6983_v57  ;;  %v1243_v23 = vshrl.u32 %v982_v25, 16  ;;  %v1246_v31 = vshll.u32 %v982_v25, 16  ;;  %v2027_v18 = vld [vmem:[#allocation2 + $0x9c] sm:$0xe]  ;;  %v2028_v49 = vld [vmem:[#allocation2 + $0xa0] sm:$0xf]  ;;  %v6668_v56 = vor.u32 %v7466_v28, %v6667_v4  ;;  %v8640_v4 = vpop.f32.mrf.mxu1 }
 0x1b7   : > { %v1506_v57 = vld [vmem:[#allocation2 + $0x44] sm:$0x1]  ;;  %v1418_v32 = vld [vmem:[#allocation2 + $0xc0] sm:$0xf]  ;;  %v6506_v53 = vrot.slane %v2027_v18, 9  ;;  %v2180_v7 = vrot.slane %v2028_v49, 5  ;;  %v2556_v28 = vsel %vm8157_vm14, %v2551_v43, %v8614_v13 }
 0x1b8   : > { %5739 = vmatmul.bf16.gmra.mxu1 %v6988_v38  ;;  %v2029_v45 = vld [vmem:[#allocation2 + $0xa4] sm:$0x1]  ;;  %v2289_v2 = vld [vmem:[#allocation2 + $0xa8] sm:$0xf]  ;;  %v3263_v38 = vor.u32 %v8616_v33, %v8593_v61  ;;  %v8634_v54 = vrot.slane %v1243_v23, 7  ;;  %9787 = vst [vmem:[#allocation21_spill] sm:$0xff] %v8640_v4  ;;  %5783 = vmatmul.bf16.gmra.mxu2 %v6668_v56 }
 0x1b9   : > { %5650 = vmatmul.bf16.gmra.mxu0 %v6984_v10  ;;  %v2183_v62 = vrot.slane %v2029_v45, 5  ;;  %v2290_v10 = vld [vmem:[#allocation2 + $0xac] sm:$0xf]  ;;  %2321 = vst [vmem:[#allocation3 + $0x3b4] sm:$0xf] %v2289_v2  ;;  %v2181_v49 = vsel %vm8076_vm11, %v6506_v53, %v2180_v7  ;;  %v2182_v18 = vrot.slane %v2180_v7, 4  ;;  %v2566_v2 = vsel %vm8157_vm14, %v2561_v19, %v8626_v37 }
 0x1ba   : > { %v3168_v25 = vld [vmem:[#allocation2 + $0x38] sm:$0x1]  ;;  %2322 = vst [vmem:[#allocation3 + $0x3d8] sm:$0xf] %v2290_v10  ;;  %v1672_v61 = vrot.slane %v1670_v5, 5  ;;  %v1676_v33 = vrot.slane %v1674_v8, 4  ;;  %v1248_v29 = vor.u32 %v1246_v31, %v8634_v54  ;;  %v8657_v10 = vpop.f32.mrf.mxu2 }
 0x1bb   : > { %v7433_v23 = vld [vmem:[#allocation3 + $0x4] sm:$0xf]  ;;  %v951_v1 = vmax.f32 %v886_v35, 0.0  ;;  %2257 = vst [vmem:[#allocation3 + $0x3b0] sm:$0xf] %v2181_v49  ;;  %v9788_v13 = vshll.u32 %v8582_v63, 16  ;;  %v2184_v7 = vsel %vm8076_vm11, %v2182_v18, %v2183_v62 }
 0x1bc   : > { %v6545_v45 = vld [vmem:[#allocation3 + $0x24] sm:$0xf0]  ;;  %2805 = vst [vmem:[#allocation3 + $0x208] sm:$0xf] %v2556_v28  ;;  %v1673_v5 = vsel %vm8157_vm14, %v8630_v16, %v1672_v61  ;;  %v1677_v8 = vor.u32 %v1676_v33, %v1672_v61  ;;  %v1680_v31 = vshll.u32 %v1506_v57, 16  ;;  %v1419_v35 = vsel %vm7929_vm3, %v1248_v29, %v1418_v32  ;;  %v8661_v16 = vpop.f32.mrf.mxu0 }
 0x1bd   : > { %v3268_v43 = vrot.slane %v9788_v13, 5  ;;  %v1507_v56 = vld [vmem:[#allocation2 + $0x48] sm:$0xf]  ;;  %v6548_v53 = vor.u32 %v7433_v23, %v6545_v45  ;;  %v983_v37 = vpack.c.bf16 %v951_v1, %v951_v1  ;;  %2258 = vst [vmem:[#allocation3 + $0x3d4] sm:$0xf] %v2184_v7  ;;  %v3264_v19 = vrot.slane %v3263_v38, 4 }
 0x1be   : > { %1420 = vst [vmem:[#allocation2 + $0xc0] sm:$0xf] %v1419_v35  ;;  %v1678_v49 = vrot.slane %v1677_v8, 4  ;;  %v1682_v62 = vrot.slane %v1680_v31, 5  ;;  %v9789_v28 = vshrl.u32 %v8582_v63, 16  ;;  %v3276_v13 = vshll.u32 %v3168_v25, 16 }
 0x1bf   : > { %5501 = vmatmul.bf16.vlgmr.msrb.gmra.mxu3 %v6548_v53  ;;  %9790 = vst [vmem:[#allocation22_spill] sm:$0xff] %v8661_v16  ;;  %v1249_v57 = vrot.slane %v8634_v54, 4  ;;  %v1251_v61 = vshrl.u32 %v983_v37, 16  ;;  %v1254_v42 = vshll.u32 %v983_v37, 16  ;;  %v3269_v32 = vsel %vm8157_vm14, %v3264_v19, %v3268_v43  ;;  %v1422_v38 = vld [vmem:[#allocation2 + $0xc8] sm:$0x1]  ;;  %v8668_v19 = vpop.f32.mrf.mxu1 }
 0x1c0   : > { %v3272_v18 = vrot.slane %v9789_v28, 4  ;;  %2806 = vst [vmem:[#allocation3 + $0x22c] sm:$0xf] %v2566_v2  ;;  %v7551_v33 = vld [vmem:[#allocation3 + $0x3b4] sm:$0xf]  ;;  %v1683_v23 = vsel %vm8157_vm14, %v1678_v49, %v1682_v62  ;;  %v1685_v45 = vshrl.u32 %v1507_v56, 16 }
 0x1c1   : > { %1966 = vst [vmem:[#allocation3 + $0x16c] sm:$0xf] %v1673_v5  ;;  %v1508_v29 = vld [vmem:[#allocation2 + $0x4c] sm:$0xf]  ;;  %v1253_v25 = vrot.slane %v1251_v61, 7  ;;  %v3278_v54 = vrot.slane %v3276_v13, 5 }
 0x1c2   : > { %v3273_v63 = vor.u32 %v3272_v18, %v3268_v43  ;;  %v7021_v1 = vld [vmem:[#allocation3 + $0x3d4] sm:$0xf0]  ;;  %1967 = vst [vmem:[#allocation3 + $0x190] sm:$0xf] %v1683_v23  ;;  %v1688_v8 = vshll.u32 %v1507_v56, 16  ;;  %v1687_v35 = vrot.slane %v1685_v45, 4 }
 0x1c3   : > { %3628 = vst [vmem:[#allocation3 + $0xac] sm:$0xf] %v3269_v32  ;;  %v1256_v2 = vor.u32 %v1254_v42, %v1253_v25  ;;  %v1258_v31 = vrot.slane %v1253_v25, 4  ;;  %v1509_v53 = vld [vmem:[#allocation2 + $0x50] sm:$0x1]  ;;  %v1694_v37 = vshll.u32 %v1508_v29, 16  ;;  %v7024_v5 = vor.u32 %v7551_v33, %v7021_v1  ;;  %v8676_v32 = vpop.f32.mrf.mxu2 }
 0x1c4   : > { %v3274_v7 = vrot.slane %v3273_v63, 4  ;;  %9791 = vst [vmem:[#allocation23_spill] sm:$0xff] %v8668_v19  ;;  %v7019_v28 = vld [vmem:[#allocation3 + $0x3b0] sm:$0xf]  ;;  %v7555_v49 = vld [vmem:[#allocation3 + $0x3d0] sm:$0xf0] }
 0x1c5   : > { %v1690_v62 = vrot.slane %v1688_v8, 5  ;;  %v1698_v18 = vshrl.u32 %v1508_v29, 16  ;;  %v7475_v61 = vld [vmem:[#allocation3 + $0x150] sm:$0xf0]  ;;  %v1257_v13 = vsel %vm7960_vm7, %v1249_v57, %v1256_v2  ;;  %v1423_v56 = vsel %vm7967_vm8, %v1258_v31, %v1422_v38  ;;  %v6703_v23 = vld [vmem:[#allocation3 + $0x130] sm:$0xf]  ;;  %v8678_v2 = vpop.f32.mrf.mxu0 }
 0x1c6   : > { %v3279_v43 = vsel %vm8157_vm14, %v3274_v7, %v3278_v54  ;;  %v7020_v42 = vor.u32 %v7555_v49, %v7019_v28  ;;  %1421 = vst [vmem:[#allocation2 + $0xc4] sm:$0xf] %v1257_v13  ;;  %v1696_v63 = vrot.slane %v1694_v37, 5  ;;  %v1704_v1 = vshll.u32 %v1509_v53, 16  ;;  %v2030_v29 = vld [vmem:[#allocation2 + $0xa8] sm:$0xe] }
 0x1c7   : > { %3629 = vst [vmem:[#allocation3 + $0xd0] sm:$0xf] %v3279_v43  ;;  %v1691_v33 = vor.u32 %v1690_v62, %v1687_v35  ;;  %v1700_v25 = vrot.slane %v1698_v18, 4  ;;  %v2031_v45 = vld [vmem:[#allocation2 + $0xac] sm:$0xf]  ;;  %v6507_v7 = vrot.slane %v2030_v29, 9  ;;  %v6704_v8 = vor.u32 %v7475_v61, %v6703_v23 }
 0x1c8   : > { %5744 = vmatmul.bf16.gmra.mxu1 %v7024_v5  ;;  %1424 = vst [vmem:[#allocation2 + $0xc8] sm:$0x1] %v1423_v56  ;;  %v2032_v57 = vld [vmem:[#allocation2 + $0xb0] sm:$0x1]  ;;  %v2187_v3 = vrot.slane %v2031_v45, 5  ;;  %v1706_v23 = vrot.slane %v1704_v1, 5 }
 0x1c9   : > { %5655 = vmatmul.bf16.gmra.mxu0 %v7020_v42  ;;  %v2291_v38 = vld [vmem:[#allocation2 + $0xb4] sm:$0xf]  ;;  %v1701_v54 = vor.u32 %v1700_v25, %v1696_v63  ;;  %9792 = vst [vmem:[#allocation24_spill] sm:$0xff] %v8678_v2  ;;  %v2190_v31 = vrot.slane %v2032_v57, 5  ;;  %v2292_v28 = vld [vmem:[#allocation2 + $0xb8] sm:$0xf]  ;;  %5788 = vmatmul.bf16.gmra.mxu2 %v6704_v8 }
 0x1ca   : > { %2323 = vst [vmem:[#allocation3 + $0x3fc] sm:$0xf] %v2291_v38  ;;  %v1692_v35 = vrot.slane %v1691_v33, 4  ;;  %v6581_v37 = vld [vmem:[#allocation3 + $0x6c] sm:$0xf0]  ;;  %v2188_v53 = vsel %vm8076_vm11, %v6507_v7, %v2187_v3  ;;  %v2189_v49 = vrot.slane %v2187_v3, 4  ;;  %v8697_v7 = vpop.f32.mrf.mxu1 }
 0x1cb   : > { %2324 = vst [vmem:[#allocation3 + $0x420] sm:$0xf] %v2292_v28  ;;  %v1702_v5 = vrot.slane %v1701_v54, 4  ;;  %v7623_v43 = vld [vmem:[%s9755_s5 + $0x170] sm:$0xff]  ;;  %v3169_v13 = vld [vmem:[#allocation2 + $0x3c] sm:$0xf]  ;;  %v8695_v57 = vpop.f32.mrf.mxu2 }
 0x1cc   : > { %2259 = vst [vmem:[#allocation3 + $0x3f8] sm:$0xf] %v2188_v53  ;;  %v7631_v62 = vld [vmem:[%s9755_s5 + $0x1b0] sm:$0xff]  ;;  %v1697_v61 = vsel %vm8157_vm14, %v1692_v35, %v1696_v63  ;;  %v7442_v56 = vld [vmem:[#allocation3 + $0x4c] sm:$0xf]  ;;  %v2191_v42 = vsel %vm8076_vm11, %v2189_v49, %v2190_v31  ;;  %5850 = vmatpush.bf16.msra.mxu3 %v7623_v43  ;;  %v2568_v25 = vshrl.u32 %v2351_v0, 16 }
 0x1cd   : > { %v7639_v18 = vld [vmem:[%s9755_s5 + $0x1f0] sm:$0xff]  ;;  %v6584_v33 = vor.u32 %v7442_v56, %v6581_v37  ;;  %2260 = vst [vmem:[#allocation3 + $0x41c] sm:$0xf] %v2191_v42  ;;  %5939 = vmatpush.bf16.msra.mxu0 %v7631_v62  ;;  %v2571_v29 = vshll.u32 %v2351_v0, 16  ;;  %v3102_v45 = vld [vmem:[#allocation2 + $0x3c] sm:$0xf]  ;;  %v1707_v63 = vsel %vm8157_vm14, %v1702_v5, %v1706_v23 }
 0x1ce   : > { %9793 = vst [vmem:[#allocation25_spill] sm:$0xff] %v8697_v7  ;;  %6028 = vmatpush.bf16.msra.mxu1 %v7639_v18  ;;  %v3103_v3 = vld [vmem:[#allocation2 + $0x40] sm:$0xf]  ;;  %v7630_v1 = vld [vmem:[%s9755_s5 + $0x1a8] sm:$0xff]  ;;  %v7647_v54 = vld [vmem:[%s9755_s5 + $0x230] sm:$0xff]  ;;  %v2570_v8 = vrot.slane %v2568_v25, 4 }
 0x1cf   : > { %1968 = vst [vmem:[#allocation3 + $0x1b4] sm:$0xf] %v1697_v61  ;;  %v3170_v38 = vld [vmem:[#allocation2 + $0x40] sm:$0xf]  ;;  %5506 = vmatmul.bf16.gmra.mxu3 %v6584_v33  ;;  %v7638_v0 = vld [vmem:[%s9755_s5 + $0x1e8] sm:$0xff]  ;;  %v2573_v31 = vrot.slane %v2571_v29, 5  ;;  %6117 = vmatpush.bf16.msra.mxu2 %v7647_v54  ;;  %v8713_v61 = vpop.f32.mrf.mxu0 }
 0x1d0   : > { %1969 = vst [vmem:[#allocation3 + $0x1d8] sm:$0xf] %v1707_v63  ;;  %v3281_v35 = vshrl.u32 %v3169_v13, 16  ;;  %v7629_v53 = vld [vmem:[%s9755_s5 + $0x1a0] sm:$0xff]  ;;  %v3284_v5 = vshll.u32 %v3169_v13, 16  ;;  %v3290_v62 = vshll.u32 %v3170_v38, 16 }
 0x1d1   : > { %v7560_v28 = vld [vmem:[#allocation3 + $0x3fc] sm:$0xf]  ;;  %5940 = vmatpush.bf16.msra.mxu0 %v7630_v1  ;;  %v2574_v49 = vor.u32 %v2573_v31, %v2570_v8  ;;  %3134 = vst [vmem:[#allocation3 + $0xf0] sm:$0xf] %v3102_v45  ;;  %v3294_v18 = vshrl.u32 %v3170_v38, 16  ;;  %v7637_v56 = vld [vmem:[%s9755_s5 + $0x1e0] sm:$0xff] }
 0x1d2   : > { %v7057_v37 = vld [vmem:[#allocation3 + $0x41c] sm:$0xf0]  ;;  %6029 = vmatpush.bf16.msra.mxu1 %v7638_v0  ;;  %3135 = vst [vmem:[#allocation3 + $0x114] sm:$0xf] %v3103_v3  ;;  %v3171_v42 = vld [vmem:[#allocation2 + $0x44] sm:$0x1] }
 0x1d3   : > { %v7055_v43 = vld [vmem:[#allocation3 + $0x3f8] sm:$0xf]  ;;  %9794 = vst [vmem:[#allocation26_spill] sm:$0xff] %v8713_v61  ;;  %v7060_v33 = vor.u32 %v7560_v28, %v7057_v37  ;;  %v3283_v29 = vrot.slane %v3281_v35, 4  ;;  %v7484_v63 = vld [vmem:[#allocation3 + $0x198] sm:$0xf0]  ;;  %v8718_v3 = vpop.f32.mrf.mxu2 }
 0x1d4   : > { %v7564_v23 = vld [vmem:[#allocation3 + $0x418] sm:$0xf0]  ;;  %v2352_v25 = vld [vmem:[#allocation2 + $0x70] sm:$0xf]  ;;  %v2575_v13 = vrot.slane %v2574_v49, 4  ;;  %v3286_v0 = vrot.slane %v3284_v5, 5  ;;  %v8722_v49 = vpop.f32.mrf.mxu1 }
 0x1d5   : > { %v7056_v1 = vor.u32 %v7564_v23, %v7055_v43  ;;  %5941 = vmatpush.bf16.msra.mxu0 %v7629_v53  ;;  %v2577_v45 = vshll.u32 %v2352_v25, 16  ;;  %v6739_v38 = vld [vmem:[#allocation3 + $0x178] sm:$0xf]  ;;  %v2353_v54 = vld [vmem:[#allocation2 + $0x74] sm:$0x1]  ;;  %v2581_v8 = vshrl.u32 %v2352_v25, 16 }
 0x1d6   : > { %v8720_v31 = vrot.slane %v3290_v62, 5  ;;  %v3296_v61 = vrot.slane %v3294_v18, 4  ;;  %v3300_v7 = vshll.u32 %v3171_v42, 16  ;;  %v6617_v28 = vld [vmem:[#allocation3 + $0xb4] sm:$0xf0]  ;;  %6030 = vmatpush.bf16.msra.mxu1 %v7637_v56  ;;  %9795 = vst [vmem:[#allocation27_spill] sm:$0xff] %v8722_v49  ;;  %v3287_v25 = vor.u32 %v3286_v0, %v3283_v29 }
 0x1d7   : > { %v2033_v35 = vld [vmem:[#allocation2 + $0xb4] sm:$0xe]  ;;  %v2034_v37 = vld [vmem:[#allocation2 + $0xb8] sm:$0xf]  ;;  %v2035_v43 = vld [vmem:[#allocation2 + $0xbc] sm:$0x1] }
 0x1d8   : > { %5749 = vmatmul.bf16.gmra.mxu1 %v7060_v33  ;;  %v1510_v53 = vld [vmem:[#allocation2 + $0x54] sm:$0xf]  ;;  %v6508_v5 = vrot.slane %v2033_v35, 9  ;;  %v2194_v23 = vrot.slane %v2034_v37, 5  ;;  %v2197_v2 = vrot.slane %v2035_v43, 5  ;;  %v7628_v62 = vld [vmem:[%s9755_s5 + $0x198] sm:$0xff]  ;;  %v6740_v33 = vor.u32 %v7484_v63, %v6739_v38 }
 0x1d9   : > { %5660 = vmatmul.bf16.gmra.mxu0 %v7056_v1  ;;  %v2293_v19 = vld [vmem:[#allocation2 + $0xc0] sm:$0xf]  ;;  %v2294_v18 = vld [vmem:[#allocation2 + $0xc4] sm:$0xf]  ;;  %v7636_v56 = vld [vmem:[%s9755_s5 + $0x1d8] sm:$0xff]  ;;  %v2579_v42 = vrot.slane %v2577_v45, 5  ;;  %v3297_v1 = vor.u32 %v3296_v61, %v8720_v31 }
 0x1da   : > { %2325 = vst [vmem:[#allocation3 + $0x444] sm:$0xf] %v2293_v19  ;;  %v2195_v35 = vsel %vm8076_vm11, %v6508_v5, %v2194_v23  ;;  %v2196_v37 = vrot.slane %v2194_v23, 4  ;;  %5942 = vmatpush.bf16.msra.mxu0 %v7628_v62  ;;  %v2583_v43 = vrot.slane %v2581_v8, 4  ;;  %v2587_v49 = vshll.u32 %v2353_v54, 16  ;;  %5793 = vmatmul.bf16.gmra.mxu2 %v6740_v33  ;;  %v7627_v19 = vld [vmem:[%s9755_s5 + $0x190] sm:$0xff]  ;;  %v8745_v8 = vpop.f32.mrf.mxu0 }
 0x1db   : > { %2326 = vst [vmem:[#allocation3 + $0x468] sm:$0xf] %v2294_v18  ;;  %v7451_v63 = vld [vmem:[#allocation3 + $0x94] sm:$0xf]  ;;  %6031 = vmatpush.bf16.msra.mxu1 %v7636_v56  ;;  %v7635_v61 = vld [vmem:[%s9755_s5 + $0x1d0] sm:$0xff]  ;;  %v2580_v29 = vsel %vm8157_vm14, %v2575_v13, %v2579_v42  ;;  %v3288_v5 = vrot.slane %v3287_v25, 4  ;;  %v8747_v18 = vpop.f32.mrf.mxu2 }
 0x1dc   : > { %2261 = vst [vmem:[#allocation3 + $0x440] sm:$0xf] %v2195_v35  ;;  %v8741_v45 = vld [vmem:[#allocation2 + $0x48] sm:$0xf]  ;;  %v6620_v0 = vor.u32 %v7451_v63, %v6617_v28  ;;  %v2198_v38 = vsel %vm8076_vm11, %v2196_v37, %v2197_v2  ;;  %v2584_v54 = vor.u32 %v2583_v43, %v2579_v42  ;;  %v3298_v23 = vrot.slane %v3297_v1, 4 }
 0x1dd   : > { %2807 = vst [vmem:[#allocation3 + $0x250] sm:$0xf] %v2580_v29  ;;  %v3302_v62 = vrot.slane %v3300_v7, 5  ;;  %v1709_v33 = vshrl.u32 %v1510_v53, 16  ;;  %v2589_v13 = vrot.slane %v2587_v49, 5  ;;  %v1712_v16 = vshll.u32 %v1510_v53, 16 }
 0x1de   : > { %9796 = vst [vmem:[#allocation28_spill] sm:$0xff] %v8745_v8  ;;  %5943 = vmatpush.bf16.msra.mxu0 %v7627_v19  ;;  %v2585_v56 = vrot.slane %v2584_v54, 4  ;;  %v1511_v35 = vld [vmem:[#allocation2 + $0x58] sm:$0xf]  ;;  %v3104_v28 = vld [vmem:[#allocation2 + $0x48] sm:$0xf]  ;;  %v3293_v7 = vsel %vm8157_vm14, %v3288_v5, %v8720_v31  ;;  %v8765_v31 = vpop.f32.mrf.mxu1 }
 0x1df   : > { %2262 = vst [vmem:[#allocation3 + $0x464] sm:$0xf] %v2198_v38  ;;  %5511 = vmatmul.bf16.gmra.mxu3 %v6620_v0  ;;  %6032 = vmatpush.bf16.msra.mxu1 %v7635_v61  ;;  %v7626_v2 = vld [vmem:[%s9755_s5 + $0x188] sm:$0xff]  ;;  %v3303_v49 = vsel %vm8157_vm14, %v3298_v23, %v3302_v62  ;;  %v1512_v25 = vld [vmem:[#allocation2 + $0x5c] sm:$0x1]  ;;  %v1711_v53 = vrot.slane %v1709_v33, 4 }
 0x1e0   : > { %v7634_v42 = vld [vmem:[%s9755_s5 + $0x1c8] sm:$0xff]  ;;  %v2590_v43 = vsel %vm8157_vm14, %v2585_v56, %v2589_v13  ;;  %3630 = vst [vmem:[#allocation3 + $0xf4] sm:$0xf] %v3293_v7  ;;  %v1714_v63 = vrot.slane %v1712_v16, 5  ;;  %v3305_v19 = vshrl.u32 %v8741_v45, 16  ;;  %v1718_v29 = vshll.u32 %v1511_v35, 16 }
 0x1e1   : > { %v3105_v1 = vld [vmem:[#allocation2 + $0x4c] sm:$0xf]  ;;  %v7569_v37 = vld [vmem:[#allocation3 + $0x444] sm:$0xf]  ;;  %2808 = vst [vmem:[#allocation3 + $0x274] sm:$0xf] %v2590_v43 }
 0x1e2   : > { %v7093_v61 = vld [vmem:[#allocation3 + $0x464] sm:$0xf0]  ;;  %v1722_v0 = vshrl.u32 %v1511_v35, 16  ;;  %v8763_v38 = vld [vmem:[#allocation2 + $0x54] sm:$0xf]  ;;  %9797 = vst [vmem:[#allocation29_spill] sm:$0xff] %v8765_v31  ;;  %5944 = vmatpush.bf16.msra.mxu0 %v7626_v2  ;;  %v1715_v62 = vor.u32 %v1714_v63, %v1711_v53 }
 0x1e3   : > { %v7091_v54 = vld [vmem:[#allocation3 + $0x440] sm:$0xf]  ;;  %v7096_v5 = vor.u32 %v7569_v37, %v7093_v61  ;;  %v7625_v23 = vld [vmem:[%s9755_s5 + $0x180] sm:$0xff]  ;;  %3631 = vst [vmem:[#allocation3 + $0x118] sm:$0xf] %v3303_v49  ;;  %6033 = vmatpush.bf16.msra.mxu1 %v7634_v42  ;;  %v1720_v56 = vrot.slane %v1718_v29, 5  ;;  %v8774_v53 = vpop.f32.mrf.mxu2  ;;  %v8778_v29 = vpop.f32.mrf.mxu0 }
 0x1e4   : > { %v1513_v16 = vld [vmem:[#allocation2 + $0x60] sm:$0xf]  ;;  %v1724_v13 = vrot.slane %v1722_v0, 4  ;;  %v1728_v35 = vshll.u32 %v1512_v25, 16  ;;  %3136 = vst [vmem:[#allocation3 + $0x138] sm:$0xf] %v3104_v28 }
 0x1e5   : > { %v7633_v33 = vld [vmem:[%s9755_s5 + $0x1c0] sm:$0xff]  ;;  %v1716_v43 = vrot.slane %v1715_v62, 4  ;;  %3137 = vst [vmem:[#allocation3 + $0x15c] sm:$0xf] %v3105_v1  ;;  %v3173_v61 = vld [vmem:[#allocation2 + $0x4c] sm:$0xf] }
 0x1e6   : > { %v7573_v7 = vld [vmem:[#allocation3 + $0x460] sm:$0xf0]  ;;  %v1725_v37 = vor.u32 %v1724_v13, %v1720_v56  ;;  %v3174_v31 = vld [vmem:[#allocation2 + $0x50] sm:$0x1]  ;;  %v3307_v8 = vrot.slane %v3305_v19, 4  ;;  %v3308_v49 = vshll.u32 %v8741_v45, 16  ;;  %5945 = vmatpush.bf16.msra.mxu0 %v7625_v23 }
 0x1e7   : > { %v7092_v2 = vor.u32 %v7573_v7, %v7091_v54  ;;  %v7493_v42 = vld [vmem:[#allocation3 + $0x1e0] sm:$0xf0]  ;;  %v1721_v63 = vsel %vm8157_vm14, %v1716_v43, %v1720_v56  ;;  %v3314_v25 = vshll.u32 %v3173_v61, 16  ;;  %v3318_v28 = vshrl.u32 %v3173_v61, 16  ;;  %9798 = vst [vmem:[#allocation30_spill] sm:$0xff] %v8778_v29  ;;  %6034 = vmatpush.bf16.msra.mxu1 %v7633_v33 }
 0x1e8   : > { %5754 = vmatmul.bf16.gmra.mxu1 %v7096_v5  ;;  %v1726_v1 = vrot.slane %v1725_v37, 4  ;;  %v1730_v0 = vrot.slane %v1728_v35, 5  ;;  %1970 = vst [vmem:[#allocation3 + $0x1fc] sm:$0xf] %v1721_v63  ;;  %v3310_v19 = vrot.slane %v3308_v49, 5  ;;  %v3329_v45 = vshrl.u32 %v8763_v38, 16 }
 0x1e9   : > { %5665 = vmatmul.bf16.gmra.mxu0 %v7092_v2  ;;  %v6775_v54 = vld [vmem:[#allocation3 + $0x1c0] sm:$0xf]  ;;  %v3316_v62 = vrot.slane %v3314_v25, 5  ;;  %v3320_v13 = vrot.slane %v3318_v28, 4  ;;  %v3324_v5 = vshll.u32 %v3174_v31, 16  ;;  %v1733_v23 = vshrl.u32 %v1513_v16, 16 }
 0x1ea   : > { %v6776_v7 = vor.u32 %v7493_v42, %v6775_v54  ;;  %v6653_v4 = vld [vmem:[#allocation3 + $0xfc] sm:$0xf0]  ;;  %v1731_v56 = vsel %vm8157_vm14, %v1726_v1, %v1730_v0  ;;  %v3311_v43 = vor.u32 %v3310_v19, %v3307_v8  ;;  %v1736_v61 = vshll.u32 %v1513_v16, 16  ;;  %v3106_v2 = vld [vmem:[#allocation2 + $0x54] sm:$0xf]  ;;  %v7622_v31 = vld [vmem:[%s9755_s5 + $0x168] sm:$0xff]  ;;  %v8787_v1 = vpop.f32.mrf.mxu1 }
 0x1eb   : > { %v2354_v33 = vld [vmem:[#allocation2 + $0x78] sm:$0xf]  ;;  %v7460_v37 = vld [vmem:[#allocation3 + $0xdc] sm:$0xf]  ;;  %1971 = vst [vmem:[#allocation3 + $0x220] sm:$0xf] %v1731_v56  ;;  %v3321_v35 = vor.u32 %v3320_v13, %v3316_v62  ;;  %5851 = vmatpush.bf16.msra.mxu3 %v7622_v31 }
 0x1ec   : > { %v1735_v49 = vrot.slane %v1733_v23, 4  ;;  %v3107_v63 = vld [vmem:[#allocation2 + $0x58] sm:$0xf]  ;;  %5798 = vmatmul.bf16.gmra.mxu2 %v6776_v7  ;;  %v3312_v25 = vrot.slane %v3311_v43, 4  ;;  %v1738_v42 = vrot.slane %v1736_v61, 5  ;;  %v3331_v28 = vrot.slane %v3329_v45, 4  ;;  %v8793_v45 = vpop.f32.mrf.mxu2 }
 0x1ed   : > { %v3332_v54 = vshll.u32 %v8763_v38, 16  ;;  %9799 = vst [vmem:[#allocation31_spill] sm:$0xff] %v8787_v1  ;;  %v3322_v8 = vrot.slane %v3321_v35, 4  ;;  %v3326_v16 = vrot.slane %v3324_v5, 5  ;;  %v3176_v0 = vld [vmem:[#allocation2 + $0x58] sm:$0xf]  ;;  %v6656_v13 = vor.u32 %v7460_v37, %v6653_v4 }
 0x1ee   : > { %3138 = vst [vmem:[#allocation3 + $0x180] sm:$0xf] %v3106_v2  ;;  %v8789_v19 = vld [vmem:[#allocation2 + $0x1c] sm:$0xf]  ;;  %v3317_v23 = vsel %vm8157_vm14, %v3312_v25, %v3316_v62  ;;  %v3338_v56 = vshll.u32 %v3176_v0, 16  ;;  %v7646_v5 = vld [vmem:[%s9755_s5 + $0x228] sm:$0xff]  ;;  %v1739_v4 = vor.u32 %v1738_v42, %v1735_v49 }
 0x1ef   : > { %3139 = vst [vmem:[#allocation3 + $0x1a4] sm:$0xf] %v3107_v63  ;;  %v3334_v7 = vrot.slane %v3332_v54, 5  ;;  %v3656_v43 = vld [vmem:[#allocation2 + $0x18] sm:$0xe]  ;;  %v3327_v61 = vsel %vm8157_vm14, %v3322_v8, %v3326_v16  ;;  %v3342_v2 = vshrl.u32 %v3176_v0, 16  ;;  %5516 = vmatmul.bf16.gmra.mxu3 %v6656_v13  ;;  %6118 = vmatpush.bf16.msra.mxu2 %v7646_v5  ;;  %v8803_v8 = vpop.f32.mrf.mxu0 }
 0x1f0   : > { %v6569_v38 = vld [vmem:[#allocation3 + $0x3c] sm:$0xf0]  ;;  %3632 = vst [vmem:[#allocation3 + $0x13c] sm:$0xf] %v3317_v23  ;;  %v2592_v37 = vshrl.u32 %v2354_v33, 16  ;;  %v2595_v62 = vshll.u32 %v2354_v33, 16 }
 0x1f1   : > { %3633 = vst [vmem:[#allocation3 + $0x160] sm:$0xf] %v3327_v61  ;;  %v1514_v35 = vld [vmem:[#allocation2 + $0x64] sm:$0xf]  ;;  %v3335_v63 = vor.u32 %v3334_v7, %v3331_v28  ;;  %v7440_v31 = vld [vmem:[#allocation3 + $0x38] sm:$0xf0] }
 0x1f2   : > { %v1515_v25 = vld [vmem:[#allocation2 + $0x68] sm:$0x1]  ;;  %v1742_v54 = vshll.u32 %v1514_v35, 16  ;;  %v1746_v1 = vshrl.u32 %v1514_v35, 16  ;;  %v3340_v29 = vrot.slane %v3338_v56, 5  ;;  %9800 = vst [vmem:[#allocation32_spill] sm:$0xff] %v8803_v8  ;;  %v8809_v24 = vpop.f32.mrf.mxu1 }
 0x1f3   : > { %v8801_v47 = vld [vmem:[#allocation2 + $0x60] sm:$0xf]  ;;  %v2594_v49 = vrot.slane %v2592_v37, 4  ;;  %v2597_v42 = vrot.slane %v2595_v62, 5  ;;  %v3177_v16 = vld [vmem:[#allocation2 + $0x5c] sm:$0x1] }
 0x1f4   : > { %v3336_v0 = vrot.slane %v3335_v63, 4  ;;  %v7436_v33 = vld [vmem:[#allocation3 + $0x1c] sm:$0xf]  ;;  %v1740_v13 = vrot.slane %v1739_v4, 4  ;;  %v1744_v23 = vrot.slane %v1742_v54, 5  ;;  %v1748_v28 = vrot.slane %v1746_v1, 4 }
 0x1f5   : > { %v3344_v7 = vrot.slane %v3342_v2, 4  ;;  %v6525_v5 = vrot.slane %v3656_v43, 9  ;;  %v1516_v61 = vld [vmem:[#allocation2 + $0x6c] sm:$0xf]  ;;  %v7502_v26 = vld [vmem:[#allocation3 + $0x228] sm:$0xf0]  ;;  %v6572_v56 = vor.u32 %v7436_v33, %v6569_v38  ;;  %v2598_v2 = vor.u32 %v2597_v42, %v2594_v49  ;;  %v8811_v38 = vpop.f32.mrf.mxu2 }
 0x1f6   : > { %v6567_v35 = vld [vmem:[#allocation3 + $0x18] sm:$0xf]  ;;  %v1752_v59 = vshll.u32 %v1515_v25, 16  ;;  %v3341_v12 = vsel %vm8157_vm14, %v3336_v0, %v3340_v29  ;;  %v1745_v37 = vsel %vm8157_vm14, %v1740_v13, %v1744_v23  ;;  %v1749_v62 = vor.u32 %v1748_v28, %v1744_v23  ;;  %v3108_v4 = vld [vmem:[#allocation2 + $0x60] sm:$0xf]  ;;  %9801 = vst [vmem:[#allocation33_spill] sm:$0xff] %v8809_v24 }
 0x1f7   : > { %v3345_v8 = vor.u32 %v3344_v7, %v3340_v29  ;;  %v3348_v63 = vshll.u32 %v3177_v16, 16  ;;  %3634 = vst [vmem:[#allocation3 + $0x184] sm:$0xf] %v3341_v12  ;;  %v6811_v54 = vld [vmem:[#allocation3 + $0x208] sm:$0xf]  ;;  %v6568_v1 = vor.u32 %v7440_v31, %v6567_v35  ;;  %v3353_v13 = vshrl.u32 %v8801_v47, 16 }
 0x1f8   : > { %1972 = vst [vmem:[#allocation3 + $0x244] sm:$0xf] %v1745_v37  ;;  %v3109_v43 = vld [vmem:[#allocation2 + $0x64] sm:$0xf]  ;;  %v6812_v25 = vor.u32 %v7502_v26, %v6811_v54  ;;  %6035 = vmatmul.bf16.vlgmr.msra.gmra.mxu1 %v6572_v56  ;;  %v2355_v0 = vld [vmem:[#allocation2 + $0x7c] sm:$0xf] }
 0x1f9   : > { %v2356_v33 = vld [vmem:[#allocation2 + $0x80] sm:$0x1]  ;;  %v9802_v29 = vrot.slane %v8789_v19, 5  ;;  %5946 = vmatmul.bf16.vlgmr.msra.gmra.mxu0 %v6568_v1  ;;  %v2601_v49 = vshll.u32 %v2355_v0, 16  ;;  %v2605_v42 = vshrl.u32 %v2355_v0, 16  ;;  %v1754_v23 = vrot.slane %v1752_v59, 5  ;;  %v8822_v59 = vpop.f32.mrf.mxu0 }
 0x1fa   : > { %v6689_v31 = vld [vmem:[#allocation3 + $0x144] sm:$0xf0]  ;;  %v2611_v16 = vshll.u32 %v2356_v33, 16  ;;  %3140 = vst [vmem:[#allocation3 + $0x1c8] sm:$0xf] %v3108_v4  ;;  %v1750_v28 = vrot.slane %v1749_v62, 4 }
 0x1fb   : > { %v3755_v12 = vsel %vm8076_vm11, %v6525_v5, %v9802_v29  ;;  %v3346_v7 = vrot.slane %v3345_v8, 4  ;;  %v3350_v26 = vrot.slane %v3348_v63, 5  ;;  %v1757_v35 = vshrl.u32 %v1516_v61, 16  ;;  %3141 = vst [vmem:[#allocation3 + $0x1ec] sm:$0xf] %v3109_v43 }
 0x1fc   : > { %v2599_v56 = vrot.slane %v2598_v2, 4  ;;  %v2603_v37 = vrot.slane %v2601_v49, 5  ;;  %v2607_v54 = vrot.slane %v2605_v42, 4  ;;  %v1760_v24 = vshll.u32 %v1516_v61, 16  ;;  %v3179_v58 = vld [vmem:[#allocation2 + $0x64] sm:$0xf]  ;;  %5803 = vmatmul.bf16.gmra.mxu2 %v6812_v25 }
 0x1fd   : > { %v2613_v20 = vrot.slane %v2611_v16, 5  ;;  %v1755_v5 = vsel %vm8157_vm14, %v1750_v28, %v1754_v23  ;;  %v3351_v1 = vsel %vm8157_vm14, %v3346_v7, %v3350_v26  ;;  %v1759_v0 = vrot.slane %v1757_v35, 4  ;;  %3896 = vst [vmem:[#allocation3 + $0x20] sm:$0xf] %v3755_v12  ;;  %v7469_v8 = vld [vmem:[#allocation3 + $0x124] sm:$0xf]  ;;  %v8829_v23 = vpop.f32.mrf.mxu2 }
 0x1fe   : > { %9803 = vst [vmem:[#allocation34_spill] sm:$0xff] %v8822_v59  ;;  %v8824_v62 = vpop.f32.mrf.mxu3  ;;  %v2604_v63 = vsel %vm8157_vm14, %v2599_v56, %v2603_v37  ;;  %v2608_v61 = vor.u32 %v2607_v54, %v2603_v37  ;;  %v1762_v4 = vrot.slane %v1760_v24, 5  ;;  %v3356_v2 = vshll.u32 %v8801_v47, 16  ;;  %v3180_v33 = vld [vmem:[#allocation2 + $0x68] sm:$0x1]  ;;  %v8835_v56 = vpop.f32.mrf.mxu1 }
 0x1ff   : > { %1973 = vst [vmem:[#allocation3 + $0x268] sm:$0xf] %v1755_v5  ;;  %v6692_v43 = vor.u32 %v7469_v8, %v6689_v31  ;;  %v3355_v29 = vrot.slane %v3353_v13, 4  ;;  %v3362_v49 = vshll.u32 %v3179_v58, 16  ;;  %v3366_v16 = vshrl.u32 %v3179_v58, 16 }
 0x200   : > { %2809 = vst [vmem:[#allocation3 + $0x298] sm:$0xf] %v2604_v63  ;;  %v2609_v12 = vrot.slane %v2608_v61, 4  ;;  %v1763_v42 = vor.u32 %v1762_v4, %v1759_v0  ;;  %v3358_v25 = vrot.slane %v3356_v2, 5  ;;  %v1517_v28 = vld [vmem:[#allocation2 + $0x70] sm:$0xf] }
 0x201   : > { %3635 = vst [vmem:[#allocation3 + $0x1a8] sm:$0xf] %v3351_v1  ;;  %v1518_v7 = vld [vmem:[#allocation2 + $0x74] sm:$0x1]  ;;  %v3110_v26 = vld [vmem:[#allocation2 + $0x6c] sm:$0xf]  ;;  %5521 = vmatmul.bf16.gmra.mxu3 %v6692_v43 }
 0x202   : > { %v8831_v35 = vld [vmem:[#allocation2 + $0x6c] sm:$0xf]  ;;  %v6605_v24 = vld [vmem:[#allocation3 + $0x84] sm:$0xf0]  ;;  %v2614_v47 = vsel %vm8157_vm14, %v2609_v12, %v2613_v20  ;;  %v1766_v31 = vshll.u32 %v1517_v28, 16  ;;  %v3372_v13 = vshll.u32 %v3180_v33, 16  ;;  %v3359_v58 = vor.u32 %v3358_v25, %v3355_v29 }
 0x203   : > { %9804 = vst [vmem:[#allocation35_spill] sm:$0xff] %v8835_v56  ;;  %v1764_v37 = vrot.slane %v1763_v42, 4  ;;  %v1770_v54 = vshrl.u32 %v1517_v28, 16  ;;  %v3111_v5 = vld [vmem:[#allocation2 + $0x70] sm:$0xf]  ;;  %v1776_v8 = vshll.u32 %v1518_v7, 16 }
 0x204   : > { %2810 = vst [vmem:[#allocation3 + $0x2bc] sm:$0xf] %v2614_v47  ;;  %v2357_v1 = vld [vmem:[#allocation2 + $0x84] sm:$0xf]  ;;  %v1768_v0 = vrot.slane %v1766_v31, 5  ;;  %v3364_v63 = vrot.slane %v3362_v49, 5  ;;  %v8850_v31 = vpop.f32.mrf.mxu0 }
 0x205   : > { %v3368_v61 = vrot.slane %v3366_v16, 4  ;;  %3142 = vst [vmem:[#allocation3 + $0x210] sm:$0xf] %v3110_v26  ;;  %v6603_v4 = vld [vmem:[#allocation3 + $0x60] sm:$0xf]  ;;  %v1772_v59 = vrot.slane %v1770_v54, 4 }
 0x206   : > { %v7449_v2 = vld [vmem:[#allocation3 + $0x80] sm:$0xf0]  ;;  %v3360_v20 = vrot.slane %v3359_v58, 4  ;;  %v9805_v33 = vrot.slane %v8789_v19, 5  ;;  %v7511_v47 = vld [vmem:[#allocation3 + $0x270] sm:$0xf0]  ;;  %v8841_v42 = vpop.f32.mrf.mxu3  ;;  %v1769_v29 = vsel %vm8157_vm14, %v1764_v37, %v1768_v0  ;;  %v8852_v37 = vpop.f32.mrf.mxu2 }
 0x207   : > { %v7445_v43 = vld [vmem:[#allocation3 + $0x64] sm:$0xf]  ;;  %v3369_v25 = vor.u32 %v3368_v61, %v3364_v63  ;;  %3143 = vst [vmem:[#allocation3 + $0x234] sm:$0xf] %v3111_v5  ;;  %v3377_v49 = vshrl.u32 %v8831_v35, 16  ;;  %v1773_v7 = vor.u32 %v1772_v59, %v1768_v0  ;;  %v6604_v54 = vor.u32 %v7449_v2, %v6603_v4 }
 0x208   : > { %v8839_v12 = vrot.slane %v9805_v33, 4  ;;  %v6847_v16 = vld [vmem:[#allocation3 + $0x250] sm:$0xf]  ;;  %v6608_v28 = vor.u32 %v7445_v43, %v6605_v24  ;;  %1974 = vst [vmem:[#allocation3 + $0x28c] sm:$0xf] %v1769_v29  ;;  %v3365_v26 = vsel %vm8157_vm14, %v3360_v20, %v3364_v63  ;;  %v1778_v58 = vrot.slane %v1776_v8, 5 }
 0x209   : > { %v8848_v19 = vld [vmem:[#allocation2 + $0x70] sm:$0xf]  ;;  %9806 = vst [vmem:[#allocation36_spill] sm:$0xff] %v8850_v31  ;;  %v3370_v33 = vrot.slane %v3369_v25, 4  ;;  %v3374_v56 = vrot.slane %v3372_v13, 5  ;;  %v6848_v5 = vor.u32 %v7511_v47, %v6847_v16  ;;  %v2616_v59 = vshrl.u32 %v2357_v1, 16  ;;  %5951 = vmatmul.bf16.gmra.mxu0 %v6604_v54 }
 0x20a   : > { %3636 = vst [vmem:[#allocation3 + $0x1cc] sm:$0xf] %v3365_v26  ;;  %6040 = vmatmul.bf16.gmra.mxu1 %v6608_v28  ;;  %v2358_v61 = vld [vmem:[#allocation2 + $0x88] sm:$0xf]  ;;  %v2359_v24 = vld [vmem:[#allocation2 + $0x8c] sm:$0x1] }
 0x20b   : > { %v2619_v0 = vshll.u32 %v2357_v1, 16  ;;  %v1519_v43 = vld [vmem:[#allocation2 + $0x78] sm:$0xf]  ;;  %v2625_v63 = vshll.u32 %v2358_v61, 16  ;;  %v2629_v20 = vshrl.u32 %v2358_v61, 16  ;;  %v3379_v29 = vrot.slane %v3377_v49, 4  ;;  %v8858_v1 = vpop.f32.mrf.mxu1 }
 0x20c   : > { %v3380_v31 = vshll.u32 %v8831_v35, 16  ;;  %v2618_v4 = vrot.slane %v2616_v59, 4  ;;  %v1774_v2 = vrot.slane %v1773_v7, 4  ;;  %v3386_v13 = vshll.u32 %v8848_v19, 16  ;;  %v6725_v25 = vld [vmem:[#allocation3 + $0x18c] sm:$0xf0]  ;;  %5808 = vmatmul.bf16.gmra.mxu2 %v6848_v5 }
 0x20d   : > { %v2621_v8 = vrot.slane %v2619_v0, 5  ;;  %v2627_v26 = vrot.slane %v2625_v63, 5  ;;  %v2631_v47 = vrot.slane %v2629_v20, 4  ;;  %v2635_v16 = vshll.u32 %v2359_v24, 16  ;;  %9807 = vst [vmem:[#allocation37_spill] sm:$0xff] %v8858_v1 }
 0x20e   : > { %v3375_v28 = vsel %vm8157_vm14, %v3370_v33, %v3374_v56  ;;  %v1779_v49 = vsel %vm8157_vm14, %v1774_v2, %v1778_v58  ;;  %v1781_v35 = vshrl.u32 %v1519_v43, 16  ;;  %v1784_v61 = vshll.u32 %v1519_v43, 16  ;;  %v3112_v59 = vld [vmem:[#allocation2 + $0x78] sm:$0xf]  ;;  %v3658_v7 = vld [vmem:[#allocation2 + $0x20] sm:$0x1]  ;;  %v8862_v9 = vpop.f32.mrf.mxu3  ;;  %v8868_v1 = vpop.f32.mrf.mxu2 }
 0x20f   : > { %v2622_v54 = vor.u32 %v2621_v8, %v2618_v4  ;;  %3637 = vst [vmem:[#allocation3 + $0x1f0] sm:$0xf] %v3375_v28  ;;  %v7478_v0 = vld [vmem:[#allocation3 + $0x16c] sm:$0xf]  ;;  %v2632_v63 = vor.u32 %v2631_v47, %v2627_v26  ;;  %v3382_v33 = vrot.slane %v3380_v31, 5  ;;  %v2637_v43 = vrot.slane %v2635_v16, 5  ;;  %v8877_v16 = vpop.f32.mrf.mxu0 }
 0x210   : > { %v7621_v56 = vld [vmem:[%s9755_s5 + $0x160] sm:$0xff]  ;;  %1975 = vst [vmem:[#allocation3 + $0x2b0] sm:$0xf] %v1779_v49  ;;  %v6728_v24 = vor.u32 %v7478_v0, %v6725_v25  ;;  %v1783_v4 = vrot.slane %v1781_v35, 4  ;;  %v1786_v58 = vrot.slane %v1784_v61, 5  ;;  %v3390_v5 = vshrl.u32 %v8848_v19, 16 }
 0x211   : > { %v2623_v20 = vrot.slane %v2622_v54, 4  ;;  %v3183_v8 = vld [vmem:[#allocation2 + $0x74] sm:$0x1]  ;;  %v2633_v2 = vrot.slane %v2632_v63, 4  ;;  %5852 = vmatpush.bf16.msra.mxu3 %v7621_v56  ;;  %v3383_v28 = vor.u32 %v3382_v33, %v3379_v29  ;;  %3144 = vst [vmem:[#allocation3 + $0x258] sm:$0xf] %v3112_v59 }
 0x212   : > { %9808 = vst [vmem:[#allocation38_spill] sm:$0xff] %v8868_v1  ;;  %v7645_v31 = vld [vmem:[%s9755_s5 + $0x220] sm:$0xff]  ;;  %v1520_v25 = vld [vmem:[#allocation2 + $0x7c] sm:$0xf]  ;;  %v1787_v49 = vor.u32 %v1786_v58, %v1783_v4  ;;  %v3388_v35 = vrot.slane %v3386_v13, 5  ;;  %5526 = vmatmul.bf16.gmra.mxu3 %v6728_v24  ;;  %v3392_v63 = vrot.slane %v3390_v5, 4 }
 0x213   : > { %v2628_v47 = vsel %vm8157_vm14, %v2623_v20, %v2627_v26  ;;  %v1521_v54 = vld [vmem:[#allocation2 + $0x80] sm:$0x1]  ;;  %v8875_v61 = vld [vmem:[#allocation2 + $0x78] sm:$0xf]  ;;  %9809 = vst [vmem:[#allocation39_spill] sm:$0xff] %v8877_v16  ;;  %v2638_v19 = vsel %vm8157_vm14, %v2633_v2, %v2637_v43  ;;  %v1790_v29 = vshll.u32 %v1520_v25, 16  ;;  %6119 = vmatpush.bf16.msra.mxu2 %v7645_v31 }
 0x214   : > { %2811 = vst [vmem:[#allocation3 + $0x2e0] sm:$0xf] %v2628_v47  ;;  %v1794_v59 = vshrl.u32 %v1520_v25, 16  ;;  %v3757_v26 = vrot.slane %v3658_v7, 5  ;;  %v3384_v0 = vrot.slane %v3383_v28, 4  ;;  %v3396_v56 = vshll.u32 %v3183_v8, 16 }
 0x215   : > { %2812 = vst [vmem:[#allocation3 + $0x304] sm:$0xf] %v2638_v19  ;;  %v6641_v33 = vld [vmem:[#allocation3 + $0xcc] sm:$0xf0]  ;;  %v1788_v20 = vrot.slane %v1787_v49, 4  ;;  %v1792_v13 = vrot.slane %v1790_v29, 5  ;;  %v3393_v43 = vor.u32 %v3392_v63, %v3388_v35  ;;  %v8890_v19 = vpop.f32.mrf.mxu1 }
 0x216   : > { %v1796_v4 = vrot.slane %v1794_v59, 4  ;;  %v1800_v58 = vshll.u32 %v1521_v54, 16  ;;  %v2360_v22 = vld [vmem:[#allocation2 + $0x90] sm:$0xf]  ;;  %v6639_v16 = vld [vmem:[#allocation3 + $0xa8] sm:$0xf]  ;;  %v3389_v2 = vsel %vm8157_vm14, %v3384_v0, %v3388_v35  ;;  %v8883_v28 = vpop.f32.mrf.mxu3  ;;  %v3758_v49 = vsel %vm8076_vm11, %v8839_v12, %v3757_v26 }
 0x217   : > { %v7458_v24 = vld [vmem:[#allocation3 + $0xc8] sm:$0xf0]  ;;  %v3113_v47 = vld [vmem:[#allocation2 + $0x7c] sm:$0xf]  ;;  %v6883_v25 = vld [vmem:[#allocation3 + $0x298] sm:$0xf]  ;;  %v1793_v8 = vsel %vm8157_vm14, %v1788_v20, %v1792_v13 }
 0x218   : > { %v7454_v52 = vld [vmem:[#allocation3 + $0xac] sm:$0xf]  ;;  %v7520_v31 = vld [vmem:[#allocation3 + $0x2b8] sm:$0xf0]  ;;  %v1797_v5 = vor.u32 %v1796_v4, %v1792_v13  ;;  %3638 = vst [vmem:[#allocation3 + $0x214] sm:$0xf] %v3389_v2  ;;  %v6640_v63 = vor.u32 %v7458_v24, %v6639_v16  ;;  %v8894_v13 = vpop.f32.mrf.mxu2 }
 0x219   : > { %v1522_v7 = vld [vmem:[#allocation2 + $0x84] sm:$0xf]  ;;  %v3185_v54 = vld [vmem:[#allocation2 + $0x7c] sm:$0xf]  ;;  %9810 = vst [vmem:[#allocation40_spill] sm:$0xff] %v8890_v19  ;;  %v6644_v29 = vor.u32 %v7454_v52, %v6641_v33  ;;  %v3394_v35 = vrot.slane %v3393_v43, 4  ;;  %v6884_v4 = vor.u32 %v7520_v31, %v6883_v25 }
 0x21a   : > { %1976 = vst [vmem:[#allocation3 + $0x2d4] sm:$0xf] %v1793_v8  ;;  %v3398_v59 = vrot.slane %v3396_v56, 5  ;;  %v3401_v0 = vshrl.u32 %v8875_v61, 16  ;;  %v1798_v46 = vrot.slane %v1797_v5, 4  ;;  %v1802_v1 = vrot.slane %v1800_v58, 5  ;;  %5956 = vmatmul.bf16.gmra.mxu0 %v6640_v63  ;;  %v8900_v5 = vpop.f32.mrf.mxu0 }
 0x21b   : > { %3145 = vst [vmem:[#allocation3 + $0x27c] sm:$0xf] %v3113_v47  ;;  %v3404_v20 = vshll.u32 %v8875_v61, 16  ;;  %6045 = vmatmul.bf16.gmra.mxu1 %v6644_v29  ;;  %v2361_v2 = vld [vmem:[#allocation2 + $0x94] sm:$0xf]  ;;  %v3410_v26 = vshll.u32 %v3185_v54, 16 }
 0x21c   : > { %9811 = vst [vmem:[#allocation41_spill] sm:$0xff] %v8894_v13  ;;  %v2362_v12 = vld [vmem:[#allocation2 + $0x98] sm:$0x1]  ;;  %v3399_v52 = vsel %vm8157_vm14, %v3394_v35, %v3398_v59  ;;  %v3414_v33 = vshrl.u32 %v3185_v54, 16  ;;  %v6761_v56 = vld [vmem:[#allocation3 + $0x1d4] sm:$0xf0]  ;;  %v1803_v61 = vsel %vm8157_vm14, %v1798_v46, %v1802_v1  ;;  %5813 = vmatmul.bf16.gmra.mxu2 %v6884_v4 }
 0x21d   : > { %v2640_v43 = vshrl.u32 %v2360_v22, 16  ;;  %v2643_v16 = vshll.u32 %v2360_v22, 16  ;;  %v2649_v24 = vshll.u32 %v2361_v2, 16  ;;  %v2653_v58 = vshrl.u32 %v2361_v2, 16  ;;  %v3186_v47 = vld [vmem:[#allocation2 + $0x80] sm:$0x1] }
 0x21e   : > { %v2659_v8 = vshll.u32 %v2362_v12, 16  ;;  %3639 = vst [vmem:[#allocation3 + $0x238] sm:$0xf] %v3399_v52  ;;  %v1805_v25 = vshrl.u32 %v1522_v7, 16  ;;  %v3403_v31 = vrot.slane %v3401_v0, 4  ;;  %v1808_v19 = vshll.u32 %v1522_v7, 16  ;;  %v8902_v13 = vpop.f32.mrf.mxu3 }
 0x21f   : > { %9812 = vst [vmem:[#allocation42_spill] sm:$0xff] %v8900_v5  ;;  %v2642_v29 = vrot.slane %v2640_v43, 4  ;;  %v2645_v35 = vrot.slane %v2643_v16, 5  ;;  %v2651_v59 = vrot.slane %v2649_v24, 5  ;;  %v2655_v54 = vrot.slane %v2653_v58, 4 }
 0x220   : > { %1977 = vst [vmem:[#allocation3 + $0x2f8] sm:$0xf] %v1803_v61  ;;  %v1807_v63 = vrot.slane %v1805_v25, 4  ;;  %v3406_v22 = vrot.slane %v3404_v20, 5  ;;  %v7487_v2 = vld [vmem:[#allocation3 + $0x1b4] sm:$0xf]  ;;  %v8904_v25 = vpop.f32.mrf.mxu1  ;;  %v8906_v7 = vpop.f32.mrf.mxu2 }
 0x221   : > { %v2646_v12 = vor.u32 %v2645_v35, %v2642_v29  ;;  %v2656_v39 = vor.u32 %v2655_v54, %v2651_v59  ;;  %v3412_v46 = vrot.slane %v3410_v26, 5  ;;  %v3416_v1 = vrot.slane %v3414_v33, 4  ;;  %3897 = vst [vmem:[#allocation3 + $0x44] sm:$0xf] %v3758_v49  ;;  %v1523_v20 = vld [vmem:[#allocation2 + $0x88] sm:$0xf] }
 0x222   : > { %v6764_v0 = vor.u32 %v7487_v2, %v6761_v56  ;;  %v1810_v52 = vrot.slane %v1808_v19, 5  ;;  %v3407_v5 = vor.u32 %v3406_v22, %v3403_v31  ;;  %v3420_v43 = vshll.u32 %v3186_v47, 16  ;;  %9813 = vst [vmem:[#allocation43_spill] sm:$0xff] %v8904_v25  ;;  %v1524_v4 = vld [vmem:[#allocation2 + $0x8c] sm:$0x1] }
 0x223   : > { %v2647_v16 = vrot.slane %v2646_v12, 4  ;;  %v2657_v24 = vrot.slane %v2656_v39, 4  ;;  %v2661_v58 = vrot.slane %v2659_v8, 5  ;;  %v3417_v61 = vor.u32 %v3416_v1, %v3412_v46  ;;  %9814 = vst [vmem:[#allocation44_spill] sm:$0xff] %v8906_v7  ;;  %v7467_v26 = vld [vmem:[#allocation3 + $0x110] sm:$0xf0] }
 0x224   : > { %v1811_v44 = vor.u32 %v1810_v52, %v1807_v63  ;;  %v3408_v29 = vrot.slane %v3407_v5, 4  ;;  %5531 = vmatmul.bf16.gmra.mxu3 %v6764_v0  ;;  %v6677_v33 = vld [vmem:[#allocation3 + $0x114] sm:$0xf0]  ;;  %v1814_v39 = vshll.u32 %v1523_v20, 16  ;;  %v1818_v56 = vshrl.u32 %v1523_v20, 16  ;;  %v8914_v0 = vpop.f32.mrf.mxu0 }
 0x225   : > { %v2652_v49 = vsel %vm8157_vm14, %v2647_v16, %v2651_v59  ;;  %v2662_v19 = vsel %vm8157_vm14, %v2657_v24, %v2661_v58  ;;  %v3660_v47 = vld [vmem:[#allocation2 + $0x28] sm:$0xf]  ;;  %v3422_v35 = vrot.slane %v3420_v43, 5  ;;  %v3659_v54 = vld [vmem:[#allocation2 + $0x24] sm:$0xe]  ;;  %v1824_v2 = vshll.u32 %v1524_v4, 16 }
 0x226   : > { %2813 = vst [vmem:[#allocation3 + $0x328] sm:$0xf] %v2652_v49  ;;  %v1812_v8 = vrot.slane %v1811_v44, 4  ;;  %v3413_v31 = vsel %vm8157_vm14, %v3408_v29, %v3412_v46  ;;  %v2363_v5 = vld [vmem:[#allocation2 + $0x9c] sm:$0xf]  ;;  %v1816_v63 = vrot.slane %v1814_v39, 5  ;;  %v8920_v20 = vpop.f32.mrf.mxu3 }
 0x227   : > { %2814 = vst [vmem:[#allocation3 + $0x34c] sm:$0xf] %v2662_v19  ;;  %v1820_v22 = vrot.slane %v1818_v56, 4  ;;  %v3418_v12 = vrot.slane %v3417_v61, 4  ;;  %v3661_v59 = vld [vmem:[#allocation2 + $0x2c] sm:$0x1] }
 0x228   : > { %3640 = vst [vmem:[#allocation3 + $0x25c] sm:$0xf] %v3413_v31  ;;  %v3761_v1 = vrot.slane %v3660_v47, 5  ;;  %v6675_v52 = vld [vmem:[#allocation3 + $0xf0] sm:$0xf]  ;;  %v1817_v44 = vsel %vm8157_vm14, %v1812_v8, %v1816_v63  ;;  %v6526_v29 = vrot.slane %v3659_v54, 9 }
 0x229   : > { %9815 = vst [vmem:[#allocation45_spill] sm:$0xff] %v8914_v0  ;;  %v7463_v16 = vld [vmem:[#allocation3 + $0xf4] sm:$0xf]  ;;  %v1821_v24 = vor.u32 %v1820_v22, %v1816_v63  ;;  %v3423_v46 = vsel %vm8157_vm14, %v3418_v12, %v3422_v35  ;;  %v3663_v43 = vld [vmem:[#allocation2 + $0x34] sm:$0xf]  ;;  %v6676_v4 = vor.u32 %v7467_v26, %v6675_v52  ;;  %v1826_v47 = vrot.slane %v1824_v2, 5  ;;  %v8924_v22 = vpop.f32.mrf.mxu2 }
 0x22a   : > { %v7529_v58 = vld [vmem:[#allocation3 + $0x300] sm:$0xf0]  ;;  %v6680_v61 = vor.u32 %v7463_v16, %v6677_v33  ;;  %1978 = vst [vmem:[#allocation3 + $0x31c] sm:$0xf] %v1817_v44  ;;  %v3763_v49 = vrot.slane %v3761_v1, 4  ;;  %v3764_v31 = vrot.slane %v3661_v59, 5  ;;  %v3762_v54 = vsel %vm8076_vm11, %v6526_v29, %v3761_v1 }
 0x22b   : > { %v3662_v19 = vld [vmem:[#allocation2 + $0x30] sm:$0xe]  ;;  %v1822_v56 = vrot.slane %v1821_v24, 4  ;;  %3641 = vst [vmem:[#allocation3 + $0x280] sm:$0xf] %v3423_v46  ;;  %v3768_v8 = vrot.slane %v3663_v43, 5  ;;  %5961 = vmatmul.bf16.gmra.mxu0 %v6676_v4  ;;  %v8930_v24 = vpop.f32.mrf.mxu1 }
 0x22c   : > { %v1525_v39 = vld [vmem:[#allocation2 + $0x90] sm:$0xf]  ;;  %9816 = vst [vmem:[#allocation46_spill] sm:$0xff] %v8924_v22  ;;  %v6919_v35 = vld [vmem:[#allocation3 + $0x2e0] sm:$0xf]  ;;  %6050 = vmatmul.bf16.gmra.mxu1 %v6680_v61  ;;  %v2664_v26 = vshrl.u32 %v2363_v5, 16 }
 0x22d   : > { %v8922_v63 = vld [vmem:[#allocation2 + $0x10] sm:$0xf]  ;;  %v2364_v12 = vld [vmem:[#allocation2 + $0xa0] sm:$0xf]  ;;  %v2365_v0 = vld [vmem:[#allocation2 + $0xa4] sm:$0x1]  ;;  %v1827_v2 = vsel %vm8157_vm14, %v1822_v56, %v1826_v47  ;;  %v6920_v25 = vor.u32 %v7529_v58, %v6919_v35 }
 0x22e   : > { %v2667_v33 = vshll.u32 %v2363_v5, 16  ;;  %v2673_v52 = vshll.u32 %v2364_v12, 16  ;;  %v2677_v16 = vshrl.u32 %v2364_v12, 16  ;;  %v3664_v59 = vld [vmem:[#allocation2 + $0x38] sm:$0x1]  ;;  %v6527_v44 = vrot.slane %v3662_v19, 9 }
 0x22f   : > { %9817 = vst [vmem:[#allocation47_spill] sm:$0xff] %v8930_v24  ;;  %v2666_v46 = vrot.slane %v2664_v26, 4  ;;  %v2683_v61 = vshll.u32 %v2365_v0, 16  ;;  %v3765_v5 = vsel %vm8076_vm11, %v3763_v49, %v3764_v31  ;;  %v6797_v22 = vld [vmem:[#allocation3 + $0x21c] sm:$0xf0]  ;;  %v1829_v47 = vshrl.u32 %v1525_v39, 16  ;;  %5818 = vmatmul.bf16.gmra.mxu2 %v6920_v25 }
 0x230   : > { %v2669_v43 = vrot.slane %v2667_v33, 5  ;;  %1979 = vst [vmem:[#allocation3 + $0x340] sm:$0xf] %v1827_v2  ;;  %v2675_v1 = vrot.slane %v2673_v52, 5  ;;  %v2679_v4 = vrot.slane %v2677_v16, 4  ;;  %v3769_v29 = vsel %vm8076_vm11, %v6527_v44, %v3768_v8  ;;  %v7620_v58 = vld [vmem:[%s9755_s5 + $0x158] sm:$0xff]  ;;  %v8940_v2 = vpop.f32.mrf.mxu0 }
 0x231   : > { %v3665_v12 = vld [vmem:[#allocation2 + $0x3c] sm:$0xe]  ;;  %v1832_v19 = vshll.u32 %v1525_v39, 16  ;;  %3898 = vst [vmem:[#allocation3 + $0x68] sm:$0xf] %v3762_v54  ;;  %v3770_v24 = vrot.slane %v3768_v8, 4  ;;  %5853 = vmatpush.bf16.msra.mxu3 %v7620_v58 }
 0x232   : > { %v2670_v56 = vor.u32 %v2669_v43, %v2666_v46  ;;  %v9758_v26 = vrot.slane %v8922_v63, 5  ;;  %v2680_v0 = vor.u32 %v2679_v4, %v2675_v1  ;;  %3899 = vst [vmem:[#allocation3 + $0x8c] sm:$0xf] %v3765_v5  ;;  %v3771_v49 = vrot.slane %v3664_v59, 5  ;;  %v7496_v31 = vld [vmem:[#allocation3 + $0x1fc] sm:$0xf]  ;;  %v8942_v46 = vpop.f32.mrf.mxu2  ;;  %v8944_v43 = vpop.f32.mrf.mxu3 }
 0x233   : > { %v2685_v33 = vrot.slane %v2683_v61, 5  ;;  %v1831_v52 = vrot.slane %v1829_v47, 4  ;;  %v1834_v16 = vrot.slane %v1832_v19, 5  ;;  %9818 = vst [vmem:[#allocation48_spill] sm:$0xff] %v8940_v2  ;;  %v6800_v39 = vor.u32 %v7496_v31, %v6797_v22  ;;  %v3666_v8 = vld [vmem:[#allocation2 + $0x40] sm:$0xf] }
 0x234   : > { %v2671_v35 = vrot.slane %v2670_v56, 4  ;;  %v2681_v54 = vrot.slane %v2680_v0, 4  ;;  %3900 = vst [vmem:[#allocation3 + $0xb0] sm:$0xf] %v3769_v29  ;;  %v6528_v25 = vrot.slane %v3665_v12, 9  ;;  %v7644_v61 = vld [vmem:[%s9755_s5 + $0x218] sm:$0xff]  ;;  %v3772_v22 = vsel %vm8076_vm11, %v3770_v24, %v3771_v49 }
 0x235   : > { %v2823_v44 = vld [vmem:[#allocation2 + $0xc] sm:$0xe]  ;;  %9819 = vst [vmem:[#allocation49_spill] sm:$0xff] %v8942_v46  ;;  %v1526_v5 = vld [vmem:[#allocation2 + $0x94] sm:$0xf]  ;;  %v1835_v4 = vor.u32 %v1834_v16, %v1831_v52  ;;  %v3775_v29 = vrot.slane %v3666_v8, 5  ;;  %5536 = vmatmul.bf16.gmra.mxu3 %v6800_v39  ;;  %6120 = vmatpush.bf16.msra.mxu2 %v7644_v61 }
 0x236   : > { %v2676_v59 = vsel %vm8157_vm14, %v2671_v35, %v2675_v1  ;;  %v2825_v56 = vld [vmem:[#allocation2 + $0x14] sm:$0x1]  ;;  %v6713_v12 = vld [vmem:[#allocation3 + $0x15c] sm:$0xf0]  ;;  %v2686_v47 = vsel %vm8157_vm14, %v2681_v54, %v2685_v33  ;;  %v1838_v0 = vshll.u32 %v1526_v5, 16  ;;  %v1842_v1 = vshrl.u32 %v1526_v5, 16 }
 0x237   : > { %2815 = vst [vmem:[#allocation3 + $0x370] sm:$0xf] %v2676_v59  ;;  %v1527_v19 = vld [vmem:[#allocation2 + $0x98] sm:$0x1]  ;;  %v7476_v58 = vld [vmem:[#allocation3 + $0x158] sm:$0xf0]  ;;  %v3776_v35 = vsel %vm8076_vm11, %v6528_v25, %v3775_v29  ;;  %v8959_v59 = vpop.f32.mrf.mxu1 }
 0x238   : > { %2816 = vst [vmem:[#allocation3 + $0x394] sm:$0xf] %v2686_v47  ;;  %v3667_v31 = vld [vmem:[#allocation2 + $0x44] sm:$0x1]  ;;  %v2826_v52 = vld [vmem:[#allocation2 + $0x18] sm:$0xe] }
 0x239   : > { %v6509_v24 = vrot.slane %v2823_v44, 9  ;;  %v7472_v49 = vld [vmem:[#allocation3 + $0x13c] sm:$0xf]  ;;  %v1836_v16 = vrot.slane %v1835_v4, 4  ;;  %v1840_v39 = vrot.slane %v1838_v0, 5  ;;  %v1844_v8 = vrot.slane %v1842_v1, 4 }
 0x23a   : > { %3901 = vst [vmem:[#allocation3 + $0xd4] sm:$0xf] %v3772_v22  ;;  %v2923_v33 = vrot.slane %v9758_v26, 4  ;;  %v2366_v54 = vld [vmem:[#allocation2 + $0xa8] sm:$0xf]  ;;  %v1848_v47 = vshll.u32 %v1527_v19, 16  ;;  %v6716_v22 = vor.u32 %v7472_v49, %v6713_v12 }
 0x23b   : > { %9820 = vst [vmem:[#allocation50_spill] sm:$0xff] %v8959_v59  ;;  %v7538_v5 = vld [vmem:[#allocation3 + $0x348] sm:$0xf0]  ;;  %v3777_v61 = vrot.slane %v3775_v29, 4  ;;  %v3778_v2 = vrot.slane %v3667_v31, 5  ;;  %v1841_v25 = vsel %vm8157_vm14, %v1836_v16, %v1840_v39  ;;  %v1845_v46 = vor.u32 %v1844_v8, %v1840_v39  ;;  %v8969_v16 = vpop.f32.mrf.mxu2 }
 0x23c   : > { %3902 = vst [vmem:[#allocation3 + $0xf8] sm:$0xf] %v3776_v35  ;;  %v2827_v44 = vld [vmem:[#allocation2 + $0x1c] sm:$0xf]  ;;  %v2828_v4 = vld [vmem:[#allocation2 + $0x20] sm:$0x1]  ;;  %6055 = vmatmul.bf16.gmra.mxu1 %v6716_v22 }
 0x23d   : > { %v2924_v0 = vrot.slane %v2825_v56, 5  ;;  %v6711_v1 = vld [vmem:[#allocation3 + $0x138] sm:$0xf]  ;;  %1980 = vst [vmem:[#allocation3 + $0x364] sm:$0xf] %v1841_v25  ;;  %v3779_v26 = vsel %vm8076_vm11, %v3777_v61, %v3778_v2  ;;  %v2928_v7 = vrot.slane %v2827_v44, 5 }
 0x23e   : > { %v6955_v59 = vld [vmem:[#allocation3 + $0x328] sm:$0xf]  ;;  %v6712_v41 = vor.u32 %v7476_v58, %v6711_v1  ;;  %v1846_v19 = vrot.slane %v1845_v46, 4  ;;  %3903 = vst [vmem:[#allocation3 + $0x11c] sm:$0xf] %v3779_v26  ;;  %v9821_v29 = vrot.slane %v8922_v63, 5  ;;  %v8973_v58 = vpop.f32.mrf.mxu0 }
 0x23f   : > { %v6510_v35 = vrot.slane %v2826_v52, 9  ;;  %9822 = vst [vmem:[#allocation51_spill] sm:$0xff] %v8969_v16  ;;  %v6956_v56 = vor.u32 %v7538_v5, %v6955_v59  ;;  %v2367_v12 = vld [vmem:[#allocation2 + $0xac] sm:$0xf]  ;;  %v2368_v49 = vld [vmem:[#allocation2 + $0xb0] sm:$0x1]  ;;  %v2925_v2 = vsel %vm8076_vm11, %v2923_v33, %v2924_v0 }
 0x240   : > { %v2922_v31 = vsel %vm8076_vm11, %v6509_v24, %v9821_v29  ;;  %v1850_v39 = vrot.slane %v1848_v47, 5  ;;  %v2931_v8 = vrot.slane %v2828_v4, 5  ;;  %9823 = vst [vmem:[#allocation52_spill] sm:$0xff] %v8973_v58  ;;  %5966 = vmatmul.bf16.gmra.mxu0 %v6712_v41  ;;  %v2688_v26 = vshrl.u32 %v2366_v54, 16  ;;  %v8975_v24 = vpop.f32.mrf.mxu3  ;;  %v6833_v52 = vld [vmem:[#allocation3 + $0x264] sm:$0xf0] }
 0x241   : > { %v2691_v63 = vshll.u32 %v2366_v54, 16  ;;  %v2697_v46 = vshll.u32 %v2367_v12, 16  ;;  %v2701_v61 = vshrl.u32 %v2367_v12, 16  ;;  %v2707_v25 = vshll.u32 %v2368_v49, 16  ;;  %3063 = vst [vmem:[#allocation3 + $0x14] sm:$0xf] %v2922_v31  ;;  %5823 = vmatmul.bf16.gmra.mxu2 %v6956_v56  ;;  %v8983_v12 = vpop.f32.mrf.mxu1 }
 0x242   : > { %v1851_v59 = vsel %vm8157_vm14, %v1846_v19, %v1850_v39  ;;  %v2929_v5 = vsel %vm8076_vm11, %v6510_v35, %v2928_v7  ;;  %v2930_v33 = vrot.slane %v2928_v7, 4  ;;  %v2690_v47 = vrot.slane %v2688_v26, 4  ;;  %v7505_v54 = vld [vmem:[#allocation3 + $0x244] sm:$0xf]  ;;  %3064 = vst [vmem:[#allocation3 + $0x38] sm:$0xf] %v2925_v2 }
 0x243   : > { %v2693_v44 = vrot.slane %v2691_v63, 5  ;;  %v2699_v4 = vrot.slane %v2697_v46, 5  ;;  %v2703_v41 = vrot.slane %v2701_v61, 4  ;;  %1981 = vst [vmem:[#allocation3 + $0x388] sm:$0xf] %v1851_v59  ;;  %v2709_v19 = vrot.slane %v2707_v25, 5  ;;  %v8985_v2 = vpop.f32.mrf.mxu2 }
 0x244   : > { %v2932_v0 = vsel %vm8076_vm11, %v2930_v33, %v2931_v8  ;;  %v2829_v1 = vld [vmem:[#allocation2 + $0x24] sm:$0xe]  ;;  %3065 = vst [vmem:[#allocation3 + $0x5c] sm:$0xf] %v2929_v5  ;;  %v2830_v31 = vld [vmem:[#allocation2 + $0x28] sm:$0xf]  ;;  %v6836_v7 = vor.u32 %v7505_v54, %v6833_v52 }
 0x245   : > { %v2694_v22 = vor.u32 %v2693_v44, %v2690_v47  ;;  %v2704_v29 = vor.u32 %v2703_v41, %v2699_v4  ;;  %9824 = vst [vmem:[#allocation53_spill] sm:$0xff] %v8983_v12  ;;  %v2831_v35 = vld [vmem:[#allocation2 + $0x2c] sm:$0x1]  ;;  %v6511_v26 = vrot.slane %v2829_v1, 9  ;;  %v2935_v63 = vrot.slane %v2830_v31, 5 }
 0x246   : > { %3066 = vst [vmem:[#allocation3 + $0x80] sm:$0xf] %v2932_v0  ;;  %v2938_v46 = vrot.slane %v2831_v35, 5  ;;  %v8990_v56 = vld [vmem:[%s9756_s6] ss:$0 sm:$0xff]  ;;  %5541 = vmatmul.bf16.gmra.mxu3 %v6836_v7  ;;  %v9000_v5 = vpop.f32.mrf.mxu0 }
 0x247   : > { %v2695_v49 = vrot.slane %v2694_v22, 4  ;;  %v2705_v39 = vrot.slane %v2704_v29, 4  ;;  %9825 = vst [vmem:[#allocation54_spill] sm:$0xff] %v8985_v2  ;;  %v2936_v52 = vsel %vm8076_vm11, %v6511_v26, %v2935_v63  ;;  %v2937_v25 = vrot.slane %v2935_v63, 4  ;;  %v6749_v33 = vld [vmem:[#allocation3 + $0x1a4] sm:$0xf0] }
 0x248   : > { %v5414_v59 = vadd.f32 %v8990_v56, %v8320_v51  ;;  %9826 = vst [vmem:[#allocation55_spill] sm:$0xff] %v9000_v5  ;;  %v5502_v44 = vpop.f32.mrf.mxu3  ;;  %v2832_v41 = vld [vmem:[#allocation2 + $0x30] sm:$0xe]  ;;  %v2369_v54 = vld [vmem:[#allocation2 + $0xb4] sm:$0xf] }
 0x249   : > { %v2700_v8 = vsel %vm8157_vm14, %v2695_v49, %v2699_v4  ;;  %v2710_v61 = vsel %vm8157_vm14, %v2705_v39, %v2709_v19  ;;  %v2939_v47 = vsel %vm8076_vm11, %v2937_v25, %v2938_v46  ;;  %v7485_v4 = vld [vmem:[#allocation3 + $0x1a0] sm:$0xf0]  ;;  %3067 = vst [vmem:[#allocation3 + $0xa4] sm:$0xf] %v2936_v52  ;;  %v6747_v22 = vld [vmem:[#allocation3 + $0x180] sm:$0xf]  ;;  %v9006_v39 = vpop.f32.mrf.mxu1 }
 0x24a   : > { %2817 = vst [vmem:[#allocation3 + $0x3b8] sm:$0xf] %v2700_v8  ;;  %v9004_v0 = vadd.f32 %v5502_v44, %v5414_v59  ;;  %v7481_v1 = vld [vmem:[#allocation3 + $0x184] sm:$0xf]  ;;  %v2833_v19 = vld [vmem:[#allocation2 + $0x34] sm:$0xf]  ;;  %v6748_v31 = vor.u32 %v7485_v4, %v6747_v22  ;;  %v5416_v22 = vadd.f32 %v8990_v56, %v8351_v27 }
 0x24b   : > { %2818 = vst [vmem:[#allocation3 + $0x3dc] sm:$0xf] %v2710_v61  ;;  %v6752_v29 = vor.u32 %v7481_v1, %v6749_v33  ;;  %v7547_v51 = vld [vmem:[#allocation3 + $0x390] sm:$0xf0]  ;;  %v2834_v7 = vld [vmem:[#allocation2 + $0x38] sm:$0x1]  ;;  %v9008_v26 = vpop.f32.mrf.mxu2 }
 0x24c   : > { %3068 = vst [vmem:[#allocation3 + $0xc8] sm:$0xf] %v2939_v47  ;;  %v6512_v35 = vrot.slane %v2832_v41, 9  ;;  %v2942_v49 = vrot.slane %v2833_v19, 5  ;;  %v2370_v63 = vld [vmem:[#allocation2 + $0xb8] sm:$0xf] }
 0x24d   : > { %9827 = vst [vmem:[#allocation56_spill] sm:$0xff] %v9006_v39  ;;  %6060 = vmatmul.bf16.gmra.mxu1 %v6752_v29  ;;  %v2371_v46 = vld [vmem:[#allocation2 + $0xbc] sm:$0x1]  ;;  %v2712_v8 = vshrl.u32 %v2369_v54, 16  ;;  %v2715_v61 = vshll.u32 %v2369_v54, 16  ;;  %v2721_v52 = vshll.u32 %v2370_v63, 16 }
 0x24e   : > { %9828 = vst [vmem:[#allocation57_spill] sm:$0xff] %v9008_v26  ;;  %v2725_v25 = vshrl.u32 %v2370_v63, 16  ;;  %v2731_v59 = vshll.u32 %v2371_v46, 16  ;;  %v2943_v33 = vsel %vm8076_vm11, %v6512_v35, %v2942_v49  ;;  %v6991_v47 = vld [vmem:[#allocation3 + $0x370] sm:$0xf]  ;;  %v2944_v41 = vrot.slane %v2942_v49, 4  ;;  %v9016_v46 = vpop.f32.mrf.mxu0 }
 0x24f   : > { %v2714_v44 = vrot.slane %v2712_v8, 4  ;;  %v2717_v4 = vrot.slane %v2715_v61, 5  ;;  %v2945_v1 = vrot.slane %v2834_v7, 5  ;;  %v6992_v29 = vor.u32 %v7547_v51, %v6991_v47  ;;  %v6869_v54 = vld [vmem:[#allocation3 + $0x2ac] sm:$0xf0]  ;;  %9829 = vst [vmem:[#allocation58_spill] sm:$0xff] %v9016_v46 }
 0x250   : > { %5971 = vmatmul.bf16.gmra.mxu0 %v6748_v31  ;;  %v2723_v19 = vrot.slane %v2721_v52, 5  ;;  %v2727_v39 = vrot.slane %v2725_v25, 4  ;;  %v5504_v5 = vpop.f32.mrf.mxu3  ;;  %3069 = vst [vmem:[#allocation3 + $0xec] sm:$0xf] %v2943_v33  ;;  %v2733_v7 = vrot.slane %v2731_v59, 5  ;;  %v7619_v27 = vld [vmem:[%s9755_s5 + $0x150] sm:$0xff]  ;;  %v5419_v47 = vadd.f32 %v8990_v56, %v8371_v14 }
 0x251   : > { %v2718_v31 = vor.u32 %v2717_v4, %v2714_v44  ;;  %v2946_v63 = vsel %vm8076_vm11, %v2944_v41, %v2945_v1  ;;  %5828 = vmatmul.bf16.gmra.mxu2 %v6992_v29  ;;  %v9018_v35 = vadd.f32 %v5504_v5, %v5416_v22  ;;  %v7514_v51 = vld [vmem:[#allocation3 + $0x28c] sm:$0xf]  ;;  %5854 = vmatpush.bf16.msra.mxu3 %v7619_v27  ;;  %v7643_v5 = vld [vmem:[%s9755_s5 + $0x210] sm:$0xff]  ;;  %v9032_v59 = vpop.f32.mrf.mxu1  ;;  %v6785_v44 = vld [vmem:[#allocation3 + $0x1ec] sm:$0xf0] }
 0x252   : > { %v2728_v49 = vor.u32 %v2727_v39, %v2723_v19  ;;  %3070 = vst [vmem:[#allocation3 + $0x110] sm:$0xf] %v2946_v63  ;;  %v6872_v61 = vor.u32 %v7514_v51, %v6869_v54  ;;  %6121 = vmatpush.bf16.msra.mxu2 %v7643_v5  ;;  %v7494_v41 = vld [vmem:[#allocation3 + $0x1e8] sm:$0xf0]  ;;  %v7027_v22 = vld [vmem:[#allocation3 + $0x3b8] sm:$0xf]  ;;  %v5421_v14 = vadd.f32 %v8990_v56, %v8395_v60 }
 0x253   : > { %v2719_v8 = vrot.slane %v2718_v31, 4  ;;  %v9023_v25 = vpop.f32.mrf.mxu2  ;;  %9831 = vst [vmem:[#allocation60_spill] sm:$0xff] %v9032_v59  ;;  %v7490_v1 = vld [vmem:[#allocation3 + $0x1cc] sm:$0xf]  ;;  %v7556_v29 = vld [vmem:[#allocation3 + $0x3d8] sm:$0xf0] }
 0x254   : > { %v2729_v52 = vrot.slane %v2728_v49, 4  ;;  %9830 = vst [vmem:[#allocation59_spill] sm:$0xff] %v9023_v25  ;;  %v2835_v54 = vld [vmem:[#allocation2 + $0x3c] sm:$0xe]  ;;  %v2372_v31 = vld [vmem:[#allocation2 + $0xc0] sm:$0xf]  ;;  %v6788_v49 = vor.u32 %v7490_v1, %v6785_v44 }
 0x255   : > { %v2724_v33 = vsel %vm8157_vm14, %v2719_v8, %v2723_v19  ;;  %v6783_v63 = vld [vmem:[#allocation3 + $0x1c8] sm:$0xf]  ;;  %v2837_v8 = vld [vmem:[#allocation2 + $0x44] sm:$0x1]  ;;  %v2739_v59 = vshll.u32 %v2372_v31, 16 }
 0x256   : > { %5546 = vmatmul.bf16.gmra.mxu3 %v6872_v61  ;;  %v2734_v39 = vsel %vm8157_vm14, %v2729_v52, %v2733_v7  ;;  %2819 = vst [vmem:[#allocation3 + $0x400] sm:$0xf] %v2724_v33  ;;  %v2836_v7 = vld [vmem:[#allocation2 + $0x40] sm:$0xf]  ;;  %v9038_v27 = vpop.f32.mrf.mxu0  ;;  %v6784_v51 = vor.u32 %v7494_v41, %v6783_v63  ;;  %v7028_v33 = vor.u32 %v7556_v29, %v7027_v22  ;;  %v2373_v5 = vld [vmem:[#allocation2 + $0xc4] sm:$0xf] }
 0x257   : > { %2820 = vst [vmem:[#allocation3 + $0x424] sm:$0xf] %v2734_v39  ;;  %v2949_v61 = vrot.slane %v2836_v7, 5  ;;  %v2374_v39 = vld [vmem:[#allocation2 + $0xc8] sm:$0x1]  ;;  %v2745_v44 = vshll.u32 %v2373_v5, 16 }
 0x258   : > { %v5507_v4 = vpop.f32.mrf.mxu3  ;;  %9832 = vst [vmem:[#allocation61_spill] sm:$0xff] %v9038_v27  ;;  %v2749_v1 = vshrl.u32 %v2373_v5, 16  ;;  %v2755_v46 = vshll.u32 %v2374_v39, 16  ;;  %v2952_v7 = vrot.slane %v2837_v8, 5  ;;  %v2741_v60 = vrot.slane %v2739_v59, 5 }
 0x259   : > { %v9036_v19 = vadd.f32 %v5507_v4, %v5419_v47  ;;  %v6513_v47 = vrot.slane %v2835_v54, 9  ;;  %v2736_v4 = vshrl.u32 %v2372_v31, 16  ;;  %v2951_v63 = vrot.slane %v2949_v61, 4  ;;  %v9046_v22 = vpop.f32.mrf.mxu1  ;;  %v6905_v54 = vld [vmem:[#allocation3 + $0x2f4] sm:$0xf0] }
 0x25a   : > { %v2747_v12 = vrot.slane %v2745_v44, 5  ;;  %v2751_v58 = vrot.slane %v2749_v1, 4  ;;  %9834 = vst [vmem:[#allocation63_spill] sm:$0xff] %v9046_v22  ;;  %v2757_v39 = vrot.slane %v2755_v46, 5  ;;  %v7523_v8 = vld [vmem:[#allocation3 + $0x2d4] sm:$0xf]  ;;  %v5424_v46 = vadd.f32 %v8990_v56, %v8427_v34 }
 0x25b   : > { %v9042_v52 = vpop.f32.mrf.mxu2  ;;  %v2950_v41 = vsel %vm8076_vm11, %v6513_v47, %v2949_v61  ;;  %v2738_v27 = vrot.slane %v2736_v4, 4  ;;  %v2953_v31 = vsel %vm8076_vm11, %v2951_v63, %v2952_v7  ;;  %v6908_v61 = vor.u32 %v7523_v8, %v6905_v54  ;;  %v7642_v44 = vld [vmem:[%s9755_s5 + $0x208] sm:$0xff]  ;;  %v3670_v8 = vld [vmem:[#allocation2 + $0x50] sm:$0x1]  ;;  %v1529_v26 = vld [vmem:[#allocation2 + $0xa0] sm:$0xf] }
 0x25c   : > { %9833 = vst [vmem:[#allocation62_spill] sm:$0xff] %v9042_v52  ;;  %v2752_v5 = vor.u32 %v2751_v58, %v2747_v12  ;;  %6122 = vmatpush.bf16.msra.mxu2 %v7642_v44  ;;  %v3668_v63 = vld [vmem:[#allocation2 + $0x48] sm:$0xe]  ;;  %v7499_v54 = vld [vmem:[#allocation3 + $0x214] sm:$0xf] }
 0x25d   : > { %6065 = vmatmul.bf16.gmra.mxu1 %v6788_v49  ;;  %3071 = vst [vmem:[#allocation3 + $0x134] sm:$0xf] %v2950_v41  ;;  %v2838_v7 = vld [vmem:[#allocation2 + $0x48] sm:$0xe] }
 0x25e   : > { %3072 = vst [vmem:[#allocation3 + $0x158] sm:$0xf] %v2953_v31  ;;  %v2753_v47 = vrot.slane %v2752_v5, 4  ;;  %v9057_v1 = vpop.f32.mrf.mxu0  ;;  %v6514_v44 = vrot.slane %v2838_v7, 9 }
 0x25f   : > { %9836 = vst [vmem:[#allocation65_spill] sm:$0xff] %v9057_v1  ;;  %v7565_v1 = vld [vmem:[#allocation3 + $0x420] sm:$0xf0] }
 0x260   : > { %5976 = vmatmul.bf16.gmra.mxu0 %v6784_v51  ;;  %v5509_v29 = vpop.f32.mrf.mxu3  ;;  %v2742_v51 = vor.u32 %v2741_v60, %v2738_v27  ;;  %v2758_v58 = vsel %vm8157_vm14, %v2753_v47, %v2757_v39  ;;  %v7503_v27 = vld [vmem:[#allocation3 + $0x230] sm:$0xf0]  ;;  %v2840_v47 = vld [vmem:[#allocation2 + $0x50] sm:$0x1] }
 0x261   : > { %5833 = vmatmul.bf16.gmra.mxu2 %v7028_v33  ;;  %v9050_v49 = vadd.f32 %v5509_v29, %v5421_v14  ;;  %v6821_v33 = vld [vmem:[#allocation3 + $0x234] sm:$0xf0]  ;;  %2822 = vst [vmem:[#allocation3 + $0x46c] sm:$0xf] %v2758_v58  ;;  %v6819_v29 = vld [vmem:[#allocation3 + $0x210] sm:$0xf]  ;;  %v9067_v31 = vpop.f32.mrf.mxu1 }
 0x262   : > { %v2743_v59 = vrot.slane %v2742_v51, 4  ;;  %9838 = vst [vmem:[#allocation67_spill] sm:$0xff] %v9067_v31  ;;  %v6820_v51 = vor.u32 %v7503_v27, %v6819_v29  ;;  %v6824_v5 = vor.u32 %v7499_v54, %v6821_v33  ;;  %v3669_v39 = vld [vmem:[#allocation2 + $0x4c] sm:$0xf]  ;;  %v3785_v33 = vrot.slane %v3670_v8, 5 }
 0x263   : > { %v9052_v4 = vpop.f32.mrf.mxu2  ;;  %v3782_v34 = vrot.slane %v3669_v39, 5  ;;  %v7618_v27 = vld [vmem:[%s9755_s5 + $0x148] sm:$0xff] }
 0x264   : > { %9835 = vst [vmem:[#allocation64_spill] sm:$0xff] %v9052_v4  ;;  %v2748_v14 = vsel %vm8157_vm14, %v2743_v59, %v2747_v12  ;;  %v7063_v12 = vld [vmem:[#allocation3 + $0x400] sm:$0xf]  ;;  %v6529_v59 = vrot.slane %v3668_v63, 9  ;;  %5855 = vmatpush.bf16.msra.mxu3 %v7618_v27 }
 0x265   : > { %2821 = vst [vmem:[#allocation3 + $0x448] sm:$0xf] %v2748_v14  ;;  %v3784_v7 = vrot.slane %v3782_v34, 4  ;;  %v6857_v27 = vld [vmem:[#allocation3 + $0x27c] sm:$0xf0] }
 0x266   : > { %5551 = vmatmul.bf16.gmra.mxu3 %v6908_v61  ;;  %v2839_v61 = vld [vmem:[#allocation2 + $0x4c] sm:$0xf]  ;;  %v3783_v63 = vsel %vm8076_vm11, %v6529_v59, %v3782_v34  ;;  %v9083_v39 = vpop.f32.mrf.mxu0  ;;  %v6941_v34 = vld [vmem:[#allocation3 + $0x33c] sm:$0xf0] }
 0x267   : > { %v2956_v14 = vrot.slane %v2839_v61, 5  ;;  %3904 = vst [vmem:[#allocation3 + $0x140] sm:$0xf] %v3783_v63  ;;  %v7064_v61 = vor.u32 %v7565_v1, %v7063_v12  ;;  %v5429_v1 = vadd.f32 %v8990_v56, %v8482_v17  ;;  %v7512_v12 = vld [vmem:[#allocation3 + $0x278] sm:$0xf0] }
 0x268   : > { %v5512_v41 = vpop.f32.mrf.mxu3  ;;  %9840 = vst [vmem:[#allocation69_spill] sm:$0xff] %v9083_v39  ;;  %v3671_v63 = vld [vmem:[#allocation2 + $0x54] sm:$0xe]  ;;  %v7574_v17 = vld [vmem:[#allocation3 + $0x468] sm:$0xf0] }
 0x269   : > { %v9065_v60 = vadd.f32 %v5512_v41, %v5424_v46  ;;  %v7641_v46 = vld [vmem:[%s9755_s5 + $0x200] sm:$0xff]  ;;  %v2959_v41 = vrot.slane %v2840_v47, 5  ;;  %v2957_v29 = vsel %vm8076_vm11, %v6514_v44, %v2956_v14  ;;  %v2958_v54 = vrot.slane %v2956_v14, 4  ;;  %v7532_v44 = vld [vmem:[#allocation3 + $0x31c] sm:$0xf] }
 0x26a   : > { %6123 = vmatpush.bf16.msra.mxu2 %v7641_v46  ;;  %3073 = vst [vmem:[#allocation3 + $0x17c] sm:$0xf] %v2957_v29  ;;  %v6944_v14 = vor.u32 %v7532_v44, %v6941_v34  ;;  %v1528_v29 = vld [vmem:[#allocation2 + $0x9c] sm:$0xf]  ;;  %v3672_v44 = vld [vmem:[#allocation2 + $0x58] sm:$0xf] }
 0x26b   : > { %9837 = vst [vmem:[#allocation66_spill] sm:$0xff] %v9065_v60  ;;  %v9069_v58 = vpop.f32.mrf.mxu2  ;;  %v2960_v8 = vsel %vm8076_vm11, %v2958_v54, %v2959_v41  ;;  %v6530_v39 = vrot.slane %v3671_v63, 9  ;;  %v3789_v31 = vrot.slane %v3672_v44, 5  ;;  %v3673_v63 = vld [vmem:[#allocation2 + $0x5c] sm:$0x1]  ;;  %v1862_v60 = vshll.u32 %v1529_v26, 16 }
 0x26c   : > { %9839 = vst [vmem:[#allocation68_spill] sm:$0xff] %v9069_v58 }
 0x26d   : > { %6070 = vmatmul.bf16.gmra.mxu1 %v6824_v5  ;;  %v5426_v5 = vadd.f32 %v8990_v56, %v8457_v21  ;;  %3074 = vst [vmem:[#allocation3 + $0x1a0] sm:$0xf] %v2960_v8  ;;  %v9091_v21 = vpop.f32.mrf.mxu1  ;;  %v7099_v8 = vld [vmem:[#allocation3 + $0x448] sm:$0xf] }
 0x26e   : > { %9842 = vst [vmem:[#allocation71_spill] sm:$0xff] %v9091_v21  ;;  %v9097_v54 = vpop.f32.mrf.mxu0  ;;  %v6977_v21 = vld [vmem:[#allocation3 + $0x384] sm:$0xf0] }
 0x26f   : > { %9844 = vst [vmem:[#allocation73_spill] sm:$0xff] %v9097_v54  ;;  %v3188_v54 = vld [vmem:[#allocation2 + $0x88] sm:$0xf] }
 0x270   : > { %5981 = vmatmul.bf16.gmra.mxu0 %v6820_v51  ;;  %v3786_v51 = vsel %vm8076_vm11, %v3784_v7, %v3785_v33  ;;  %v5514_v59 = vpop.f32.mrf.mxu3  ;;  %v3187_v33 = vld [vmem:[#allocation2 + $0x84] sm:$0xf]  ;;  %v2841_v7 = vld [vmem:[#allocation2 + $0x54] sm:$0xe] }
 0x271   : > { %3905 = vst [vmem:[#allocation3 + $0x164] sm:$0xf] %v3786_v51  ;;  %5838 = vmatmul.bf16.gmra.mxu2 %v7064_v61  ;;  %v9089_v47 = vadd.f32 %v5514_v59, %v5426_v5  ;;  %v6855_v61 = vld [vmem:[#allocation3 + $0x258] sm:$0xf]  ;;  %v7508_v51 = vld [vmem:[#allocation3 + $0x25c] sm:$0xf] }
 0x272   : > { %v6856_v59 = vor.u32 %v7512_v12, %v6855_v61  ;;  %v6860_v34 = vor.u32 %v7508_v51, %v6857_v27  ;;  %v6515_v22 = vrot.slane %v2841_v7, 9  ;;  %v5431_v12 = vadd.f32 %v8990_v56, %v8499_v6  ;;  %v7541_v27 = vld [vmem:[#allocation3 + $0x364] sm:$0xf]  ;;  %v3189_v61 = vld [vmem:[#allocation2 + $0x8c] sm:$0x1] }
 0x273   : > { %9841 = vst [vmem:[#allocation70_spill] sm:$0xff] %v9089_v47  ;;  %v9093_v46 = vpop.f32.mrf.mxu2  ;;  %v3425_v51 = vshrl.u32 %v3187_v33, 16  ;;  %v3428_v4 = vshll.u32 %v3187_v33, 16  ;;  %v3790_v7 = vsel %vm8076_vm11, %v6530_v39, %v3789_v31  ;;  %v7100_v6 = vor.u32 %v7574_v17, %v7099_v8 }
 0x274   : > { %9843 = vst [vmem:[#allocation72_spill] sm:$0xff] %v9093_v46  ;;  %v6980_v33 = vor.u32 %v7541_v27, %v6977_v21  ;;  %v1866_v8 = vshrl.u32 %v1529_v26, 16  ;;  %v3791_v17 = vrot.slane %v3789_v31, 4 }
 0x275   : > { %v9110_v44 = vpop.f32.mrf.mxu1  ;;  %v3430_v25 = vrot.slane %v3428_v4, 5  ;;  %3906 = vst [vmem:[#allocation3 + $0x188] sm:$0xf] %v3790_v7  ;;  %v3792_v4 = vrot.slane %v3673_v63, 5 }
 0x276   : > { %5556 = vmatmul.bf16.gmra.mxu3 %v6944_v14  ;;  %v9101_v14 = vld [vmem:[#allocation2 + $0x58] sm:$0xf]  ;;  %9847 = vst [vmem:[#allocation76_spill] sm:$0xff] %v9110_v44  ;;  %v1856_v44 = vshll.u32 %v1528_v29, 16 }
 0x277   : > { %v2963_v46 = vrot.slane %v9101_v14, 5  ;;  %v3438_v14 = vshrl.u32 %v3188_v54, 16 }
 0x278   : > { %v5517_v41 = vpop.f32.mrf.mxu3  ;;  %v1858_v27 = vrot.slane %v1856_v44, 5  ;;  %v5434_v44 = vadd.f32 %v8990_v56, %v8521_v55 }
 0x279   : > { %v9099_v5 = vadd.f32 %v5517_v41, %v5429_v1  ;;  %v3114_v1 = vld [vmem:[#allocation2 + $0x84] sm:$0xf]  ;;  %v3115_v41 = vld [vmem:[#allocation2 + $0x88] sm:$0xf]  ;;  %v2964_v52 = vsel %vm8076_vm11, %v6515_v22, %v2963_v46  ;;  %v2965_v31 = vrot.slane %v2963_v46, 4 }
 0x27a   : > { %3146 = vst [vmem:[#allocation3 + $0x2a0] sm:$0xf] %v3114_v1  ;;  %v3444_v1 = vshll.u32 %v3189_v61, 16  ;;  %v9116_v61 = vpop.f32.mrf.mxu0 }
 0x27b   : > { %9845 = vst [vmem:[#allocation74_spill] sm:$0xff] %v9099_v5  ;;  %v9104_v58 = vpop.f32.mrf.mxu2  ;;  %v3440_v5 = vrot.slane %v3438_v14, 4 }
 0x27c   : > { %9846 = vst [vmem:[#allocation75_spill] sm:$0xff] %v9104_v58  ;;  %v1853_v58 = vshrl.u32 %v1528_v29, 16  ;;  %v3446_v21 = vrot.slane %v3444_v1, 5  ;;  %v3793_v29 = vsel %vm8076_vm11, %v3791_v17, %v3792_v4  ;;  %v9138_v17 = vld [vmem:[#allocation2 + $0x64] sm:$0xf] }
 0x27d   : > { %6075 = vmatmul.bf16.gmra.mxu1 %v6860_v34  ;;  %3147 = vst [vmem:[#allocation3 + $0x2c4] sm:$0xf] %v3115_v41  ;;  %v3434_v34 = vshll.u32 %v3188_v54, 16  ;;  %v1530_v54 = vld [vmem:[#allocation2 + $0xa4] sm:$0x1] }
 0x27e   : > { %v1855_v47 = vrot.slane %v1853_v58, 4  ;;  %3075 = vst [vmem:[#allocation3 + $0x1c4] sm:$0xf] %v2964_v52  ;;  %v2843_v58 = vld [vmem:[#allocation2 + $0x5c] sm:$0x1] }
 0x27f   : > { %v3436_v16 = vrot.slane %v3434_v34, 5  ;;  %9848 = vst [vmem:[#allocation77_spill] sm:$0xff] %v9116_v61  ;;  %v1864_v34 = vrot.slane %v1862_v60, 5  ;;  %v2966_v63 = vrot.slane %v2843_v58, 5  ;;  %v1531_v4 = vld [vmem:[#allocation2 + $0xa8] sm:$0xf] }
 0x280   : > { %5986 = vmatmul.bf16.gmra.mxu0 %v6856_v59  ;;  %v3427_v59 = vrot.slane %v3425_v51, 4  ;;  %v5519_v2 = vpop.f32.mrf.mxu3  ;;  %v1859_v52 = vor.u32 %v1858_v27, %v1855_v47  ;;  %3907 = vst [vmem:[#allocation3 + $0x1ac] sm:$0xf] %v3793_v29  ;;  %v3674_v47 = vld [vmem:[#allocation2 + $0x60] sm:$0xe] }
 0x281   : > { %5843 = vmatmul.bf16.gmra.mxu2 %v7100_v6  ;;  %v9114_v39 = vadd.f32 %v5519_v2, %v5431_v12  ;;  %v3441_v22 = vor.u32 %v3440_v5, %v3436_v16  ;;  %v1868_v12 = vrot.slane %v1866_v8, 4  ;;  %v9128_v6 = vpop.f32.mrf.mxu1  ;;  %v2967_v46 = vsel %vm8076_vm11, %v2965_v31, %v2966_v63  ;;  %v6891_v55 = vld [vmem:[#allocation3 + $0x2a0] sm:$0xf]  ;;  %v3191_v29 = vld [vmem:[#allocation2 + $0x94] sm:$0xf] }
 0x282   : > { %v3431_v41 = vor.u32 %v3430_v25, %v3427_v59  ;;  %v1872_v25 = vshll.u32 %v1530_v54, 16  ;;  %v1860_v14 = vrot.slane %v1859_v52, 4  ;;  %9850 = vst [vmem:[#allocation79_spill] sm:$0xff] %v9128_v6  ;;  %v6531_v58 = vrot.slane %v3674_v47, 9  ;;  %v9145_v52 = vpop.f32.mrf.mxu0 }
 0x283   : > { %v9118_v7 = vpop.f32.mrf.mxu2  ;;  %v3442_v2 = vrot.slane %v3441_v22, 4  ;;  %v1869_v60 = vor.u32 %v1868_v12, %v1864_v34  ;;  %3076 = vst [vmem:[#allocation3 + $0x1e8] sm:$0xf] %v2967_v46  ;;  %v1532_v46 = vld [vmem:[#allocation2 + $0xac] sm:$0xf]  ;;  %v9926_v40 = vld [vmem:[#allocation75_spill] sm:$0xff] }
 0x284   : > { %v3432_v51 = vrot.slane %v3431_v41, 4  ;;  %9849 = vst [vmem:[#allocation78_spill] sm:$0xff] %v9118_v7  ;;  %v7521_v1 = vld [vmem:[#allocation3 + $0x2c0] sm:$0xf0]  ;;  %v3190_v41 = vld [vmem:[#allocation2 + $0x90] sm:$0xf]  ;;  %v1865_v22 = vsel %vm8157_vm14, %v1860_v14, %v1864_v34 }
 0x285   : > { %v3447_v5 = vsel %vm8157_vm14, %v3442_v2, %v3446_v21  ;;  %1982 = vst [vmem:[#allocation3 + $0x3ac] sm:$0xf] %v1865_v22  ;;  %v7441_v21 = vld [vmem:[#allocation3 + $0x40] sm:$0xf0]  ;;  %v6892_v27 = vor.u32 %v7521_v1, %v6891_v55  ;;  %v3796_v2 = vrot.slane %v9138_v17, 5  ;;  %v3452_v14 = vshll.u32 %v3190_v41, 16 }
 0x286   : > { %5561 = vmatmul.bf16.gmra.mxu3 %v6980_v33  ;;  %v3437_v26 = vsel %vm8157_vm14, %v3432_v51, %v3436_v16  ;;  %3643 = vst [vmem:[#allocation3 + $0x2c8] sm:$0xf] %v3447_v5  ;;  %v1870_v33 = vrot.slane %v1869_v60, 4  ;;  %v1874_v16 = vrot.slane %v1872_v25, 5  ;;  %v6575_v51 = vld [vmem:[#allocation3 + $0x20] sm:$0xf] }
 0x287   : > { %3642 = vst [vmem:[#allocation3 + $0x2a4] sm:$0xf] %v3437_v26  ;;  %v3116_v25 = vld [vmem:[#allocation2 + $0x90] sm:$0xf]  ;;  %v3117_v34 = vld [vmem:[#allocation2 + $0x94] sm:$0xf]  ;;  %v5436_v26 = vadd.f32 %v8990_v56, %v8538_v48  ;;  %v6576_v60 = vor.u32 %v7441_v21, %v6575_v51 }
 0x288   : > { %v5522_v59 = vpop.f32.mrf.mxu3  ;;  %v1875_v8 = vsel %vm8157_vm14, %v1870_v33, %v1874_v16  ;;  %9852 = vst [vmem:[#allocation81_spill] sm:$0xff] %v9145_v52  ;;  %v3192_v5 = vld [vmem:[#allocation2 + $0x98] sm:$0x1]  ;;  %v3458_v33 = vshll.u32 %v3191_v29, 16  ;;  %v3462_v16 = vshrl.u32 %v3191_v29, 16  ;;  %v7617_v48 = vld [vmem:[%s9755_s5 + $0x140] sm:$0xff] }
 0x289   : > { %v9132_v54 = vadd.f32 %v5522_v59, %v5434_v44  ;;  %1983 = vst [vmem:[#allocation3 + $0x3d0] sm:$0xf] %v1875_v8  ;;  %v3449_v44 = vshrl.u32 %v3190_v41, 16  ;;  %v3797_v59 = vsel %vm8076_vm11, %v6531_v58, %v3796_v2  ;;  %v3468_v47 = vshll.u32 %v3192_v5, 16  ;;  %v3676_v21 = vld [vmem:[#allocation2 + $0x68] sm:$0x1]  ;;  %v9154_v29 = vpop.f32.mrf.mxu1  ;;  %5856 = vmatpush.bf16.msra.mxu3 %v7617_v48 }
 0x28a   : > { %3148 = vst [vmem:[#allocation3 + $0x2e8] sm:$0xf] %v3116_v25  ;;  %v3454_v8 = vrot.slane %v3452_v14, 5  ;;  %v1877_v17 = vshrl.u32 %v1531_v4, 16  ;;  %v1880_v51 = vshll.u32 %v1531_v4, 16  ;;  %v3460_v58 = vrot.slane %v3458_v33, 5 }
 0x28b   : > { %v9141_v12 = vpop.f32.mrf.mxu2  ;;  %3149 = vst [vmem:[#allocation3 + $0x30c] sm:$0xf] %v3117_v34  ;;  %v3451_v55 = vrot.slane %v3449_v44, 4  ;;  %v3464_v25 = vrot.slane %v3462_v16, 4  ;;  %v1533_v34 = vld [vmem:[#allocation2 + $0xb0] sm:$0x1]  ;;  %v5439_v48 = vadd.f32 %v8990_v56, %v8555_v50 }
 0x28c   : > { %9851 = vst [vmem:[#allocation80_spill] sm:$0xff] %v9141_v12  ;;  %v1882_v52 = vrot.slane %v1880_v51, 5  ;;  %v1886_v6 = vshll.u32 %v1532_v46, 16  ;;  %v1890_v4 = vshrl.u32 %v1532_v46, 16  ;;  %v3799_v61 = vrot.slane %v3676_v21, 5  ;;  %v9162_v21 = vpop.f32.mrf.mxu0 }
 0x28d   : > { %v6893_v63 = vld [vmem:[#allocation3 + $0x2c4] sm:$0xf0]  ;;  %9853 = vst [vmem:[#allocation82_spill] sm:$0xff] %v9154_v29  ;;  %v3455_v5 = vor.u32 %v3454_v8, %v3451_v55  ;;  %v3465_v14 = vor.u32 %v3464_v25, %v3460_v58  ;;  %v1896_v16 = vshll.u32 %v1533_v34, 16  ;;  %v3470_v12 = vrot.slane %v3468_v47, 5 }
 0x28e   : > { %v7517_v31 = vld [vmem:[#allocation3 + $0x2a4] sm:$0xf]  ;;  %3908 = vst [vmem:[#allocation3 + $0x1d0] sm:$0xf] %v3797_v59  ;;  %v1888_v33 = vrot.slane %v1886_v6, 5  ;;  %v1892_v55 = vrot.slane %v1890_v4, 4 }
 0x28f   : > { %v6896_v1 = vor.u32 %v7517_v31, %v6893_v63  ;;  %v1879_v63 = vrot.slane %v1877_v17, 4  ;;  %v3466_v29 = vrot.slane %v3465_v14, 4  ;;  %v3798_v8 = vrot.slane %v3796_v2, 4  ;;  %v2845_v17 = vld [vmem:[#allocation2 + $0x64] sm:$0xf]  ;;  %9855 = vst [vmem:[#allocation84_spill] sm:$0xff] %v9162_v21 }
 0x290   : > { %5991 = vmatmul.bf16.gmra.mxu0 %v6892_v27  ;;  %v5524_v22 = vpop.f32.mrf.mxu3  ;;  %v7550_v27 = vld [vmem:[#allocation3 + $0x3ac] sm:$0xf]  ;;  %v7013_v31 = vld [vmem:[#allocation3 + $0x3cc] sm:$0xf0]  ;;  %v3677_v47 = vld [vmem:[#allocation2 + $0x6c] sm:$0xe] }
 0x291   : > { %6124 = vmatmul.bf16.vlgmr.msra.gmra.mxu2 %v6576_v60  ;;  %v9152_v41 = vadd.f32 %v5524_v22, %v5436_v26  ;;  %6080 = vmatmul.bf16.gmra.mxu1 %v6896_v1  ;;  %v7016_v44 = vor.u32 %v7550_v27, %v7013_v31  ;;  %v3456_v60 = vrot.slane %v3455_v5, 4  ;;  %v1883_v1 = vor.u32 %v1882_v52, %v1879_v63  ;;  %v2844_v22 = vld [vmem:[#allocation2 + $0x60] sm:$0xe]  ;;  %v9170_v34 = vld [vmem:[#allocation2 + $0x68] sm:$0x1] }
 0x292   : > { %v7530_v51 = vld [vmem:[#allocation3 + $0x308] sm:$0xf0]  ;;  %v3471_v6 = vsel %vm8157_vm14, %v3466_v29, %v3470_v12  ;;  %v1893_v52 = vor.u32 %v1892_v55, %v1888_v33  ;;  %v1898_v27 = vrot.slane %v1896_v16, 5  ;;  %v3800_v2 = vsel %vm8076_vm11, %v3798_v8, %v3799_v61  ;;  %v3193_v5 = vld [vmem:[#allocation2 + $0x9c] sm:$0xf] }
 0x293   : > { %v9156_v26 = vpop.f32.mrf.mxu2  ;;  %v3461_v59 = vsel %vm8157_vm14, %v3456_v60, %v3460_v58  ;;  %v1884_v46 = vrot.slane %v1883_v1, 4  ;;  %3645 = vst [vmem:[#allocation3 + $0x310] sm:$0xf] %v3471_v6  ;;  %v6516_v58 = vrot.slane %v2844_v22, 9  ;;  %v2970_v31 = vrot.slane %v2845_v17, 5  ;;  %v9182_v17 = vpop.f32.mrf.mxu1 }
 0x294   : > { %9854 = vst [vmem:[#allocation83_spill] sm:$0xff] %v9156_v26  ;;  %v7450_v63 = vld [vmem:[#allocation3 + $0x88] sm:$0xf0]  ;;  %v6927_v12 = vld [vmem:[#allocation3 + $0x2e8] sm:$0xf]  ;;  %v1894_v29 = vrot.slane %v1893_v52, 4  ;;  %v5441_v52 = vadd.f32 %v8990_v56, %v8572_v11 }
 0x295   : > { %3644 = vst [vmem:[#allocation3 + $0x2ec] sm:$0xf] %v3461_v59  ;;  %v1889_v50 = vsel %vm8157_vm14, %v1884_v46, %v1888_v33  ;;  %v1534_v14 = vld [vmem:[#allocation2 + $0xb4] sm:$0xf]  ;;  %v6928_v4 = vor.u32 %v7530_v51, %v6927_v12  ;;  %v9174_v61 = vld [vmem:[#allocation2 + $0x70] sm:$0xf]  ;;  %v2971_v1 = vsel %vm8076_vm11, %v6516_v58, %v2970_v31 }
 0x296   : > { %5566 = vmatmul.bf16.gmra.mxu3 %v7016_v44  ;;  %1984 = vst [vmem:[#allocation3 + $0x3f4] sm:$0xf] %v1889_v50  ;;  %v6532_v60 = vrot.slane %v3677_v47, 9  ;;  %v6611_v33 = vld [vmem:[#allocation3 + $0x68] sm:$0xf]  ;;  %v1899_v16 = vsel %vm8157_vm14, %v1894_v29, %v1898_v27  ;;  %v9759_v22 = vrot.slane %v9174_v61, 5 }
 0x297   : > { %3909 = vst [vmem:[#allocation3 + $0x1f4] sm:$0xf] %v3800_v2  ;;  %v2972_v55 = vrot.slane %v2970_v31, 4  ;;  %v2973_v8 = vrot.slane %v9170_v34, 5  ;;  %v3118_v51 = vld [vmem:[#allocation2 + $0x9c] sm:$0xf]  ;;  %v6612_v27 = vor.u32 %v7450_v63, %v6611_v33  ;;  %v9192_v63 = vpop.f32.mrf.mxu0 }
 0x298   : > { %v5527_v25 = vpop.f32.mrf.mxu3  ;;  %3077 = vst [vmem:[#allocation3 + $0x20c] sm:$0xf] %v2971_v1  ;;  %v3119_v59 = vld [vmem:[#allocation2 + $0xa0] sm:$0xf]  ;;  %v3195_v6 = vld [vmem:[#allocation2 + $0xa4] sm:$0x1]  ;;  %v3804_v12 = vsel %vm8076_vm11, %v6532_v60, %v9759_v22 }
 0x299   : > { %v9172_v44 = vadd.f32 %v5527_v25, %v5439_v48  ;;  %9856 = vst [vmem:[#allocation85_spill] sm:$0xff] %v9182_v17  ;;  %v3194_v46 = vld [vmem:[#allocation2 + $0xa0] sm:$0xf]  ;;  %v3473_v47 = vshrl.u32 %v3193_v5, 16  ;;  %v3476_v25 = vshll.u32 %v3193_v5, 16  ;;  %v1901_v31 = vshrl.u32 %v1534_v14, 16 }
 0x29a   : > { %1985 = vst [vmem:[#allocation3 + $0x418] sm:$0xf] %v1899_v16  ;;  %v6929_v50 = vld [vmem:[#allocation3 + $0x30c] sm:$0xf0]  ;;  %v3482_v34 = vshll.u32 %v3194_v46, 16  ;;  %v3486_v58 = vshrl.u32 %v3194_v46, 16 }
 0x29b   : > { %v9184_v48 = vpop.f32.mrf.mxu2  ;;  %3150 = vst [vmem:[#allocation3 + $0x330] sm:$0xf] %v3118_v51  ;;  %v3475_v1 = vrot.slane %v3473_v47, 4  ;;  %v3478_v16 = vrot.slane %v3476_v25, 5  ;;  %v3492_v51 = vshll.u32 %v3195_v6, 16  ;;  %v1904_v26 = vshll.u32 %v1534_v14, 16 }
 0x29c   : > { %9857 = vst [vmem:[#allocation86_spill] sm:$0xff] %v9184_v48  ;;  %v7526_v2 = vld [vmem:[#allocation3 + $0x2ec] sm:$0xf]  ;;  %v1535_v11 = vld [vmem:[#allocation2 + $0xb8] sm:$0xf]  ;;  %v3488_v46 = vrot.slane %v3486_v58, 4  ;;  %v2974_v6 = vsel %vm8076_vm11, %v2972_v55, %v2973_v8 }
 0x29d   : > { %3151 = vst [vmem:[#allocation3 + $0x354] sm:$0xf] %v3119_v59  ;;  %v7559_v5 = vld [vmem:[#allocation3 + $0x3f4] sm:$0xf]  ;;  %v3484_v59 = vrot.slane %v3482_v34, 5  ;;  %v3479_v21 = vor.u32 %v3478_v16, %v3475_v1  ;;  %v1903_v48 = vrot.slane %v1901_v31, 4  ;;  %v5444_v16 = vadd.f32 %v8990_v56, %v8596_v30 }
 0x29e   : > { %9858 = vst [vmem:[#allocation87_spill] sm:$0xff] %v9192_v63  ;;  %v1536_v17 = vld [vmem:[#allocation2 + $0xbc] sm:$0x1]  ;;  %v1910_v60 = vshll.u32 %v1535_v11, 16  ;;  %v1914_v47 = vshrl.u32 %v1535_v11, 16  ;;  %v1906_v34 = vrot.slane %v1904_v26, 5 }
 0x29f   : > { %v1920_v25 = vshll.u32 %v1536_v17, 16  ;;  %3910 = vst [vmem:[#allocation3 + $0x218] sm:$0xf] %v3804_v12  ;;  %v3494_v1 = vrot.slane %v3492_v51, 5  ;;  %v9200_v14 = vld [vmem:[#allocation2 + $0x6c] sm:$0xe]  ;;  %v9204_v17 = vpop.f32.mrf.mxu1 }
 0x2a0   : > { %5996 = vmatmul.bf16.gmra.mxu0 %v6928_v4  ;;  %v5529_v29 = vpop.f32.mrf.mxu3  ;;  %v6932_v4 = vor.u32 %v7526_v2, %v6929_v50  ;;  %v3489_v2 = vor.u32 %v3488_v46, %v3484_v59  ;;  %v3480_v50 = vrot.slane %v3479_v21, 4  ;;  %v1912_v58 = vrot.slane %v1910_v60, 5  ;;  %9860 = vst [vmem:[#allocation89_spill] sm:$0xff] %v9204_v17  ;;  %v3680_v30 = vld [vmem:[#allocation2 + $0x78] sm:$0xe] }
 0x2a1   : > { %6129 = vmatmul.bf16.gmra.mxu2 %v6612_v27  ;;  %v9194_v33 = vadd.f32 %v5529_v29, %v5441_v52  ;;  %v7049_v22 = vld [vmem:[#allocation3 + $0x414] sm:$0xf0]  ;;  %v3679_v29 = vld [vmem:[#allocation2 + $0x74] sm:$0x1]  ;;  %v1916_v31 = vrot.slane %v1914_v47, 4  ;;  %v9861_v26 = vrot.slane %v9174_v61, 5 }
 0x2a2   : > { %6085 = vmatmul.bf16.gmra.mxu1 %v6932_v4  ;;  %v7052_v52 = vor.u32 %v7559_v5, %v7049_v22  ;;  %v3490_v4 = vrot.slane %v3489_v2, 4  ;;  %v3485_v55 = vsel %vm8157_vm14, %v3480_v50, %v3484_v59  ;;  %v1907_v22 = vor.u32 %v1906_v34, %v1903_v48  ;;  %3078 = vst [vmem:[#allocation3 + $0x230] sm:$0xf] %v2974_v6  ;;  %v9212_v2 = vld [vmem:[#allocation2 + $0x70] sm:$0xf] }
 0x2a3   : > { %v9198_v27 = vpop.f32.mrf.mxu2  ;;  %v3805_v21 = vrot.slane %v9861_v26, 4  ;;  %3646 = vst [vmem:[#allocation3 + $0x334] sm:$0xf] %v3485_v55  ;;  %v1917_v51 = vor.u32 %v1916_v31, %v1912_v58  ;;  %v1922_v11 = vrot.slane %v1920_v25, 5  ;;  %v3806_v5 = vrot.slane %v3679_v29, 5 }
 0x2a4   : > { %9859 = vst [vmem:[#allocation88_spill] sm:$0xff] %v9198_v27  ;;  %v7539_v12 = vld [vmem:[#allocation3 + $0x350] sm:$0xf0]  ;;  %v3495_v8 = vsel %vm8157_vm14, %v3490_v4, %v3494_v1  ;;  %v1908_v60 = vrot.slane %v1907_v22, 4  ;;  %v3196_v47 = vld [vmem:[#allocation2 + $0xa8] sm:$0xf]  ;;  %v9221_v4 = vpop.f32.mrf.mxu0 }
 0x2a5   : > { %3647 = vst [vmem:[#allocation3 + $0x358] sm:$0xf] %v3495_v8  ;;  %v7459_v59 = vld [vmem:[#allocation3 + $0xd0] sm:$0xf0]  ;;  %v6963_v61 = vld [vmem:[#allocation3 + $0x330] sm:$0xf]  ;;  %v3807_v6 = vsel %vm8076_vm11, %v3805_v21, %v3806_v5 }
 0x2a6   : > { %5571 = vmatmul.bf16.gmra.mxu3 %v7052_v52  ;;  %v1918_v52 = vrot.slane %v1917_v51, 4  ;;  %v1913_v50 = vsel %vm8157_vm14, %v1908_v60, %v1912_v58  ;;  %3911 = vst [vmem:[#allocation3 + $0x23c] sm:$0xf] %v3807_v6  ;;  %v3681_v25 = vld [vmem:[#allocation2 + $0x7c] sm:$0xf]  ;;  %v6533_v34 = vrot.slane %v3680_v30, 9  ;;  %v6964_v31 = vor.u32 %v7539_v12, %v6963_v61 }
 0x2a7   : > { %v6517_v29 = vrot.slane %v9200_v14, 9  ;;  %v6647_v1 = vld [vmem:[#allocation3 + $0xb0] sm:$0xf]  ;;  %1986 = vst [vmem:[#allocation3 + $0x43c] sm:$0xf] %v1913_v50  ;;  %v3810_v22 = vrot.slane %v3681_v25, 5  ;;  %v9232_v25 = vpop.f32.mrf.mxu1 }
 0x2a8   : > { %v5532_v46 = vpop.f32.mrf.mxu3  ;;  %v3682_v55 = vld [vmem:[#allocation2 + $0x80] sm:$0x1]  ;;  %v2977_v26 = vrot.slane %v9212_v2, 5  ;;  %v3120_v58 = vld [vmem:[#allocation2 + $0xa8] sm:$0xf]  ;;  %v6648_v5 = vor.u32 %v7459_v59, %v6647_v1  ;;  %v3500_v60 = vshll.u32 %v3196_v47, 16 }
 0x2a9   : > { %v9214_v48 = vadd.f32 %v5532_v46, %v5444_v16  ;;  %v1923_v16 = vsel %vm8157_vm14, %v1918_v52, %v1922_v11  ;;  %v3121_v8 = vld [vmem:[#allocation2 + $0xac] sm:$0xf]  ;;  %3152 = vst [vmem:[#allocation3 + $0x378] sm:$0xf] %v3120_v58  ;;  %v3198_v51 = vld [vmem:[#allocation2 + $0xb0] sm:$0x1]  ;;  %v3811_v12 = vsel %vm8076_vm11, %v6533_v34, %v3810_v22  ;;  %v5446_v11 = vadd.f32 %v8990_v56, %v8628_v15 }
 0x2aa   : > { %1987 = vst [vmem:[#allocation3 + $0x460] sm:$0xf] %v1923_v16  ;;  %v3197_v14 = vld [vmem:[#allocation2 + $0xac] sm:$0xf]  ;;  %v3497_v46 = vshrl.u32 %v3196_v47, 16  ;;  %v3516_v6 = vshll.u32 %v3198_v51, 16 }
 0x2ab   : > { %v9226_v21 = vpop.f32.mrf.mxu2  ;;  %v7535_v30 = vld [vmem:[#allocation3 + $0x334] sm:$0xf]  ;;  %3153 = vst [vmem:[#allocation3 + $0x39c] sm:$0xf] %v3121_v8  ;;  %v3506_v61 = vshll.u32 %v3197_v14, 16  ;;  %v3510_v52 = vshrl.u32 %v3197_v14, 16  ;;  %v2978_v14 = vsel %vm8076_vm11, %v6517_v29, %v2977_v26 }
 0x2ac   : > { %9862 = vst [vmem:[#allocation90_spill] sm:$0xff] %v9226_v21  ;;  %v6965_v2 = vld [vmem:[#allocation3 + $0x354] sm:$0xf0]  ;;  %v3812_v50 = vrot.slane %v3810_v22, 4  ;;  %v3499_v58 = vrot.slane %v3497_v46, 4  ;;  %v3502_v17 = vrot.slane %v3500_v60, 5 }
 0x2ad   : > { %v6968_v16 = vor.u32 %v7535_v30, %v6965_v2  ;;  %v3813_v34 = vrot.slane %v3682_v55, 5  ;;  %3912 = vst [vmem:[#allocation3 + $0x260] sm:$0xf] %v3811_v12  ;;  %v3508_v56 = vrot.slane %v3506_v61, 5  ;;  %v3512_v59 = vrot.slane %v3510_v52, 4  ;;  %v9242_v61 = vpop.f32.mrf.mxu0 }
 0x2ae   : > { %v2849_v1 = vld [vmem:[#allocation2 + $0x74] sm:$0x1]  ;;  %v3503_v8 = vor.u32 %v3502_v17, %v3499_v58  ;;  %v3518_v46 = vrot.slane %v3516_v6, 5  ;;  %v2850_v2 = vld [vmem:[#allocation2 + $0x78] sm:$0xe] }
 0x2af   : > { %v7568_v47 = vld [vmem:[#allocation3 + $0x43c] sm:$0xf]  ;;  %v3814_v22 = vsel %vm8076_vm11, %v3812_v50, %v3813_v34  ;;  %v3513_v30 = vor.u32 %v3512_v59, %v3508_v56  ;;  %v2980_v60 = vrot.slane %v2849_v1, 5  ;;  %3079 = vst [vmem:[#allocation3 + $0x254] sm:$0xf] %v2978_v14  ;;  %v6518_v34 = vrot.slane %v2850_v2, 9 }
 0x2b0   : > { %6001 = vmatmul.bf16.gmra.mxu0 %v6964_v31  ;;  %v5534_v31 = vpop.f32.mrf.mxu3  ;;  %3913 = vst [vmem:[#allocation3 + $0x284] sm:$0xf] %v3814_v22  ;;  %v3683_v29 = vld [vmem:[#allocation2 + $0x84] sm:$0xe]  ;;  %v2851_v50 = vld [vmem:[#allocation2 + $0x7c] sm:$0xf] }
 0x2b1   : > { %6134 = vmatmul.bf16.gmra.mxu2 %v6648_v5  ;;  %v9234_v15 = vadd.f32 %v5534_v31, %v5446_v11  ;;  %v7085_v51 = vld [vmem:[#allocation3 + $0x45c] sm:$0xf0]  ;;  %v3504_v11 = vrot.slane %v3503_v8, 4  ;;  %v2979_v5 = vrot.slane %v2977_v26, 4  ;;  %v3514_v17 = vrot.slane %v3513_v30, 4 }
 0x2b2   : > { %6090 = vmatmul.bf16.gmra.mxu1 %v6968_v16  ;;  %v7088_v12 = vor.u32 %v7568_v47, %v7085_v51  ;;  %v9251_v31 = vld [vmem:[%s9756_s6] ss:$0 sm:$0xff]  ;;  %v6999_v16 = vld [vmem:[#allocation3 + $0x378] sm:$0xf]  ;;  %v7548_v1 = vld [vmem:[#allocation3 + $0x398] sm:$0xf0] }
 0x2b3   : > { %9863 = vst [vmem:[#allocation91_spill] sm:$0xff] %v9234_v15  ;;  %v9240_v55 = vpop.f32.mrf.mxu2  ;;  %v3509_v52 = vsel %vm8157_vm14, %v3504_v11, %v3508_v56  ;;  %v2981_v6 = vsel %vm8076_vm11, %v2979_v5, %v2980_v60  ;;  %v5449_v26 = vadd.f32 %v9251_v31, %v8657_v10  ;;  %v3519_v58 = vsel %vm8157_vm14, %v3514_v17, %v3518_v46  ;;  %v2852_v47 = vld [vmem:[#allocation2 + $0x80] sm:$0x1]  ;;  %v3199_v8 = vld [vmem:[#allocation2 + $0xb4] sm:$0xf]  ;;  %v9261_v10 = vpop.f32.mrf.mxu1 }
 0x2b4   : > { %9864 = vst [vmem:[#allocation92_spill] sm:$0xff] %v9240_v55  ;;  %v2984_v56 = vrot.slane %v2851_v50, 5  ;;  %v7468_v22 = vld [vmem:[#allocation3 + $0x118] sm:$0xf0]  ;;  %v3684_v30 = vld [vmem:[#allocation2 + $0x88] sm:$0xf]  ;;  %v7000_v60 = vor.u32 %v7548_v1, %v6999_v16 }
 0x2b5   : > { %3648 = vst [vmem:[#allocation3 + $0x37c] sm:$0xf] %v3509_v52  ;;  %v6534_v46 = vrot.slane %v3683_v29, 9  ;;  %v6683_v5 = vld [vmem:[#allocation3 + $0xf8] sm:$0xf]  ;;  %v3817_v2 = vrot.slane %v3684_v30, 5 }
 0x2b6   : > { %5576 = vmatmul.bf16.gmra.mxu3 %v7088_v12  ;;  %3649 = vst [vmem:[#allocation3 + $0x3a0] sm:$0xf] %v3519_v58  ;;  %v2985_v51 = vsel %vm8076_vm11, %v6518_v34, %v2984_v56  ;;  %v3685_v12 = vld [vmem:[#allocation2 + $0x8c] sm:$0x1]  ;;  %v2986_v11 = vrot.slane %v2984_v56, 4  ;;  %v2987_v52 = vrot.slane %v2852_v47, 5  ;;  %v5451_v34 = vadd.f32 %v9251_v31, %v8676_v32 }
 0x2b7   : > { %3080 = vst [vmem:[#allocation3 + $0x278] sm:$0xf] %v2981_v6  ;;  %v3820_v17 = vrot.slane %v3685_v12, 5  ;;  %v3123_v58 = vld [vmem:[#allocation2 + $0xb8] sm:$0xf]  ;;  %v3521_v63 = vshrl.u32 %v3199_v8, 16  ;;  %v3818_v16 = vsel %vm8076_vm11, %v6534_v46, %v3817_v2  ;;  %v6684_v56 = vor.u32 %v7468_v22, %v6683_v5 }
 0x2b8   : > { %v5537_v59 = vpop.f32.mrf.mxu3  ;;  %3081 = vst [vmem:[#allocation3 + $0x29c] sm:$0xf] %v2985_v51  ;;  %v3200_v6 = vld [vmem:[#allocation2 + $0xb8] sm:$0xf]  ;;  %v3524_v29 = vshll.u32 %v3199_v8, 16  ;;  %v2988_v30 = vsel %vm8076_vm11, %v2986_v11, %v2987_v52  ;;  %v3819_v21 = vrot.slane %v3817_v2, 4 }
 0x2b9   : > { %v9257_v14 = vadd.f32 %v5537_v59, %v5449_v26  ;;  %v3122_v26 = vld [vmem:[#allocation2 + $0xb4] sm:$0xf]  ;;  %v3201_v59 = vld [vmem:[#allocation2 + $0xbc] sm:$0x1]  ;;  %3155 = vst [vmem:[#allocation3 + $0x3e4] sm:$0xf] %v3123_v58 }
 0x2ba   : > { %3154 = vst [vmem:[#allocation3 + $0x3c0] sm:$0xf] %v3122_v26  ;;  %v3530_v47 = vshll.u32 %v3200_v6, 16  ;;  %v3534_v51 = vshrl.u32 %v3200_v6, 16  ;;  %v2853_v12 = vld [vmem:[#allocation2 + $0x84] sm:$0xe]  ;;  %v3821_v11 = vsel %vm8076_vm11, %v3819_v21, %v3820_v17 }
 0x2bb   : > { %9865 = vst [vmem:[#allocation93_spill] sm:$0xff] %v9257_v14  ;;  %v9263_v50 = vpop.f32.mrf.mxu2  ;;  %v3526_v26 = vrot.slane %v3524_v29, 5  ;;  %v3540_v55 = vshll.u32 %v3201_v59, 16  ;;  %v2854_v22 = vld [vmem:[#allocation2 + $0x88] sm:$0xf] }
 0x2bc   : > { %9866 = vst [vmem:[#allocation94_spill] sm:$0xff] %v9263_v50  ;;  %v7544_v1 = vld [vmem:[#allocation3 + $0x37c] sm:$0xf]  ;;  %v9271_v50 = vpop.f32.mrf.mxu0  ;;  %v3532_v7 = vrot.slane %v3530_v47, 5  ;;  %v3536_v46 = vrot.slane %v3534_v51, 4  ;;  %v2991_v47 = vrot.slane %v2854_v22, 5 }
 0x2bd   : > { %v7001_v32 = vld [vmem:[#allocation3 + $0x39c] sm:$0xf0]  ;;  %3914 = vst [vmem:[#allocation3 + $0x2a8] sm:$0xf] %v3818_v16  ;;  %v6561_v58 = vld [vmem:[#allocation3 + $0x34] sm:$0xf0]  ;;  %v9277_v16 = vpop.f32.mrf.mxu1 }
 0x2be   : > { %v7004_v27 = vor.u32 %v7544_v1, %v7001_v32  ;;  %3082 = vst [vmem:[#allocation3 + $0x2c0] sm:$0xf] %v2988_v30  ;;  %v3537_v52 = vor.u32 %v3536_v46, %v3532_v7  ;;  %v3542_v59 = vrot.slane %v3540_v55, 5  ;;  %v2855_v29 = vld [vmem:[#allocation2 + $0x8c] sm:$0x1]  ;;  %v6519_v1 = vrot.slane %v2853_v12, 9 }
 0x2bf   : > { %3915 = vst [vmem:[#allocation3 + $0x2cc] sm:$0xf] %v3821_v11  ;;  %v2993_v21 = vrot.slane %v2991_v47, 4  ;;  %v2994_v17 = vrot.slane %v2855_v29, 5  ;;  %v3686_v30 = vld [vmem:[#allocation2 + $0x90] sm:$0xe] }
 0x2c0   : > { %6006 = vmatmul.bf16.gmra.mxu0 %v7000_v60  ;;  %v3523_v60 = vrot.slane %v3521_v63, 4  ;;  %v5539_v8 = vpop.f32.mrf.mxu3  ;;  %v7435_v63 = vld [vmem:[#allocation3 + $0x14] sm:$0xf]  ;;  %v3538_v51 = vrot.slane %v3537_v52, 4  ;;  %v2856_v12 = vld [vmem:[#allocation2 + $0x90] sm:$0xe] }
 0x2c1   : > { %6139 = vmatmul.bf16.gmra.mxu2 %v6684_v56  ;;  %v9273_v5 = vadd.f32 %v5539_v8, %v5451_v34  ;;  %v6564_v34 = vor.u32 %v7435_v63, %v6561_v58  ;;  %v7035_v8 = vld [vmem:[#allocation3 + $0x3c0] sm:$0xf]  ;;  %v7557_v46 = vld [vmem:[#allocation3 + $0x3e0] sm:$0xf0]  ;;  %v3202_v22 = vld [vmem:[#allocation2 + $0xc0] sm:$0xf] }
 0x2c2   : > { %v3527_v6 = vor.u32 %v3526_v26, %v3523_v60  ;;  %6095 = vmatmul.bf16.gmra.mxu1 %v7004_v27  ;;  %v2992_v27 = vsel %vm8076_vm11, %v6519_v1, %v2991_v47  ;;  %v3543_v55 = vsel %vm8157_vm14, %v3538_v51, %v3542_v59  ;;  %v5454_v60 = vadd.f32 %v9251_v31, %v8695_v57  ;;  %v3687_v52 = vld [vmem:[#allocation2 + $0x94] sm:$0xf]  ;;  %v3688_v59 = vld [vmem:[#allocation2 + $0x98] sm:$0x1]  ;;  %v7477_v29 = vld [vmem:[#allocation3 + $0x160] sm:$0xf0] }
 0x2c3   : > { %9867 = vst [vmem:[#allocation95_spill] sm:$0xff] %v9273_v5  ;;  %v2995_v26 = vsel %vm8076_vm11, %v2993_v21, %v2994_v17  ;;  %v6535_v11 = vrot.slane %v3686_v30, 9  ;;  %v6520_v63 = vrot.slane %v2856_v12, 9  ;;  %v6719_v57 = vld [vmem:[#allocation3 + $0x140] sm:$0xf]  ;;  %v7036_v1 = vor.u32 %v7557_v46, %v7035_v8 }
 0x2c4   : > { %v3528_v2 = vrot.slane %v3527_v6, 4  ;;  %v9279_v56 = vpop.f32.mrf.mxu2  ;;  %3651 = vst [vmem:[#allocation3 + $0x3e8] sm:$0xf] %v3543_v55  ;;  %v9291_v58 = vpop.f32.mrf.mxu0  ;;  %v3824_v47 = vrot.slane %v3687_v52, 5  ;;  %v3125_v21 = vld [vmem:[#allocation2 + $0xc4] sm:$0xf]  ;;  %v5456_v55 = vadd.f32 %v9251_v31, %v8718_v3  ;;  %v6720_v8 = vor.u32 %v7477_v29, %v6719_v57 }
 0x2c5   : > { %9868 = vst [vmem:[#allocation96_spill] sm:$0xff] %v9279_v56  ;;  %v3203_v17 = vld [vmem:[#allocation2 + $0xc4] sm:$0xf]  ;;  %v3204_v12 = vld [vmem:[#allocation2 + $0xc8] sm:$0x1]  ;;  %v3545_v52 = vshrl.u32 %v3202_v22, 16 }
 0x2c6   : > { %v3533_v32 = vsel %vm8157_vm14, %v3528_v2, %v3532_v7  ;;  %5857 = vmatmul.bf16.vlgmr.msra.gmra.mxu3 %v6564_v34  ;;  %3083 = vst [vmem:[#allocation3 + $0x2e4] sm:$0xf] %v2992_v27  ;;  %v2857_v2 = vld [vmem:[#allocation2 + $0x94] sm:$0xf]  ;;  %v3827_v34 = vrot.slane %v3688_v59, 5  ;;  %v3548_v59 = vshll.u32 %v3202_v22, 16 }
 0x2c7   : > { %3650 = vst [vmem:[#allocation3 + $0x3c4] sm:$0xf] %v3533_v32  ;;  %v2998_v51 = vrot.slane %v2857_v2, 5  ;;  %v3124_v27 = vld [vmem:[#allocation2 + $0xc0] sm:$0xf]  ;;  %v3554_v3 = vshll.u32 %v3203_v17, 16 }
 0x2c8   : > { %3084 = vst [vmem:[#allocation3 + $0x308] sm:$0xf] %v2995_v26  ;;  %v2858_v26 = vld [vmem:[#allocation2 + $0x98] sm:$0x1]  ;;  %v3564_v56 = vshll.u32 %v3204_v12, 16  ;;  %v3550_v5 = vrot.slane %v3548_v59, 5 }
 0x2c9   : > { %v5542_v7 = vpop.f32.mrf.mxu3  ;;  %3156 = vst [vmem:[#allocation3 + $0x408] sm:$0xf] %v3124_v27  ;;  %v2999_v2 = vsel %vm8076_vm11, %v6520_v63, %v2998_v51  ;;  %v3000_v14 = vrot.slane %v2998_v51, 4  ;;  %v6597_v57 = vld [vmem:[#allocation3 + $0x7c] sm:$0xf0]  ;;  %v3556_v29 = vrot.slane %v3554_v3, 5 }
 0x2ca   : > { %v9293_v6 = vadd.f32 %v5542_v7, %v5454_v60  ;;  %v3825_v60 = vsel %vm8076_vm11, %v6535_v11, %v3824_v47  ;;  %v9301_v7 = vpop.f32.mrf.mxu1  ;;  %3157 = vst [vmem:[#allocation3 + $0x42c] sm:$0xf] %v3125_v21  ;;  %v3826_v11 = vrot.slane %v3824_v47, 4  ;;  %v7444_v12 = vld [vmem:[#allocation3 + $0x5c] sm:$0xf] }
 0x2cb   : > { %v7037_v46 = vld [vmem:[#allocation3 + $0x3e4] sm:$0xf0]  ;;  %3916 = vst [vmem:[#allocation3 + $0x2f0] sm:$0xf] %v3825_v60  ;;  %v6600_v51 = vor.u32 %v7444_v12, %v6597_v57  ;;  %v2859_v3 = vld [vmem:[#allocation2 + $0x9c] sm:$0xe] }
 0x2cc   : > { %9869 = vst [vmem:[#allocation97_spill] sm:$0xff] %v9293_v6  ;;  %v9295_v32 = vpop.f32.mrf.mxu2  ;;  %v3547_v6 = vrot.slane %v3545_v52, 4  ;;  %v3828_v63 = vsel %vm8076_vm11, %v3826_v11, %v3827_v34  ;;  %v3689_v34 = vld [vmem:[#allocation2 + $0x9c] sm:$0xe] }
 0x2cd   : > { %9870 = vst [vmem:[#allocation98_spill] sm:$0xff] %v9295_v32  ;;  %v6536_v57 = vrot.slane %v3689_v34, 9 }
 0x2ce   : > { %v7553_v30 = vld [vmem:[#allocation3 + $0x3c4] sm:$0xf]  ;;  %v3551_v22 = vor.u32 %v3550_v5, %v3547_v6  ;;  %3085 = vst [vmem:[#allocation3 + $0x32c] sm:$0xf] %v2999_v2  ;;  %v5459_v6 = vadd.f32 %v9251_v31, %v8747_v18  ;;  %v2860_v18 = vld [vmem:[#allocation2 + $0xa0] sm:$0xf] }
 0x2cf   : > { %v7040_v32 = vor.u32 %v7553_v30, %v7037_v46  ;;  %v3001_v30 = vrot.slane %v2858_v26, 5  ;;  %v3566_v46 = vrot.slane %v3564_v56, 5  ;;  %3917 = vst [vmem:[#allocation3 + $0x314] sm:$0xf] %v3828_v63  ;;  %v7486_v63 = vld [vmem:[#allocation3 + $0x1a8] sm:$0xf0] }
 0x2d0   : > { %6011 = vmatmul.bf16.gmra.mxu0 %v7036_v1  ;;  %v3558_v1 = vshrl.u32 %v3203_v17, 16  ;;  %v9309_v17 = vpop.f32.mrf.mxu0  ;;  %v7071_v59 = vld [vmem:[#allocation3 + $0x408] sm:$0xf]  ;;  %v3005_v12 = vrot.slane %v2860_v18, 5 }
 0x2d1   : > { %v5544_v27 = vpop.f32.mrf.mxu3  ;;  %6144 = vmatmul.bf16.gmra.mxu2 %v6720_v8  ;;  %v3002_v8 = vsel %vm8076_vm11, %v3000_v14, %v3001_v30  ;;  %v7566_v2 = vld [vmem:[#allocation3 + $0x428] sm:$0xf0]  ;;  %v6521_v30 = vrot.slane %v2859_v3, 9 }
 0x2d2   : > { %v9305_v15 = vadd.f32 %v5544_v27, %v5456_v55  ;;  %v3560_v21 = vrot.slane %v3558_v1, 4  ;;  %6100 = vmatmul.bf16.gmra.mxu1 %v7040_v32  ;;  %v3552_v55 = vrot.slane %v3551_v22, 4  ;;  %3086 = vst [vmem:[#allocation3 + $0x350] sm:$0xf] %v3002_v8  ;;  %v9321_v26 = vpop.f32.mrf.mxu1  ;;  %v3690_v1 = vld [vmem:[#allocation2 + $0xa0] sm:$0xf]  ;;  %v7072_v11 = vor.u32 %v7566_v2, %v7071_v59 }
 0x2d3   : > { %v3691_v27 = vld [vmem:[#allocation2 + $0xa4] sm:$0x1]  ;;  %v3006_v34 = vsel %vm8076_vm11, %v6521_v30, %v3005_v12  ;;  %v6633_v2 = vld [vmem:[#allocation3 + $0xc4] sm:$0xf0] }
 0x2d4   : > { %v3561_v60 = vor.u32 %v3560_v21, %v3556_v29  ;;  %v9311_v47 = vpop.f32.mrf.mxu2  ;;  %v3557_v5 = vsel %vm8157_vm14, %v3552_v55, %v3556_v29  ;;  %v3831_v29 = vrot.slane %v3690_v1, 5  ;;  %v2861_v21 = vld [vmem:[#allocation2 + $0xa4] sm:$0x1]  ;;  %v3834_v8 = vrot.slane %v3691_v27, 5  ;;  %3087 = vst [vmem:[#allocation3 + $0x374] sm:$0xf] %v3006_v34 }
 0x2d5   : > { %3652 = vst [vmem:[#allocation3 + $0x40c] sm:$0xf] %v3557_v5  ;;  %v5461_v5 = vadd.f32 %v9251_v31, %v8774_v53  ;;  %v3694_v53 = vld [vmem:[#allocation2 + $0xb0] sm:$0x1] }
 0x2d6   : > { %v3562_v32 = vrot.slane %v3561_v60, 4  ;;  %5862 = vmatmul.bf16.gmra.mxu3 %v6600_v51  ;;  %v3832_v51 = vsel %vm8076_vm11, %v6536_v57, %v3831_v29  ;;  %v3833_v55 = vrot.slane %v3831_v29, 4  ;;  %v3692_v29 = vld [vmem:[#allocation2 + $0xa8] sm:$0xe]  ;;  %v3841_v30 = vrot.slane %v3694_v53, 5 }
 0x2d7   : > { %3918 = vst [vmem:[#allocation3 + $0x338] sm:$0xf] %v3832_v51 }
 0x2d8   : > { %v3567_v56 = vsel %vm8157_vm14, %v3562_v32, %v3566_v46  ;;  %v9327_v60 = vpop.f32.mrf.mxu0  ;;  %v6755_v46 = vld [vmem:[#allocation3 + $0x188] sm:$0xf]  ;;  %v3008_v32 = vrot.slane %v2861_v21, 5  ;;  %v3835_v3 = vsel %vm8076_vm11, %v3833_v55, %v3834_v8  ;;  %v6537_v21 = vrot.slane %v3692_v29, 9  ;;  %v2864_v8 = vld [vmem:[#allocation2 + $0xb0] sm:$0x1] }
 0x2d9   : > { %v5547_v52 = vpop.f32.mrf.mxu3  ;;  %3653 = vst [vmem:[#allocation3 + $0x430] sm:$0xf] %v3567_v56  ;;  %v3693_v56 = vld [vmem:[#allocation2 + $0xac] sm:$0xf] }
 0x2da   : > { %v9323_v14 = vadd.f32 %v5547_v52, %v5459_v6  ;;  %v6756_v52 = vor.u32 %v7486_v63, %v6755_v46  ;;  %v3838_v1 = vrot.slane %v3693_v56, 5  ;;  %3919 = vst [vmem:[#allocation3 + $0x35c] sm:$0xf] %v3835_v3  ;;  %v2862_v63 = vld [vmem:[#allocation2 + $0xa8] sm:$0xe]  ;;  %v9339_v46 = vpop.f32.mrf.mxu1 }
 0x2db   : > { %v6522_v56 = vrot.slane %v2862_v63, 9  ;;  %v2866_v63 = vld [vmem:[#allocation2 + $0xb8] sm:$0xf] }
 0x2dc   : > { %v9325_v22 = vpop.f32.mrf.mxu2  ;;  %v7562_v6 = vld [vmem:[#allocation3 + $0x40c] sm:$0xf]  ;;  %v3840_v51 = vrot.slane %v3838_v1, 4  ;;  %v3839_v34 = vsel %vm8076_vm11, %v6537_v21, %v3838_v1  ;;  %v5464_v1 = vadd.f32 %v9251_v31, %v8793_v45  ;;  %v7495_v21 = vld [vmem:[#allocation3 + $0x1f0] sm:$0xf0]  ;;  %v3019_v45 = vrot.slane %v2866_v63, 5 }
 0x2dd   : > { %3920 = vst [vmem:[#allocation3 + $0x380] sm:$0xf] %v3839_v34  ;;  %v3695_v34 = vld [vmem:[#allocation2 + $0xb4] sm:$0xe] }
 0x2e0   : > { %6016 = vmatmul.bf16.gmra.mxu0 %v7072_v11  ;;  %v7073_v59 = vld [vmem:[#allocation3 + $0x42c] sm:$0xf0]  ;;  %v3007_v11 = vrot.slane %v3005_v12, 4  ;;  %v2863_v12 = vld [vmem:[#allocation2 + $0xac] sm:$0xf] }
 0x2e1   : > { %v5549_v27 = vpop.f32.mrf.mxu3  ;;  %v7076_v57 = vor.u32 %v7562_v6, %v7073_v59  ;;  %6149 = vmatmul.bf16.gmra.mxu2 %v6756_v52  ;;  %v7453_v6 = vld [vmem:[#allocation3 + $0xa4] sm:$0xf]  ;;  %v3012_v52 = vrot.slane %v2863_v12, 5 }
 0x2e2   : > { %v9337_v18 = vadd.f32 %v5549_v27, %v5461_v5  ;;  %v3009_v55 = vsel %vm8076_vm11, %v3007_v11, %v3008_v32  ;;  %v3842_v5 = vsel %vm8076_vm11, %v3840_v51, %v3841_v30  ;;  %v6636_v3 = vor.u32 %v7453_v6, %v6633_v2  ;;  %v6791_v51 = vld [vmem:[#allocation3 + $0x1d0] sm:$0xf]  ;;  %v3696_v30 = vld [vmem:[#allocation2 + $0xb8] sm:$0xf] }
 0x2e3   : > { %6105 = vmatmul.bf16.gmra.mxu1 %v7076_v57  ;;  %3088 = vst [vmem:[#allocation3 + $0x398] sm:$0xf] %v3009_v55  ;;  %v3015_v27 = vrot.slane %v2864_v8, 5  ;;  %v3013_v32 = vsel %vm8076_vm11, %v6522_v56, %v3012_v52  ;;  %v3014_v11 = vrot.slane %v3012_v52, 4  ;;  %v5466_v55 = vadd.f32 %v9251_v31, %v8811_v38  ;;  %v6669_v8 = vld [vmem:[#allocation3 + $0x10c] sm:$0xf0] }
 0x2e4   : > { %v9347_v59 = vpop.f32.mrf.mxu2  ;;  %3921 = vst [vmem:[#allocation3 + $0x3a4] sm:$0xf] %v3842_v5  ;;  %v6792_v12 = vor.u32 %v7495_v21, %v6791_v51  ;;  %v3845_v56 = vrot.slane %v3696_v30, 5  ;;  %v3697_v5 = vld [vmem:[#allocation2 + $0xbc] sm:$0x1] }
 0x2e5   : > { %9871 = vst [vmem:[#allocation99_spill] sm:$0xff] %v9347_v59  ;;  %v3016_v57 = vsel %vm8076_vm11, %v3014_v11, %v3015_v27  ;;  %v2865_v52 = vld [vmem:[#allocation2 + $0xb4] sm:$0xe]  ;;  %v6538_v27 = vrot.slane %v3695_v34, 9  ;;  %v3848_v11 = vrot.slane %v3697_v5, 5 }
 0x2e6   : > { %5867 = vmatmul.bf16.gmra.mxu3 %v6636_v3  ;;  %3089 = vst [vmem:[#allocation3 + $0x3bc] sm:$0xf] %v3013_v32  ;;  %v3847_v32 = vrot.slane %v3845_v56, 4  ;;  %v7462_v59 = vld [vmem:[#allocation3 + $0xec] sm:$0xf] }
 0x2e7   : > { %3090 = vst [vmem:[#allocation3 + $0x3e0] sm:$0xf] %v3016_v57  ;;  %v6523_v57 = vrot.slane %v2865_v52, 9  ;;  %v3846_v38 = vsel %vm8076_vm11, %v6538_v27, %v3845_v56  ;;  %v6672_v30 = vor.u32 %v7462_v59, %v6669_v8  ;;  %v7504_v59 = vld [vmem:[#allocation3 + $0x238] sm:$0xf0] }
 0x2e8   : > { %v3849_v21 = vsel %vm8076_vm11, %v3847_v32, %v3848_v11  ;;  %3922 = vst [vmem:[#allocation3 + $0x3c8] sm:$0xf] %v3846_v38  ;;  %v6827_v8 = vld [vmem:[#allocation3 + $0x218] sm:$0xf]  ;;  %v7471_v32 = vld [vmem:[#allocation3 + $0x134] sm:$0xf] }
 0x2e9   : > { %v5552_v29 = vpop.f32.mrf.mxu3  ;;  %v3020_v63 = vsel %vm8076_vm11, %v6523_v57, %v3019_v45  ;;  %3923 = vst [vmem:[#allocation3 + $0x3ec] sm:$0xf] %v3849_v21  ;;  %v6828_v5 = vor.u32 %v7504_v59, %v6827_v8  ;;  %v6705_v27 = vld [vmem:[#allocation3 + $0x154] sm:$0xf0]  ;;  %v6863_v21 = vld [vmem:[#allocation3 + $0x260] sm:$0xf] }
 0x2ea   : > { %v9355_v53 = vadd.f32 %v5552_v29, %v5464_v1  ;;  %v2867_v1 = vld [vmem:[#allocation2 + $0xbc] sm:$0x1]  ;;  %v3021_v29 = vrot.slane %v3019_v45, 4  ;;  %3091 = vst [vmem:[#allocation3 + $0x404] sm:$0xf] %v3020_v63  ;;  %v5471_v45 = vadd.f32 %v9251_v31, %v8852_v37 }
 0x2eb   : > { %v7513_v37 = vld [vmem:[#allocation3 + $0x280] sm:$0xf0]  ;;  %v7480_v59 = vld [vmem:[#allocation3 + $0x17c] sm:$0xf] }
 0x2ec   : > { %v9357_v2 = vpop.f32.mrf.mxu2  ;;  %v6864_v63 = vor.u32 %v7513_v37, %v6863_v21  ;;  %v6777_v21 = vld [vmem:[#allocation3 + $0x1e4] sm:$0xf0] }
 0x2ed   : > { %9872 = vst [vmem:[#allocation100_spill] sm:$0xff] %v9357_v2  ;;  %v3022_v2 = vrot.slane %v2867_v1, 5  ;;  %v5474_v1 = vadd.f32 %v9251_v31, %v8824_v62 }
 0x2f1   : > { %v5554_v6 = vpop.f32.mrf.mxu3  ;;  %6154 = vmatmul.bf16.gmra.mxu2 %v6792_v12  ;;  %v5469_v12 = vadd.f32 %v9251_v31, %v8829_v23  ;;  %v6708_v23 = vor.u32 %v7471_v32, %v6705_v27  ;;  %v7522_v27 = vld [vmem:[#allocation3 + $0x2c8] sm:$0xf0] }
 0x2f2   : > { %v9361_v3 = vadd.f32 %v5554_v6, %v5466_v55  ;;  %v3023_v55 = vsel %vm8076_vm11, %v3021_v29, %v3022_v2 }
 0x2f3   : > { %3092 = vst [vmem:[#allocation3 + $0x428] sm:$0xf] %v3023_v55 }
 0x2f4   : > { %v9367_v51 = vpop.f32.mrf.mxu2 }
 0x2f5   : > { %9873 = vst [vmem:[#allocation101_spill] sm:$0xff] %v9367_v51 }
 0x2f6   : > { %5872 = vmatmul.bf16.gmra.mxu3 %v6672_v30  ;;  %v5476_v30 = vadd.f32 %v9251_v31, %v8841_v42  ;;  %v6899_v42 = vld [vmem:[#allocation3 + $0x2a8] sm:$0xf] }
 0x2f9   : > { %v5557_v56 = vpop.f32.mrf.mxu3 }
 0x2fa   : > { %v9375_v6 = vadd.f32 %v5557_v56, %v5469_v12  ;;  %v6741_v56 = vld [vmem:[#allocation3 + $0x19c] sm:$0xf0] }
 0x2fb   : > { %v6744_v62 = vor.u32 %v7480_v59, %v6741_v56 }
 0x2fc   : > { %v9377_v34 = vpop.f32.mrf.mxu2 }
 0x2fd   : > { %9874 = vst [vmem:[#allocation102_spill] sm:$0xff] %v9377_v34 }
 0x301   : > { %v5559_v52 = vpop.f32.mrf.mxu3  ;;  %6159 = vmatmul.bf16.gmra.mxu2 %v6828_v5 }
 0x302   : > { %v9381_v2 = vadd.f32 %v5559_v52, %v5471_v45  ;;  %v5479_v45 = vadd.f32 %v9251_v31, %v8862_v9 }
 0x304   : > { %v9383_v11 = vpop.f32.mrf.mxu2 }
 0x305   : > { %9875 = vst [vmem:[#allocation103_spill] sm:$0xff] %v9383_v11  ;;  %v9882_v11 = vld [vmem:[#allocation38_spill] sm:$0xff] }
 0x306   : > { %5877 = vmatmul.bf16.gmra.mxu3 %v6708_v23  ;;  %v5481_v23 = vadd.f32 %v9251_v31, %v8883_v28 }
 0x309   : > { %v5562_v57 = vpop.f32.mrf.mxu3 }
 0x30a   : > { %v9387_v29 = vadd.f32 %v5562_v57, %v5474_v1  ;;  %v6900_v1 = vor.u32 %v7522_v27, %v6899_v42 }
 0x30c   : > { %v9389_v38 = vpop.f32.mrf.mxu2 }
 0x30d   : > { %9876 = vst [vmem:[#allocation104_spill] sm:$0xff] %v9389_v38 }
 0x311   : > { %v5564_v55 = vpop.f32.mrf.mxu3  ;;  %6164 = vmatmul.bf16.gmra.mxu2 %v6864_v63 }
 0x312   : > { %v9393_v12 = vadd.f32 %v5564_v55, %v5476_v30  ;;  %v7489_v30 = vld [vmem:[#allocation3 + $0x1c4] sm:$0xf]  ;;  %v5484_v55 = vadd.f32 %v9251_v31, %v8902_v13  ;;  %v5489_v13 = vadd.f32 %v9251_v31, %v8944_v43  ;;  %v7507_v43 = vld [vmem:[#allocation3 + $0x254] sm:$0xf] }
 0x313   : > { %v6780_v63 = vor.u32 %v7489_v30, %v6777_v21 }
 0x314   : > { %v9395_v8 = vpop.f32.mrf.mxu2 }
 0x316   : > { %5882 = vmatmul.bf16.gmra.mxu3 %v6744_v62  ;;  %v7531_v62 = vld [vmem:[#allocation3 + $0x310] sm:$0xf0] }
 0x319   : > { %v5567_v5 = vpop.f32.mrf.mxu3 }
 0x31a   : > { %v9399_v52 = vadd.f32 %v5567_v5, %v5479_v45  ;;  %v6935_v45 = vld [vmem:[#allocation3 + $0x2f0] sm:$0xf]  ;;  %v5486_v5 = vadd.f32 %v9251_v31, %v8920_v20  ;;  %v6971_v20 = vld [vmem:[#allocation3 + $0x338] sm:$0xf] }
 0x31b   : > { %v6936_v28 = vor.u32 %v7531_v62, %v6935_v45  ;;  %v5491_v45 = vadd.f32 %v9251_v31, %v8975_v24 }
 0x31c   : > { %v9401_v32 = vpop.f32.mrf.mxu2 }
 0x321   : > { %v5569_v57 = vpop.f32.mrf.mxu3  ;;  %6169 = vmatmul.bf16.gmra.mxu2 %v6900_v1 }
 0x322   : > { %v9405_v37 = vadd.f32 %v5569_v57, %v5481_v23  ;;  %v6813_v23 = vld [vmem:[#allocation3 + $0x22c] sm:$0xf0]  ;;  %v7498_v57 = vld [vmem:[#allocation3 + $0x20c] sm:$0xf] }
 0x323   : > { %v6816_v21 = vor.u32 %v7498_v57, %v6813_v23  ;;  %v6849_v23 = vld [vmem:[#allocation3 + $0x274] sm:$0xf0] }
 0x324   : > { %v9407_v9 = vpop.f32.mrf.mxu2 }
 0x326   : > { %5887 = vmatmul.bf16.gmra.mxu3 %v6780_v63 }
 0x329   : > { %v5572_v56 = vpop.f32.mrf.mxu3 }
 0x32a   : > { %v9411_v59 = vadd.f32 %v5572_v56, %v5484_v55  ;;  %v7540_v56 = vld [vmem:[#allocation3 + $0x358] sm:$0xf0] }
 0x32b   : > { %v6972_v62 = vor.u32 %v7540_v56, %v6971_v20  ;;  %v9881_v56 = vld [vmem:[#allocation6_spill] sm:$0xff] }
 0x32c   : > { %v9415_v27 = vpop.f32.mrf.mxu2  ;;  %v5594_v20 = vadd.f32 %v9881_v56, %v9018_v35 }
 0x331   : > { %6174 = vmatmul.bf16.gmra.mxu2 %v6936_v28  ;;  %v5574_v42 = vpop.f32.mrf.mxu3  ;;  %v9878_v28 = vld [vmem:[#allocation4_spill] sm:$0xff] }
 0x332   : > { %v9417_v1 = vadd.f32 %v5574_v42, %v5486_v5  ;;  %v5592_v5 = vadd.f32 %v9878_v28, %v9004_v0  ;;  %v9437_v0 = vpop.f32.mrf.mxu0  ;;  %v7549_v28 = vld [vmem:[#allocation3 + $0x3a0] sm:$0xf0] }
 0x334   : > { %v9423_v55 = vpop.f32.mrf.mxu2 }
 0x336   : > { %5892 = vmatmul.bf16.gmra.mxu3 %v6816_v21  ;;  %v6852_v21 = vor.u32 %v7507_v43, %v6849_v23  ;;  %v3698_v43 = vld [vmem:[#allocation2 + $0xc0] sm:$0xe] }
 0x339   : > { %v5577_v30 = vpop.f32.mrf.mxu3 }
 0x33a   : > { %v9421_v63 = vadd.f32 %v5577_v30, %v5489_v13  ;;  %v9880_v13 = vld [vmem:[#allocation5_spill] sm:$0xff] }
 0x33b   : > { %v5681_v30 = vadd.f32 %v9880_v13, %v5592_v5  ;;  %v3699_v5 = vld [vmem:[#allocation2 + $0xc4] sm:$0xf]  ;;  %v3700_v13 = vld [vmem:[#allocation2 + $0xc8] sm:$0x1] }
 0x33c   : > { %9877 = vst [vmem:[#allocation105_spill] sm:$0xff] %v9421_v63  ;;  %v9432_v38 = vpop.f32.mrf.mxu2  ;;  %v3852_v35 = vrot.slane %v3699_v5, 5  ;;  %v3855_v56 = vrot.slane %v3700_v13, 5  ;;  %v9885_v63 = vld [vmem:[#allocation41_spill] sm:$0xff] }
 0x33d   : > { %v5770_v24 = vadd.f32 %v9882_v11, %v5681_v30 }
 0x341   : > { %6179 = vmatmul.bf16.gmra.mxu2 %v6972_v62  ;;  %v5579_v42 = vpop.f32.mrf.mxu3  ;;  %v7007_v62 = vld [vmem:[#allocation3 + $0x380] sm:$0xf] }
 0x342   : > { %v9429_v57 = vadd.f32 %v5579_v42, %v5491_v45  ;;  %v9883_v42 = vld [vmem:[#allocation7_spill] sm:$0xff] }
 0x343   : > { %v5683_v23 = vadd.f32 %v9883_v42, %v5594_v20  ;;  %v9884_v20 = vld [vmem:[#allocation8_spill] sm:$0xff] }
 0x344   : > { %9879 = vst [vmem:[#allocation4_spill] sm:$0xff] %v9429_v57  ;;  %v6539_v57 = vrot.slane %v3698_v43, 9  ;;  %v9444_v30 = vpop.f32.mrf.mxu2  ;;  %v6205_v43 = vld [vmem:[%s7908_s8] sm:$0xff] }
 0x345   : > { %v5772_v51 = vadd.f32 %v9885_v63, %v5683_v23  ;;  %v9458_v63 = vpop.f32.mrf.mxu0 }
 0x346   : > { %5897 = vmatmul.bf16.gmra.mxu3 %v6852_v21  ;;  %v9441_v21 = vpop.f32.mrf.mxu1 }
 0x349   : > { %v5858_v31 = vpop.f32.mrf.mxu3 }
 0x34a   : > { %v5859_v34 = vadd.f32 %v5858_v31, %v5770_v24  ;;  %v7008_v24 = vor.u32 %v7549_v28, %v7007_v62  ;;  %v5597_v31 = vadd.f32 %v9884_v20, %v9036_v19 }
 0x34c   : > { %v5948_v45 = vadd.f32 %v9221_v4, %v5859_v34  ;;  %v3853_v4 = vsel %vm8076_vm11, %v6539_v57, %v3852_v35  ;;  %v3854_v34 = vrot.slane %v3852_v35, 4  ;;  %v7516_v57 = vld [vmem:[#allocation3 + $0x29c] sm:$0xf]  ;;  %v9467_v20 = vpop.f32.mrf.mxu2 }
 0x34d   : > { %3924 = vst [vmem:[#allocation3 + $0x410] sm:$0xf] %v3853_v4  ;;  %v9888_v4 = vld [vmem:[#allocation44_spill] sm:$0xff] }
 0x34e   : > { %v6037_v11 = vadd.f32 %v9232_v25, %v5948_v45  ;;  %v6885_v25 = vld [vmem:[#allocation3 + $0x2bc] sm:$0xf0]  ;;  %v3856_v62 = vsel %vm8076_vm11, %v3854_v34, %v3855_v56  ;;  %v9887_v56 = vld [vmem:[#allocation10_spill] sm:$0xff] }
 0x34f   : > { %3925 = vst [vmem:[#allocation3 + $0x434] sm:$0xf] %v3856_v62  ;;  %v6888_v13 = vor.u32 %v7516_v57, %v6885_v25  ;;  %v2868_v62 = vld [vmem:[#allocation2 + $0xc0] sm:$0xe] }
 0x350   : > { %v6126_v42 = vadd.f32 %v9395_v8, %v6037_v11  ;;  %v9886_v8 = vld [vmem:[#allocation9_spill] sm:$0xff]  ;;  %v9461_v11 = vpop.f32.mrf.mxu1 }
 0x351   : > { %6184 = vmatmul.bf16.gmra.mxu2 %v7008_v24  ;;  %v5860_v5 = vpop.f32.mrf.mxu3  ;;  %v5686_v35 = vadd.f32 %v9886_v8, %v5597_v31  ;;  %v5599_v24 = vadd.f32 %v9887_v56, %v9050_v49  ;;  %v2869_v31 = vld [vmem:[#allocation2 + $0xc4] sm:$0xf]  ;;  %v9889_v49 = vld [vmem:[#allocation11_spill] sm:$0xff]  ;;  %v9476_v56 = vpop.f32.mrf.mxu0 }
 0x352   : > { %v6237_v28 = vadd.f32 %v6205_v43, %v6126_v42  ;;  %v5861_v45 = vadd.f32 %v5860_v5, %v5772_v51  ;;  %v3026_v25 = vrot.slane %v2869_v31, 5 }
 0x353   : > { %v5775_v34 = vadd.f32 %v9888_v4, %v5686_v35 }
 0x354   : > { %6269 = vst [vmem:[%s7908_s8] sm:$0xff] %v6237_v28  ;;  %v5950_v19 = vadd.f32 %v9242_v61, %v5861_v45  ;;  %v6206_v61 = vld [vmem:[%s7908_s8 + $0x8] sm:$0xff]  ;;  %v7558_v45 = vld [vmem:[#allocation3 + $0x3e8] sm:$0xf0] }
 0x355   : > { %v2870_v28 = vld [vmem:[#allocation2 + $0xc8] sm:$0x1] }
 0x356   : > { %v6039_v23 = vadd.f32 %v9261_v10, %v5950_v19  ;;  %5902 = vmatmul.bf16.gmra.mxu3 %v6888_v13  ;;  %v7043_v10 = vld [vmem:[#allocation3 + $0x3c8] sm:$0xf]  ;;  %v5688_v19 = vadd.f32 %v9889_v49, %v5599_v24  ;;  %v3028_v13 = vrot.slane %v3026_v25, 4  ;;  %v3029_v8 = vrot.slane %v2870_v28, 5  ;;  %v9487_v28 = vpop.f32.mrf.mxu2 }
 0x357   : > { %v9893_v49 = vld [vmem:[#allocation13_spill] sm:$0xff] }
 0x358   : > { %v6128_v51 = vadd.f32 %v9401_v32, %v6039_v23  ;;  %v6524_v32 = vrot.slane %v2868_v62, 9  ;;  %v3030_v4 = vsel %vm8076_vm11, %v3028_v13, %v3029_v8  ;;  %v9894_v13 = vld [vmem:[#allocation70_spill] sm:$0xff] }
 0x359   : > { %v5863_v42 = vpop.f32.mrf.mxu3  ;;  %3094 = vst [vmem:[#allocation3 + $0x470] sm:$0xf] %v3030_v4  ;;  %v9895_v8 = vld [vmem:[#allocation14_spill] sm:$0xff] }
 0x35a   : > { %v6238_v43 = vadd.f32 %v6206_v61, %v6128_v51  ;;  %v5864_v5 = vadd.f32 %v5863_v42, %v5775_v34  ;;  %v3027_v23 = vsel %vm8076_vm11, %v6524_v32, %v3026_v25  ;;  %v7044_v51 = vor.u32 %v7558_v45, %v7043_v10  ;;  %v9891_v34 = vld [vmem:[#allocation12_spill] sm:$0xff]  ;;  %v9892_v42 = vld [vmem:[#allocation46_spill] sm:$0xff]  ;;  %v6921_v25 = vld [vmem:[#allocation3 + $0x304] sm:$0xf0] }
 0x35b   : > { %3093 = vst [vmem:[#allocation3 + $0x44c] sm:$0xf] %v3027_v23  ;;  %v5777_v31 = vadd.f32 %v9892_v42, %v5688_v19  ;;  %v7525_v45 = vld [vmem:[#allocation3 + $0x2e4] sm:$0xf] }
 0x35c   : > { %6270 = vst [vmem:[%s7908_s8 + $0x8] sm:$0xff] %v6238_v43  ;;  %v5953_v57 = vadd.f32 %v9271_v50, %v5864_v5  ;;  %v9890_v50 = vld [vmem:[#allocation66_spill] sm:$0xff]  ;;  %v6207_v43 = vld [vmem:[%s7908_s8 + $0x10] sm:$0xff] }
 0x35d   : > { %v5602_v24 = vadd.f32 %v9891_v34, %v9890_v50  ;;  %v9497_v50 = vpop.f32.mrf.mxu0  ;;  %v6208_v34 = vld [vmem:[%s7908_s8 + $0x18] sm:$0xff] }
 0x35e   : > { %v6042_v35 = vadd.f32 %v9277_v16, %v5953_v57  ;;  %v9484_v16 = vpop.f32.mrf.mxu1 }
 0x35f   : > { %v5691_v19 = vadd.f32 %v9893_v49, %v5602_v24  ;;  %v7079_v24 = vld [vmem:[#allocation3 + $0x410] sm:$0xf] }
 0x360   : > { %v6131_v61 = vadd.f32 %v9407_v9, %v6042_v35  ;;  %v6924_v9 = vor.u32 %v7525_v45, %v6921_v25  ;;  %v5604_v35 = vadd.f32 %v9895_v8, %v9894_v13  ;;  %v9898_v45 = vld [vmem:[#allocation74_spill] sm:$0xff]  ;;  %v6209_v13 = vld [vmem:[%s7908_s8 + $0x20] sm:$0xff] }
 0x361   : > { %6189 = vmatmul.bf16.gmra.mxu2 %v7044_v51  ;;  %v5865_v5 = vpop.f32.mrf.mxu3  ;;  %v9896_v51 = vld [vmem:[#allocation49_spill] sm:$0xff] }
 0x362   : > { %v6239_v10 = vadd.f32 %v6207_v43, %v6131_v61  ;;  %v5866_v62 = vadd.f32 %v5865_v5, %v5777_v31  ;;  %v5780_v4 = vadd.f32 %v9896_v51, %v5691_v19  ;;  %v9897_v5 = vld [vmem:[#allocation15_spill] sm:$0xff] }
 0x363   : > { %v5693_v25 = vadd.f32 %v9897_v5, %v5604_v35  ;;  %v9900_v19 = vld [vmem:[#allocation51_spill] sm:$0xff] }
 0x364   : > { %6271 = vst [vmem:[%s7908_s8 + $0x10] sm:$0xff] %v6239_v10  ;;  %v5955_v57 = vadd.f32 %v9291_v58, %v5866_v62 }
 0x365   : > { %v9513_v35 = vpop.f32.mrf.mxu0 }
 0x366   : > { %v6044_v32 = vadd.f32 %v9301_v7, %v5955_v57  ;;  %5907 = vmatmul.bf16.gmra.mxu3 %v6924_v9  ;;  %v9500_v31 = vpop.f32.mrf.mxu1  ;;  %v7567_v7 = vld [vmem:[#allocation3 + $0x430] sm:$0xf0]  ;;  %v9899_v57 = vld [vmem:[#allocation16_spill] sm:$0xff] }
 0x367   : > { %v7080_v62 = vor.u32 %v7567_v7, %v7079_v24  ;;  %v5607_v9 = vadd.f32 %v9899_v57, %v9898_v45  ;;  %v9902_v7 = vld [vmem:[#allocation18_spill] sm:$0xff] }
 0x368   : > { %v6133_v23 = vadd.f32 %v9415_v27, %v6044_v32  ;;  %v9505_v27 = vpop.f32.mrf.mxu2  ;;  %v5782_v32 = vadd.f32 %v9900_v19, %v5693_v25  ;;  %v9903_v25 = vld [vmem:[#allocation54_spill] sm:$0xff] }
 0x369   : > { %v5868_v61 = vpop.f32.mrf.mxu3 }
 0x36a   : > { %v6240_v42 = vadd.f32 %v6208_v34, %v6133_v23  ;;  %v5869_v58 = vadd.f32 %v5868_v61, %v5780_v4  ;;  %v6957_v23 = vld [vmem:[#allocation3 + $0x34c] sm:$0xf0]  ;;  %v7534_v4 = vld [vmem:[#allocation3 + $0x32c] sm:$0xf] }
 0x36b   : > { %v6960_v34 = vor.u32 %v7534_v4, %v6957_v23  ;;  %v9901_v61 = vld [vmem:[#allocation17_spill] sm:$0xff]  ;;  %v6211_v4 = vld [vmem:[%s7908_s8 + $0x30] sm:$0xff] }
 0x36c   : > { %6272 = vst [vmem:[%s7908_s8 + $0x18] sm:$0xff] %v6240_v42  ;;  %v5958_v43 = vadd.f32 %v9309_v17, %v5869_v58  ;;  %v5696_v42 = vadd.f32 %v9901_v61, %v5607_v9  ;;  %v9906_v23 = vld [vmem:[#allocation57_spill] sm:$0xff] }
 0x36d   : > { %v9531_v19 = vpop.f32.mrf.mxu0 }
 0x36e   : > { %v6047_v10 = vadd.f32 %v9321_v26, %v5958_v43  ;;  %v5609_v43 = vadd.f32 %v9902_v7, %v9114_v39  ;;  %v9907_v7 = vld [vmem:[#allocation21_spill] sm:$0xff] }
 0x370   : > { %v6136_v49 = vadd.f32 %v9423_v55, %v6047_v10  ;;  %v9518_v55 = vpop.f32.mrf.mxu1  ;;  %v9521_v24 = vpop.f32.mrf.mxu2  ;;  %v5785_v10 = vadd.f32 %v9903_v25, %v5696_v42  ;;  %v7543_v42 = vld [vmem:[#allocation3 + $0x374] sm:$0xf] }
 0x371   : > { %6194 = vmatmul.bf16.gmra.mxu2 %v7080_v62  ;;  %v5870_v8 = vpop.f32.mrf.mxu3  ;;  %v6210_v62 = vld [vmem:[%s7908_s8 + $0x28] sm:$0xff] }
 0x372   : > { %v6241_v17 = vadd.f32 %v6209_v13, %v6136_v49  ;;  %v5871_v51 = vadd.f32 %v5870_v8, %v5782_v32 }
 0x374   : > { %6273 = vst [vmem:[%s7908_s8 + $0x20] sm:$0xff] %v6241_v17  ;;  %v5960_v26 = vadd.f32 %v9327_v60, %v5871_v51 }
 0x376   : > { %v6049_v58 = vadd.f32 %v9339_v46, %v5960_v26  ;;  %5912 = vmatmul.bf16.gmra.mxu3 %v6960_v34  ;;  %v9904_v46 = vld [vmem:[#allocation19_spill] sm:$0xff] }
 0x377   : > { %v5698_v49 = vadd.f32 %v9904_v46, %v5609_v43  ;;  %v9547_v43 = vpop.f32.mrf.mxu0 }
 0x378   : > { %v6138_v5 = vadd.f32 %v9432_v38, %v6049_v58  ;;  %v9534_v39 = vpop.f32.mrf.mxu1  ;;  %v9905_v38 = vld [vmem:[#allocation20_spill] sm:$0xff]  ;;  %v9540_v51 = vpop.f32.mrf.mxu2 }
 0x379   : > { %v5873_v60 = vpop.f32.mrf.mxu3  ;;  %v5612_v13 = vadd.f32 %v9905_v38, %v9132_v54  ;;  %v5787_v17 = vadd.f32 %v9906_v23, %v5698_v49  ;;  %v9912_v23 = vld [vmem:[#allocation62_spill] sm:$0xff] }
 0x37a   : > { %v6242_v45 = vadd.f32 %v6210_v62, %v6138_v5  ;;  %v5874_v57 = vadd.f32 %v5873_v60, %v5785_v10  ;;  %v9908_v5 = vld [vmem:[#allocation22_spill] sm:$0xff]  ;;  %v9909_v62 = vld [vmem:[#allocation59_spill] sm:$0xff] }
 0x37b   : > { %v5701_v54 = vadd.f32 %v9907_v7, %v5612_v13  ;;  %v5614_v25 = vadd.f32 %v9908_v5, %v9152_v41 }
 0x37c   : > { %6274 = vst [vmem:[%s7908_s8 + $0x28] sm:$0xff] %v6242_v45  ;;  %v5963_v9 = vadd.f32 %v9437_v0, %v5874_v57  ;;  %v6993_v0 = vld [vmem:[#allocation3 + $0x394] sm:$0xf0]  ;;  %v6212_v57 = vld [vmem:[%s7908_s8 + $0x38] sm:$0xff] }
 0x37d   : > { %v6996_v58 = vor.u32 %v7543_v42, %v6993_v0  ;;  %v5790_v60 = vadd.f32 %v9909_v62, %v5701_v54 }
 0x37e   : > { %v6052_v32 = vadd.f32 %v9441_v21, %v5963_v9 }
 0x380   : > { %v6141_v8 = vadd.f32 %v9444_v30, %v6052_v32  ;;  %v9553_v45 = vpop.f32.mrf.mxu1  ;;  %v9556_v49 = vpop.f32.mrf.mxu2  ;;  %v9910_v32 = vld [vmem:[#allocation23_spill] sm:$0xff] }
 0x381   : > { %v5875_v26 = vpop.f32.mrf.mxu3  ;;  %v5703_v38 = vadd.f32 %v9910_v32, %v5614_v25 }
 0x382   : > { %v6243_v34 = vadd.f32 %v6211_v4, %v6141_v8  ;;  %v5876_v61 = vadd.f32 %v5875_v26, %v5787_v17  ;;  %v9566_v4 = vpop.f32.mrf.mxu0  ;;  %v6213_v26 = vld [vmem:[%s7908_s8 + $0x40] sm:$0xff] }
 0x383   : > { %v5792_v17 = vadd.f32 %v9912_v23, %v5703_v38  ;;  %v3702_v38 = vld [vmem:[#allocation2 + $0xd0] sm:$0xf] }
 0x384   : > { %6275 = vst [vmem:[%s7908_s8 + $0x30] sm:$0xff] %v6243_v34  ;;  %v5965_v21 = vadd.f32 %v9458_v63, %v5876_v61  ;;  %v7552_v34 = vld [vmem:[#allocation3 + $0x3bc] sm:$0xf]  ;;  %v7029_v61 = vld [vmem:[#allocation3 + $0x3dc] sm:$0xf0] }
 0x386   : > { %v6054_v30 = vadd.f32 %v9461_v11, %v5965_v21  ;;  %5917 = vmatmul.bf16.gmra.mxu3 %v6996_v58  ;;  %v9913_v58 = vld [vmem:[#allocation25_spill] sm:$0xff] }
 0x388   : > { %v6143_v10 = vadd.f32 %v9467_v20, %v6054_v30  ;;  %v9911_v20 = vld [vmem:[#allocation24_spill] sm:$0xff]  ;;  %v9569_v21 = vpop.f32.mrf.mxu1  ;;  %v9574_v7 = vpop.f32.mrf.mxu2  ;;  %v9914_v30 = vld [vmem:[#allocation26_spill] sm:$0xff] }
 0x389   : > { %v5878_v63 = vpop.f32.mrf.mxu3  ;;  %v5617_v13 = vadd.f32 %v9911_v20, %v9172_v44  ;;  %v7032_v44 = vor.u32 %v7552_v34, %v7029_v61  ;;  %v5619_v5 = vadd.f32 %v9914_v30, %v9194_v33  ;;  %v3703_v33 = vld [vmem:[#allocation2 + $0xd4] sm:$0x1]  ;;  %v3205_v61 = vld [vmem:[#allocation2 + $0xcc] sm:$0xf] }
 0x38a   : > { %v6244_v9 = vadd.f32 %v6212_v57, %v6143_v10  ;;  %v5879_v46 = vadd.f32 %v5878_v63, %v5790_v60  ;;  %v9915_v10 = vld [vmem:[#allocation64_spill] sm:$0xff]  ;;  %v6214_v60 = vld [vmem:[%s7908_s8 + $0x48] sm:$0xff]  ;;  %v3862_v23 = vrot.slane %v3703_v33, 5 }
 0x38c   : > { %6276 = vst [vmem:[%s7908_s8 + $0x38] sm:$0xff] %v6244_v9  ;;  %v5968_v11 = vadd.f32 %v9476_v56, %v5879_v46 }
 0x38e   : > { %v6057_v41 = vadd.f32 %v9484_v16, %v5968_v11  ;;  %v9916_v11 = vld [vmem:[#allocation27_spill] sm:$0xff] }
 0x38f   : > { %v5708_v32 = vadd.f32 %v9916_v11, %v5619_v5  ;;  %v7065_v5 = vld [vmem:[#allocation3 + $0x424] sm:$0xf0] }
 0x390   : > { %v6146_v8 = vadd.f32 %v9487_v28, %v6057_v41  ;;  %v5706_v28 = vadd.f32 %v9913_v58, %v5617_v13  ;;  %v9587_v41 = vpop.f32.mrf.mxu1  ;;  %v3126_v13 = vld [vmem:[#allocation2 + $0xcc] sm:$0xf]  ;;  %v3206_v58 = vld [vmem:[#allocation2 + $0xd0] sm:$0xf] }
 0x391   : > { %v5880_v0 = vpop.f32.mrf.mxu3  ;;  %3158 = vst [vmem:[#allocation3 + $0x450] sm:$0xf] %v3126_v13 }
 0x392   : > { %v6245_v42 = vadd.f32 %v6213_v26, %v6146_v8  ;;  %v5881_v56 = vadd.f32 %v5880_v0, %v5792_v17  ;;  %v5795_v62 = vadd.f32 %v9915_v10, %v5706_v28  ;;  %v3127_v17 = vld [vmem:[#allocation2 + $0xd0] sm:$0xf]  ;;  %v9590_v26 = vpop.f32.mrf.mxu2  ;;  %v7561_v0 = vld [vmem:[#allocation3 + $0x404] sm:$0xf]  ;;  %v3207_v28 = vld [vmem:[#allocation2 + $0xd4] sm:$0x1] }
 0x393   : > { %3159 = vst [vmem:[#allocation3 + $0x474] sm:$0xf] %v3127_v17  ;;  %v3569_v10 = vshrl.u32 %v3205_v61, 16 }
 0x394   : > { %6277 = vst [vmem:[%s7908_s8 + $0x40] sm:$0xff] %v6245_v42  ;;  %v5970_v16 = vadd.f32 %v9497_v50, %v5881_v56  ;;  %v9582_v50 = vpop.f32.mrf.mxu0  ;;  %v9917_v42 = vld [vmem:[#allocation28_spill] sm:$0xff] }
 0x395   : > { %v5622_v56 = vadd.f32 %v9917_v42, %v9214_v48  ;;  %v3582_v48 = vshrl.u32 %v3206_v58, 16 }
 0x396   : > { %v6059_v54 = vadd.f32 %v9500_v31, %v5970_v16  ;;  %5922 = vmatmul.bf16.gmra.mxu3 %v7032_v44  ;;  %v3701_v31 = vld [vmem:[#allocation2 + $0xcc] sm:$0xe]  ;;  %v9918_v44 = vld [vmem:[#allocation68_spill] sm:$0xff] }
 0x397   : > { %v6540_v20 = vrot.slane %v3701_v31, 9  ;;  %v7068_v31 = vor.u32 %v7561_v0, %v7065_v5  ;;  %v9920_v0 = vld [vmem:[#allocation91_spill] sm:$0xff] }
 0x398   : > { %v6148_v25 = vadd.f32 %v9505_v27, %v6059_v54  ;;  %v3859_v27 = vrot.slane %v3702_v38, 5  ;;  %v6215_v54 = vld [vmem:[%s7908_s8 + $0x50] sm:$0xff]  ;;  %v9919_v38 = vld [vmem:[#allocation29_spill] sm:$0xff] }
 0x399   : > { %v5883_v57 = vpop.f32.mrf.mxu3  ;;  %v5711_v33 = vadd.f32 %v9919_v38, %v5622_v56  ;;  %v6217_v38 = vld [vmem:[%s7908_s8 + $0x60] sm:$0xff] }
 0x39a   : > { %v6246_v63 = vadd.f32 %v6214_v60, %v6148_v25  ;;  %v5884_v9 = vadd.f32 %v5883_v57, %v5795_v62  ;;  %v3861_v34 = vrot.slane %v3859_v27, 4  ;;  %v3572_v62 = vshll.u32 %v3205_v61, 16 }
 0x39b   : > { %v3578_v60 = vshll.u32 %v3206_v58, 16 }
 0x39c   : > { %6278 = vst [vmem:[%s7908_s8 + $0x48] sm:$0xff] %v6246_v63  ;;  %v5973_v46 = vadd.f32 %v9513_v35, %v5884_v9  ;;  %v3860_v35 = vsel %vm8076_vm11, %v6540_v20, %v3859_v27  ;;  %v3863_v25 = vsel %vm8076_vm11, %v3861_v34, %v3862_v23  ;;  %v3571_v9 = vrot.slane %v3569_v10, 4  ;;  %v9604_v36 = vpop.f32.mrf.mxu0  ;;  %v7107_v27 = vld [vmem:[#allocation3 + $0x450] sm:$0xf]  ;;  %v7575_v23 = vld [vmem:[#allocation3 + $0x470] sm:$0xf0]  ;;  %v9607_v34 = vpop.f32.mrf.mxu1 }
 0x39d   : > { %3926 = vst [vmem:[#allocation3 + $0x458] sm:$0xf] %v3860_v35  ;;  %v3580_v11 = vrot.slane %v3578_v60, 5  ;;  %v3584_v20 = vrot.slane %v3582_v48, 4  ;;  %v7108_v42 = vor.u32 %v7575_v23, %v7107_v27 }
 0x39e   : > { %v6062_v8 = vadd.f32 %v9518_v55, %v5973_v46  ;;  %v5797_v55 = vadd.f32 %v9918_v44, %v5708_v32  ;;  %3927 = vst [vmem:[#allocation3 + $0x47c] sm:$0xf] %v3863_v25  ;;  %v3574_v46 = vrot.slane %v3572_v62, 5 }
 0x39f   : > { %v3585_v17 = vor.u32 %v3584_v20, %v3580_v11  ;;  %6021 = vmatmul.bf16.gmra.mxu0 %v7108_v42 }
 0x3a0   : > { %v6151_v16 = vadd.f32 %v9521_v24, %v6062_v8  ;;  %v3588_v24 = vshll.u32 %v3207_v28, 16  ;;  %v3575_v13 = vor.u32 %v3574_v46, %v3571_v9  ;;  %v9924_v46 = vld [vmem:[#allocation93_spill] sm:$0xff] }
 0x3a1   : > { %v5885_v30 = vpop.f32.mrf.mxu3  ;;  %v3586_v28 = vrot.slane %v3585_v17, 4 }
 0x3a2   : > { %v6247_v57 = vadd.f32 %v6215_v54, %v6151_v16  ;;  %v5886_v63 = vadd.f32 %v5885_v30, %v5797_v55  ;;  %v3590_v35 = vrot.slane %v3588_v24, 5  ;;  %v9921_v16 = vld [vmem:[#allocation30_spill] sm:$0xff]  ;;  %v9922_v55 = vld [vmem:[#allocation72_spill] sm:$0xff]  ;;  %v9613_v54 = vpop.f32.mrf.mxu2 }
 0x3a3   : > { %v5624_v56 = vadd.f32 %v9921_v16, %v9920_v0  ;;  %v5800_v58 = vadd.f32 %v9922_v55, %v5711_v33 }
 0x3a4   : > { %6279 = vst [vmem:[%s7908_s8 + $0x50] sm:$0xff] %v6247_v57  ;;  %v5975_v32 = vadd.f32 %v9531_v19, %v5886_v63  ;;  %v7115_v61 = vld [vmem:[#allocation3 + $0x458] sm:$0xf]  ;;  %v3576_v19 = vrot.slane %v3575_v13, 4  ;;  %v3591_v57 = vsel %vm8157_vm14, %v3586_v28, %v3590_v35  ;;  %v5987_v9 = vpop.f32.mrf.mxu0  ;;  %v6076_v20 = vpop.f32.mrf.mxu1  ;;  %v7570_v13 = vld [vmem:[#allocation3 + $0x44c] sm:$0xf] }
 0x3a5   : > { %v7576_v5 = vld [vmem:[#allocation3 + $0x478] sm:$0xf0]  ;;  %3655 = vst [vmem:[#allocation3 + $0x478] sm:$0xf] %v3591_v57  ;;  %v9930_v28 = vld [vmem:[#allocation78_spill] sm:$0xff] }
 0x3a6   : > { %v6064_v8 = vadd.f32 %v9534_v39, %v5975_v32  ;;  %5927 = vmatmul.bf16.gmra.mxu3 %v7068_v31  ;;  %v6216_v39 = vld [vmem:[%s7908_s8 + $0x58] sm:$0xff]  ;;  %v3581_v25 = vsel %vm8157_vm14, %v3576_v19, %v3580_v11  ;;  %v7116_v60 = vor.u32 %v7576_v5, %v7115_v61  ;;  %v9923_v63 = vld [vmem:[#allocation31_spill] sm:$0xff]  ;;  %v6218_v5 = vld [vmem:[%s7908_s8 + $0x68] sm:$0xff] }
 0x3a7   : > { %3654 = vst [vmem:[#allocation3 + $0x454] sm:$0xf] %v3581_v25  ;;  %v5713_v48 = vadd.f32 %v9923_v63, %v5624_v56  ;;  %v9925_v11 = vld [vmem:[#allocation32_spill] sm:$0xff]  ;;  %v9928_v56 = vld [vmem:[#allocation95_spill] sm:$0xff] }
 0x3a8   : > { %v6153_v44 = vadd.f32 %v9540_v51, %v6064_v8  ;;  %6199 = vmatmul.bf16.gmra.mxu2 %v7116_v60  ;;  %v5627_v32 = vadd.f32 %v9925_v11, %v9924_v46  ;;  %v7101_v8 = vld [vmem:[#allocation3 + $0x46c] sm:$0xf0]  ;;  %v9934_v11 = vld [vmem:[#allocation80_spill] sm:$0xff] }
 0x3a9   : > { %v5888_v30 = vpop.f32.mrf.mxu3  ;;  %v5802_v33 = vadd.f32 %v9926_v40, %v5713_v48  ;;  %v7104_v19 = vor.u32 %v7570_v13, %v7101_v8  ;;  %v9932_v48 = vld [vmem:[#allocation97_spill] sm:$0xff] }
 0x3aa   : > { %v6248_v10 = vadd.f32 %v6216_v39, %v6153_v44  ;;  %v5889_v62 = vadd.f32 %v5888_v30, %v5800_v58  ;;  %v9929_v44 = vld [vmem:[#allocation34_spill] sm:$0xff]  ;;  %v9935_v13 = vld [vmem:[#allocation37_spill] sm:$0xff] }
 0x3ab   : > { %v5629_v55 = vadd.f32 %v9929_v44, %v9928_v56  ;;  %v9938_v56 = vld [vmem:[#allocation40_spill] sm:$0xff] }
 0x3ac   : > { %6280 = vst [vmem:[%s7908_s8 + $0x58] sm:$0xff] %v6248_v10  ;;  %v5978_v51 = vadd.f32 %v9547_v43, %v5889_v62  ;;  %v7109_v35 = vld [vmem:[#allocation3 + $0x474] sm:$0xf0]  ;;  %v5989_v30 = vpop.f32.mrf.mxu0  ;;  %v6078_v62 = vpop.f32.mrf.mxu1 }
 0x3ae   : > { %v6067_v24 = vadd.f32 %v9553_v45, %v5978_v51  ;;  %v7571_v43 = vld [vmem:[#allocation3 + $0x454] sm:$0xf]  ;;  %v6165_v45 = vpop.f32.mrf.mxu2 }
 0x3af   : > { %v7112_v61 = vor.u32 %v7571_v43, %v7109_v35 }
 0x3b0   : > { %v6156_v31 = vadd.f32 %v9556_v49, %v6067_v24  ;;  %v9927_v49 = vld [vmem:[#allocation33_spill] sm:$0xff] }
 0x3b1   : > { %v5890_v27 = vpop.f32.mrf.mxu3  ;;  %v5716_v0 = vadd.f32 %v9927_v49, %v5627_v32  ;;  %6110 = vmatmul.bf16.gmra.mxu1 %v7112_v61  ;;  %v9937_v61 = vld [vmem:[#allocation83_spill] sm:$0xff] }
 0x3b2   : > { %v6249_v23 = vadd.f32 %v6217_v38, %v6156_v31  ;;  %v5891_v17 = vadd.f32 %v5890_v27, %v5802_v33  ;;  %v6219_v31 = vld [vmem:[%s7908_s8 + $0x70] sm:$0xff] }
 0x3b3   : > { %v5805_v39 = vadd.f32 %v9930_v28, %v5716_v0  ;;  %v9939_v28 = vld [vmem:[#allocation42_spill] sm:$0xff] }
 0x3b4   : > { %6281 = vst [vmem:[%s7908_s8 + $0x60] sm:$0xff] %v6249_v23  ;;  %v5980_v42 = vadd.f32 %v9566_v4, %v5891_v17  ;;  %v5992_v27 = vpop.f32.mrf.mxu0 }
 0x3b6   : > { %v6069_v16 = vadd.f32 %v9569_v21, %v5980_v42  ;;  %5932 = vmatmul.bf16.gmra.mxu3 %v7104_v19  ;;  %v9931_v21 = vld [vmem:[#allocation35_spill] sm:$0xff]  ;;  %v6167_v51 = vpop.f32.mrf.mxu2  ;;  %v6220_v19 = vld [vmem:[%s7908_s8 + $0x78] sm:$0xff] }
 0x3b7   : > { %v5718_v57 = vadd.f32 %v9931_v21, %v5629_v55 }
 0x3b8   : > { %v6158_v58 = vadd.f32 %v9574_v7, %v6069_v16  ;;  %v9933_v7 = vld [vmem:[#allocation36_spill] sm:$0xff] }
 0x3b9   : > { %v5893_v25 = vpop.f32.mrf.mxu3  ;;  %v5632_v24 = vadd.f32 %v9933_v7, %v9932_v48  ;;  %v5807_v32 = vadd.f32 %v9934_v11, %v5718_v57  ;;  %v9941_v57 = vld [vmem:[#allocation43_spill] sm:$0xff]  ;;  %v9942_v7 = vld [vmem:[#allocation45_spill] sm:$0xff] }
 0x3ba   : > { %v6250_v10 = vadd.f32 %v6218_v5, %v6158_v58  ;;  %v5894_v4 = vadd.f32 %v5893_v25, %v5805_v39 }
 0x3bb   : > { %v5721_v8 = vadd.f32 %v9935_v13, %v5632_v24  ;;  %v5639_v24 = vadd.f32 %v9942_v7, %v9337_v18 }
 0x3bc   : > { %6282 = vst [vmem:[%s7908_s8 + $0x68] sm:$0xff] %v6250_v10  ;;  %v5983_v60 = vadd.f32 %v9582_v50, %v5894_v4  ;;  %v5994_v55 = vpop.f32.mrf.mxu0  ;;  %v6221_v10 = vld [vmem:[%s7908_s8 + $0x80] sm:$0xff] }
 0x3bd   : > { %v5810_v42 = vadd.f32 %v9937_v61, %v5721_v8  ;;  %v9945_v8 = vld [vmem:[#allocation48_spill] sm:$0xff] }
 0x3be   : > { %v6072_v63 = vadd.f32 %v9587_v41, %v5983_v60  ;;  %v6081_v41 = vpop.f32.mrf.mxu1  ;;  %v6170_v23 = vpop.f32.mrf.mxu2 }
 0x3c0   : > { %v6161_v46 = vadd.f32 %v9590_v26, %v6072_v63  ;;  %v9936_v26 = vld [vmem:[#allocation39_spill] sm:$0xff] }
 0x3c1   : > { %v5895_v38 = vpop.f32.mrf.mxu3  ;;  %v5634_v17 = vadd.f32 %v9936_v26, %v9305_v15  ;;  %v5637_v15 = vadd.f32 %v9939_v28, %v9323_v14  ;;  %v6224_v28 = vld [vmem:[%s7908_s8 + $0x98] sm:$0xff] }
 0x3c2   : > { %v6251_v40 = vadd.f32 %v6219_v31, %v6161_v46  ;;  %v5896_v33 = vadd.f32 %v5895_v38, %v5807_v32  ;;  %v6222_v32 = vld [vmem:[%s7908_s8 + $0x88] sm:$0xff] }
 0x3c3   : > { %v5723_v44 = vadd.f32 %v9938_v56, %v5634_v17  ;;  %v5726_v63 = vadd.f32 %v9941_v57, %v5637_v15  ;;  %v9948_v56 = vld [vmem:[#allocation52_spill] sm:$0xff]  ;;  %v9952_v57 = vld [vmem:[#allocation94_spill] sm:$0xff] }
 0x3c4   : > { %6283 = vst [vmem:[%s7908_s8 + $0x70] sm:$0xff] %v6251_v40  ;;  %v5985_v50 = vadd.f32 %v9604_v36, %v5896_v33 }
 0x3c6   : > { %v6074_v43 = vadd.f32 %v9607_v34, %v5985_v50  ;;  %v6083_v58 = vpop.f32.mrf.mxu1  ;;  %v6172_v25 = vpop.f32.mrf.mxu2  ;;  %v9944_v50 = vld [vmem:[#allocation47_spill] sm:$0xff] }
 0x3c7   : > { %v5728_v13 = vadd.f32 %v9944_v50, %v5639_v24 }
 0x3c8   : > { %v6163_v35 = vadd.f32 %v9613_v54, %v6074_v43  ;;  %v9940_v54 = vld [vmem:[#allocation86_spill] sm:$0xff]  ;;  %v5642_v43 = vadd.f32 %v9945_v8, %v9355_v53  ;;  %v5644_v53 = vadd.f32 %v9948_v56, %v9361_v3 }
 0x3c9   : > { %v5898_v49 = vpop.f32.mrf.mxu3  ;;  %v5812_v5 = vadd.f32 %v9940_v54, %v5723_v44  ;;  %v9949_v44 = vld [vmem:[#allocation92_spill] sm:$0xff] }
 0x3ca   : > { %v6252_v0 = vadd.f32 %v6220_v19, %v6163_v35  ;;  %v5899_v16 = vadd.f32 %v5898_v49, %v5810_v42  ;;  %v6223_v35 = vld [vmem:[%s7908_s8 + $0x90] sm:$0xff] }
 0x3cc   : > { %6284 = vst [vmem:[%s7908_s8 + $0x78] sm:$0xff] %v6252_v0  ;;  %v5988_v36 = vadd.f32 %v5987_v9, %v5899_v16 }
 0x3ce   : > { %v6077_v34 = vadd.f32 %v6076_v20, %v5988_v36  ;;  %v5997_v20 = vpop.f32.mrf.mxu0  ;;  %v6086_v11 = vpop.f32.mrf.mxu1 }
 0x3cf   : > { %v6175_v33 = vpop.f32.mrf.mxu2 }
 0x3d0   : > { %v6166_v39 = vadd.f32 %v6165_v45, %v6077_v34  ;;  %v9943_v45 = vld [vmem:[#allocation88_spill] sm:$0xff] }
 0x3d1   : > { %v5900_v4 = vpop.f32.mrf.mxu3  ;;  %v5815_v46 = vadd.f32 %v9943_v45, %v5726_v63 }
 0x3d2   : > { %v6253_v60 = vadd.f32 %v6221_v10, %v6166_v39  ;;  %v5901_v21 = vadd.f32 %v5900_v4, %v5812_v5 }
 0x3d4   : > { %6285 = vst [vmem:[%s7908_s8 + $0x80] sm:$0xff] %v6253_v60  ;;  %v5990_v9 = vadd.f32 %v5989_v30, %v5901_v21 }
 0x3d6   : > { %v6079_v48 = vadd.f32 %v6078_v62, %v5990_v9  ;;  %v5999_v17 = vpop.f32.mrf.mxu0  ;;  %v6088_v49 = vpop.f32.mrf.mxu1  ;;  %v9951_v9 = vld [vmem:[#allocation55_spill] sm:$0xff] }
 0x3d7   : > { %v6177_v36 = vpop.f32.mrf.mxu2  ;;  %v5647_v3 = vadd.f32 %v9951_v9, %v9375_v6 }
 0x3d8   : > { %v6168_v14 = vadd.f32 %v6167_v51, %v6079_v48  ;;  %v9946_v51 = vld [vmem:[#allocation90_spill] sm:$0xff]  ;;  %v6225_v48 = vld [vmem:[%s7908_s8 + $0xa0] sm:$0xff] }
 0x3d9   : > { %v5903_v31 = vpop.f32.mrf.mxu3  ;;  %v5817_v26 = vadd.f32 %v9946_v51, %v5728_v13  ;;  %v6226_v13 = vld [vmem:[%s7908_s8 + $0xa8] sm:$0xff]  ;;  %v9956_v51 = vld [vmem:[#allocation60_spill] sm:$0xff] }
 0x3da   : > { %v6254_v38 = vadd.f32 %v6222_v32, %v6168_v14  ;;  %v5904_v40 = vadd.f32 %v5903_v31, %v5815_v46 }
 0x3dc   : > { %6286 = vst [vmem:[%s7908_s8 + $0x88] sm:$0xff] %v6254_v38  ;;  %v5993_v30 = vadd.f32 %v5992_v27, %v5904_v40  ;;  %v9947_v27 = vld [vmem:[#allocation50_spill] sm:$0xff] }
 0x3dd   : > { %v5731_v16 = vadd.f32 %v9947_v27, %v5642_v43  ;;  %v9954_v38 = vld [vmem:[#allocation58_spill] sm:$0xff]  ;;  %v6227_v27 = vld [vmem:[%s7908_s8 + $0xb0] sm:$0xff] }
 0x3de   : > { %v6082_v62 = vadd.f32 %v6081_v41, %v5993_v30  ;;  %v6002_v5 = vpop.f32.mrf.mxu0  ;;  %v6091_v60 = vpop.f32.mrf.mxu1  ;;  %v5649_v40 = vadd.f32 %v9954_v38, %v9381_v2 }
 0x3df   : > { %v5820_v34 = vadd.f32 %v9949_v44, %v5731_v16 }
 0x3e0   : > { %v6171_v18 = vadd.f32 %v6170_v23, %v6082_v62 }
 0x3e1   : > { %v5905_v61 = vpop.f32.mrf.mxu3 }
 0x3e2   : > { %v6255_v42 = vadd.f32 %v6223_v35, %v6171_v18  ;;  %v5906_v19 = vadd.f32 %v5905_v61, %v5817_v26  ;;  %v5738_v26 = vadd.f32 %v9956_v51, %v5649_v40  ;;  %v9957_v61 = vld [vmem:[#allocation61_spill] sm:$0xff] }
 0x3e3   : > { %v9964_v40 = vld [vmem:[#allocation73_spill] sm:$0xff] }
 0x3e4   : > { %6287 = vst [vmem:[%s7908_s8 + $0x90] sm:$0xff] %v6255_v42  ;;  %v5995_v0 = vadd.f32 %v5994_v55, %v5906_v19  ;;  %v9950_v55 = vld [vmem:[#allocation53_spill] sm:$0xff]  ;;  %v5652_v42 = vadd.f32 %v9957_v61, %v9387_v29  ;;  %v9958_v19 = vld [vmem:[#allocation98_spill] sm:$0xff] }
 0x3e5   : > { %v5733_v4 = vadd.f32 %v9950_v55, %v5644_v53 }
 0x3e6   : > { %v6084_v41 = vadd.f32 %v6083_v58, %v5995_v0  ;;  %v6180_v58 = vpop.f32.mrf.mxu2  ;;  %v6004_v32 = vpop.f32.mrf.mxu0 }
 0x3e7   : > { %v5822_v63 = vadd.f32 %v9952_v57, %v5733_v4  ;;  %v9962_v57 = vld [vmem:[#allocation69_spill] sm:$0xff] }
 0x3e8   : > { %v6173_v23 = vadd.f32 %v6172_v25, %v6084_v41 }
 0x3e9   : > { %v5908_v15 = vpop.f32.mrf.mxu3 }
 0x3ea   : > { %v6256_v39 = vadd.f32 %v6224_v28, %v6173_v23  ;;  %v5909_v54 = vadd.f32 %v5908_v15, %v5820_v34  ;;  %v9959_v23 = vld [vmem:[#allocation63_spill] sm:$0xff]  ;;  %v9960_v28 = vld [vmem:[#allocation65_spill] sm:$0xff] }
 0x3eb   : > { %v5741_v44 = vadd.f32 %v9959_v23, %v5652_v42  ;;  %v5654_v15 = vadd.f32 %v9960_v28, %v9393_v12  ;;  %v5657_v12 = vadd.f32 %v9962_v57, %v9399_v52  ;;  %v5659_v52 = vadd.f32 %v9964_v40, %v9405_v37  ;;  %v9968_v42 = vld [vmem:[#allocation100_spill] sm:$0xff]  ;;  %v9971_v28 = vld [vmem:[#allocation101_spill] sm:$0xff]  ;;  %v9975_v57 = vld [vmem:[#allocation102_spill] sm:$0xff] }
 0x3ec   : > { %6288 = vst [vmem:[%s7908_s8 + $0x98] sm:$0xff] %v6256_v39  ;;  %v5998_v10 = vadd.f32 %v5997_v20, %v5909_v54  ;;  %v9953_v20 = vld [vmem:[#allocation56_spill] sm:$0xff] }
 0x3ed   : > { %v5736_v46 = vadd.f32 %v9953_v20, %v5647_v3  ;;  %v5830_v39 = vadd.f32 %v9311_v47, %v5741_v44  ;;  %v9970_v44 = vld [vmem:[#allocation81_spill] sm:$0xff] }
 0x3ee   : > { %v6087_v21 = vadd.f32 %v6086_v11, %v5998_v10  ;;  %v6093_v11 = vpop.f32.mrf.mxu1  ;;  %v6182_v50 = vpop.f32.mrf.mxu2 }
 0x3ef   : > { %v6007_v35 = vpop.f32.mrf.mxu0 }
 0x3f0   : > { %v6176_v25 = vadd.f32 %v6175_v33, %v6087_v21  ;;  %v9955_v33 = vld [vmem:[#allocation96_spill] sm:$0xff] }
 0x3f1   : > { %v5910_v7 = vpop.f32.mrf.mxu3  ;;  %v5825_v30 = vadd.f32 %v9955_v33, %v5736_v46  ;;  %v9963_v46 = vld [vmem:[#allocation71_spill] sm:$0xff] }
 0x3f2   : > { %v6257_v24 = vadd.f32 %v6225_v48, %v6176_v25  ;;  %v5911_v14 = vadd.f32 %v5910_v7, %v5822_v63  ;;  %v6229_v48 = vld [vmem:[%s7908_s8 + $0xc0] sm:$0xff]  ;;  %v9965_v33 = vld [vmem:[#allocation99_spill] sm:$0xff] }
 0x3f4   : > { %6289 = vst [vmem:[%s7908_s8 + $0xa0] sm:$0xff] %v6257_v24  ;;  %v6000_v45 = vadd.f32 %v5999_v17, %v5911_v14 }
 0x3f6   : > { %v6089_v31 = vadd.f32 %v6088_v49, %v6000_v45  ;;  %v5827_v49 = vadd.f32 %v9958_v19, %v5738_v26  ;;  %v6096_v0 = vpop.f32.mrf.mxu1  ;;  %v6185_v56 = vpop.f32.mrf.mxu2 }
 0x3f7   : > { %v6009_v54 = vpop.f32.mrf.mxu0 }
 0x3f8   : > { %v6178_v6 = vadd.f32 %v6177_v36, %v6089_v31 }
 0x3f9   : > { %v5913_v62 = vpop.f32.mrf.mxu3 }
 0x3fa   : > { %v6258_v8 = vadd.f32 %v6226_v13, %v6178_v6  ;;  %v5914_v43 = vadd.f32 %v5913_v62, %v5825_v30  ;;  %v6230_v30 = vld [vmem:[%s7908_s8 + $0xc8] sm:$0xff] }
 0x3fc   : > { %6290 = vst [vmem:[%s7908_s8 + $0xa8] sm:$0xff] %v6258_v8  ;;  %v6003_v18 = vadd.f32 %v6002_v5, %v5914_v43  ;;  %v6228_v5 = vld [vmem:[%s7908_s8 + $0xb8] sm:$0xff] }
 0x3fd   : > { %v9966_v43 = vld [vmem:[#allocation76_spill] sm:$0xff] }
 0x3fe   : > { %v6092_v17 = vadd.f32 %v6091_v60, %v6003_v18  ;;  %v6098_v60 = vpop.f32.mrf.mxu1  ;;  %v6187_v3 = vpop.f32.mrf.mxu2  ;;  %v5748_v18 = vadd.f32 %v9966_v43, %v5659_v52 }
 0x3ff   : > { %v6012_v45 = vpop.f32.mrf.mxu0 }
 0x400   : > { %v6181_v2 = vadd.f32 %v6180_v58, %v6092_v17  ;;  %v9961_v58 = vld [vmem:[#allocation67_spill] sm:$0xff] }
 0x401   : > { %v5915_v16 = vpop.f32.mrf.mxu3  ;;  %v5743_v9 = vadd.f32 %v9961_v58, %v5654_v15 }
 0x402   : > { %v6259_v36 = vadd.f32 %v6227_v27, %v6181_v2  ;;  %v5916_v41 = vadd.f32 %v5915_v16, %v5827_v49  ;;  %v5837_v2 = vadd.f32 %v9968_v42, %v5748_v18  ;;  %v6231_v49 = vld [vmem:[%s7908_s8 + $0xd0] sm:$0xff]  ;;  %v9980_v18 = vld [vmem:[#allocation89_spill] sm:$0xff] }
 0x403   : > { %v5832_v47 = vadd.f32 %v9325_v22, %v5743_v9  ;;  %v9973_v9 = vld [vmem:[#allocation105_spill] sm:$0xff]  ;;  %v6235_v42 = vld [vmem:[%s7908_s8 + $0xf0] sm:$0xff] }
 0x404   : > { %6291 = vst [vmem:[%s7908_s8 + $0xb0] sm:$0xff] %v6259_v36  ;;  %v6005_v53 = vadd.f32 %v6004_v32, %v5916_v41  ;;  %v5746_v32 = vadd.f32 %v9963_v46, %v5657_v12  ;;  %v9969_v41 = vld [vmem:[#allocation79_spill] sm:$0xff] }
 0x406   : > { %v6094_v34 = vadd.f32 %v6093_v11, %v6005_v53  ;;  %v6101_v31 = vpop.f32.mrf.mxu1  ;;  %v6190_v38 = vpop.f32.mrf.mxu2  ;;  %v5835_v22 = vadd.f32 %v9965_v33, %v5746_v32 }
 0x407   : > { %v6014_v51 = vpop.f32.mrf.mxu0 }
 0x408   : > { %v6183_v29 = vadd.f32 %v6182_v50, %v6094_v34  ;;  %v5664_v34 = vadd.f32 %v9970_v44, %v9417_v1 }
 0x409   : > { %v5918_v10 = vpop.f32.mrf.mxu3 }
 0x40a   : > { %v6260_v55 = vadd.f32 %v6228_v5, %v6183_v29  ;;  %v5919_v4 = vadd.f32 %v5918_v10, %v5830_v39  ;;  %v6232_v39 = vld [vmem:[%s7908_s8 + $0xd8] sm:$0xff] }
 0x40c   : > { %6292 = vst [vmem:[%s7908_s8 + $0xb8] sm:$0xff] %v6260_v55  ;;  %v6008_v21 = vadd.f32 %v6007_v35, %v5919_v4  ;;  %v9967_v35 = vld [vmem:[#allocation77_spill] sm:$0xff] }
 0x40d   : > { %v5662_v61 = vadd.f32 %v9967_v35, %v9411_v59 }
 0x40e   : > { %v6097_v25 = vadd.f32 %v6096_v0, %v6008_v21  ;;  %v6103_v17 = vpop.f32.mrf.mxu1  ;;  %v6192_v19 = vpop.f32.mrf.mxu2 }
 0x40f   : > { %v6017_v23 = vpop.f32.mrf.mxu0 }
 0x410   : > { %v6186_v63 = vadd.f32 %v6185_v56, %v6097_v25  ;;  %v5751_v56 = vadd.f32 %v9969_v41, %v5662_v61  ;;  %v9981_v61 = vld [vmem:[#allocation104_spill] sm:$0xff] }
 0x411   : > { %v5920_v7 = vpop.f32.mrf.mxu3 }
 0x412   : > { %v6261_v24 = vadd.f32 %v6229_v48, %v6186_v63  ;;  %v5921_v14 = vadd.f32 %v5920_v7, %v5832_v47  ;;  %v5840_v15 = vadd.f32 %v9971_v28, %v5751_v56  ;;  %v6233_v47 = vld [vmem:[%s7908_s8 + $0xe0] sm:$0xff] }
 0x414   : > { %6293 = vst [vmem:[%s7908_s8 + $0xc0] sm:$0xff] %v6261_v24  ;;  %v6010_v20 = vadd.f32 %v6009_v54, %v5921_v14 }
 0x416   : > { %v6099_v11 = vadd.f32 %v6098_v60, %v6010_v20  ;;  %v6106_v29 = vpop.f32.mrf.mxu1  ;;  %v6195_v55 = vpop.f32.mrf.mxu2  ;;  %v9972_v60 = vld [vmem:[#allocation82_spill] sm:$0xff]  ;;  %v9976_v20 = vld [vmem:[#allocation85_spill] sm:$0xff] }
 0x417   : > { %v5753_v21 = vadd.f32 %v9972_v60, %v5664_v34  ;;  %v6019_v63 = vpop.f32.mrf.mxu0 }
 0x418   : > { %v6188_v6 = vadd.f32 %v6187_v3, %v6099_v11  ;;  %v9974_v3 = vld [vmem:[#allocation84_spill] sm:$0xff] }
 0x419   : > { %v5923_v50 = vpop.f32.mrf.mxu3  ;;  %v5667_v25 = vadd.f32 %v9974_v3, %v9973_v9  ;;  %v5842_v12 = vadd.f32 %v9975_v57, %v5753_v21  ;;  %v9977_v11 = vld [vmem:[#allocation4_spill] sm:$0xff] }
 0x41a   : > { %v6262_v13 = vadd.f32 %v6230_v30, %v6188_v6  ;;  %v5924_v62 = vadd.f32 %v5923_v50, %v5835_v22  ;;  %v9979_v6 = vld [vmem:[#allocation103_spill] sm:$0xff]  ;;  %v6234_v22 = vld [vmem:[%s7908_s8 + $0xe8] sm:$0xff] }
 0x41b   : > { %v5756_v46 = vadd.f32 %v9976_v20, %v5667_v25 }
 0x41c   : > { %6294 = vst [vmem:[%s7908_s8 + $0xc8] sm:$0xff] %v6262_v13  ;;  %v6013_v8 = vadd.f32 %v6012_v45, %v5924_v62 }
 0x41d   : > { %v5845_v33 = vadd.f32 %v9979_v6, %v5756_v46 }
 0x41e   : > { %v6102_v26 = vadd.f32 %v6101_v31, %v6013_v8  ;;  %v6108_v14 = vpop.f32.mrf.mxu1  ;;  %v6197_v32 = vpop.f32.mrf.mxu2 }
 0x41f   : > { %v6022_v30 = vpop.f32.mrf.mxu0 }
 0x420   : > { %v6191_v37 = vadd.f32 %v6190_v38, %v6102_v26  ;;  %v9978_v38 = vld [vmem:[#allocation87_spill] sm:$0xff] }
 0x421   : > { %v5925_v0 = vpop.f32.mrf.mxu3  ;;  %v5669_v40 = vadd.f32 %v9978_v38, %v9977_v11 }
 0x422   : > { %v6263_v27 = vadd.f32 %v6231_v49, %v6191_v37  ;;  %v5926_v16 = vadd.f32 %v5925_v0, %v5837_v2 }
 0x424   : > { %6295 = vst [vmem:[%s7908_s8 + $0xd0] sm:$0xff] %v6263_v27  ;;  %v6015_v36 = vadd.f32 %v6014_v51, %v5926_v16  ;;  %v5758_v51 = vadd.f32 %v9980_v18, %v5669_v40 }
 0x426   : > { %v6104_v53 = vadd.f32 %v6103_v17, %v6015_v36  ;;  %v5847_v37 = vadd.f32 %v9981_v61, %v5758_v51 }
 0x427   : > { %v6024_v0 = vpop.f32.mrf.mxu0 }
 0x428   : > { %v6193_v59 = vadd.f32 %v6192_v19, %v6104_v53  ;;  %v6236_v53 = vld [vmem:[%s7908_s8 + $0xf8] sm:$0xff] }
 0x429   : > { %v5928_v54 = vpop.f32.mrf.mxu3 }
 0x42a   : > { %v6264_v5 = vadd.f32 %v6232_v39, %v6193_v59  ;;  %v5929_v10 = vadd.f32 %v5928_v54, %v5840_v15 }
 0x42b   : > { %v6200_v26 = vpop.f32.mrf.mxu2 }
 0x42c   : > { %6296 = vst [vmem:[%s7908_s8 + $0xd8] sm:$0xff] %v6264_v5  ;;  %v6018_v4 = vadd.f32 %v6017_v23, %v5929_v10 }
 0x42e   : > { %v6107_v58 = vadd.f32 %v6106_v29, %v6018_v4  ;;  %v6111_v8 = vpop.f32.mrf.mxu1 }
 0x430   : > { %v6196_v1 = vadd.f32 %v6195_v55, %v6107_v58 }
 0x431   : > { %v5930_v48 = vpop.f32.mrf.mxu3 }
 0x432   : > { %v6265_v7 = vadd.f32 %v6233_v47, %v6196_v1  ;;  %v5931_v24 = vadd.f32 %v5930_v48, %v5842_v12 }
 0x433   : > { %v6202_v41 = vpop.f32.mrf.mxu2 }
 0x434   : > { %6297 = vst [vmem:[%s7908_s8 + $0xe0] sm:$0xff] %v6265_v7  ;;  %v6020_v45 = vadd.f32 %v6019_v63, %v5931_v24 }
 0x436   : > { %v6109_v31 = vadd.f32 %v6108_v14, %v6020_v45  ;;  %v6113_v16 = vpop.f32.mrf.mxu1 }
 0x438   : > { %v6198_v52 = vadd.f32 %v6197_v32, %v6109_v31 }
 0x439   : > { %v5933_v50 = vpop.f32.mrf.mxu3 }
 0x43a   : > { %v6266_v13 = vadd.f32 %v6234_v22, %v6198_v52  ;;  %v5934_v62 = vadd.f32 %v5933_v50, %v5845_v33 }
 0x43c   : > { %6298 = vst [vmem:[%s7908_s8 + $0xe8] sm:$0xff] %v6266_v13  ;;  %v6023_v43 = vadd.f32 %v6022_v30, %v5934_v62 }
 0x43e   : > { %v6112_v17 = vadd.f32 %v6111_v8, %v6023_v43 }
 0x440   : > { %v6201_v35 = vadd.f32 %v6200_v26, %v6112_v17 }
 0x441   : > { %v5935_v2 = vpop.f32.mrf.mxu3 }
 0x442   : > { %v6267_v19 = vadd.f32 %v6235_v42, %v6201_v35  ;;  %v5936_v49 = vadd.f32 %v5935_v2, %v5847_v37 }
 0x444   : > { %6299 = vst [vmem:[%s7908_s8 + $0xf0] sm:$0xff] %v6267_v19  ;;  %v6025_v27 = vadd.f32 %v6024_v0, %v5936_v49 }
 0x446   : > { %v6114_v36 = vadd.f32 %v6113_v16, %v6025_v27 }
 0x448   : > { %v6203_v56 = vadd.f32 %v6202_v41, %v6114_v36 }
 0x44a   : > { %v6268_v23 = vadd.f32 %v6236_v53, %v6203_v56 }
 0x44c   : > { %6300 = vst [vmem:[%s7908_s8 + $0xf8] sm:$0xff] %v6268_v23 }
 0x44d PF: > { %s17_s24 = sadd.s32 1, %s7689_s24  }
 0x44e   : > { %p14_p4 = scmp.ge.s32.totalorder %s17_s24, 4  }
 0x450   :  { %16 = sbr.rel (!%p14_p4) target bundleno = 1 (0x1), region = 80 }

</bundles_post_ra>
